<compile_context>
chip_gen: v5e
topology: v5e:2x2
jax: 0.10.0
libtpu: 0.0.40
codegen_flags: <defaults>
</compile_context>

<pallas_src>
import numpy as np
import jax
import jax.numpy as jnp
from jax.experimental import pallas as pl
from jax.experimental.pallas import tpu as pltpu


# ----------------------------------------------------------------------------
# Host-side packing: fold ReflectionPad2d + im2col + Conv2d into ONE dense
# matmul per layer on the flattened (H, W, C) channel-fastest activation.
# ----------------------------------------------------------------------------
def _reflect(t, n):
    if t < 0:
        return -t
    if t >= n:
        return 2 * (n - 1) - t
    return t


def _pack_dense_layer(w_oihw, Hin, Win, k, stride, pad):
    """Dense W of shape (Hin*Win*Cin, OH*OW*Cout) so that
       y_flat = x_flat @ W  equals ReflectionPad2d(pad) + Conv2d(k, stride)
       for x laid out (Hin, Win, Cin) row-major (channel fastest)."""
    w = np.asarray(w_oihw, dtype=np.float32)              # (Cout, Cin, k, k)
    Cout, Cin = w.shape[0], w.shape[1]
    OH = (Hin + 2 * pad - k) // stride + 1
    OW = (Win + 2 * pad - k) // stride + 1
    W = np.zeros((Hin * Win * Cin, OH * OW * Cout), np.float32)
    for oh in range(OH):
        for kh in range(k):
            ih = _reflect(stride * oh + kh - pad, Hin)
            for ow in range(OW):
                for kw in range(k):
                    iw = _reflect(stride * ow + kw - pad, Win)
                    r0 = (ih * Win + iw) * Cin
                    c0 = (oh * OW + ow) * Cout
                    # += : reflection can alias two taps onto one source pixel.
                    W[r0:r0 + Cin, c0:c0 + Cout] += w[:, :, kh, kw].T
    return W, OH, OW, Cout


# (name, k, stride, pad, use_bias, act, is_pred) — pad = (k-1)//2 as in PyTorch.
_LAYER_DEFS = [
    ("d1",  4, 2, 1, True,  "leaky",   False),
    ("d1p", 7, 1, 3, False, "sigmoid", True),
    ("d2",  4, 2, 1, True,  "leaky",   False),
    ("d2p", 7, 1, 3, False, "sigmoid", True),
    ("d3",  7, 2, 3, True,  "leaky",   False),
    ("d3p", 7, 1, 3, False, "sigmoid", True),
    ("d4",  4, 1, 1, True,  "leaky",   False),
    ("d4p", 5, 1, 2, False, "sigmoid", True),
]


def pack_network(params, H, W):
    """Returns (weights[bf16 dense mats], bias_slab(1,Ktot) f32, metas,
    pred_shapes, out_width)."""
    Hc, Wc, Cc = H, W, 1
    weights, metas, pred_shapes = [], [], []
    bias_chunks, bias_off = [], 0
    pred_off = 0
    for (name, k, s, p, use_b, act, is_pred) in _LAYER_DEFS:
        w = params[name + "_w"]
        assert w.shape[1] == Cc, f"channel mismatch at {name}"
        Wd, OH, OW, Cout = _pack_dense_layer(w, Hc, Wc, k, s, p)
        n_out = OH * OW * Cout
        meta = {"act": act, "is_pred": is_pred, "n_out": n_out,
                "has_bias": use_b, "bias_off": None, "pred_off": None}
        if use_b:
            meta["bias_off"] = bias_off
            bias_chunks.append(np.tile(np.asarray(params[name + "_b"],
                                                  np.float32), OH * OW))
            bias_off += n_out
        if is_pred:
            pred_off = ((pred_off + 127) // 128) * 128     # lane-align each map
            meta["pred_off"] = pred_off
            pred_shapes.append((OH, OW))
            pred_off += n_out
        else:
            Hc, Wc, Cc = OH, OW, Cout
        weights.append(jnp.asarray(Wd, jnp.bfloat16))
        metas.append(meta)
    bias_slab = jnp.asarray(np.concatenate(bias_chunks)[None, :], jnp.float32)
    out_width = ((pred_off + 127) // 128) * 128
    return weights, bias_slab, metas, pred_shapes, out_width


# ----------------------------------------------------------------------------
# Single fused Pallas kernel: abs -> 8 dense-matmul conv layers -> packed preds.
# ----------------------------------------------------------------------------
def _make_fused_kernel(metas):
    n_layers = len(metas)

    def kernel(x_ref, b_ref, *refs):
        w_refs = refs[:n_layers]
        out_ref = refs[n_layers]

        out_ref[...] = jnp.zeros_like(out_ref)             # deterministic padding
        cur = jnp.abs(x_ref[...]).astype(jnp.bfloat16)     # (B, H*W), Cin = 1

        for meta, w_ref in zip(metas, w_refs):
            acc = jnp.dot(cur, w_ref[...],
                          preferred_element_type=jnp.float32)
            if meta["has_bias"]:
                o = meta["bias_off"]
                acc = acc + b_ref[:, o:o + meta["n_out"]]  # f32 epilogue
            if meta["act"] == "leaky":
                act = jnp.where(acc >= 0.0, acc, 0.2 * acc)
            else:                                          # sigmoid head
                act = jax.nn.sigmoid(acc)
            if meta["is_pred"]:
                po = meta["pred_off"]
                out_ref[:, po:po + meta["n_out"]] = act    # lane-dense slab
            else:
                cur = act.astype(jnp.bfloat16)             # stays VMEM/vreg-resident

    return kernel


def disc_forward(x, weights, bias_slab, metas, pred_shapes, out_width):
    """x: (N, H, W).  Returns [ds1_pred, ds2_pred, ds3_pred, ds4_pred] in NCHW."""
    N, H, W = x.shape
    x_flat = x.reshape(N, H * W)
    kernel = _make_fused_kernel(metas)

    in_specs = [pl.BlockSpec(x_flat.shape, lambda i: (0, 0)),
                pl.BlockSpec(bias_slab.shape, lambda i: (0, 0))]
    for w in weights:
        in_specs.append(pl.BlockSpec(w.shape, lambda i: (0, 0)))

    out_shape = jax.ShapeDtypeStruct((N, out_width), jnp.float32)
    out_spec = pl.BlockSpec((N, out_width), lambda i: (0, 0))

    packed_out = pl.pallas_call(
        kernel,
        grid=(1,),                                         # batch folded into M
        in_specs=in_specs,
        out_specs=out_spec,
        out_shape=out_shape,
        compiler_params=pltpu.CompilerParams(
            dimension_semantics=("arbitrary",)),
    )(x_flat, bias_slab, *weights)

    preds = []
    pred_metas = [m for m in metas if m["is_pred"]]
    for meta, (oh, ow) in zip(pred_metas, pred_shapes):
        po, n = meta["pred_off"], meta["n_out"]
        preds.append(packed_out[:, po:po + n].reshape(N, 1, oh, ow))
    return preds


# ----------------------------------------------------------------------------
# Deterministic synthetic parameters (not a checkpoint load).
# ----------------------------------------------------------------------------
def init_params(key, conv_dim):
    cfgs = {
        "d1":  (conv_dim,     1,            4, True),
        "d1p": (1,            conv_dim,     7, False),
        "d2":  (conv_dim * 2, conv_dim,     4, True),
        "d2p": (1,            conv_dim * 2, 7, False),
        "d3":  (conv_dim * 4, conv_dim * 2, 7, True),
        "d3p": (1,            conv_dim * 4, 7, False),
        "d4":  (conv_dim * 8, conv_dim * 4, 4, True),
        "d4p": (1,            conv_dim * 8, 5, False),
    }
    params = {}
    keys = jax.random.split(key, 2 * len(cfgs))
    for idx, (name, (cout, cin, k, use_bias)) in enumerate(cfgs.items()):
        fan_in = cin * k * k
        params[name + "_w"] = jax.random.normal(
            keys[2 * idx], (cout, cin, k, k), jnp.float32) * (fan_in ** -0.5)
        params[name + "_b"] = (0.1 * jax.random.normal(
            keys[2 * idx + 1], (cout,), jnp.float32)) if use_bias else None
    return params


# ----------------------------------------------------------------------------
# Pure-JAX (XLA) reference used only for a numerical sanity check.
# ----------------------------------------------------------------------------
def reference_forward(x, params):
    def conv(h, w, b, s, p, act):
        hp = jnp.pad(h, ((0, 0), (0, 0), (p, p), (p, p)), mode="reflect")
        out = jax.lax.conv_general_dilated(
            hp, w, window_strides=(s, s), padding="VALID",
            dimension_numbers=("NCHW", "OIHW", "NCHW"),
            precision=jax.lax.Precision.HIGHEST)
        if b is not None:
            out = out + b.reshape(1, -1, 1, 1)
        return jnp.where(out >= 0, out, 0.2 * out) if act == "leaky" \
            else jax.nn.sigmoid(out)

    h = jnp.abs(x).astype(jnp.float32)[:, None]
    ds1 = conv(h,   params["d1_w"],  params["d1_b"], 2, 1, "leaky")
    p1  = conv(ds1, params["d1p_w"], None,           1, 3, "sigmoid")
    ds2 = conv(ds1, params["d2_w"],  params["d2_b"], 2, 1, "leaky")
    p2  = conv(ds2, params["d2p_w"], None,           1, 3, "sigmoid")
    ds3 = conv(ds2, params["d3_w"],  params["d3_b"], 2, 3, "leaky")
    p3  = conv(ds3, params["d3p_w"], None,           1, 3, "sigmoid")
    ds4 = conv(ds3, params["d4_w"],  params["d4_b"], 1, 1, "leaky")
    p4  = conv(ds4, params["d4p_w"], None,           1, 2, "sigmoid")
    return [p1, p2, p3, p4]


# ----------------------------------------------------------------------------
if __name__ == "__main__":
    conv_dim = 4
    N, H, W = 2, 32, 32            # module input is (N, H, W); channel added inside

    x = jax.random.normal(jax.random.PRNGKey(0), (N, H, W), jnp.float32)
    params = init_params(jax.random.PRNGKey(1), conv_dim)

    weights, bias_slab, metas, pred_shapes, out_width = pack_network(params, H, W)

    fwd = jax.jit(lambda inp, ws, bs: disc_forward(inp, ws, bs, metas,
                                                   pred_shapes, out_width))
    outs = fwd(x, weights, bias_slab)
    for o in outs:
        jax.block_until_ready(o)

    # Shape checks mirroring the PyTorch module.
    assert outs[0].shape == (N, 1, 16, 16)
    assert outs[1].shape == (N, 1, 8, 8)
    assert outs[2].shape == (N, 1, 4, 4)
    assert outs[3].shape == (N, 1, 3, 3)

    # Numerical check vs a pure-JAX f32 reference (bf16 MXU operands => ~1e-3).
    refs = reference_forward(x, params)
    for o, r in zip(outs, refs):
        err = float(jnp.max(jnp.abs(o - r)))
        assert err < 5e-2, f"mismatch vs reference: max|diff|={err}"

    print("KERNEL_OK")
</pallas_src>

<mosaic_0001>
module attributes {stable_mosaic.version = 11 : i64} {
  func.func @kernel(%arg0: i32, %arg1: memref<2x1024xf32, #tpu.memory_space<vmem>>, %arg2: memref<1x2080xf32, #tpu.memory_space<vmem>>, %arg3: memref<1024x1024xbf16, #tpu.memory_space<vmem>>, %arg4: memref<1024x256xbf16, #tpu.memory_space<vmem>>, %arg5: memref<1024x512xbf16, #tpu.memory_space<vmem>>, %arg6: memref<512x64xbf16, #tpu.memory_space<vmem>>, %arg7: memref<512x256xbf16, #tpu.memory_space<vmem>>, %arg8: memref<256x16xbf16, #tpu.memory_space<vmem>>, %arg9: memref<256x288xbf16, #tpu.memory_space<vmem>>, %arg10: memref<288x9xbf16, #tpu.memory_space<vmem>>, %arg11: memref<2x640xf32, #tpu.memory_space<vmem>>) attributes {dimension_semantics = [#tpu.dimension_semantics<arbitrary>], iteration_bounds = array<i64: 1>, scalar_prefetch = 0 : i64, scratch_operands = 0 : i64, tpu.core_type = #tpu.core_type<tc>, window_params = [{pipeline_mode = #tpu.pipeline_mode<synchronous>, transform_indices = @transform_0, window_bounds = array<i64: 2, 1024>}, {pipeline_mode = #tpu.pipeline_mode<synchronous>, transform_indices = @transform_1, window_bounds = array<i64: 1, 2080>}, {pipeline_mode = #tpu.pipeline_mode<synchronous>, transform_indices = @transform_2, window_bounds = array<i64: 1024, 1024>}, {pipeline_mode = #tpu.pipeline_mode<synchronous>, transform_indices = @transform_3, window_bounds = array<i64: 1024, 256>}, {pipeline_mode = #tpu.pipeline_mode<synchronous>, transform_indices = @transform_4, window_bounds = array<i64: 1024, 512>}, {pipeline_mode = #tpu.pipeline_mode<synchronous>, transform_indices = @transform_5, window_bounds = array<i64: 512, 64>}, {pipeline_mode = #tpu.pipeline_mode<synchronous>, transform_indices = @transform_6, window_bounds = array<i64: 512, 256>}, {pipeline_mode = #tpu.pipeline_mode<synchronous>, transform_indices = @transform_7, window_bounds = array<i64: 256, 16>}, {pipeline_mode = #tpu.pipeline_mode<synchronous>, transform_indices = @transform_8, window_bounds = array<i64: 256, 288>}, {pipeline_mode = #tpu.pipeline_mode<synchronous>, transform_indices = @transform_9, window_bounds = array<i64: 288, 9>}, {pipeline_mode = #tpu.pipeline_mode<synchronous>, transform_indices = @transform_10, window_bounds = array<i64: 2, 640>}]} {
    %cst = arith.constant 0.000000e+00 : f32
    %0 = vector.broadcast %cst : f32 to vector<2x640xf32>
    %c0 = arith.constant 0 : index
    %c0_0 = arith.constant 0 : index
    %1 = vector.load %arg11[%c0, %c0_0] : memref<2x640xf32, #tpu.memory_space<vmem>>, vector<2x640xf32>
    tpu.vector_store %arg11[%c0, %c0_0], %0 {strides = array<i32>} : memref<2x640xf32, #tpu.memory_space<vmem>>, vector<2x640xf32>,
    %c0_1 = arith.constant 0 : index
    %c0_2 = arith.constant 0 : index
    %2 = vector.load %arg1[%c0_1, %c0_2] : memref<2x1024xf32, #tpu.memory_space<vmem>>, vector<2x1024xf32>
    %3 = math.absf %2 : vector<2x1024xf32>
    %4 = arith.truncf %3 : vector<2x1024xf32> to vector<2x1024xbf16>
    %c0_3 = arith.constant 0 : index
    %c0_4 = arith.constant 0 : index
    %5 = vector.load %arg3[%c0_3, %c0_4] : memref<1024x1024xbf16, #tpu.memory_space<vmem>>, vector<1024x1024xbf16>
    %cst_5 = arith.constant dense<0.000000e+00> : vector<2x1024xf32>
    %6 = tpu.matmul %4, %5, %cst_5 {dimension_numbers = #tpu.dot_dimension_numbers<[1], [0], [0], [1], [0, 0, 1, 1], [], []>} : vector<2x1024xbf16>, vector<1024x1024xbf16>, vector<2x1024xf32> -> vector<2x1024xf32>
    %c0_6 = arith.constant 0 : index
    %c0_7 = arith.constant 0 : index
    %7 = vector.load %arg2[%c0_6, %c0_7] : memref<1x2080xf32, #tpu.memory_space<vmem>>, vector<1x1024xf32>
    %8 = vector.broadcast %7 : vector<1x1024xf32> to vector<2x1024xf32>
    %9 = arith.addf %6, %8 : vector<2x1024xf32>
    %cst_8 = arith.constant 0.000000e+00 : f32
    %10 = vector.broadcast %cst_8 : f32 to vector<2x1024xf32>
    %11 = arith.cmpf oge, %9, %10 : vector<2x1024xf32>
    %cst_9 = arith.constant 2.000000e-01 : f32
    %12 = vector.broadcast %cst_9 : f32 to vector<2x1024xf32>
    %13 = arith.mulf %12, %9 : vector<2x1024xf32>
    %14 = arith.select %11, %9, %13 : vector<2x1024xi1>, vector<2x1024xf32>
    %15 = arith.truncf %14 : vector<2x1024xf32> to vector<2x1024xbf16>
    %c0_10 = arith.constant 0 : index
    %c0_11 = arith.constant 0 : index
    %16 = vector.load %arg4[%c0_10, %c0_11] : memref<1024x256xbf16, #tpu.memory_space<vmem>>, vector<1024x256xbf16>
    %cst_12 = arith.constant dense<0.000000e+00> : vector<2x256xf32>
    %17 = tpu.matmul %15, %16, %cst_12 {dimension_numbers = #tpu.dot_dimension_numbers<[1], [0], [0], [1], [0, 0, 1, 1], [], []>} : vector<2x1024xbf16>, vector<1024x256xbf16>, vector<2x256xf32> -> vector<2x256xf32>
    %18 = arith.negf %17 : vector<2x256xf32>
    %19 = math.exp %18 : vector<2x256xf32>
    %cst_13 = arith.constant 1.000000e+00 : f32
    %20 = vector.broadcast %cst_13 : f32 to vector<2x256xf32>
    %21 = arith.addf %20, %19 : vector<2x256xf32>
    %22 = arith.divf %20, %21 : vector<2x256xf32>
    %c0_14 = arith.constant 0 : index
    %c0_15 = arith.constant 0 : index
    %23 = vector.load %arg11[%c0_14, %c0_15] : memref<2x640xf32, #tpu.memory_space<vmem>>, vector<2x256xf32>
    tpu.vector_store %arg11[%c0_14, %c0_15], %22 {strides = array<i32>} : memref<2x640xf32, #tpu.memory_space<vmem>>, vector<2x256xf32>,
    %c0_16 = arith.constant 0 : index
    %c0_17 = arith.constant 0 : index
    %24 = vector.load %arg5[%c0_16, %c0_17] : memref<1024x512xbf16, #tpu.memory_space<vmem>>, vector<1024x512xbf16>
    %cst_18 = arith.constant dense<0.000000e+00> : vector<2x512xf32>
    %25 = tpu.matmul %15, %24, %cst_18 {dimension_numbers = #tpu.dot_dimension_numbers<[1], [0], [0], [1], [0, 0, 1, 1], [], []>} : vector<2x1024xbf16>, vector<1024x512xbf16>, vector<2x512xf32> -> vector<2x512xf32>
    %c0_19 = arith.constant 0 : index
    %c1024 = arith.constant 1024 : index
    %26 = vector.load %arg2[%c0_19, %c1024] : memref<1x2080xf32, #tpu.memory_space<vmem>>, vector<1x512xf32>
    %27 = vector.broadcast %26 : vector<1x512xf32> to vector<2x512xf32>
    %28 = arith.addf %25, %27 : vector<2x512xf32>
    %cst_20 = arith.constant 0.000000e+00 : f32
    %29 = vector.broadcast %cst_20 : f32 to vector<2x512xf32>
    %30 = arith.cmpf oge, %28, %29 : vector<2x512xf32>
    %cst_21 = arith.constant 2.000000e-01 : f32
    %31 = vector.broadcast %cst_21 : f32 to vector<2x512xf32>
    %32 = arith.mulf %31, %28 : vector<2x512xf32>
    %33 = arith.select %30, %28, %32 : vector<2x512xi1>, vector<2x512xf32>
    %34 = arith.truncf %33 : vector<2x512xf32> to vector<2x512xbf16>
    %c0_22 = arith.constant 0 : index
    %c0_23 = arith.constant 0 : index
    %35 = vector.load %arg6[%c0_22, %c0_23] : memref<512x64xbf16, #tpu.memory_space<vmem>>, vector<512x64xbf16>
    %cst_24 = arith.constant dense<0.000000e+00> : vector<2x64xf32>
    %36 = tpu.matmul %34, %35, %cst_24 {dimension_numbers = #tpu.dot_dimension_numbers<[1], [0], [0], [1], [0, 0, 1, 1], [], []>} : vector<2x512xbf16>, vector<512x64xbf16>, vector<2x64xf32> -> vector<2x64xf32>
    %37 = arith.negf %36 : vector<2x64xf32>
    %38 = math.exp %37 : vector<2x64xf32>
    %cst_25 = arith.constant 1.000000e+00 : f32
    %39 = vector.broadcast %cst_25 : f32 to vector<2x64xf32>
    %40 = arith.addf %39, %38 : vector<2x64xf32>
    %41 = arith.divf %39, %40 : vector<2x64xf32>
    %c0_26 = arith.constant 0 : index
    %c256 = arith.constant 256 : index
    %42 = vector.load %arg11[%c0_26, %c256] : memref<2x640xf32, #tpu.memory_space<vmem>>, vector<2x64xf32>
    tpu.vector_store %arg11[%c0_26, %c256], %41 {strides = array<i32>} : memref<2x640xf32, #tpu.memory_space<vmem>>, vector<2x64xf32>,
    %c0_27 = arith.constant 0 : index
    %c0_28 = arith.constant 0 : index
    %43 = vector.load %arg7[%c0_27, %c0_28] : memref<512x256xbf16, #tpu.memory_space<vmem>>, vector<512x256xbf16>
    %cst_29 = arith.constant dense<0.000000e+00> : vector<2x256xf32>
    %44 = tpu.matmul %34, %43, %cst_29 {dimension_numbers = #tpu.dot_dimension_numbers<[1], [0], [0], [1], [0, 0, 1, 1], [], []>} : vector<2x512xbf16>, vector<512x256xbf16>, vector<2x256xf32> -> vector<2x256xf32>
    %c0_30 = arith.constant 0 : index
    %c1536 = arith.constant 1536 : index
    %45 = vector.load %arg2[%c0_30, %c1536] : memref<1x2080xf32, #tpu.memory_space<vmem>>, vector<1x256xf32>
    %46 = vector.broadcast %45 : vector<1x256xf32> to vector<2x256xf32>
    %47 = arith.addf %44, %46 : vector<2x256xf32>
    %cst_31 = arith.constant 0.000000e+00 : f32
    %48 = vector.broadcast %cst_31 : f32 to vector<2x256xf32>
    %49 = arith.cmpf oge, %47, %48 : vector<2x256xf32>
    %cst_32 = arith.constant 2.000000e-01 : f32
    %50 = vector.broadcast %cst_32 : f32 to vector<2x256xf32>
    %51 = arith.mulf %50, %47 : vector<2x256xf32>
    %52 = arith.select %49, %47, %51 : vector<2x256xi1>, vector<2x256xf32>
    %53 = arith.truncf %52 : vector<2x256xf32> to vector<2x256xbf16>
    %c0_33 = arith.constant 0 : index
    %c0_34 = arith.constant 0 : index
    %54 = vector.load %arg8[%c0_33, %c0_34] : memref<256x16xbf16, #tpu.memory_space<vmem>>, vector<256x16xbf16>
    %cst_35 = arith.constant dense<0.000000e+00> : vector<2x16xf32>
    %55 = tpu.matmul %53, %54, %cst_35 {dimension_numbers = #tpu.dot_dimension_numbers<[1], [0], [0], [1], [0, 0, 1, 1], [], []>} : vector<2x256xbf16>, vector<256x16xbf16>, vector<2x16xf32> -> vector<2x16xf32>
    %56 = arith.negf %55 : vector<2x16xf32>
    %57 = math.exp %56 : vector<2x16xf32>
    %cst_36 = arith.constant 1.000000e+00 : f32
    %58 = vector.broadcast %cst_36 : f32 to vector<2x16xf32>
    %59 = arith.addf %58, %57 : vector<2x16xf32>
    %60 = arith.divf %58, %59 : vector<2x16xf32>
    %c0_37 = arith.constant 0 : index
    %c384 = arith.constant 384 : index
    %61 = vector.load %arg11[%c0_37, %c384] : memref<2x640xf32, #tpu.memory_space<vmem>>, vector<2x16xf32>
    tpu.vector_store %arg11[%c0_37, %c384], %60 {strides = array<i32>} : memref<2x640xf32, #tpu.memory_space<vmem>>, vector<2x16xf32>,
    %c0_38 = arith.constant 0 : index
    %c0_39 = arith.constant 0 : index
    %62 = vector.load %arg9[%c0_38, %c0_39] : memref<256x288xbf16, #tpu.memory_space<vmem>>, vector<256x288xbf16>
    %cst_40 = arith.constant dense<0.000000e+00> : vector<2x288xf32>
    %63 = tpu.matmul %53, %62, %cst_40 {dimension_numbers = #tpu.dot_dimension_numbers<[1], [0], [0], [1], [0, 0, 1, 1], [], []>} : vector<2x256xbf16>, vector<256x288xbf16>, vector<2x288xf32> -> vector<2x288xf32>
    %c0_41 = arith.constant 0 : index
    %c1792 = arith.constant 1792 : index
    %64 = vector.load %arg2[%c0_41, %c1792] : memref<1x2080xf32, #tpu.memory_space<vmem>>, vector<1x288xf32>
    %65 = vector.broadcast %64 : vector<1x288xf32> to vector<2x288xf32>
    %66 = arith.addf %63, %65 : vector<2x288xf32>
    %cst_42 = arith.constant 0.000000e+00 : f32
    %67 = vector.broadcast %cst_42 : f32 to vector<2x288xf32>
    %68 = arith.cmpf oge, %66, %67 : vector<2x288xf32>
    %cst_43 = arith.constant 2.000000e-01 : f32
    %69 = vector.broadcast %cst_43 : f32 to vector<2x288xf32>
    %70 = arith.mulf %69, %66 : vector<2x288xf32>
    %71 = arith.select %68, %66, %70 : vector<2x288xi1>, vector<2x288xf32>
    %72 = arith.truncf %71 : vector<2x288xf32> to vector<2x288xbf16>
    %c0_44 = arith.constant 0 : index
    %c0_45 = arith.constant 0 : index
    %73 = vector.load %arg10[%c0_44, %c0_45] : memref<288x9xbf16, #tpu.memory_space<vmem>>, vector<288x9xbf16>
    %cst_46 = arith.constant dense<0.000000e+00> : vector<2x9xf32>
    %74 = tpu.matmul %72, %73, %cst_46 {dimension_numbers = #tpu.dot_dimension_numbers<[1], [0], [0], [1], [0, 0, 1, 1], [], []>} : vector<2x288xbf16>, vector<288x9xbf16>, vector<2x9xf32> -> vector<2x9xf32>
    %75 = arith.negf %74 : vector<2x9xf32>
    %76 = math.exp %75 : vector<2x9xf32>
    %cst_47 = arith.constant 1.000000e+00 : f32
    %77 = vector.broadcast %cst_47 : f32 to vector<2x9xf32>
    %78 = arith.addf %77, %76 : vector<2x9xf32>
    %79 = arith.divf %77, %78 : vector<2x9xf32>
    %c0_48 = arith.constant 0 : index
    %c512 = arith.constant 512 : index
    %80 = vector.load %arg11[%c0_48, %c512] : memref<2x640xf32, #tpu.memory_space<vmem>>, vector<2x9xf32>
    tpu.vector_store %arg11[%c0_48, %c512], %79 {strides = array<i32>} : memref<2x640xf32, #tpu.memory_space<vmem>>, vector<2x9xf32>,
    return
  }
  func.func @transform_0(%arg0: i32) -> (i32, i32) {
    %c0_i32 = arith.constant 0 : i32
    %c0_i32_0 = arith.constant 0 : i32
    %c0_i32_1 = arith.constant 0 : i32
    return %c0_i32, %c0_i32_0 : i32, i32
  }
  func.func @transform_1(%arg0: i32) -> (i32, i32) {
    %c0_i32 = arith.constant 0 : i32
    %c0_i32_0 = arith.constant 0 : i32
    %c0_i32_1 = arith.constant 0 : i32
    return %c0_i32, %c0_i32_0 : i32, i32
  }
  func.func @transform_2(%arg0: i32) -> (i32, i32) {
    %c0_i32 = arith.constant 0 : i32
    %c0_i32_0 = arith.constant 0 : i32
    %c0_i32_1 = arith.constant 0 : i32
    return %c0_i32, %c0_i32_0 : i32, i32
  }
  func.func @transform_3(%arg0: i32) -> (i32, i32) {
    %c0_i32 = arith.constant 0 : i32
    %c0_i32_0 = arith.constant 0 : i32
    %c0_i32_1 = arith.constant 0 : i32
    return %c0_i32, %c0_i32_0 : i32, i32
  }
  func.func @transform_4(%arg0: i32) -> (i32, i32) {
    %c0_i32 = arith.constant 0 : i32
    %c0_i32_0 = arith.constant 0 : i32
    %c0_i32_1 = arith.constant 0 : i32
    return %c0_i32, %c0_i32_0 : i32, i32
  }
  func.func @transform_5(%arg0: i32) -> (i32, i32) {
    %c0_i32 = arith.constant 0 : i32
    %c0_i32_0 = arith.constant 0 : i32
    %c0_i32_1 = arith.constant 0 : i32
    return %c0_i32, %c0_i32_0 : i32, i32
  }
  func.func @transform_6(%arg0: i32) -> (i32, i32) {
    %c0_i32 = arith.constant 0 : i32
    %c0_i32_0 = arith.constant 0 : i32
    %c0_i32_1 = arith.constant 0 : i32
    return %c0_i32, %c0_i32_0 : i32, i32
  }
  func.func @transform_7(%arg0: i32) -> (i32, i32) {
    %c0_i32 = arith.constant 0 : i32
    %c0_i32_0 = arith.constant 0 : i32
    %c0_i32_1 = arith.constant 0 : i32
    return %c0_i32, %c0_i32_0 : i32, i32
  }
  func.func @transform_8(%arg0: i32) -> (i32, i32) {
    %c0_i32 = arith.constant 0 : i32
    %c0_i32_0 = arith.constant 0 : i32
    %c0_i32_1 = arith.constant 0 : i32
    return %c0_i32, %c0_i32_0 : i32, i32
  }
  func.func @transform_9(%arg0: i32) -> (i32, i32) {
    %c0_i32 = arith.constant 0 : i32
    %c0_i32_0 = arith.constant 0 : i32
    %c0_i32_1 = arith.constant 0 : i32
    return %c0_i32, %c0_i32_0 : i32, i32
  }
  func.func @transform_10(%arg0: i32) -> (i32, i32) {
    %c0_i32 = arith.constant 0 : i32
    %c0_i32_0 = arith.constant 0 : i32
    %c0_i32_1 = arith.constant 0 : i32
    return %c0_i32, %c0_i32_0 : i32, i32
  }
}

</mosaic_0001>

<bundles_post_ra>
// kernel: _lambda_.1
= control target key start
LH: loop header
LB: loop body
LE: loop exit
PB: predicated region body
PF: predicated region fallthrough
CT: control target
= control target key end

     0   :  { %15 = vsyncpa [#allocation3], 0  ;;  %s15289_s0 = inlined_call_operand.vmem [shape: f32[2,1024], index: 0, kind: input, shape index: {}]   ;;  %s15290_s1 = inlined_call_operand.hbm [shape: f32[1,2080], index: 1, kind: input, shape index: {}]   ;;  %s15291_s2 = inlined_call_operand.hbm [shape: bf16[1024,1024], index: 2, kind: input, shape index: {}]   ;;  %s15292_s3 = inlined_call_operand.hbm [shape: bf16[1024,256], index: 3, kind: input, shape index: {}]   ;;  %s15293_s4 = inlined_call_operand.hbm [shape: bf16[1024,512], index: 4, kind: input, shape index: {}]   ;;  %s15294_s5 = inlined_call_operand.vmem [shape: bf16[512,64], index: 5, kind: input, shape index: {}]   ;;  %s15295_s6 = inlined_call_operand.hbm [shape: bf16[512,256], index: 6, kind: input, shape index: {}]   ;;  %s15296_s7 = inlined_call_operand.vmem [shape: bf16[256,16], index: 7, kind: input, shape index: {}]   ;;  %s15297_s8 = inlined_call_operand.vmem [shape: bf16[256,288], index: 8, kind: input, shape index: {}]   ;;  %s15298_s9 = inlined_call_operand.vmem [shape: bf16[288,9], index: 9, kind: input, shape index: {}]   ;;  %s15299_s10 = inlined_call_operand.vmem [shape: f32[2,640], index: 10, kind: output, shape index: {}]  }
   0x1   :  { %16 = vsyncpa [#allocation5], 0  ;;  %s35_s15 = sshll.u32 %s15291_s2, 4  ;;  %s36_s15 = int_to_ptr.hbm [resolvable:$true] %s35_s15 }
   0x2   :  { %17 = vsyncpa [#allocation8], 0  ;;  %s14277_s16 = smov [#allocation4]   ;;  %s61_s20 = sshll.u32 %s15293_s4, 4  ;;  %s62_s20 = int_to_ptr.hbm [resolvable:$true] %s61_s20 }
   0x3   :  { %s37_s17 = sshll.u32 %s14277_s16, 4  ;;  %s14278_s21 = smov 512   ;;  %s38_s17 = int_to_ptr.vmem [resolvable:$true] %s37_s17 }
   0x4   :  { %s14279_s22 = smov 32   ;;  %s14280_s23 = smov [#allocation7]  }
   0x5   :  { %43 = dma.hbm_to_vmem [thread:$0]  %s36_s15, 65536, %s38_s17, [#allocation5], %s14278_s21, %s14278_s21, %s14279_s22  }
   0x6   :  { %s63_s24 = sshll.u32 %s14280_s23, 4  ;;  %s14281_s25 = smov 256   ;;  %s64_s24 = int_to_ptr.vmem [resolvable:$true] %s63_s24 }
   0x7   :  { %s14282_s26 = smov 16   ;;  %s25_s28 = sshll.u32 %s15290_s1, 4  ;;  %s26_s28 = int_to_ptr.hbm [resolvable:$true] %s25_s28 }
   0x8   :  { %69 = dma.hbm_to_vmem [thread:$0]  %s62_s20, 32768, %s64_s24, [#allocation8], %s14281_s25, %s14281_s25, %s14282_s26  }
   0x9   :  { %s14283_s29 = smov [#allocation2]   ;;  %s48_s12 = sshll.u32 %s15292_s3, 4  ;;  %s49_s12 = int_to_ptr.hbm [resolvable:$true] %s48_s12 }
   0xa   :  { %s27_s30 = sshll.u32 %s14283_s29, 4  ;;  %s14284_s13 = smov [#allocation6]   ;;  %s28_s30 = int_to_ptr.vmem [resolvable:$true] %s27_s30 }
   0xb   :  { %30 = dma.hbm_to_vmem [thread:$0]  %s26_s28, 272, %s28_s30, [#allocation3]  }
   0xc   :  { %s50_s14 = sshll.u32 %s14284_s13, 4  ;;  %s14285_s15 = smov 128   ;;  %s51_s14 = int_to_ptr.vmem [resolvable:$true] %s50_s14 }
   0xd   :  { %s14286_s16 = smov 8   ;;  %s76_s1 = sshll.u32 %s15295_s6, 4  ;;  %s77_s1 = int_to_ptr.hbm [resolvable:$true] %s76_s1 }
   0xe   :  { %56 = dma.hbm_to_vmem [thread:$0]  %s49_s12, 16384, %s51_s14, [#allocation5], %s14285_s15, %s14285_s15, %s14286_s16  }
   0xf   :  { %s14287_s19 = smov [#allocation9]  }
  0x10   :  { %s78_s20 = sshll.u32 %s14287_s19, 4  ;;  %s79_s20 = int_to_ptr.vmem [resolvable:$true] %s78_s20 }
  0x11   :  { %84 = dma.hbm_to_vmem [thread:$0]  %s77_s1, 8192, %s79_s20, [#allocation8], %s14285_s15, %s14285_s15, %s14286_s16  }
  0x12   :  { %14271 = dma.done.wait [#allocation3], 272  }
  0x13   :  { %14272 = vsyncadd [#allocation3], 4294967024 }
  0x14   :  { %14273 = dma.done.wait [#allocation5], 81920  }
  0x15   :  { %14274 = vsyncadd [#allocation5], 4294885376 }
  0x16   :  { %14275 = dma.done.wait [#allocation8], 40960  }
  0x17   :  { %14276 = vsyncadd [#allocation8], 4294926336  ;;  %v8965_v0 = vld [vmem:[#allocation4 + $0x1c0] sm:$0xf] }
  0x18   :  { %v13101_v1 = vld [vmem:[#allocation4 + $0x1dc] sm:$0xf0] }
  0x19   :  { %v9221_v2 = vld [vmem:[#allocation4 + $0x3c0] sm:$0xf]  ;;  %v8966_v3 = vor.u32 %v13101_v1, %v8965_v0 }
  0x1a   :  { %v13165_v4 = vld [vmem:[#allocation4 + $0x3dc] sm:$0xf0] }
  0x1b   :  { %v9477_v5 = vld [vmem:[#allocation4 + $0x5c0] sm:$0xf]  ;;  %v9222_v7 = vor.u32 %v13165_v4, %v9221_v2  ;;  %3237 = vmatpush.bf16.msra.mxu0 %v8966_v3 }
  0x1c   :  { %v13229_v6 = vld [vmem:[#allocation4 + $0x5dc] sm:$0xf0] }
  0x1d   :  { %v9478_v8 = vor.u32 %v13229_v6, %v9477_v5  ;;  %v9733_v9 = vld [vmem:[#allocation4 + $0x7c0] sm:$0xf]  ;;  %3250 = vmatpush.bf16.msra.mxu1 %v9222_v7 }
  0x1e   :  { %v13293_v10 = vld [vmem:[#allocation4 + $0x7dc] sm:$0xf0] }
  0x1f   :  { %v8933_v11 = vld [vmem:[#allocation4 + $0x180] sm:$0xf]  ;;  %v9734_v12 = vor.u32 %v13293_v10, %v9733_v9  ;;  %3263 = vmatpush.bf16.msra.mxu2 %v9478_v8 }
  0x20   :  { %v13093_v13 = vld [vmem:[#allocation4 + $0x19c] sm:$0xf0] }
  0x21   :  { %v9189_v14 = vld [vmem:[#allocation4 + $0x380] sm:$0xf]  ;;  %v8934_v16 = vor.u32 %v13093_v13, %v8933_v11  ;;  %3276 = vmatpush.bf16.msra.mxu3 %v9734_v12 }
  0x22   :  { %v13157_v15 = vld [vmem:[#allocation4 + $0x39c] sm:$0xf0] }
  0x23   :  { %v9190_v17 = vor.u32 %v13157_v15, %v9189_v14  ;;  %v9445_v18 = vld [vmem:[#allocation4 + $0x580] sm:$0xf]  ;;  %3238 = vmatpush.bf16.msra.mxu0 %v8934_v16 }
  0x24   :  { %v13221_v19 = vld [vmem:[#allocation4 + $0x59c] sm:$0xf0] }
  0x25   :  { %v9701_v20 = vld [vmem:[#allocation4 + $0x780] sm:$0xf]  ;;  %v9446_v21 = vor.u32 %v13221_v19, %v9445_v18  ;;  %3251 = vmatpush.bf16.msra.mxu1 %v9190_v17 }
  0x26   :  { %v13285_v22 = vld [vmem:[#allocation4 + $0x79c] sm:$0xf0] }
  0x27   :  { %v8901_v23 = vld [vmem:[#allocation4 + $0x140] sm:$0xf]  ;;  %v9702_v25 = vor.u32 %v13285_v22, %v9701_v20  ;;  %3264 = vmatpush.bf16.msra.mxu2 %v9446_v21 }
  0x28   :  { %v13085_v24 = vld [vmem:[#allocation4 + $0x15c] sm:$0xf0] }
  0x29   :  { %v9157_v26 = vld [vmem:[#allocation4 + $0x340] sm:$0xf]  ;;  %v8902_v29 = vor.u32 %v13085_v24, %v8901_v23  ;;  %3277 = vmatpush.bf16.msra.mxu3 %v9702_v25 }
  0x2a   :  { %v13149_v27 = vld [vmem:[#allocation4 + $0x35c] sm:$0xf0] }
  0x2b   :  { %v9413_v28 = vld [vmem:[#allocation4 + $0x540] sm:$0xf]  ;;  %v9158_v33 = vor.u32 %v13149_v27, %v9157_v26  ;;  %3239 = vmatpush.bf16.msra.mxu0 %v8902_v29 }
  0x2c   :  { %v13213_v30 = vld [vmem:[#allocation4 + $0x55c] sm:$0xf0] }
  0x2d   :  { %v9669_v31 = vld [vmem:[#allocation4 + $0x740] sm:$0xf]  ;;  %v9414_v34 = vor.u32 %v13213_v30, %v9413_v28  ;;  %3252 = vmatpush.bf16.msra.mxu1 %v9158_v33 }
  0x2e   :  { %v13277_v32 = vld [vmem:[#allocation4 + $0x75c] sm:$0xf0] }
  0x2f   :  { %v8869_v35 = vld [vmem:[#allocation4 + $0x100] sm:$0xf]  ;;  %v9670_v38 = vor.u32 %v13277_v32, %v9669_v31  ;;  %3265 = vmatpush.bf16.msra.mxu2 %v9414_v34 }
  0x30   :  { %v13077_v36 = vld [vmem:[#allocation4 + $0x11c] sm:$0xf0] }
  0x31   :  { %v9125_v37 = vld [vmem:[#allocation4 + $0x300] sm:$0xf]  ;;  %v8870_v44 = vor.u32 %v13077_v36, %v8869_v35  ;;  %3278 = vmatpush.bf16.msra.mxu3 %v9670_v38 }
  0x32   :  { %v13141_v39 = vld [vmem:[#allocation4 + $0x31c] sm:$0xf0] }
  0x33   :  { %v9381_v40 = vld [vmem:[#allocation4 + $0x500] sm:$0xf]  ;;  %v9126_v45 = vor.u32 %v13141_v39, %v9125_v37  ;;  %3240 = vmatpush.bf16.msra.mxu0 %v8870_v44 }
  0x34   :  { %v13205_v41 = vld [vmem:[#allocation4 + $0x51c] sm:$0xf0] }
  0x35   :  { %v9637_v42 = vld [vmem:[#allocation4 + $0x700] sm:$0xf]  ;;  %v9382_v46 = vor.u32 %v13205_v41, %v9381_v40  ;;  %3253 = vmatpush.bf16.msra.mxu1 %v9126_v45 }
  0x36   :  { %v13269_v43 = vld [vmem:[#allocation4 + $0x71c] sm:$0xf0] }
  0x37   :  { %v8837_v47 = vld [vmem:[#allocation4 + $0xc0] sm:$0xf]  ;;  %v9638_v50 = vor.u32 %v13269_v43, %v9637_v42  ;;  %3266 = vmatpush.bf16.msra.mxu2 %v9382_v46 }
  0x38   :  { %v13069_v48 = vld [vmem:[#allocation4 + $0xdc] sm:$0xf0] }
  0x39   :  { %v9093_v49 = vld [vmem:[#allocation4 + $0x2c0] sm:$0xf]  ;;  %v8838_v56 = vor.u32 %v13069_v48, %v8837_v47  ;;  %3279 = vmatpush.bf16.msra.mxu3 %v9638_v50 }
  0x3a   :  { %v13133_v51 = vld [vmem:[#allocation4 + $0x2dc] sm:$0xf0] }
  0x3b   :  { %v9349_v52 = vld [vmem:[#allocation4 + $0x4c0] sm:$0xf]  ;;  %v9094_v57 = vor.u32 %v13133_v51, %v9093_v49  ;;  %3241 = vmatpush.bf16.msra.mxu0 %v8838_v56 }
  0x3c   :  { %v13197_v53 = vld [vmem:[#allocation4 + $0x4dc] sm:$0xf0] }
  0x3d   :  { %v9605_v54 = vld [vmem:[#allocation4 + $0x6c0] sm:$0xf]  ;;  %v9350_v58 = vor.u32 %v13197_v53, %v9349_v52  ;;  %3254 = vmatpush.bf16.msra.mxu1 %v9094_v57 }
  0x3e   :  { %v13261_v55 = vld [vmem:[#allocation4 + $0x6dc] sm:$0xf0] }
  0x3f   :  { %v8805_v59 = vld [vmem:[#allocation4 + $0x80] sm:$0xf]  ;;  %v9606_v62 = vor.u32 %v13261_v55, %v9605_v54  ;;  %3267 = vmatpush.bf16.msra.mxu2 %v9350_v58 }
  0x40   :  { %v13061_v60 = vld [vmem:[#allocation4 + $0x9c] sm:$0xf0] }
  0x41   :  { %v9061_v61 = vld [vmem:[#allocation4 + $0x280] sm:$0xf]  ;;  %v8806_v4 = vor.u32 %v13061_v60, %v8805_v59  ;;  %3280 = vmatpush.bf16.msra.mxu3 %v9606_v62  ;;  %v114_v59 = vld [vmem:[%s15289_s0] sm:$0xff] }
  0x42   :  { %v13125_v63 = vld [vmem:[#allocation4 + $0x29c] sm:$0xf0] }
  0x43   :  { %v9317_v0 = vld [vmem:[#allocation4 + $0x480] sm:$0xf]  ;;  %v9062_v5 = vor.u32 %v13125_v63, %v9061_v61  ;;  %3242 = vmatpush.bf16.msra.mxu0 %v8806_v4  ;;  %v116_v63 = vand.u32 2147483647, %v114_v59 }
  0x44   :  { %v13189_v1 = vld [vmem:[#allocation4 + $0x49c] sm:$0xf0] }
  0x45   :  { %v9573_v2 = vld [vmem:[#allocation4 + $0x680] sm:$0xf]  ;;  %v9318_v6 = vor.u32 %v13189_v1, %v9317_v0  ;;  %3255 = vmatpush.bf16.msra.mxu1 %v9062_v5  ;;  %120 = vst [vmem:[#allocation1] ss:$4 sm:$0xff] %v116_v63 }
  0x46   :  { %v13253_v3 = vld [vmem:[#allocation4 + $0x69c] sm:$0xf0] }
  0x47   :  { %v8773_v7 = vld [vmem:[#allocation4 + $0x40] sm:$0xf]  ;;  %v9574_v10 = vor.u32 %v13253_v3, %v9573_v2  ;;  %3268 = vmatpush.bf16.msra.mxu2 %v9318_v6 }
  0x48   :  { %v13053_v8 = vld [vmem:[#allocation4 + $0x5c] sm:$0xf0] }
  0x49   :  { %v9029_v9 = vld [vmem:[#allocation4 + $0x240] sm:$0xf]  ;;  %v8774_v16 = vor.u32 %v13053_v8, %v8773_v7  ;;  %3281 = vmatpush.bf16.msra.mxu3 %v9574_v10 }
  0x4a   :  { %v13117_v11 = vld [vmem:[#allocation4 + $0x25c] sm:$0xf0] }
  0x4b   :  { %v9285_v12 = vld [vmem:[#allocation4 + $0x440] sm:$0xf]  ;;  %v9030_v19 = vor.u32 %v13117_v11, %v9029_v9  ;;  %3243 = vmatpush.bf16.msra.mxu0 %v8774_v16 }
  0x4c   :  { %v13181_v13 = vld [vmem:[#allocation4 + $0x45c] sm:$0xf0] }
  0x4d   :  { %v9541_v14 = vld [vmem:[#allocation4 + $0x640] sm:$0xf]  ;;  %v9286_v20 = vor.u32 %v13181_v13, %v9285_v12  ;;  %3256 = vmatpush.bf16.msra.mxu1 %v9030_v19 }
  0x4e   :  { %v13245_v15 = vld [vmem:[#allocation4 + $0x65c] sm:$0xf0] }
  0x4f   :  { %v8741_v17 = vld [vmem:[#allocation4] sm:$0xf]  ;;  %v9542_v24 = vor.u32 %v13245_v15, %v9541_v14  ;;  %3269 = vmatpush.bf16.msra.mxu2 %v9286_v20 }
  0x50   :  { %v13045_v18 = vld [vmem:[#allocation4 + $0x1c] sm:$0xf0] }
  0x51   :  { %v8997_v21 = vld [vmem:[#allocation4 + $0x200] sm:$0xf]  ;;  %v8742_v31 = vor.u32 %v13045_v18, %v8741_v17  ;;  %3282 = vmatpush.bf16.msra.mxu3 %v9542_v24 }
  0x52   :  { %v13109_v22 = vld [vmem:[#allocation4 + $0x21c] sm:$0xf0] }
  0x53   :  { %v9253_v23 = vld [vmem:[#allocation4 + $0x400] sm:$0xf]  ;;  %v8998_v35 = vor.u32 %v13109_v22, %v8997_v21  ;;  %3244 = vmatpush.bf16.msra.mxu0 %v8742_v31 }
  0x54   :  { %v13173_v25 = vld [vmem:[#allocation4 + $0x41c] sm:$0xf0] }
  0x55   :  { %v9509_v26 = vld [vmem:[#allocation4 + $0x600] sm:$0xf]  ;;  %v9254_v36 = vor.u32 %v13173_v25, %v9253_v23  ;;  %3257 = vmatpush.bf16.msra.mxu1 %v8998_v35 }
  0x56   :  { %v13237_v27 = vld [vmem:[#allocation4 + $0x61c] sm:$0xf0] }
  0x57   :  { %v9989_v28 = vld [vmem:[#allocation4 + $0x9c0] sm:$0xf]  ;;  %v9510_v39 = vor.u32 %v13237_v27, %v9509_v26  ;;  %3270 = vmatpush.bf16.msra.mxu2 %v9254_v36  ;;  %v125_v26 = vld.sshfl [vmem:[#allocation1 + $0x10] sm:$0xff pattern:$0x73625140] }
  0x58   :  { %v13357_v29 = vld [vmem:[#allocation4 + $0x9dc] sm:$0xf0]  ;;  %v123_v27 = vld.sshfl [vmem:[#allocation1] sm:$0xff pattern:$0x73625140] }
  0x59   :  { %v10245_v30 = vld [vmem:[#allocation4 + $0xbc0] sm:$0xf]  ;;  %v9990_v40 = vor.u32 %v13357_v29, %v9989_v28  ;;  %3283 = vmatpush.bf16.msra.mxu3 %v9510_v39  ;;  %v14364_v31 = vpack.c.bf16 %v123_v27, %v123_v27 }
  0x5a   :  { %v13421_v32 = vld [vmem:[#allocation4 + $0xbdc] sm:$0xf0] }
  0x5b   :  { %v10501_v33 = vld [vmem:[#allocation4 + $0xdc0] sm:$0xf]  ;;  %v10246_v41 = vor.u32 %v13421_v32, %v10245_v30  ;;  %3289 = vmatpush.bf16.msrb.mxu0 %v9990_v40  ;;  %v14362_v30 = vpack.c.bf16 %v125_v26, %v125_v26 }
  0x5c   :  { %v13485_v34 = vld [vmem:[#allocation4 + $0xddc] sm:$0xf0]  ;;  %3245 = vmatmul.bf16.vlgmr.msra.gmra.mxu0 %v14364_v31 }
  0x5d   :  { %v10757_v37 = vld [vmem:[#allocation4 + $0xfc0] sm:$0xf]  ;;  %v10502_v42 = vor.u32 %v13485_v34, %v10501_v33  ;;  %3302 = vmatpush.bf16.msrb.mxu1 %v10246_v41  ;;  %v124_v33 = vld.sshfl [vmem:[#allocation1 + $0x8] sm:$0xff pattern:$0x73625140]  ;;  %3271 = vmatmul.bf16.vlgmr.msra.gmra.mxu2 %v14362_v30 }
  0x5e   :  { %v13549_v38 = vld [vmem:[#allocation4 + $0xfdc] sm:$0xf0]  ;;  %v14368_v39 = vpack.c.bf16 %v124_v33, %v124_v33 }
  0x5f   :  { %v9957_v43 = vld [vmem:[#allocation4 + $0x980] sm:$0xf]  ;;  %v10758_v46 = vor.u32 %v13549_v38, %v10757_v37  ;;  %3315 = vmatpush.bf16.msrb.mxu2 %v10502_v42 }
  0x60   :  { %v13349_v44 = vld [vmem:[#allocation4 + $0x99c] sm:$0xf0]  ;;  %3258 = vmatmul.bf16.vlgmr.msra.gmra.mxu1 %v14368_v39 }
  0x61   :  { %v10213_v45 = vld [vmem:[#allocation4 + $0xb80] sm:$0xf]  ;;  %v9958_v52 = vor.u32 %v13349_v44, %v9957_v43  ;;  %3328 = vmatpush.bf16.msrb.mxu3 %v10758_v46 }
  0x62   :  { %v13413_v47 = vld [vmem:[#allocation4 + $0xb9c] sm:$0xf0] }
  0x63   :  { %v10469_v48 = vld [vmem:[#allocation4 + $0xd80] sm:$0xf]  ;;  %v10214_v55 = vor.u32 %v13413_v47, %v10213_v45  ;;  %3290 = vmatpush.bf16.msrb.mxu0 %v9958_v52 }
  0x64   :  { %v13477_v49 = vld [vmem:[#allocation4 + $0xd9c] sm:$0xf0] }
  0x65   :  { %v10725_v50 = vld [vmem:[#allocation4 + $0xf80] sm:$0xf]  ;;  %v10470_v56 = vor.u32 %v13477_v49, %v10469_v48  ;;  %3303 = vmatpush.bf16.msrb.mxu1 %v10214_v55 }
  0x66   :  { %v13541_v51 = vld [vmem:[#allocation4 + $0xf9c] sm:$0xf0] }
  0x67   :  { %v9925_v53 = vld [vmem:[#allocation4 + $0x940] sm:$0xf]  ;;  %v10726_v60 = vor.u32 %v13541_v51, %v10725_v50  ;;  %3316 = vmatpush.bf16.msrb.mxu2 %v10470_v56 }
  0x68   :  { %v13341_v54 = vld [vmem:[#allocation4 + $0x95c] sm:$0xf0] }
  0x69   :  { %v10181_v57 = vld [vmem:[#allocation4 + $0xb40] sm:$0xf]  ;;  %v9926_v2 = vor.u32 %v13341_v54, %v9925_v53  ;;  %3329 = vmatpush.bf16.msrb.mxu3 %v10726_v60 }
  0x6a   :  { %v13405_v58 = vld [vmem:[#allocation4 + $0xb5c] sm:$0xf0] }
  0x6b   :  { %v10437_v61 = vld [vmem:[#allocation4 + $0xd40] sm:$0xf]  ;;  %v10182_v3 = vor.u32 %v13405_v58, %v10181_v57  ;;  %3291 = vmatpush.bf16.msrb.mxu0 %v9926_v2  ;;  %v115_v57 = vld [vmem:[%s15289_s0 + $0x8] sm:$0xff] }
  0x6c   :  { %v13469_v62 = vld [vmem:[#allocation4 + $0xd5c] sm:$0xf0]  ;;  %v117_v60 = vand.u32 2147483647, %v115_v57 }
  0x6d   :  { %v10693_v0 = vld [vmem:[#allocation4 + $0xf40] sm:$0xf]  ;;  %v10438_v4 = vor.u32 %v13469_v62, %v10437_v61  ;;  %3304 = vmatpush.bf16.msrb.mxu1 %v10182_v3 }
  0x6e   :  { %v13533_v1 = vld [vmem:[#allocation4 + $0xf5c] sm:$0xf0]  ;;  %122 = vst [vmem:[#allocation1 + $0x20] ss:$4 sm:$0xff] %v117_v60  ;;  %v8871_v60 = vld [vmem:[#allocation4 + $0x120] sm:$0xf0] }
  0x6f   :  { %v9893_v5 = vld [vmem:[#allocation4 + $0x900] sm:$0xf]  ;;  %v10694_v8 = vor.u32 %v13533_v1, %v10693_v0  ;;  %3317 = vmatpush.bf16.msrb.mxu2 %v10438_v4 }
  0x70   :  { %v13333_v6 = vld [vmem:[#allocation4 + $0x91c] sm:$0xf0] }
  0x71   :  { %v10149_v7 = vld [vmem:[#allocation4 + $0xb00] sm:$0xf]  ;;  %v9894_v14 = vor.u32 %v13333_v6, %v9893_v5  ;;  %3330 = vmatpush.bf16.msrb.mxu3 %v10694_v8  ;;  %v13097_v8 = vld [vmem:[#allocation4 + $0x1c4] sm:$0xf] }
  0x72   :  { %v13397_v9 = vld [vmem:[#allocation4 + $0xb1c] sm:$0xf0] }
  0x73   :  { %v10405_v10 = vld [vmem:[#allocation4 + $0xd00] sm:$0xf]  ;;  %v10150_v17 = vor.u32 %v13397_v9, %v10149_v7  ;;  %3292 = vmatpush.bf16.msrb.mxu0 %v9894_v14  ;;  %v8967_v9 = vld [vmem:[#allocation4 + $0x1e0] sm:$0xf0] }
  0x74   :  { %v13461_v11 = vld [vmem:[#allocation4 + $0xd1c] sm:$0xf0]  ;;  %v9479_v14 = vld [vmem:[#allocation4 + $0x5e0] sm:$0xf0] }
  0x75   :  { %v10661_v12 = vld [vmem:[#allocation4 + $0xf00] sm:$0xf]  ;;  %v10406_v18 = vor.u32 %v13461_v11, %v10405_v10  ;;  %3305 = vmatpush.bf16.msrb.mxu1 %v10150_v17  ;;  %v13161_v10 = vld [vmem:[#allocation4 + $0x3c4] sm:$0xf] }
  0x76   :  { %v13525_v13 = vld [vmem:[#allocation4 + $0xf1c] sm:$0xf0]  ;;  %v9223_v11 = vld [vmem:[#allocation4 + $0x3e0] sm:$0xf0] }
  0x77   :  { %v9861_v15 = vld [vmem:[#allocation4 + $0x8c0] sm:$0xf]  ;;  %v10662_v22 = vor.u32 %v13525_v13, %v10661_v12  ;;  %3318 = vmatpush.bf16.msrb.mxu2 %v10406_v18  ;;  %v13225_v13 = vld [vmem:[#allocation4 + $0x5c4] sm:$0xf]  ;;  %v9226_v26 = vor.u32 %v13161_v10, %v9223_v11 }
  0x78   :  { %v13325_v16 = vld [vmem:[#allocation4 + $0x8dc] sm:$0xf0]  ;;  %v9735_v18 = vld [vmem:[#allocation4 + $0x7e0] sm:$0xf0]  ;;  %v9482_v27 = vor.u32 %v13225_v13, %v9479_v14 }
  0x79   :  { %v10117_v19 = vld [vmem:[#allocation4 + $0xac0] sm:$0xf]  ;;  %v9862_v28 = vor.u32 %v13325_v16, %v9861_v15  ;;  %3331 = vmatpush.bf16.msrb.mxu3 %v10662_v22  ;;  %v13289_v15 = vld [vmem:[#allocation4 + $0x7c4] sm:$0xf]  ;;  %v8970_v22 = vor.u32 %v13097_v8, %v8967_v9 }
  0x7a   :  { %v13389_v20 = vld [vmem:[#allocation4 + $0xadc] sm:$0xf0]  ;;  %v9738_v33 = vor.u32 %v13289_v15, %v9735_v18  ;;  %v8839_v8 = vld [vmem:[#allocation4 + $0xe0] sm:$0xf0] }
  0x7b   :  { %v10373_v21 = vld [vmem:[#allocation4 + $0xcc0] sm:$0xf]  ;;  %v10118_v29 = vor.u32 %v13389_v20, %v10117_v19  ;;  %3293 = vmatpush.bf16.msrb.mxu0 %v9862_v28  ;;  %v13089_v19 = vld [vmem:[#allocation4 + $0x184] sm:$0xf] }
  0x7c   :  { %v13453_v23 = vld [vmem:[#allocation4 + $0xcdc] sm:$0xf0]  ;;  %v8935_v20 = vld [vmem:[#allocation4 + $0x1a0] sm:$0xf0] }
  0x7d   :  { %v10629_v24 = vld [vmem:[#allocation4 + $0xec0] sm:$0xf]  ;;  %v10374_v34 = vor.u32 %v13453_v23, %v10373_v21  ;;  %3306 = vmatpush.bf16.msrb.mxu1 %v10118_v29  ;;  %v13153_v23 = vld [vmem:[#allocation4 + $0x384] sm:$0xf] }
  0x7e   :  { %v13517_v25 = vld [vmem:[#allocation4 + $0xedc] sm:$0xf0]  ;;  %v9447_v28 = vld [vmem:[#allocation4 + $0x5a0] sm:$0xf0] }
  0x7f   :  { %v126_v32 = vld.sshfl [vmem:[#allocation1 + $0x18] sm:$0xff pattern:$0x73625140]  ;;  %v10630_v40 = vor.u32 %v13517_v25, %v10629_v24  ;;  %3319 = vmatpush.bf16.msrb.mxu2 %v10374_v34  ;;  %v129_v34 = vld.sshfl [vmem:[#allocation1 + $0x30] sm:$0xff pattern:$0x73625140] }
  0x80   :  { %v9829_v35 = vld [vmem:[#allocation4 + $0x880] sm:$0xf]  ;;  %v14366_v38 = vpack.c.bf16 %v126_v32, %v126_v32  ;;  %v9191_v24 = vld [vmem:[#allocation4 + $0x3a0] sm:$0xf0] }
  0x81   :  { %v13317_v36 = vld [vmem:[#allocation4 + $0x89c] sm:$0xf0]  ;;  %3332 = vmatpush.bf16.msrb.mxu3 %v10630_v40  ;;  %v13217_v25 = vld [vmem:[#allocation4 + $0x584] sm:$0xf] }
  0x82   :  { %v10085_v37 = vld [vmem:[#allocation4 + $0xa80] sm:$0xf]  ;;  %3284 = vmatmul.bf16.vlgmr.msra.gmra.mxu3 %v14366_v38  ;;  %v9830_v46 = vor.u32 %v13317_v36, %v9829_v35  ;;  %v13281_v29 = vld [vmem:[#allocation4 + $0x784] sm:$0xf]  ;;  %v14377_v36 = vpack.c.bf16 %v129_v34, %v129_v34 }
  0x83   :  { %v13381_v41 = vld [vmem:[#allocation4 + $0xa9c] sm:$0xf0]  ;;  %v9703_v32 = vld [vmem:[#allocation4 + $0x7a0] sm:$0xf0] }
  0x84   :  { %v10341_v42 = vld [vmem:[#allocation4 + $0xc80] sm:$0xf]  ;;  %v10086_v49 = vor.u32 %v13381_v41, %v10085_v37  ;;  %3294 = vmatpush.bf16.msrb.mxu0 %v9830_v46  ;;  %v127_v35 = vld.sshfl [vmem:[#allocation1 + $0x20] sm:$0xff pattern:$0x73625140]  ;;  %v9450_v46 = vor.u32 %v13217_v25, %v9447_v28 }
  0x85   :  { %v13445_v43 = vld [vmem:[#allocation4 + $0xc9c] sm:$0xf0]  ;;  %v14379_v37 = vpack.c.bf16 %v127_v35, %v127_v35  ;;  %v128_v41 = vld.sshfl [vmem:[#allocation1 + $0x28] sm:$0xff pattern:$0x73625140] }
  0x86   :  { %v10597_v44 = vld [vmem:[#allocation4 + $0xe80] sm:$0xf]  ;;  %v10342_v50 = vor.u32 %v13445_v43, %v10341_v42  ;;  %3307 = vmatpush.bf16.msrb.mxu1 %v10086_v49  ;;  %v8938_v42 = vor.u32 %v13089_v19, %v8935_v20  ;;  %v13145_v49 = vld [vmem:[#allocation4 + $0x344] sm:$0xf] }
  0x87   :  { %v13509_v45 = vld [vmem:[#allocation4 + $0xe9c] sm:$0xf0]  ;;  %v13129_v9 = vld [vmem:[#allocation4 + $0x2c4] sm:$0xf] }
  0x88   :  { %v9797_v47 = vld [vmem:[#allocation4 + $0x840] sm:$0xf]  ;;  %v10598_v54 = vor.u32 %v13509_v45, %v10597_v44  ;;  %3320 = vmatpush.bf16.msrb.mxu2 %v10342_v50  ;;  %v14383_v44 = vpack.c.bf16 %v128_v41, %v128_v41  ;;  %v9194_v45 = vor.u32 %v13153_v23, %v9191_v24  ;;  %v9706_v50 = vor.u32 %v13281_v29, %v9703_v32  ;;  %v9095_v11 = vld [vmem:[#allocation4 + $0x2e0] sm:$0xf0] }
  0x89   :  { %v13309_v48 = vld [vmem:[#allocation4 + $0x85c] sm:$0xf0]  ;;  %v9351_v13 = vld [vmem:[#allocation4 + $0x4e0] sm:$0xf0] }
  0x8a   :  { %v10053_v51 = vld [vmem:[#allocation4 + $0xa40] sm:$0xf]  ;;  %v9798_v61 = vor.u32 %v13309_v48, %v9797_v47  ;;  %3333 = vmatpush.bf16.msrb.mxu3 %v10598_v54  ;;  %v13081_v47 = vld [vmem:[#allocation4 + $0x144] sm:$0xf] }
  0x8b   :  { %v13373_v52 = vld [vmem:[#allocation4 + $0xa5c] sm:$0xf0]  ;;  %v8903_v48 = vld [vmem:[#allocation4 + $0x160] sm:$0xf0] }
  0x8c   :  { %v10309_v53 = vld [vmem:[#allocation4 + $0xc40] sm:$0xf]  ;;  %v10054_v1 = vor.u32 %v13373_v52, %v10053_v51  ;;  %3295 = vmatpush.bf16.msrb.mxu0 %v9798_v61  ;;  %v9159_v51 = vld [vmem:[#allocation4 + $0x360] sm:$0xf0] }
  0x8d   :  { %v13437_v55 = vld [vmem:[#allocation4 + $0xc5c] sm:$0xf0]  ;;  %v13209_v52 = vld [vmem:[#allocation4 + $0x544] sm:$0xf]  ;;  %v9162_v57 = vor.u32 %v13145_v49, %v9159_v51 }
  0x8e   :  { %v10565_v56 = vld [vmem:[#allocation4 + $0xe40] sm:$0xf]  ;;  %v10310_v2 = vor.u32 %v13437_v55, %v10309_v53  ;;  %3308 = vmatpush.bf16.msrb.mxu1 %v10054_v1  ;;  %v9415_v53 = vld [vmem:[#allocation4 + $0x560] sm:$0xf0] }
  0x8f   :  { %v13501_v58 = vld [vmem:[#allocation4 + $0xe5c] sm:$0xf0]  ;;  %v13273_v54 = vld [vmem:[#allocation4 + $0x744] sm:$0xf] }
  0x90   :  { %v9765_v59 = vld [vmem:[#allocation4 + $0x800] sm:$0xf]  ;;  %v10566_v5 = vor.u32 %v13501_v58, %v10565_v56  ;;  %3321 = vmatpush.bf16.msrb.mxu2 %v10310_v2  ;;  %v9671_v55 = vld [vmem:[#allocation4 + $0x760] sm:$0xf0]  ;;  %v8906_v56 = vor.u32 %v13081_v47, %v8903_v48  ;;  %v9418_v58 = vor.u32 %v13209_v52, %v9415_v53 }
  0x91   :  { %v13301_v62 = vld [vmem:[#allocation4 + $0x81c] sm:$0xf0]  ;;  %v13137_v61 = vld [vmem:[#allocation4 + $0x304] sm:$0xf] }
  0x92   :  { %v10021_v63 = vld [vmem:[#allocation4 + $0xa00] sm:$0xf]  ;;  %v9766_v12 = vor.u32 %v13301_v62, %v9765_v59  ;;  %3334 = vmatpush.bf16.msrb.mxu3 %v10566_v5  ;;  %v13073_v59 = vld [vmem:[#allocation4 + $0x104] sm:$0xf]  ;;  %v9674_v62 = vor.u32 %v13273_v54, %v9671_v55 }
  0x93   :  { %v13365_v0 = vld [vmem:[#allocation4 + $0xa1c] sm:$0xf0]  ;;  %v9383_v1 = vld [vmem:[#allocation4 + $0x520] sm:$0xf0] }
  0x94   :  { %v10277_v3 = vld [vmem:[#allocation4 + $0xc00] sm:$0xf]  ;;  %v10022_v16 = vor.u32 %v13365_v0, %v10021_v63  ;;  %3296 = vmatpush.bf16.msrb.mxu0 %v9766_v12  ;;  %v9127_v63 = vld [vmem:[#allocation4 + $0x320] sm:$0xf0] }
  0x95   :  { %v13429_v4 = vld [vmem:[#allocation4 + $0xc1c] sm:$0xf0]  ;;  %v13201_v0 = vld [vmem:[#allocation4 + $0x504] sm:$0xf]  ;;  %v9130_v5 = vor.u32 %v13137_v61, %v9127_v63 }
  0x96   :  { %v10533_v6 = vld [vmem:[#allocation4 + $0xe00] sm:$0xf]  ;;  %v10278_v17 = vor.u32 %v13429_v4, %v10277_v3  ;;  %3309 = vmatpush.bf16.msrb.mxu1 %v10022_v16  ;;  %v13265_v2 = vld [vmem:[#allocation4 + $0x704] sm:$0xf]  ;;  %v8874_v4 = vor.u32 %v13073_v59, %v8871_v60 }
  0x97   :  { %v13493_v7 = vld [vmem:[#allocation4 + $0xe1c] sm:$0xf0]  ;;  %3297 = vmatmul.bf16.vlgmr.msrb.gmra.mxu0 %v14379_v37  ;;  %v9639_v3 = vld [vmem:[#allocation4 + $0x720] sm:$0xf0] }
  0x98   :  { %v10534_v21 = vor.u32 %v13493_v7, %v10533_v6  ;;  %3322 = vmatpush.bf16.msrb.mxu2 %v10278_v17  ;;  %v130_v40 = vld.sshfl [vmem:[#allocation1 + $0x38] sm:$0xff pattern:$0x73625140]  ;;  %3341 = vmatpush.bf16.msra.mxu0 %v8970_v22  ;;  %v9386_v6 = vor.u32 %v13201_v0, %v9383_v1  ;;  %v9642_v10 = vor.u32 %v13265_v2, %v9639_v3 }
  0x99   :  { %v14381_v43 = vpack.c.bf16 %v130_v40, %v130_v40  ;;  %3310 = vmatmul.bf16.vlgmr.msrb.gmra.mxu1 %v14383_v44  ;;  %v13065_v7 = vld [vmem:[#allocation4 + $0xc4] sm:$0xf]  ;;  %v9098_v17 = vor.u32 %v13129_v9, %v9095_v11 }
  0x9a   :  { %3335 = vmatpush.bf16.msrb.mxu3 %v10534_v21  ;;  %3354 = vmatpush.bf16.msra.mxu1 %v9226_v26  ;;  %v13193_v12 = vld [vmem:[#allocation4 + $0x4c4] sm:$0xf]  ;;  %v8842_v16 = vor.u32 %v13065_v7, %v8839_v8 }
  0x9b   :  { %3323 = vmatmul.bf16.vlgmr.msrb.gmra.mxu2 %v14377_v36  ;;  %v13257_v14 = vld [vmem:[#allocation4 + $0x6c4] sm:$0xf]  ;;  %v9354_v18 = vor.u32 %v13193_v12, %v9351_v13 }
  0x9c   :  { %3367 = vmatpush.bf16.msra.mxu2 %v9482_v27  ;;  %3342 = vmatpush.bf16.msra.mxu0 %v8938_v42  ;;  %v9607_v15 = vld [vmem:[#allocation4 + $0x6e0] sm:$0xf0] }
  0x9d   :  { %3336 = vmatmul.bf16.vlgmr.msrb.gmra.mxu3 %v14381_v43  ;;  %v13057_v19 = vld [vmem:[#allocation4 + $0x84] sm:$0xf]  ;;  %v9610_v22 = vor.u32 %v13257_v14, %v9607_v15 }
  0x9e   :  { %3380 = vmatpush.bf16.msra.mxu3 %v9738_v33  ;;  %3355 = vmatpush.bf16.msra.mxu1 %v9194_v45  ;;  %v8807_v20 = vld [vmem:[#allocation4 + $0xa0] sm:$0xf0] }
  0x9f   :  { %v13121_v21 = vld [vmem:[#allocation4 + $0x284] sm:$0xf]  ;;  %v8810_v28 = vor.u32 %v13057_v19, %v8807_v20 }
  0xa0   :  { %3368 = vmatpush.bf16.msra.mxu2 %v9450_v46  ;;  %3343 = vmatpush.bf16.msra.mxu0 %v8906_v56  ;;  %v9063_v23 = vld [vmem:[#allocation4 + $0x2a0] sm:$0xf0] }
  0xa1   :  { %v13185_v24 = vld [vmem:[#allocation4 + $0x484] sm:$0xf]  ;;  %v9066_v29 = vor.u32 %v13121_v21, %v9063_v23 }
  0xa2   :  { %3381 = vmatpush.bf16.msra.mxu3 %v9706_v50  ;;  %3356 = vmatpush.bf16.msra.mxu1 %v9162_v57  ;;  %v9319_v25 = vld [vmem:[#allocation4 + $0x4a0] sm:$0xf0] }
  0xa3   :  { %v13249_v26 = vld [vmem:[#allocation4 + $0x684] sm:$0xf]  ;;  %v9322_v32 = vor.u32 %v13185_v24, %v9319_v25 }
  0xa4   :  { %3369 = vmatpush.bf16.msra.mxu2 %v9418_v58  ;;  %3344 = vmatpush.bf16.msra.mxu0 %v8874_v4  ;;  %v9575_v27 = vld [vmem:[#allocation4 + $0x6a0] sm:$0xf0] }
  0xa5   :  { %v13049_v33 = vld [vmem:[#allocation4 + $0x44] sm:$0xf]  ;;  %v9578_v40 = vor.u32 %v13249_v26, %v9575_v27 }
  0xa6   :  { %3382 = vmatpush.bf16.msra.mxu3 %v9674_v62  ;;  %3357 = vmatpush.bf16.msra.mxu1 %v9130_v5  ;;  %v8775_v34 = vld [vmem:[#allocation4 + $0x60] sm:$0xf0] }
  0xa7   :  { %v13113_v35 = vld [vmem:[#allocation4 + $0x244] sm:$0xf]  ;;  %v8778_v48 = vor.u32 %v13049_v33, %v8775_v34 }
  0xa8   :  { %3370 = vmatpush.bf16.msra.mxu2 %v9386_v6  ;;  %3345 = vmatpush.bf16.msra.mxu0 %v8842_v16  ;;  %v9031_v41 = vld [vmem:[#allocation4 + $0x260] sm:$0xf0] }
  0xa9   :  { %v13177_v42 = vld [vmem:[#allocation4 + $0x444] sm:$0xf]  ;;  %v9034_v51 = vor.u32 %v13113_v35, %v9031_v41 }
  0xaa   :  { %3383 = vmatpush.bf16.msra.mxu3 %v9642_v10  ;;  %3358 = vmatpush.bf16.msra.mxu1 %v9098_v17  ;;  %v9287_v45 = vld [vmem:[#allocation4 + $0x460] sm:$0xf0] }
  0xab   :  { %v13241_v46 = vld [vmem:[#allocation4 + $0x644] sm:$0xf]  ;;  %v9290_v52 = vor.u32 %v13177_v42, %v9287_v45 }
  0xac   :  { %3371 = vmatpush.bf16.msra.mxu2 %v9354_v18  ;;  %v9543_v47 = vld [vmem:[#allocation4 + $0x660] sm:$0xf0]  ;;  %3346 = vmatpush.bf16.msra.mxu0 %v8810_v28 }
  0xad   :  { %v13041_v49 = vld [vmem:[#allocation4 + $0x4] sm:$0xf]  ;;  %v9546_v56 = vor.u32 %v13241_v46, %v9543_v47 }
  0xae   :  { %3384 = vmatpush.bf16.msra.mxu3 %v9610_v22  ;;  %v8743_v50 = vld [vmem:[#allocation4 + $0x20] sm:$0xf0]  ;;  %3359 = vmatpush.bf16.msra.mxu1 %v9066_v29 }
  0xaf   :  { %v13105_v53 = vld [vmem:[#allocation4 + $0x204] sm:$0xf]  ;;  %v8746_v63 = vor.u32 %v13041_v49, %v8743_v50 }
  0xb0   :  { %3372 = vmatpush.bf16.msra.mxu2 %v9322_v32  ;;  %v8999_v54 = vld [vmem:[#allocation4 + $0x220] sm:$0xf0]  ;;  %3347 = vmatpush.bf16.msra.mxu0 %v8778_v48 }
  0xb1   :  { %v13169_v55 = vld [vmem:[#allocation4 + $0x404] sm:$0xf]  ;;  %v9002_v3 = vor.u32 %v13105_v53, %v8999_v54 }
  0xb2   :  { %3385 = vmatpush.bf16.msra.mxu3 %v9578_v40  ;;  %v9255_v57 = vld [vmem:[#allocation4 + $0x420] sm:$0xf0]  ;;  %3360 = vmatpush.bf16.msra.mxu1 %v9034_v51 }
  0xb3   :  { %v13233_v58 = vld [vmem:[#allocation4 + $0x604] sm:$0xf]  ;;  %v9258_v4 = vor.u32 %v13169_v55, %v9255_v57 }
  0xb4   :  { %v9511_v59 = vld [vmem:[#allocation4 + $0x620] sm:$0xf0]  ;;  %3373 = vmatpush.bf16.msra.mxu2 %v9290_v52  ;;  %3348 = vmatpush.bf16.msra.mxu0 %v8746_v63 }
  0xb5   :  { %v13353_v60 = vld [vmem:[#allocation4 + $0x9c4] sm:$0xf]  ;;  %v9514_v7 = vor.u32 %v13233_v58, %v9511_v59 }
  0xb6   :  { %v9991_v61 = vld [vmem:[#allocation4 + $0x9e0] sm:$0xf0]  ;;  %3386 = vmatpush.bf16.msra.mxu3 %v9546_v56  ;;  %3361 = vmatpush.bf16.msra.mxu1 %v9002_v3 }
  0xb7   :  { %v13417_v62 = vld [vmem:[#allocation4 + $0xbc4] sm:$0xf]  ;;  %v9994_v8 = vor.u32 %v13353_v60, %v9991_v61  ;;  %3349 = vmatmul.bf16.vlgmr.msra.gmra.mxu0 %v14364_v31 }
  0xb8   :  { %v10247_v0 = vld [vmem:[#allocation4 + $0xbe0] sm:$0xf0]  ;;  %3374 = vmatpush.bf16.msra.mxu2 %v9258_v4 }
  0xb9   :  { %v13481_v1 = vld [vmem:[#allocation4 + $0xdc4] sm:$0xf]  ;;  %v10250_v9 = vor.u32 %v13417_v62, %v10247_v0  ;;  %3393 = vmatpush.bf16.msrb.mxu0 %v9994_v8  ;;  %3362 = vmatmul.bf16.vlgmr.msra.gmra.mxu1 %v14368_v39 }
  0xba   :  { %v10503_v2 = vld [vmem:[#allocation4 + $0xde0] sm:$0xf0]  ;;  %3387 = vmatpush.bf16.msra.mxu3 %v9514_v7 }
  0xbb   :  { %v13545_v5 = vld [vmem:[#allocation4 + $0xfc4] sm:$0xf]  ;;  %v10506_v10 = vor.u32 %v13481_v1, %v10503_v2  ;;  %3406 = vmatpush.bf16.msrb.mxu1 %v10250_v9  ;;  %3375 = vmatmul.bf16.vlgmr.msra.gmra.mxu2 %v14362_v30 }
  0xbc   :  { %v10759_v6 = vld [vmem:[#allocation4 + $0xfe0] sm:$0xf0] }
  0xbd   :  { %v13345_v11 = vld [vmem:[#allocation4 + $0x984] sm:$0xf]  ;;  %v10762_v14 = vor.u32 %v13545_v5, %v10759_v6  ;;  %3419 = vmatpush.bf16.msrb.mxu2 %v10506_v10  ;;  %3388 = vmatmul.bf16.vlgmr.msra.gmra.mxu3 %v14366_v38 }
  0xbe   :  { %v9959_v12 = vld [vmem:[#allocation4 + $0x9a0] sm:$0xf0] }
  0xbf   :  { %v13409_v13 = vld [vmem:[#allocation4 + $0xb84] sm:$0xf]  ;;  %v9962_v20 = vor.u32 %v13345_v11, %v9959_v12  ;;  %3432 = vmatpush.bf16.msrb.mxu3 %v10762_v14 }
  0xc0   :  { %v10215_v15 = vld [vmem:[#allocation4 + $0xba0] sm:$0xf0] }
  0xc1   :  { %v13473_v16 = vld [vmem:[#allocation4 + $0xd84] sm:$0xf]  ;;  %v10218_v21 = vor.u32 %v13409_v13, %v10215_v15  ;;  %3394 = vmatpush.bf16.msrb.mxu0 %v9962_v20 }
  0xc2   :  { %v10471_v17 = vld [vmem:[#allocation4 + $0xda0] sm:$0xf0] }
  0xc3   :  { %v13537_v18 = vld [vmem:[#allocation4 + $0xf84] sm:$0xf]  ;;  %v10474_v22 = vor.u32 %v13473_v16, %v10471_v17  ;;  %3407 = vmatpush.bf16.msrb.mxu1 %v10218_v21 }
  0xc4   :  { %v10727_v19 = vld [vmem:[#allocation4 + $0xfa0] sm:$0xf0] }
  0xc5   :  { %v13337_v23 = vld [vmem:[#allocation4 + $0x944] sm:$0xf]  ;;  %v10730_v26 = vor.u32 %v13537_v18, %v10727_v19  ;;  %3420 = vmatpush.bf16.msrb.mxu2 %v10474_v22 }
  0xc6   :  { %v9927_v24 = vld [vmem:[#allocation4 + $0x960] sm:$0xf0] }
  0xc7   :  { %v13401_v25 = vld [vmem:[#allocation4 + $0xb44] sm:$0xf]  ;;  %v9930_v34 = vor.u32 %v13337_v23, %v9927_v24  ;;  %3433 = vmatpush.bf16.msrb.mxu3 %v10730_v26 }
  0xc8   :  { %v10183_v27 = vld [vmem:[#allocation4 + $0xb60] sm:$0xf0] }
  0xc9   :  { %v13465_v28 = vld [vmem:[#allocation4 + $0xd44] sm:$0xf]  ;;  %v10186_v35 = vor.u32 %v13401_v25, %v10183_v27  ;;  %3395 = vmatpush.bf16.msrb.mxu0 %v9930_v34 }
  0xca   :  { %v10439_v29 = vld [vmem:[#allocation4 + $0xd60] sm:$0xf0] }
  0xcb   :  { %v13529_v32 = vld [vmem:[#allocation4 + $0xf44] sm:$0xf]  ;;  %v10442_v40 = vor.u32 %v13465_v28, %v10439_v29  ;;  %3408 = vmatpush.bf16.msrb.mxu1 %v10186_v35 }
  0xcc   :  { %v10695_v33 = vld [vmem:[#allocation4 + $0xf60] sm:$0xf0] }
  0xcd   :  { %v13329_v41 = vld [vmem:[#allocation4 + $0x904] sm:$0xf]  ;;  %v10698_v46 = vor.u32 %v13529_v32, %v10695_v33  ;;  %3421 = vmatpush.bf16.msrb.mxu2 %v10442_v40 }
  0xce   :  { %v9895_v42 = vld [vmem:[#allocation4 + $0x920] sm:$0xf0] }
  0xcf   :  { %v13393_v45 = vld [vmem:[#allocation4 + $0xb04] sm:$0xf]  ;;  %v9898_v52 = vor.u32 %v13329_v41, %v9895_v42  ;;  %3434 = vmatpush.bf16.msrb.mxu3 %v10698_v46  ;;  %v8973_v42 = vld [vmem:[#allocation4 + $0x1c8] sm:$0xf] }
  0xd0   :  { %v10151_v47 = vld [vmem:[#allocation4 + $0xb20] sm:$0xf0]  ;;  %v9229_v46 = vld [vmem:[#allocation4 + $0x3c8] sm:$0xf] }
  0xd1   :  { %v13457_v48 = vld [vmem:[#allocation4 + $0xd04] sm:$0xf]  ;;  %v10154_v53 = vor.u32 %v13393_v45, %v10151_v47  ;;  %3396 = vmatpush.bf16.msrb.mxu0 %v9898_v52  ;;  %v13102_v45 = vld [vmem:[#allocation4 + $0x1e4] sm:$0xf0] }
  0xd2   :  { %v10407_v49 = vld [vmem:[#allocation4 + $0xd20] sm:$0xf0] }
  0xd3   :  { %v13521_v50 = vld [vmem:[#allocation4 + $0xf04] sm:$0xf]  ;;  %v10410_v54 = vor.u32 %v13457_v48, %v10407_v49  ;;  %3409 = vmatpush.bf16.msrb.mxu1 %v10154_v53  ;;  %v13166_v48 = vld [vmem:[#allocation4 + $0x3e4] sm:$0xf0] }
  0xd4   :  { %v10663_v51 = vld [vmem:[#allocation4 + $0xf20] sm:$0xf0]  ;;  %v9485_v49 = vld [vmem:[#allocation4 + $0x5c8] sm:$0xf] }
  0xd5   :  { %v13321_v55 = vld [vmem:[#allocation4 + $0x8c4] sm:$0xf]  ;;  %v10666_v58 = vor.u32 %v13521_v50, %v10663_v51  ;;  %3422 = vmatpush.bf16.msrb.mxu2 %v10410_v54  ;;  %v13230_v50 = vld [vmem:[#allocation4 + $0x5e4] sm:$0xf0] }
  0xd6   :  { %v9863_v56 = vld [vmem:[#allocation4 + $0x8e0] sm:$0xf0]  ;;  %v9741_v53 = vld [vmem:[#allocation4 + $0x7c8] sm:$0xf] }
  0xd7   :  { %v13385_v57 = vld [vmem:[#allocation4 + $0xac4] sm:$0xf]  ;;  %v9866_v0 = vor.u32 %v13321_v55, %v9863_v56  ;;  %3435 = vmatpush.bf16.msrb.mxu3 %v10666_v58  ;;  %v13294_v54 = vld [vmem:[#allocation4 + $0x7e4] sm:$0xf0]  ;;  %v8974_v56 = vor.u32 %v13102_v45, %v8973_v42  ;;  %v9486_v58 = vor.u32 %v13230_v50, %v9485_v49 }
  0xd8   :  { %v10119_v59 = vld [vmem:[#allocation4 + $0xae0] sm:$0xf0]  ;;  %v9357_v42 = vld [vmem:[#allocation4 + $0x4c8] sm:$0xf] }
  0xd9   :  { %v13449_v60 = vld [vmem:[#allocation4 + $0xcc4] sm:$0xf]  ;;  %v10122_v1 = vor.u32 %v13385_v57, %v10119_v59  ;;  %3397 = vmatpush.bf16.msrb.mxu0 %v9866_v0  ;;  %v9230_v57 = vor.u32 %v13166_v48, %v9229_v46  ;;  %v8941_v59 = vld [vmem:[#allocation4 + $0x188] sm:$0xf] }
  0xda   :  { %v10375_v61 = vld [vmem:[#allocation4 + $0xce0] sm:$0xf0]  ;;  %v9453_v0 = vld [vmem:[#allocation4 + $0x588] sm:$0xf] }
  0xdb   :  { %v13513_v62 = vld [vmem:[#allocation4 + $0xec4] sm:$0xf]  ;;  %v10378_v2 = vor.u32 %v13449_v60, %v10375_v61  ;;  %3410 = vmatpush.bf16.msrb.mxu1 %v10122_v1  ;;  %v13094_v60 = vld [vmem:[#allocation4 + $0x1a4] sm:$0xf0] }
  0xdc   :  { %v10631_v63 = vld [vmem:[#allocation4 + $0xee0] sm:$0xf0]  ;;  %v9197_v61 = vld [vmem:[#allocation4 + $0x388] sm:$0xf] }
  0xdd   :  { %v13313_v3 = vld [vmem:[#allocation4 + $0x884] sm:$0xf]  ;;  %v10634_v6 = vor.u32 %v13513_v62, %v10631_v63  ;;  %3423 = vmatpush.bf16.msrb.mxu2 %v10378_v2  ;;  %v9742_v62 = vor.u32 %v13294_v54, %v9741_v53  ;;  %v13158_v63 = vld [vmem:[#allocation4 + $0x3a4] sm:$0xf0] }
  0xde   :  { %v9831_v4 = vld [vmem:[#allocation4 + $0x8a0] sm:$0xf0]  ;;  %v13222_v1 = vld [vmem:[#allocation4 + $0x5a4] sm:$0xf0] }
  0xdf   :  { %v13377_v5 = vld [vmem:[#allocation4 + $0xa84] sm:$0xf]  ;;  %v9834_v12 = vor.u32 %v13313_v3, %v9831_v4  ;;  %3436 = vmatpush.bf16.msrb.mxu3 %v10634_v6  ;;  %v9709_v2 = vld [vmem:[#allocation4 + $0x788] sm:$0xf]  ;;  %v8942_v4 = vor.u32 %v13094_v60, %v8941_v59  ;;  %v9454_v6 = vor.u32 %v13222_v1, %v9453_v0 }
  0xe0   :  { %v10087_v7 = vld [vmem:[#allocation4 + $0xaa0] sm:$0xf0]  ;;  %v13286_v3 = vld [vmem:[#allocation4 + $0x7a4] sm:$0xf0] }
  0xe1   :  { %v13441_v8 = vld [vmem:[#allocation4 + $0xc84] sm:$0xf]  ;;  %v10090_v13 = vor.u32 %v13377_v5, %v10087_v7  ;;  %3398 = vmatpush.bf16.msrb.mxu0 %v9834_v12  ;;  %v9198_v5 = vor.u32 %v13158_v63, %v9197_v61  ;;  %v8909_v7 = vld [vmem:[#allocation4 + $0x148] sm:$0xf] }
  0xe2   :  { %v10343_v9 = vld [vmem:[#allocation4 + $0xca0] sm:$0xf0]  ;;  %v9421_v12 = vld [vmem:[#allocation4 + $0x548] sm:$0xf] }
  0xe3   :  { %v13505_v10 = vld [vmem:[#allocation4 + $0xe84] sm:$0xf]  ;;  %v10346_v14 = vor.u32 %v13441_v8, %v10343_v9  ;;  %3411 = vmatpush.bf16.msrb.mxu1 %v10090_v13  ;;  %v13086_v8 = vld [vmem:[#allocation4 + $0x164] sm:$0xf0] }
  0xe4   :  { %v10599_v11 = vld [vmem:[#allocation4 + $0xea0] sm:$0xf0]  ;;  %v9165_v9 = vld [vmem:[#allocation4 + $0x348] sm:$0xf] }
  0xe5   :  { %v13305_v15 = vld [vmem:[#allocation4 + $0x844] sm:$0xf]  ;;  %v10602_v18 = vor.u32 %v13505_v10, %v10599_v11  ;;  %3424 = vmatpush.bf16.msrb.mxu2 %v10346_v14  ;;  %v9710_v10 = vor.u32 %v13286_v3, %v9709_v2  ;;  %v13150_v11 = vld [vmem:[#allocation4 + $0x364] sm:$0xf0] }
  0xe6   :  { %v9799_v16 = vld [vmem:[#allocation4 + $0x860] sm:$0xf0]  ;;  %v13214_v13 = vld [vmem:[#allocation4 + $0x564] sm:$0xf0] }
  0xe7   :  { %v13369_v17 = vld [vmem:[#allocation4 + $0xa44] sm:$0xf]  ;;  %v9802_v24 = vor.u32 %v13305_v15, %v9799_v16  ;;  %3437 = vmatpush.bf16.msrb.mxu3 %v10602_v18  ;;  %v9677_v14 = vld [vmem:[#allocation4 + $0x748] sm:$0xf]  ;;  %v8910_v16 = vor.u32 %v13086_v8, %v8909_v7  ;;  %v9422_v18 = vor.u32 %v13214_v13, %v9421_v12 }
  0xe8   :  { %v10055_v19 = vld [vmem:[#allocation4 + $0xa60] sm:$0xf0]  ;;  %v13278_v15 = vld [vmem:[#allocation4 + $0x764] sm:$0xf0] }
  0xe9   :  { %v13433_v20 = vld [vmem:[#allocation4 + $0xc44] sm:$0xf]  ;;  %v10058_v27 = vor.u32 %v13369_v17, %v10055_v19  ;;  %3399 = vmatpush.bf16.msrb.mxu0 %v9802_v24  ;;  %v9166_v17 = vor.u32 %v13150_v11, %v9165_v9  ;;  %v8877_v19 = vld [vmem:[#allocation4 + $0x108] sm:$0xf] }
  0xea   :  { %v10311_v21 = vld [vmem:[#allocation4 + $0xc60] sm:$0xf0]  ;;  %v9389_v24 = vld [vmem:[#allocation4 + $0x508] sm:$0xf] }
  0xeb   :  { %v13497_v22 = vld [vmem:[#allocation4 + $0xe44] sm:$0xf]  ;;  %v10314_v28 = vor.u32 %v13433_v20, %v10311_v21  ;;  %3412 = vmatpush.bf16.msrb.mxu1 %v10058_v27  ;;  %v13078_v20 = vld [vmem:[#allocation4 + $0x124] sm:$0xf0] }
  0xec   :  { %v10567_v23 = vld [vmem:[#allocation4 + $0xe60] sm:$0xf0]  ;;  %v9133_v21 = vld [vmem:[#allocation4 + $0x308] sm:$0xf] }
  0xed   :  { %v13297_v25 = vld [vmem:[#allocation4 + $0x804] sm:$0xf]  ;;  %v10570_v34 = vor.u32 %v13497_v22, %v10567_v23  ;;  %3425 = vmatpush.bf16.msrb.mxu2 %v10314_v28  ;;  %v9678_v22 = vor.u32 %v13278_v15, %v9677_v14  ;;  %v13142_v23 = vld [vmem:[#allocation4 + $0x324] sm:$0xf0]  ;;  %v8878_v28 = vor.u32 %v13078_v20, %v8877_v19 }
  0xee   :  { %v9767_v26 = vld [vmem:[#allocation4 + $0x820] sm:$0xf0]  ;;  %v13270_v27 = vld [vmem:[#allocation4 + $0x724] sm:$0xf0] }
  0xef   :  { %v13361_v29 = vld [vmem:[#allocation4 + $0xa04] sm:$0xf]  ;;  %v9770_v47 = vor.u32 %v13297_v25, %v9767_v26  ;;  %3438 = vmatpush.bf16.msrb.mxu3 %v10570_v34  ;;  %v13206_v25 = vld [vmem:[#allocation4 + $0x524] sm:$0xf0] }
  0xf0   :  { %v10023_v32 = vld [vmem:[#allocation4 + $0xa20] sm:$0xf0]  ;;  %v9645_v26 = vld [vmem:[#allocation4 + $0x708] sm:$0xf] }
  0xf1   :  { %v13425_v33 = vld [vmem:[#allocation4 + $0xc04] sm:$0xf]  ;;  %v10026_v51 = vor.u32 %v13361_v29, %v10023_v32  ;;  %3400 = vmatpush.bf16.msrb.mxu0 %v9770_v47  ;;  %v9134_v29 = vor.u32 %v13142_v23, %v9133_v21  ;;  %v9390_v32 = vor.u32 %v13206_v25, %v9389_v24  ;;  %v13070_v34 = vld [vmem:[#allocation4 + $0xe4] sm:$0xf0] }
  0xf2   :  { %v10279_v35 = vld [vmem:[#allocation4 + $0xc20] sm:$0xf0]  ;;  %v13198_v45 = vld [vmem:[#allocation4 + $0x4e4] sm:$0xf0] }
  0xf3   :  { %v13489_v40 = vld [vmem:[#allocation4 + $0xe04] sm:$0xf]  ;;  %v10282_v52 = vor.u32 %v13425_v33, %v10279_v35  ;;  %3413 = vmatpush.bf16.msrb.mxu1 %v10026_v51  ;;  %v8845_v33 = vld [vmem:[#allocation4 + $0xc8] sm:$0xf]  ;;  %v9358_v50 = vor.u32 %v13198_v45, %v9357_v42 }
  0xf4   :  { %v10535_v41 = vld [vmem:[#allocation4 + $0xe20] sm:$0xf0]  ;;  %3401 = vmatmul.bf16.vlgmr.msrb.gmra.mxu0 %v14379_v37  ;;  %v9101_v35 = vld [vmem:[#allocation4 + $0x2c8] sm:$0xf]  ;;  %v8846_v48 = vor.u32 %v13070_v34, %v8845_v33 }
  0xf5   :  { %v10538_v55 = vor.u32 %v13489_v40, %v10535_v41  ;;  %3426 = vmatpush.bf16.msrb.mxu2 %v10282_v52  ;;  %3445 = vmatpush.bf16.msra.mxu0 %v8974_v56  ;;  %v9646_v40 = vor.u32 %v13270_v27, %v9645_v26  ;;  %v13134_v41 = vld [vmem:[#allocation4 + $0x2e4] sm:$0xf0] }
  0xf6   :  { %3414 = vmatmul.bf16.vlgmr.msrb.gmra.mxu1 %v14383_v44  ;;  %v9613_v46 = vld [vmem:[#allocation4 + $0x6c8] sm:$0xf]  ;;  %v9102_v49 = vor.u32 %v13134_v41, %v9101_v35 }
  0xf7   :  { %3439 = vmatpush.bf16.msrb.mxu3 %v10538_v55  ;;  %3458 = vmatpush.bf16.msra.mxu1 %v9230_v57  ;;  %v13262_v47 = vld [vmem:[#allocation4 + $0x6e4] sm:$0xf0] }
  0xf8   :  { %3427 = vmatmul.bf16.vlgmr.msrb.gmra.mxu2 %v14377_v36  ;;  %v8813_v51 = vld [vmem:[#allocation4 + $0x88] sm:$0xf]  ;;  %v9614_v54 = vor.u32 %v13262_v47, %v9613_v46 }
  0xf9   :  { %3471 = vmatpush.bf16.msra.mxu2 %v9486_v58  ;;  %3446 = vmatpush.bf16.msra.mxu0 %v8942_v4  ;;  %v13062_v52 = vld [vmem:[#allocation4 + $0xa4] sm:$0xf0] }
  0xfa   :  { %3440 = vmatmul.bf16.vlgmr.msrb.gmra.mxu3 %v14381_v43  ;;  %v9069_v53 = vld [vmem:[#allocation4 + $0x288] sm:$0xf]  ;;  %v8814_v60 = vor.u32 %v13062_v52, %v8813_v51 }
  0xfb   :  { %3484 = vmatpush.bf16.msra.mxu3 %v9742_v62  ;;  %3459 = vmatpush.bf16.msra.mxu1 %v9198_v5  ;;  %v13126_v55 = vld [vmem:[#allocation4 + $0x2a4] sm:$0xf0] }
  0xfc   :  { %v9325_v56 = vld [vmem:[#allocation4 + $0x488] sm:$0xf]  ;;  %v9070_v61 = vor.u32 %v13126_v55, %v9069_v53 }
  0xfd   :  { %3472 = vmatpush.bf16.msra.mxu2 %v9454_v6  ;;  %3447 = vmatpush.bf16.msra.mxu0 %v8910_v16  ;;  %v13190_v57 = vld [vmem:[#allocation4 + $0x4a4] sm:$0xf0] }
  0xfe   :  { %v9581_v58 = vld [vmem:[#allocation4 + $0x688] sm:$0xf]  ;;  %v9326_v62 = vor.u32 %v13190_v57, %v9325_v56 }
  0xff   :  { %3485 = vmatpush.bf16.msra.mxu3 %v9710_v10  ;;  %3460 = vmatpush.bf16.msra.mxu1 %v9166_v17  ;;  %v13254_v59 = vld [vmem:[#allocation4 + $0x6a4] sm:$0xf0] }
 0x100   :  { %v8781_v63 = vld [vmem:[#allocation4 + $0x48] sm:$0xf]  ;;  %v9582_v2 = vor.u32 %v13254_v59, %v9581_v58 }
 0x101   :  { %3473 = vmatpush.bf16.msra.mxu2 %v9422_v18  ;;  %3448 = vmatpush.bf16.msra.mxu0 %v8878_v28  ;;  %v13054_v0 = vld [vmem:[#allocation4 + $0x64] sm:$0xf0] }
 0x102   :  { %v9037_v1 = vld [vmem:[#allocation4 + $0x248] sm:$0xf]  ;;  %v8782_v8 = vor.u32 %v13054_v0, %v8781_v63 }
 0x103   :  { %3486 = vmatpush.bf16.msra.mxu3 %v9678_v22  ;;  %3461 = vmatpush.bf16.msra.mxu1 %v9134_v29  ;;  %v13118_v3 = vld [vmem:[#allocation4 + $0x264] sm:$0xf0] }
 0x104   :  { %v9293_v4 = vld [vmem:[#allocation4 + $0x448] sm:$0xf]  ;;  %v9038_v11 = vor.u32 %v13118_v3, %v9037_v1 }
 0x105   :  { %3474 = vmatpush.bf16.msra.mxu2 %v9390_v32  ;;  %3449 = vmatpush.bf16.msra.mxu0 %v8846_v48  ;;  %v13182_v5 = vld [vmem:[#allocation4 + $0x464] sm:$0xf0] }
 0x106   :  { %v9549_v6 = vld [vmem:[#allocation4 + $0x648] sm:$0xf]  ;;  %v9294_v12 = vor.u32 %v13182_v5, %v9293_v4 }
 0x107   :  { %3487 = vmatpush.bf16.msra.mxu3 %v9646_v40  ;;  %3462 = vmatpush.bf16.msra.mxu1 %v9102_v49  ;;  %v13246_v7 = vld [vmem:[#allocation4 + $0x664] sm:$0xf0] }
 0x108   :  { %v8749_v9 = vld [vmem:[#allocation4 + $0x8] sm:$0xf]  ;;  %v9550_v16 = vor.u32 %v13246_v7, %v9549_v6 }
 0x109   :  { %3475 = vmatpush.bf16.msra.mxu2 %v9358_v50  ;;  %3450 = vmatpush.bf16.msra.mxu0 %v8814_v60  ;;  %v13046_v10 = vld [vmem:[#allocation4 + $0x24] sm:$0xf0] }
 0x10a   :  { %v9005_v13 = vld [vmem:[#allocation4 + $0x208] sm:$0xf]  ;;  %v8750_v23 = vor.u32 %v13046_v10, %v8749_v9 }
 0x10b   :  { %3488 = vmatpush.bf16.msra.mxu3 %v9614_v54  ;;  %3463 = vmatpush.bf16.msra.mxu1 %v9070_v61  ;;  %v13110_v14 = vld [vmem:[#allocation4 + $0x224] sm:$0xf0] }
 0x10c   :  { %v9261_v15 = vld [vmem:[#allocation4 + $0x408] sm:$0xf]  ;;  %v9006_v27 = vor.u32 %v13110_v14, %v9005_v13 }
 0x10d   :  { %3476 = vmatpush.bf16.msra.mxu2 %v9326_v62  ;;  %v13174_v17 = vld [vmem:[#allocation4 + $0x424] sm:$0xf0]  ;;  %3451 = vmatpush.bf16.msra.mxu0 %v8782_v8 }
 0x10e   :  { %v9517_v18 = vld [vmem:[#allocation4 + $0x608] sm:$0xf]  ;;  %v9262_v28 = vor.u32 %v13174_v17, %v9261_v15 }
 0x10f   :  { %3489 = vmatpush.bf16.msra.mxu3 %v9582_v2  ;;  %v13238_v19 = vld [vmem:[#allocation4 + $0x624] sm:$0xf0]  ;;  %3464 = vmatpush.bf16.msra.mxu1 %v9038_v11 }
 0x110   :  { %v9997_v20 = vld [vmem:[#allocation4 + $0x9c8] sm:$0xf]  ;;  %v9518_v33 = vor.u32 %v13238_v19, %v9517_v18 }
 0x111   :  { %v13358_v21 = vld [vmem:[#allocation4 + $0x9e4] sm:$0xf0]  ;;  %3477 = vmatpush.bf16.msra.mxu2 %v9294_v12  ;;  %3452 = vmatpush.bf16.msra.mxu0 %v8750_v23 }
 0x112   :  { %v10253_v22 = vld [vmem:[#allocation4 + $0xbc8] sm:$0xf]  ;;  %v9998_v34 = vor.u32 %v13358_v21, %v9997_v20 }
 0x113   :  { %v13422_v24 = vld [vmem:[#allocation4 + $0xbe4] sm:$0xf0]  ;;  %3490 = vmatpush.bf16.msra.mxu3 %v9550_v16  ;;  %3465 = vmatpush.bf16.msra.mxu1 %v9006_v27 }
 0x114   :  { %v10509_v25 = vld [vmem:[#allocation4 + $0xdc8] sm:$0xf]  ;;  %v10254_v35 = vor.u32 %v13422_v24, %v10253_v22  ;;  %3453 = vmatmul.bf16.vlgmr.msra.gmra.mxu0 %v14364_v31 }
 0x115   :  { %v13486_v26 = vld [vmem:[#allocation4 + $0xde4] sm:$0xf0]  ;;  %3478 = vmatpush.bf16.msra.mxu2 %v9262_v28  ;;  %3497 = vmatpush.bf16.msrb.mxu0 %v9998_v34 }
 0x116   :  { %v10765_v29 = vld [vmem:[#allocation4 + $0xfc8] sm:$0xf]  ;;  %v10510_v40 = vor.u32 %v13486_v26, %v10509_v25  ;;  %3466 = vmatmul.bf16.vlgmr.msra.gmra.mxu1 %v14368_v39 }
 0x117   :  { %v13550_v32 = vld [vmem:[#allocation4 + $0xfe4] sm:$0xf0]  ;;  %3491 = vmatpush.bf16.msra.mxu3 %v9518_v33  ;;  %3510 = vmatpush.bf16.msrb.mxu1 %v10254_v35 }
 0x118   :  { %v9965_v41 = vld [vmem:[#allocation4 + $0x988] sm:$0xf]  ;;  %v10766_v46 = vor.u32 %v13550_v32, %v10765_v29  ;;  %3479 = vmatmul.bf16.vlgmr.msra.gmra.mxu2 %v14362_v30 }
 0x119   :  { %v13350_v42 = vld [vmem:[#allocation4 + $0x9a4] sm:$0xf0]  ;;  %3523 = vmatpush.bf16.msrb.mxu2 %v10510_v40  ;;  %v14401_v40 = vld [vmem:[#allocation2] sm:$0xff] }
 0x11a   :  { %v10221_v45 = vld [vmem:[#allocation4 + $0xb88] sm:$0xf]  ;;  %v9966_v52 = vor.u32 %v13350_v42, %v9965_v41  ;;  %3492 = vmatmul.bf16.vlgmr.msra.gmra.mxu3 %v14366_v38 }
 0x11b   :  { %v13414_v47 = vld [vmem:[#allocation4 + $0xba4] sm:$0xf0]  ;;  %3536 = vmatpush.bf16.msrb.mxu3 %v10766_v46 }
 0x11c   :  { %v10477_v48 = vld [vmem:[#allocation4 + $0xd88] sm:$0xf]  ;;  %v10222_v53 = vor.u32 %v13414_v47, %v10221_v45  ;;  %3498 = vmatpush.bf16.msrb.mxu0 %v9966_v52 }
 0x11d   :  { %v13478_v49 = vld [vmem:[#allocation4 + $0xda4] sm:$0xf0] }
 0x11e   :  { %v10733_v50 = vld [vmem:[#allocation4 + $0xf88] sm:$0xf]  ;;  %v10478_v54 = vor.u32 %v13478_v49, %v10477_v48  ;;  %3511 = vmatpush.bf16.msrb.mxu1 %v10222_v53 }
 0x11f   :  { %v13542_v51 = vld [vmem:[#allocation4 + $0xfa4] sm:$0xf0] }
 0x120   :  { %v9933_v55 = vld [vmem:[#allocation4 + $0x948] sm:$0xf]  ;;  %v10734_v58 = vor.u32 %v13542_v51, %v10733_v50  ;;  %3524 = vmatpush.bf16.msrb.mxu2 %v10478_v54  ;;  %v661_v51 = vperm.slane %v14401_v40, 0 }
 0x121   :  { %v13342_v56 = vld [vmem:[#allocation4 + $0x964] sm:$0xf0] }
 0x122   :  { %v10189_v57 = vld [vmem:[#allocation4 + $0xb48] sm:$0xf]  ;;  %v9934_v0 = vor.u32 %v13342_v56, %v9933_v55  ;;  %3537 = vmatpush.bf16.msrb.mxu3 %v10734_v58 }
 0x123   :  { %v13406_v59 = vld [vmem:[#allocation4 + $0xb64] sm:$0xf0] }
 0x124   :  { %v10445_v60 = vld [vmem:[#allocation4 + $0xd48] sm:$0xf]  ;;  %v10190_v1 = vor.u32 %v13406_v59, %v10189_v57  ;;  %3499 = vmatpush.bf16.msrb.mxu0 %v9934_v0 }
 0x125   :  { %v13470_v61 = vld [vmem:[#allocation4 + $0xd64] sm:$0xf0] }
 0x126   :  { %v10701_v62 = vld [vmem:[#allocation4 + $0xf48] sm:$0xf]  ;;  %v10446_v2 = vor.u32 %v13470_v61, %v10445_v60  ;;  %3512 = vmatpush.bf16.msrb.mxu1 %v10190_v1  ;;  %v3246_v61 = vpop.f32.mrf.mxu0 }
 0x127   :  { %v13534_v63 = vld [vmem:[#allocation4 + $0xf64] sm:$0xf0] }
 0x128   :  { %v9901_v3 = vld [vmem:[#allocation4 + $0x908] sm:$0xf]  ;;  %v10702_v6 = vor.u32 %v13534_v63, %v10701_v62  ;;  %3525 = vmatpush.bf16.msrb.mxu2 %v10446_v2 }
 0x129   :  { %v13334_v4 = vld [vmem:[#allocation4 + $0x924] sm:$0xf0] }
 0x12a   :  { %v10157_v5 = vld [vmem:[#allocation4 + $0xb08] sm:$0xf]  ;;  %v9902_v12 = vor.u32 %v13334_v4, %v9901_v3  ;;  %3538 = vmatpush.bf16.msrb.mxu3 %v10702_v6  ;;  %v3247_v3 = vadd.f32 %v3246_v61, %v661_v51  ;;  %v3259_v4 = vpop.f32.mrf.mxu1 }
 0x12b   :  { %v13398_v7 = vld [vmem:[#allocation4 + $0xb24] sm:$0xf0] }
 0x12c   :  { %v10413_v8 = vld [vmem:[#allocation4 + $0xd08] sm:$0xf]  ;;  %v10158_v13 = vor.u32 %v13398_v7, %v10157_v5  ;;  %3500 = vmatpush.bf16.msrb.mxu0 %v9902_v12  ;;  %v3260_v12 = vadd.f32 %v3259_v4, %v3247_v3  ;;  %v8879_v3 = vld [vmem:[#allocation4 + $0x128] sm:$0xf0] }
 0x12d   :  { %v13462_v9 = vld [vmem:[#allocation4 + $0xd24] sm:$0xf0]  ;;  %v13138_v4 = vld [vmem:[#allocation4 + $0x30c] sm:$0xf] }
 0x12e   :  { %v10669_v10 = vld [vmem:[#allocation4 + $0xf08] sm:$0xf]  ;;  %v10414_v14 = vor.u32 %v13462_v9, %v10413_v8  ;;  %3513 = vmatpush.bf16.msrb.mxu1 %v10158_v13  ;;  %v13098_v9 = vld [vmem:[#allocation4 + $0x1cc] sm:$0xf] }
 0x12f   :  { %v13526_v11 = vld [vmem:[#allocation4 + $0xf24] sm:$0xf0] }
 0x130   :  { %v9869_v15 = vld [vmem:[#allocation4 + $0x8c8] sm:$0xf]  ;;  %v10670_v18 = vor.u32 %v13526_v11, %v10669_v10  ;;  %3526 = vmatpush.bf16.msrb.mxu2 %v10414_v14  ;;  %v8975_v10 = vld [vmem:[#allocation4 + $0x1e8] sm:$0xf0] }
 0x131   :  { %v13326_v16 = vld [vmem:[#allocation4 + $0x8e4] sm:$0xf0]  ;;  %v13162_v11 = vld [vmem:[#allocation4 + $0x3cc] sm:$0xf] }
 0x132   :  { %v10125_v17 = vld [vmem:[#allocation4 + $0xac8] sm:$0xf]  ;;  %v9870_v24 = vor.u32 %v13326_v16, %v9869_v15  ;;  %3539 = vmatpush.bf16.msrb.mxu3 %v10670_v18  ;;  %v9231_v14 = vld [vmem:[#allocation4 + $0x3e8] sm:$0xf0] }
 0x133   :  { %v13390_v19 = vld [vmem:[#allocation4 + $0xae4] sm:$0xf0]  ;;  %v13226_v15 = vld [vmem:[#allocation4 + $0x5cc] sm:$0xf] }
 0x134   :  { %v10381_v20 = vld [vmem:[#allocation4 + $0xcc8] sm:$0xf]  ;;  %v10126_v26 = vor.u32 %v13390_v19, %v10125_v17  ;;  %3501 = vmatpush.bf16.msrb.mxu0 %v9870_v24  ;;  %v9487_v16 = vld [vmem:[#allocation4 + $0x5e8] sm:$0xf0] }
 0x135   :  { %v13454_v21 = vld [vmem:[#allocation4 + $0xce4] sm:$0xf0]  ;;  %v13290_v19 = vld [vmem:[#allocation4 + $0x7cc] sm:$0xf] }
 0x136   :  { %v10637_v22 = vld [vmem:[#allocation4 + $0xec8] sm:$0xf]  ;;  %v10382_v27 = vor.u32 %v13454_v21, %v10381_v20  ;;  %3514 = vmatpush.bf16.msrb.mxu1 %v10126_v26  ;;  %v9743_v20 = vld [vmem:[#allocation4 + $0x7e8] sm:$0xf0]  ;;  %v3272_v21 = vpop.f32.mrf.mxu2  ;;  %v9234_v26 = vor.u32 %v13162_v11, %v9231_v14 }
 0x137   :  { %v13518_v23 = vld [vmem:[#allocation4 + $0xee4] sm:$0xf0]  ;;  %v3273_v24 = vadd.f32 %v3272_v21, %v3260_v12  ;;  %v9103_v21 = vld [vmem:[#allocation4 + $0x2e8] sm:$0xf0] }
 0x138   :  { %v9837_v25 = vld [vmem:[#allocation4 + $0x888] sm:$0xf]  ;;  %v10638_v33 = vor.u32 %v13518_v23, %v10637_v22  ;;  %3527 = vmatpush.bf16.msrb.mxu2 %v10382_v27  ;;  %v8978_v23 = vor.u32 %v13098_v9, %v8975_v10  ;;  %v9490_v27 = vor.u32 %v13226_v15, %v9487_v16  ;;  %v13266_v9 = vld [vmem:[#allocation4 + $0x70c] sm:$0xf] }
 0x139   :  { %v13318_v28 = vld [vmem:[#allocation4 + $0x8a4] sm:$0xf0]  ;;  %v9647_v10 = vld [vmem:[#allocation4 + $0x728] sm:$0xf0] }
 0x13a   :  { %v10093_v29 = vld [vmem:[#allocation4 + $0xa88] sm:$0xf]  ;;  %v9838_v45 = vor.u32 %v13318_v28, %v9837_v25  ;;  %3540 = vmatpush.bf16.msrb.mxu3 %v10638_v33  ;;  %v3285_v25 = vpop.f32.mrf.mxu3  ;;  %v13090_v28 = vld [vmem:[#allocation4 + $0x18c] sm:$0xf]  ;;  %v9746_v33 = vor.u32 %v13290_v19, %v9743_v20  ;;  %v9650_v20 = vor.u32 %v13266_v9, %v9647_v10 }
 0x13b   :  { %v13382_v32 = vld [vmem:[#allocation4 + $0xaa4] sm:$0xf0]  ;;  %v13066_v15 = vld [vmem:[#allocation4 + $0xcc] sm:$0xf] }
 0x13c   :  { %v10349_v34 = vld [vmem:[#allocation4 + $0xc88] sm:$0xf]  ;;  %v10094_v47 = vor.u32 %v13382_v32, %v10093_v29  ;;  %3502 = vmatpush.bf16.msrb.mxu0 %v9838_v45  ;;  %v8943_v29 = vld [vmem:[#allocation4 + $0x1a8] sm:$0xf0]  ;;  %v3248_v45 = vpop.f32.mrf.mxu0 }
 0x13d   :  { %v13446_v35 = vld [vmem:[#allocation4 + $0xca4] sm:$0xf0]  ;;  %v13154_v32 = vld [vmem:[#allocation4 + $0x38c] sm:$0xf] }
 0x13e   :  { %v10605_v41 = vld [vmem:[#allocation4 + $0xe88] sm:$0xf]  ;;  %v10350_v48 = vor.u32 %v13446_v35, %v10349_v34  ;;  %3515 = vmatpush.bf16.msrb.mxu1 %v10094_v47  ;;  %v9199_v34 = vld [vmem:[#allocation4 + $0x3a8] sm:$0xf0]  ;;  %v3274_v61 = vpop.f32.mrf.mxu2 }
 0x13f   :  { %v13510_v42 = vld [vmem:[#allocation4 + $0xea4] sm:$0xf0]  ;;  %v13218_v35 = vld [vmem:[#allocation4 + $0x58c] sm:$0xf] }
 0x140   :  { %v9805_v46 = vld [vmem:[#allocation4 + $0x848] sm:$0xf]  ;;  %v10606_v52 = vor.u32 %v13510_v42, %v10605_v41  ;;  %3528 = vmatpush.bf16.msrb.mxu2 %v10350_v48  ;;  %v9455_v41 = vld [vmem:[#allocation4 + $0x5a8] sm:$0xf0]  ;;  %v3286_v42 = vadd.f32 %v3285_v25, %v3273_v24  ;;  %v3261_v48 = vpop.f32.mrf.mxu1 }
 0x141   :  { %v13310_v49 = vld [vmem:[#allocation4 + $0x864] sm:$0xf0]  ;;  %v9711_v47 = vld [vmem:[#allocation4 + $0x7a8] sm:$0xf0]  ;;  %v9458_v51 = vor.u32 %v13218_v35, %v9455_v41 }
 0x142   :  { %v10061_v50 = vld [vmem:[#allocation4 + $0xa48] sm:$0xf]  ;;  %v9806_v58 = vor.u32 %v13310_v49, %v9805_v46  ;;  %3541 = vmatpush.bf16.msrb.mxu3 %v10606_v52  ;;  %v13282_v46 = vld [vmem:[#allocation4 + $0x78c] sm:$0xf]  ;;  %v8946_v49 = vor.u32 %v13090_v28, %v8943_v29 }
 0x143   :  { %v13374_v53 = vld [vmem:[#allocation4 + $0xa64] sm:$0xf0]  ;;  %v13082_v52 = vld [vmem:[#allocation4 + $0x14c] sm:$0xf] }
 0x144   :  { %v10317_v54 = vld [vmem:[#allocation4 + $0xc48] sm:$0xf]  ;;  %v10062_v62 = vor.u32 %v13374_v53, %v10061_v50  ;;  %3503 = vmatpush.bf16.msrb.mxu0 %v9806_v58  ;;  %v9202_v50 = vor.u32 %v13154_v32, %v9199_v34  ;;  %v8911_v53 = vld [vmem:[#allocation4 + $0x168] sm:$0xf0]  ;;  %v3298_v12 = vpop.f32.mrf.mxu0 }
 0x145   :  { %v13438_v55 = vld [vmem:[#allocation4 + $0xc64] sm:$0xf0]  ;;  %v9423_v58 = vld [vmem:[#allocation4 + $0x568] sm:$0xf0] }
 0x146   :  { %v10573_v56 = vld [vmem:[#allocation4 + $0xe48] sm:$0xf]  ;;  %v10318_v63 = vor.u32 %v13438_v55, %v10317_v54  ;;  %3516 = vmatpush.bf16.msrb.mxu1 %v10062_v62  ;;  %v13146_v54 = vld [vmem:[#allocation4 + $0x34c] sm:$0xf]  ;;  %v9714_v55 = vor.u32 %v13282_v46, %v9711_v47  ;;  %v8914_v62 = vor.u32 %v13082_v52, %v8911_v53  ;;  %v3324_v35 = vpop.f32.mrf.mxu2 }
 0x147   :  { %v13502_v57 = vld [vmem:[#allocation4 + $0xe64] sm:$0xf0]  ;;  %v8847_v16 = vld [vmem:[#allocation4 + $0xe8] sm:$0xf0] }
 0x148   :  { %v9773_v59 = vld [vmem:[#allocation4 + $0x808] sm:$0xf]  ;;  %v10574_v5 = vor.u32 %v13502_v57, %v10573_v56  ;;  %3529 = vmatpush.bf16.msrb.mxu2 %v10318_v63  ;;  %v9167_v56 = vld [vmem:[#allocation4 + $0x368] sm:$0xf0]  ;;  %v3287_v63 = vpop.f32.mrf.mxu3  ;;  %v3311_v19 = vpop.f32.mrf.mxu1 }
 0x149   :  { %v13302_v60 = vld [vmem:[#allocation4 + $0x824] sm:$0xf0]  ;;  %v13210_v57 = vld [vmem:[#allocation4 + $0x54c] sm:$0xf] }
 0x14a   :  { %v10029_v0 = vld [vmem:[#allocation4 + $0xa08] sm:$0xf]  ;;  %v9774_v13 = vor.u32 %v13302_v60, %v9773_v59  ;;  %3542 = vmatpush.bf16.msrb.mxu3 %v10574_v5  ;;  %v13274_v59 = vld [vmem:[#allocation4 + $0x74c] sm:$0xf] }
 0x14b   :  { %v13366_v1 = vld [vmem:[#allocation4 + $0xa24] sm:$0xf0]  ;;  %v9679_v60 = vld [vmem:[#allocation4 + $0x768] sm:$0xf0] }
 0x14c   :  { %v10285_v2 = vld [vmem:[#allocation4 + $0xc08] sm:$0xf]  ;;  %v10030_v17 = vor.u32 %v13366_v1, %v10029_v0  ;;  %3504 = vmatpush.bf16.msrb.mxu0 %v9774_v13  ;;  %v9170_v0 = vor.u32 %v13146_v54, %v9167_v56  ;;  %v9426_v1 = vor.u32 %v13210_v57, %v9423_v58  ;;  %v9682_v5 = vor.u32 %v13274_v59, %v9679_v60  ;;  %v13258_v24 = vld [vmem:[#allocation4 + $0x6cc] sm:$0xf]  ;;  %v3300_v53 = vpop.f32.mrf.mxu0 }
 0x14d   :  { %v13430_v6 = vld [vmem:[#allocation4 + $0xc24] sm:$0xf0]  ;;  %v9615_v25 = vld [vmem:[#allocation4 + $0x6e8] sm:$0xf0] }
 0x14e   :  { %v10541_v7 = vld [vmem:[#allocation4 + $0xe08] sm:$0xf]  ;;  %v10286_v18 = vor.u32 %v13430_v6, %v10285_v2  ;;  %3517 = vmatpush.bf16.msrb.mxu1 %v10030_v17  ;;  %v13074_v2 = vld [vmem:[#allocation4 + $0x10c] sm:$0xf]  ;;  %v9618_v41 = vor.u32 %v13258_v24, %v9615_v25  ;;  %v3326_v10 = vpop.f32.mrf.mxu2 }
 0x14f   :  { %v13494_v8 = vld [vmem:[#allocation4 + $0xe24] sm:$0xf0]  ;;  %3505 = vmatmul.bf16.vlgmr.msrb.gmra.mxu0 %v14379_v37  ;;  %v9135_v6 = vld [vmem:[#allocation4 + $0x328] sm:$0xf0]  ;;  %v8882_v11 = vor.u32 %v13074_v2, %v8879_v3 }
 0x150   :  { %v10542_v22 = vor.u32 %v13494_v8, %v10541_v7  ;;  %3530 = vmatpush.bf16.msrb.mxu2 %v10286_v18  ;;  %3549 = vmatpush.bf16.msra.mxu0 %v8978_v23  ;;  %v13202_v7 = vld [vmem:[#allocation4 + $0x50c] sm:$0xf]  ;;  %v9138_v13 = vor.u32 %v13138_v4, %v9135_v6  ;;  %v3299_v18 = vadd.f32 %v3298_v12, %v3286_v42  ;;  %v3337_v48 = vpop.f32.mrf.mxu3  ;;  %v3313_v59 = vpop.f32.mrf.mxu1 }
 0x151   :  { %3518 = vmatmul.bf16.vlgmr.msrb.gmra.mxu1 %v14383_v44  ;;  %v9391_v8 = vld [vmem:[#allocation4 + $0x528] sm:$0xf0] }
 0x152   :  { %3543 = vmatpush.bf16.msrb.mxu3 %v10542_v22  ;;  %3562 = vmatpush.bf16.msra.mxu1 %v9234_v26  ;;  %v9394_v14 = vor.u32 %v13202_v7, %v9391_v8  ;;  %v13130_v17 = vld [vmem:[#allocation4 + $0x2cc] sm:$0xf]  ;;  %v3312_v26 = vadd.f32 %v3311_v19, %v3299_v18 }
 0x153   :  { %3531 = vmatmul.bf16.vlgmr.msrb.gmra.mxu2 %v14377_v36  ;;  %v13194_v22 = vld [vmem:[#allocation4 + $0x4cc] sm:$0xf]  ;;  %v9106_v28 = vor.u32 %v13130_v17, %v9103_v21 }
 0x154   :  { %3575 = vmatpush.bf16.msra.mxu2 %v9490_v27  ;;  %3550 = vmatpush.bf16.msra.mxu0 %v8946_v49  ;;  %v9359_v23 = vld [vmem:[#allocation4 + $0x4e8] sm:$0xf0]  ;;  %v8850_v27 = vor.u32 %v13066_v15, %v8847_v16  ;;  %v3325_v47 = vadd.f32 %v3324_v35, %v3312_v26 }
 0x155   :  { %3544 = vmatmul.bf16.vlgmr.msrb.gmra.mxu3 %v14381_v43  ;;  %v9362_v29 = vor.u32 %v13194_v22, %v9359_v23  ;;  %v13058_v32 = vld [vmem:[#allocation4 + $0x8c] sm:$0xf] }
 0x156   :  { %3588 = vmatpush.bf16.msra.mxu3 %v9746_v33  ;;  %3563 = vmatpush.bf16.msra.mxu1 %v9202_v50  ;;  %v8815_v33 = vld [vmem:[#allocation4 + $0xa8] sm:$0xf0]  ;;  %v14408_v52 = vadd.f32 %v3337_v48, %v3325_v47 }
 0x157   :  { %v13122_v34 = vld [vmem:[#allocation4 + $0x28c] sm:$0xf] }
 0x158   :  { %3576 = vmatpush.bf16.msra.mxu2 %v9458_v51  ;;  %3551 = vmatpush.bf16.msra.mxu0 %v8914_v62  ;;  %v9071_v42 = vld [vmem:[#allocation4 + $0x2a8] sm:$0xf0]  ;;  %v8818_v51 = vor.u32 %v13058_v32, %v8815_v33  ;;  %v3339_v15 = vpop.f32.mrf.mxu3  ;;  %vm4069_vm0 = vcmp.ge.f32.partialorder %v14408_v52, 0.0 }
 0x159   :  { %v13186_v45 = vld [vmem:[#allocation4 + $0x48c] sm:$0xf]  ;;  %v9074_v54 = vor.u32 %v13122_v34, %v9071_v42 }
 0x15a   :  { %3589 = vmatpush.bf16.msra.mxu3 %v9714_v55  ;;  %3564 = vmatpush.bf16.msra.mxu1 %v9170_v0  ;;  %v9327_v46 = vld [vmem:[#allocation4 + $0x4a8] sm:$0xf0] }
 0x15b   :  { %v13250_v49 = vld [vmem:[#allocation4 + $0x68c] sm:$0xf]  ;;  %v9330_v55 = vor.u32 %v13186_v45, %v9327_v46 }
 0x15c   :  { %3577 = vmatpush.bf16.msra.mxu2 %v9426_v1  ;;  %3552 = vmatpush.bf16.msra.mxu0 %v8882_v11  ;;  %v9583_v50 = vld [vmem:[#allocation4 + $0x6a8] sm:$0xf0] }
 0x15d   :  { %v13050_v56 = vld [vmem:[#allocation4 + $0x4c] sm:$0xf]  ;;  %v9586_v60 = vor.u32 %v13250_v49, %v9583_v50 }
 0x15e   :  { %3590 = vmatpush.bf16.msra.mxu3 %v9682_v5  ;;  %3565 = vmatpush.bf16.msra.mxu1 %v9138_v13  ;;  %v8783_v57 = vld [vmem:[#allocation4 + $0x68] sm:$0xf0] }
 0x15f   :  { %v13114_v58 = vld [vmem:[#allocation4 + $0x24c] sm:$0xf]  ;;  %v8786_v2 = vor.u32 %v13050_v56, %v8783_v57 }
 0x160   :  { %3578 = vmatpush.bf16.msra.mxu2 %v9394_v14  ;;  %3553 = vmatpush.bf16.msra.mxu0 %v8850_v27  ;;  %v9039_v61 = vld [vmem:[#allocation4 + $0x268] sm:$0xf0] }
 0x161   :  { %v13178_v62 = vld [vmem:[#allocation4 + $0x44c] sm:$0xf]  ;;  %v9042_v5 = vor.u32 %v13114_v58, %v9039_v61 }
 0x162   :  { %3591 = vmatpush.bf16.msra.mxu3 %v9650_v20  ;;  %3566 = vmatpush.bf16.msra.mxu1 %v9106_v28  ;;  %v9295_v63 = vld [vmem:[#allocation4 + $0x468] sm:$0xf0] }
 0x163   :  { %v13242_v0 = vld [vmem:[#allocation4 + $0x64c] sm:$0xf]  ;;  %v9298_v6 = vor.u32 %v13178_v62, %v9295_v63 }
 0x164   :  { %3579 = vmatpush.bf16.msra.mxu2 %v9362_v29  ;;  %v9551_v1 = vld [vmem:[#allocation4 + $0x668] sm:$0xf0]  ;;  %3554 = vmatpush.bf16.msra.mxu0 %v8818_v51 }
 0x165   :  { %v13042_v3 = vld [vmem:[#allocation4 + $0xc] sm:$0xf]  ;;  %v9554_v11 = vor.u32 %v13242_v0, %v9551_v1 }
 0x166   :  { %3592 = vmatpush.bf16.msra.mxu3 %v9618_v41  ;;  %v8751_v4 = vld [vmem:[#allocation4 + $0x28] sm:$0xf0]  ;;  %3567 = vmatpush.bf16.msra.mxu1 %v9074_v54 }
 0x167   :  { %v13106_v7 = vld [vmem:[#allocation4 + $0x20c] sm:$0xf]  ;;  %v8754_v19 = vor.u32 %v13042_v3, %v8751_v4  ;;  %v662_v4 = vperm.slane %v14401_v40, 1 }
 0x168   :  { %3580 = vmatpush.bf16.msra.mxu2 %v9330_v55  ;;  %v9007_v8 = vld [vmem:[#allocation4 + $0x228] sm:$0xf0]  ;;  %3555 = vmatpush.bf16.msra.mxu0 %v8786_v2 }
 0x169   :  { %v13170_v9 = vld [vmem:[#allocation4 + $0x40c] sm:$0xf]  ;;  %v9010_v23 = vor.u32 %v13106_v7, %v9007_v8 }
 0x16a   :  { %3593 = vmatpush.bf16.msra.mxu3 %v9586_v60  ;;  %v9263_v12 = vld [vmem:[#allocation4 + $0x428] sm:$0xf0]  ;;  %3568 = vmatpush.bf16.msra.mxu1 %v9042_v5 }
 0x16b   :  { %v13234_v13 = vld [vmem:[#allocation4 + $0x60c] sm:$0xf]  ;;  %v9266_v24 = vor.u32 %v13170_v9, %v9263_v12  ;;  %v3350_v12 = vpop.f32.mrf.mxu0 }
 0x16c   :  { %v9519_v14 = vld [vmem:[#allocation4 + $0x628] sm:$0xf0]  ;;  %3581 = vmatpush.bf16.msra.mxu2 %v9298_v6  ;;  %3556 = vmatpush.bf16.msra.mxu0 %v8754_v19  ;;  %v3363_v19 = vpop.f32.mrf.mxu1 }
 0x16d   :  { %v13354_v16 = vld [vmem:[#allocation4 + $0x9cc] sm:$0xf]  ;;  %v9522_v27 = vor.u32 %v13234_v13, %v9519_v14 }
 0x16e   :  { %v9999_v17 = vld [vmem:[#allocation4 + $0x9e8] sm:$0xf0]  ;;  %3594 = vmatpush.bf16.msra.mxu3 %v9554_v11  ;;  %3569 = vmatpush.bf16.msra.mxu1 %v9010_v23 }
 0x16f   :  { %v13418_v18 = vld [vmem:[#allocation4 + $0xbcc] sm:$0xf]  ;;  %v10002_v28 = vor.u32 %v13354_v16, %v9999_v17  ;;  %3557 = vmatmul.bf16.vlgmr.msra.gmra.mxu0 %v14364_v31 }
 0x170   :  { %v10255_v20 = vld [vmem:[#allocation4 + $0xbe8] sm:$0xf0]  ;;  %3582 = vmatpush.bf16.msra.mxu2 %v9266_v24 }
 0x171   :  { %v13482_v21 = vld [vmem:[#allocation4 + $0xdcc] sm:$0xf]  ;;  %v10258_v29 = vor.u32 %v13418_v18, %v10255_v20  ;;  %3601 = vmatpush.bf16.msrb.mxu0 %v10002_v28  ;;  %3570 = vmatmul.bf16.vlgmr.msra.gmra.mxu1 %v14368_v39  ;;  %v3351_v18 = vadd.f32 %v3350_v12, %v662_v4 }
 0x172   :  { %v10511_v22 = vld [vmem:[#allocation4 + $0xde8] sm:$0xf0]  ;;  %3595 = vmatpush.bf16.msra.mxu3 %v9522_v27 }
 0x173   :  { %v13546_v25 = vld [vmem:[#allocation4 + $0xfcc] sm:$0xf]  ;;  %v10514_v32 = vor.u32 %v13482_v21, %v10511_v22  ;;  %3614 = vmatpush.bf16.msrb.mxu1 %v10258_v29  ;;  %3583 = vmatmul.bf16.vlgmr.msra.gmra.mxu2 %v14362_v30 }
 0x174   :  { %v10767_v26 = vld [vmem:[#allocation4 + $0xfe8] sm:$0xf0] }
 0x175   :  { %v13346_v33 = vld [vmem:[#allocation4 + $0x98c] sm:$0xf]  ;;  %v10770_v41 = vor.u32 %v13546_v25, %v10767_v26  ;;  %3627 = vmatpush.bf16.msrb.mxu2 %v10514_v32  ;;  %3596 = vmatmul.bf16.vlgmr.msra.gmra.mxu3 %v14366_v38  ;;  %v3364_v25 = vadd.f32 %v3363_v19, %v3351_v18  ;;  %v9237_v18 = vld [vmem:[#allocation4 + $0x3d0] sm:$0xf] }
 0x176   :  { %v9967_v34 = vld [vmem:[#allocation4 + $0x9a8] sm:$0xf0] }
 0x177   :  { %v13410_v35 = vld [vmem:[#allocation4 + $0xb8c] sm:$0xf]  ;;  %v9970_v49 = vor.u32 %v13346_v33, %v9967_v34  ;;  %3640 = vmatpush.bf16.msrb.mxu3 %v10770_v41  ;;  %v3376_v34 = vpop.f32.mrf.mxu2 }
 0x178   :  { %v10223_v42 = vld [vmem:[#allocation4 + $0xba8] sm:$0xf0] }
 0x179   :  { %v13474_v45 = vld [vmem:[#allocation4 + $0xd8c] sm:$0xf]  ;;  %v10226_v50 = vor.u32 %v13410_v35, %v10223_v42  ;;  %3602 = vmatpush.bf16.msrb.mxu0 %v9970_v49 }
 0x17a   :  { %v10479_v46 = vld [vmem:[#allocation4 + $0xda8] sm:$0xf0] }
 0x17b   :  { %v13538_v47 = vld [vmem:[#allocation4 + $0xf8c] sm:$0xf]  ;;  %v10482_v51 = vor.u32 %v13474_v45, %v10479_v46  ;;  %3615 = vmatpush.bf16.msrb.mxu1 %v10226_v50  ;;  %v3377_v46 = vadd.f32 %v3376_v34, %v3364_v25  ;;  %v13295_v25 = vld [vmem:[#allocation4 + $0x7ec] sm:$0xf0] }
 0x17c   :  { %v10735_v48 = vld [vmem:[#allocation4 + $0xfa8] sm:$0xf0]  ;;  %v9205_v34 = vld [vmem:[#allocation4 + $0x390] sm:$0xf] }
 0x17d   :  { %v13338_v53 = vld [vmem:[#allocation4 + $0x94c] sm:$0xf]  ;;  %v10738_v56 = vor.u32 %v13538_v47, %v10735_v48  ;;  %3628 = vmatpush.bf16.msrb.mxu2 %v10482_v51  ;;  %v3389_v47 = vpop.f32.mrf.mxu3 }
 0x17e   :  { %v9935_v54 = vld [vmem:[#allocation4 + $0x968] sm:$0xf0]  ;;  %v14415_v51 = vadd.f32 %v3389_v47, %v3377_v46  ;;  %v9717_v46 = vld [vmem:[#allocation4 + $0x790] sm:$0xf] }
 0x17f   :  { %v13402_v55 = vld [vmem:[#allocation4 + $0xb4c] sm:$0xf]  ;;  %v9938_v62 = vor.u32 %v13338_v53, %v9935_v54  ;;  %3641 = vmatpush.bf16.msrb.mxu3 %v10738_v56  ;;  %v3352_v53 = vpop.f32.mrf.mxu0  ;;  %v13287_v47 = vld [vmem:[#allocation4 + $0x7ac] sm:$0xf0] }
 0x180   :  { %v10191_v57 = vld [vmem:[#allocation4 + $0xb68] sm:$0xf0]  ;;  %v8917_v53 = vld [vmem:[#allocation4 + $0x150] sm:$0xf] }
 0x181   :  { %v13466_v58 = vld [vmem:[#allocation4 + $0xd4c] sm:$0xf]  ;;  %v10194_v0 = vor.u32 %v13402_v55, %v10191_v57  ;;  %3603 = vmatpush.bf16.msrb.mxu0 %v9938_v62 }
 0x182   :  { %v10447_v59 = vld [vmem:[#allocation4 + $0xd68] sm:$0xf0] }
 0x183   :  { %v13530_v60 = vld [vmem:[#allocation4 + $0xf4c] sm:$0xf]  ;;  %v10450_v1 = vor.u32 %v13466_v58, %v10447_v59  ;;  %3616 = vmatpush.bf16.msrb.mxu1 %v10194_v0  ;;  %v3365_v59 = vpop.f32.mrf.mxu1 }
 0x184   :  { %v10703_v61 = vld [vmem:[#allocation4 + $0xf68] sm:$0xf0]  ;;  %v13215_v59 = vld [vmem:[#allocation4 + $0x56c] sm:$0xf0] }
 0x185   :  { %v13330_v63 = vld [vmem:[#allocation4 + $0x90c] sm:$0xf]  ;;  %v10706_v5 = vor.u32 %v13530_v60, %v10703_v61  ;;  %3629 = vmatpush.bf16.msrb.mxu2 %v10450_v1 }
 0x186   :  { %v9903_v2 = vld [vmem:[#allocation4 + $0x928] sm:$0xf0] }
 0x187   :  { %v13394_v3 = vld [vmem:[#allocation4 + $0xb0c] sm:$0xf]  ;;  %v9906_v11 = vor.u32 %v13330_v63, %v9903_v2  ;;  %3642 = vmatpush.bf16.msrb.mxu3 %v10706_v5 }
 0x188   :  { %v10159_v6 = vld [vmem:[#allocation4 + $0xb28] sm:$0xf0] }
 0x189   :  { %v13458_v7 = vld [vmem:[#allocation4 + $0xd0c] sm:$0xf]  ;;  %v10162_v13 = vor.u32 %v13394_v3, %v10159_v6  ;;  %3604 = vmatpush.bf16.msrb.mxu0 %v9906_v11 }
 0x18a   :  { %v10415_v8 = vld [vmem:[#allocation4 + $0xd28] sm:$0xf0] }
 0x18b   :  { %v13522_v9 = vld [vmem:[#allocation4 + $0xf0c] sm:$0xf]  ;;  %v10418_v14 = vor.u32 %v13458_v7, %v10415_v8  ;;  %3617 = vmatpush.bf16.msrb.mxu1 %v10162_v13 }
 0x18c   :  { %v10671_v10 = vld [vmem:[#allocation4 + $0xf28] sm:$0xf0] }
 0x18d   :  { %v13322_v15 = vld [vmem:[#allocation4 + $0x8cc] sm:$0xf]  ;;  %v10674_v40 = vor.u32 %v13522_v9, %v10671_v10  ;;  %3630 = vmatpush.bf16.msrb.mxu2 %v10418_v14  ;;  %v3378_v10 = vpop.f32.mrf.mxu2 }
 0x18e   :  { %v9871_v16 = vld [vmem:[#allocation4 + $0x8e8] sm:$0xf0] }
 0x18f   :  { %v13386_v17 = vld [vmem:[#allocation4 + $0xacc] sm:$0xf]  ;;  %v9874_v26 = vor.u32 %v13322_v15, %v9871_v16  ;;  %3643 = vmatpush.bf16.msrb.mxu3 %v10674_v40  ;;  %v3391_v15 = vpop.f32.mrf.mxu3  ;;  %v8981_v16 = vld [vmem:[#allocation4 + $0x1d0] sm:$0xf] }
 0x190   :  { %v10127_v20 = vld [vmem:[#allocation4 + $0xae8] sm:$0xf0]  ;;  %v13167_v40 = vld [vmem:[#allocation4 + $0x3ec] sm:$0xf0] }
 0x191   :  { %v13450_v21 = vld [vmem:[#allocation4 + $0xccc] sm:$0xf]  ;;  %v10130_v27 = vor.u32 %v13386_v17, %v10127_v20  ;;  %3605 = vmatpush.bf16.msrb.mxu0 %v9874_v26  ;;  %v13103_v17 = vld [vmem:[#allocation4 + $0x1ec] sm:$0xf0] }
 0x192   :  { %v10383_v22 = vld [vmem:[#allocation4 + $0xce8] sm:$0xf0]  ;;  %v9493_v20 = vld [vmem:[#allocation4 + $0x5d0] sm:$0xf] }
 0x193   :  { %v13514_v23 = vld [vmem:[#allocation4 + $0xecc] sm:$0xf]  ;;  %v10386_v28 = vor.u32 %v13450_v21, %v10383_v22  ;;  %3618 = vmatpush.bf16.msrb.mxu1 %v10130_v27  ;;  %v13231_v21 = vld [vmem:[#allocation4 + $0x5ec] sm:$0xf0]  ;;  %v8982_v27 = vor.u32 %v13103_v17, %v8981_v16 }
 0x194   :  { %v10639_v24 = vld [vmem:[#allocation4 + $0xee8] sm:$0xf0]  ;;  %v13071_v15 = vld [vmem:[#allocation4 + $0xec] sm:$0xf0] }
 0x195   :  { %v13314_v29 = vld [vmem:[#allocation4 + $0x88c] sm:$0xf]  ;;  %v10642_v35 = vor.u32 %v13514_v23, %v10639_v24  ;;  %3631 = vmatpush.bf16.msrb.mxu2 %v10386_v28  ;;  %v9749_v24 = vld [vmem:[#allocation4 + $0x7d0] sm:$0xf]  ;;  %v9238_v28 = vor.u32 %v13167_v40, %v9237_v18  ;;  %v3415_v18 = vpop.f32.mrf.mxu1 }
 0x196   :  { %v9839_v32 = vld [vmem:[#allocation4 + $0x8a8] sm:$0xf0]  ;;  %v9109_v16 = vld [vmem:[#allocation4 + $0x2d0] sm:$0xf] }
 0x197   :  { %v13378_v33 = vld [vmem:[#allocation4 + $0xa8c] sm:$0xf]  ;;  %v9842_v50 = vor.u32 %v13314_v29, %v9839_v32  ;;  %3644 = vmatpush.bf16.msrb.mxu3 %v10642_v35  ;;  %v9494_v29 = vor.u32 %v13231_v21, %v9493_v20  ;;  %v8949_v32 = vld [vmem:[#allocation4 + $0x190] sm:$0xf]  ;;  %v9750_v35 = vor.u32 %v13295_v25, %v9749_v24 }
 0x198   :  { %v10095_v41 = vld [vmem:[#allocation4 + $0xaa8] sm:$0xf0]  ;;  %v13135_v40 = vld [vmem:[#allocation4 + $0x2ec] sm:$0xf0] }
 0x199   :  { %v13442_v42 = vld [vmem:[#allocation4 + $0xc8c] sm:$0xf]  ;;  %v10098_v54 = vor.u32 %v13378_v33, %v10095_v41  ;;  %3606 = vmatpush.bf16.msrb.mxu0 %v9842_v50  ;;  %v13095_v33 = vld [vmem:[#allocation4 + $0x1ac] sm:$0xf0] }
 0x19a   :  { %v10351_v45 = vld [vmem:[#allocation4 + $0xca8] sm:$0xf0]  ;;  %v13159_v41 = vld [vmem:[#allocation4 + $0x3ac] sm:$0xf0] }
 0x19b   :  { %v13506_v48 = vld [vmem:[#allocation4 + $0xe8c] sm:$0xf]  ;;  %v10354_v55 = vor.u32 %v13442_v42, %v10351_v45  ;;  %3619 = vmatpush.bf16.msrb.mxu1 %v10098_v54  ;;  %v9461_v42 = vld [vmem:[#allocation4 + $0x590] sm:$0xf] }
 0x19c   :  { %v10607_v49 = vld [vmem:[#allocation4 + $0xea8] sm:$0xf0]  ;;  %v13223_v45 = vld [vmem:[#allocation4 + $0x5ac] sm:$0xf0] }
 0x19d   :  { %v13306_v56 = vld [vmem:[#allocation4 + $0x84c] sm:$0xf]  ;;  %v10610_v60 = vor.u32 %v13506_v48, %v10607_v49  ;;  %3632 = vmatpush.bf16.msrb.mxu2 %v10354_v55  ;;  %v8950_v48 = vor.u32 %v13095_v33, %v8949_v32  ;;  %v9206_v49 = vor.u32 %v13159_v41, %v9205_v34  ;;  %v9462_v50 = vor.u32 %v13223_v45, %v9461_v42  ;;  %v13087_v54 = vld [vmem:[#allocation4 + $0x16c] sm:$0xf0]  ;;  %v3428_v33 = vpop.f32.mrf.mxu2  ;;  %v3441_v45 = vpop.f32.mrf.mxu3 }
 0x19e   :  { %v9807_v57 = vld [vmem:[#allocation4 + $0x868] sm:$0xf0]  ;;  %v9173_v55 = vld [vmem:[#allocation4 + $0x350] sm:$0xf] }
 0x19f   :  { %v13370_v58 = vld [vmem:[#allocation4 + $0xa4c] sm:$0xf]  ;;  %v9810_v2 = vor.u32 %v13306_v56, %v9807_v57  ;;  %3645 = vmatpush.bf16.msrb.mxu3 %v10610_v60  ;;  %v9718_v56 = vor.u32 %v13287_v47, %v9717_v46  ;;  %v13151_v57 = vld [vmem:[#allocation4 + $0x36c] sm:$0xf0] }
 0x1a0   :  { %v10063_v61 = vld [vmem:[#allocation4 + $0xa68] sm:$0xf0]  ;;  %v9685_v60 = vld [vmem:[#allocation4 + $0x750] sm:$0xf] }
 0x1a1   :  { %v13434_v62 = vld [vmem:[#allocation4 + $0xc4c] sm:$0xf]  ;;  %v10066_v5 = vor.u32 %v13370_v58, %v10063_v61  ;;  %3607 = vmatpush.bf16.msrb.mxu0 %v9810_v2  ;;  %v9429_v58 = vld [vmem:[#allocation4 + $0x550] sm:$0xf] }
 0x1a2   :  { %v10319_v63 = vld [vmem:[#allocation4 + $0xc68] sm:$0xf0]  ;;  %v13279_v61 = vld [vmem:[#allocation4 + $0x76c] sm:$0xf0] }
 0x1a3   :  { %v13498_v0 = vld [vmem:[#allocation4 + $0xe4c] sm:$0xf]  ;;  %v10322_v6 = vor.u32 %v13434_v62, %v10319_v63  ;;  %3620 = vmatpush.bf16.msrb.mxu1 %v10066_v5  ;;  %v8918_v62 = vor.u32 %v13087_v54, %v8917_v53  ;;  %v9174_v63 = vor.u32 %v13151_v57, %v9173_v55  ;;  %v13079_v2 = vld [vmem:[#allocation4 + $0x12c] sm:$0xf0] }
 0x1a4   :  { %v10575_v1 = vld [vmem:[#allocation4 + $0xe68] sm:$0xf0]  ;;  %v13143_v5 = vld [vmem:[#allocation4 + $0x32c] sm:$0xf0] }
 0x1a5   :  { %v13298_v3 = vld [vmem:[#allocation4 + $0x80c] sm:$0xf]  ;;  %v10578_v11 = vor.u32 %v13498_v0, %v10575_v1  ;;  %3633 = vmatpush.bf16.msrb.mxu2 %v10322_v6  ;;  %v9430_v0 = vor.u32 %v13215_v59, %v9429_v58  ;;  %v8885_v1 = vld [vmem:[#allocation4 + $0x110] sm:$0xf]  ;;  %v3417_v58 = vpop.f32.mrf.mxu1 }
 0x1a6   :  { %v9775_v4 = vld [vmem:[#allocation4 + $0x828] sm:$0xf0]  ;;  %v9397_v6 = vld [vmem:[#allocation4 + $0x510] sm:$0xf]  ;;  %v8886_v10 = vor.u32 %v13079_v2, %v8885_v1 }
 0x1a7   :  { %v13362_v7 = vld [vmem:[#allocation4 + $0xa0c] sm:$0xf]  ;;  %v9778_v19 = vor.u32 %v13298_v3, %v9775_v4  ;;  %3646 = vmatpush.bf16.msrb.mxu3 %v10578_v11  ;;  %v9141_v3 = vld [vmem:[#allocation4 + $0x310] sm:$0xf]  ;;  %v9686_v4 = vor.u32 %v13279_v61, %v9685_v60  ;;  %v3402_v11 = vpop.f32.mrf.mxu0 }
 0x1a8   :  { %v10031_v8 = vld [vmem:[#allocation4 + $0xa28] sm:$0xf0]  ;;  %v3403_v17 = vadd.f32 %v3402_v11, %v14415_v51  ;;  %v9365_v20 = vld [vmem:[#allocation4 + $0x4d0] sm:$0xf] }
 0x1a9   :  { %v13426_v9 = vld [vmem:[#allocation4 + $0xc0c] sm:$0xf]  ;;  %v10034_v22 = vor.u32 %v13362_v7, %v10031_v8  ;;  %3608 = vmatpush.bf16.msrb.mxu0 %v9778_v19  ;;  %v13207_v7 = vld [vmem:[#allocation4 + $0x52c] sm:$0xf0] }
 0x1aa   :  { %v10287_v12 = vld [vmem:[#allocation4 + $0xc28] sm:$0xf0]  ;;  %v9653_v8 = vld [vmem:[#allocation4 + $0x710] sm:$0xf]  ;;  %v3416_v24 = vadd.f32 %v3415_v18, %v3403_v17 }
 0x1ab   :  { %v13490_v13 = vld [vmem:[#allocation4 + $0xe0c] sm:$0xf]  ;;  %v10290_v23 = vor.u32 %v13426_v9, %v10287_v12  ;;  %3621 = vmatpush.bf16.msrb.mxu1 %v10034_v22  ;;  %v13271_v9 = vld [vmem:[#allocation4 + $0x72c] sm:$0xf0]  ;;  %v9142_v12 = vor.u32 %v13143_v5, %v9141_v3 }
 0x1ac   :  { %v10543_v14 = vld [vmem:[#allocation4 + $0xe28] sm:$0xf0]  ;;  %3609 = vmatmul.bf16.vlgmr.msrb.gmra.mxu0 %v14379_v37  ;;  %v9654_v19 = vor.u32 %v13271_v9, %v9653_v8  ;;  %v13199_v21 = vld [vmem:[#allocation4 + $0x4ec] sm:$0xf0]  ;;  %v3429_v42 = vadd.f32 %v3428_v33, %v3416_v24  ;;  %v3430_v9 = vpop.f32.mrf.mxu2 }
 0x1ad   :  { %v10546_v26 = vor.u32 %v13490_v13, %v10543_v14  ;;  %3634 = vmatpush.bf16.msrb.mxu2 %v10290_v23  ;;  %3653 = vmatpush.bf16.msra.mxu0 %v8982_v27  ;;  %v9398_v13 = vor.u32 %v13207_v7, %v9397_v6  ;;  %v8853_v14 = vld [vmem:[#allocation4 + $0xd0] sm:$0xf]  ;;  %v9366_v27 = vor.u32 %v13199_v21, %v9365_v20 }
 0x1ae   :  { %3622 = vmatmul.bf16.vlgmr.msrb.gmra.mxu1 %v14383_v44  ;;  %v9621_v22 = vld [vmem:[#allocation4 + $0x6d0] sm:$0xf]  ;;  %v8854_v25 = vor.u32 %v13071_v15, %v8853_v14  ;;  %v3443_v14 = vpop.f32.mrf.mxu3 }
 0x1af   :  { %3647 = vmatpush.bf16.msrb.mxu3 %v10546_v26  ;;  %3666 = vmatpush.bf16.msra.mxu1 %v9238_v28  ;;  %v13263_v23 = vld [vmem:[#allocation4 + $0x6ec] sm:$0xf0]  ;;  %v9110_v26 = vor.u32 %v13135_v40, %v9109_v16 }
 0x1b0   :  { %3635 = vmatmul.bf16.vlgmr.msrb.gmra.mxu2 %v14377_v36  ;;  %v8821_v28 = vld [vmem:[#allocation4 + $0x90] sm:$0xf]  ;;  %v9622_v51 = vor.u32 %v13263_v23, %v9621_v22 }
 0x1b1   :  { %3679 = vmatpush.bf16.msra.mxu2 %v9494_v29  ;;  %3654 = vmatpush.bf16.msra.mxu0 %v8950_v48  ;;  %v13063_v29 = vld [vmem:[#allocation4 + $0xac] sm:$0xf0] }
 0x1b2   :  { %3648 = vmatmul.bf16.vlgmr.msrb.gmra.mxu3 %v14381_v43  ;;  %v9077_v32 = vld [vmem:[#allocation4 + $0x290] sm:$0xf]  ;;  %v8822_v48 = vor.u32 %v13063_v29, %v8821_v28 }
 0x1b3   :  { %3692 = vmatpush.bf16.msra.mxu3 %v9750_v35  ;;  %3667 = vmatpush.bf16.msra.mxu1 %v9206_v49  ;;  %v13127_v34 = vld [vmem:[#allocation4 + $0x2ac] sm:$0xf0]  ;;  %v14422_v49 = vadd.f32 %v3441_v45, %v3429_v42 }
 0x1b4   :  { %v9333_v35 = vld [vmem:[#allocation4 + $0x490] sm:$0xf]  ;;  %v9078_v53 = vor.u32 %v13127_v34, %v9077_v32 }
 0x1b5   :  { %3680 = vmatpush.bf16.msra.mxu2 %v9462_v50  ;;  %3655 = vmatpush.bf16.msra.mxu0 %v8918_v62  ;;  %v13191_v41 = vld [vmem:[#allocation4 + $0x4ac] sm:$0xf0]  ;;  %v3404_v50 = vpop.f32.mrf.mxu0  ;;  %vm4070_vm1 = vcmp.ge.f32.partialorder %v14422_v49, 0.0 }
 0x1b6   :  { %v9589_v46 = vld [vmem:[#allocation4 + $0x690] sm:$0xf]  ;;  %v9334_v54 = vor.u32 %v13191_v41, %v9333_v35 }
 0x1b7   :  { %3693 = vmatpush.bf16.msra.mxu3 %v9718_v56  ;;  %3668 = vmatpush.bf16.msra.mxu1 %v9174_v63  ;;  %v13255_v47 = vld [vmem:[#allocation4 + $0x6ac] sm:$0xf0] }
 0x1b8   :  { %v8789_v55 = vld [vmem:[#allocation4 + $0x50] sm:$0xf]  ;;  %v9590_v59 = vor.u32 %v13255_v47, %v9589_v46 }
 0x1b9   :  { %3681 = vmatpush.bf16.msra.mxu2 %v9430_v0  ;;  %3656 = vmatpush.bf16.msra.mxu0 %v8886_v10  ;;  %v13055_v56 = vld [vmem:[#allocation4 + $0x6c] sm:$0xf0] }
 0x1ba   :  { %v9045_v57 = vld [vmem:[#allocation4 + $0x250] sm:$0xf]  ;;  %v8790_v1 = vor.u32 %v13055_v56, %v8789_v55 }
 0x1bb   :  { %3694 = vmatpush.bf16.msra.mxu3 %v9686_v4  ;;  %3669 = vmatpush.bf16.msra.mxu1 %v9142_v12  ;;  %v13119_v60 = vld [vmem:[#allocation4 + $0x26c] sm:$0xf0] }
 0x1bc   :  { %v9301_v61 = vld [vmem:[#allocation4 + $0x450] sm:$0xf]  ;;  %v9046_v4 = vor.u32 %v13119_v60, %v9045_v57 }
 0x1bd   :  { %3682 = vmatpush.bf16.msra.mxu2 %v9398_v13  ;;  %3657 = vmatpush.bf16.msra.mxu0 %v8854_v25  ;;  %v13183_v62 = vld [vmem:[#allocation4 + $0x46c] sm:$0xf0] }
 0x1be   :  { %v9557_v63 = vld [vmem:[#allocation4 + $0x650] sm:$0xf]  ;;  %v9302_v5 = vor.u32 %v13183_v62, %v9301_v61 }
 0x1bf   :  { %3695 = vmatpush.bf16.msra.mxu3 %v9654_v19  ;;  %3670 = vmatpush.bf16.msra.mxu1 %v9110_v26  ;;  %v13247_v0 = vld [vmem:[#allocation4 + $0x66c] sm:$0xf0] }
 0x1c0   :  { %v8757_v2 = vld [vmem:[#allocation4 + $0x10] sm:$0xf]  ;;  %v9558_v10 = vor.u32 %v13247_v0, %v9557_v63 }
 0x1c1   :  { %3683 = vmatpush.bf16.msra.mxu2 %v9366_v27  ;;  %3658 = vmatpush.bf16.msra.mxu0 %v8822_v48  ;;  %v13047_v3 = vld [vmem:[#allocation4 + $0x2c] sm:$0xf0] }
 0x1c2   :  { %v9013_v6 = vld [vmem:[#allocation4 + $0x210] sm:$0xf]  ;;  %v8758_v18 = vor.u32 %v13047_v3, %v8757_v2 }
 0x1c3   :  { %3696 = vmatpush.bf16.msra.mxu3 %v9622_v51  ;;  %3671 = vmatpush.bf16.msra.mxu1 %v9078_v53  ;;  %v13111_v7 = vld [vmem:[#allocation4 + $0x22c] sm:$0xf0] }
 0x1c4   :  { %v9269_v8 = vld [vmem:[#allocation4 + $0x410] sm:$0xf]  ;;  %v9014_v21 = vor.u32 %v13111_v7, %v9013_v6 }
 0x1c5   :  { %3684 = vmatpush.bf16.msra.mxu2 %v9334_v54  ;;  %v13175_v11 = vld [vmem:[#allocation4 + $0x42c] sm:$0xf0]  ;;  %3659 = vmatpush.bf16.msra.mxu0 %v8790_v1 }
 0x1c6   :  { %v9525_v12 = vld [vmem:[#allocation4 + $0x610] sm:$0xf]  ;;  %v9270_v22 = vor.u32 %v13175_v11, %v9269_v8 }
 0x1c7   :  { %3697 = vmatpush.bf16.msra.mxu3 %v9590_v59  ;;  %v13239_v13 = vld [vmem:[#allocation4 + $0x62c] sm:$0xf0]  ;;  %3672 = vmatpush.bf16.msra.mxu1 %v9046_v4 }
 0x1c8   :  { %v10005_v15 = vld [vmem:[#allocation4 + $0x9d0] sm:$0xf]  ;;  %v9526_v25 = vor.u32 %v13239_v13, %v9525_v12  ;;  %v3454_v12 = vpop.f32.mrf.mxu0 }
 0x1c9   :  { %v13359_v16 = vld [vmem:[#allocation4 + $0x9ec] sm:$0xf0]  ;;  %3685 = vmatpush.bf16.msra.mxu2 %v9302_v5  ;;  %3660 = vmatpush.bf16.msra.mxu0 %v8758_v18 }
 0x1ca   :  { %v10261_v17 = vld [vmem:[#allocation4 + $0xbd0] sm:$0xf]  ;;  %v10006_v26 = vor.u32 %v13359_v16, %v10005_v15 }
 0x1cb   :  { %v13423_v19 = vld [vmem:[#allocation4 + $0xbec] sm:$0xf0]  ;;  %3698 = vmatpush.bf16.msra.mxu3 %v9558_v10  ;;  %3673 = vmatpush.bf16.msra.mxu1 %v9014_v21 }
 0x1cc   :  { %v10517_v40 = vld [vmem:[#allocation4 + $0xdd0] sm:$0xf]  ;;  %v10262_v27 = vor.u32 %v13423_v19, %v10261_v17  ;;  %3661 = vmatmul.bf16.vlgmr.msra.gmra.mxu0 %v14364_v31  ;;  %v3467_v19 = vpop.f32.mrf.mxu1 }
 0x1cd   :  { %v13487_v20 = vld [vmem:[#allocation4 + $0xdec] sm:$0xf0]  ;;  %3686 = vmatpush.bf16.msra.mxu2 %v9270_v22  ;;  %3705 = vmatpush.bf16.msrb.mxu0 %v10006_v26 }
 0x1ce   :  { %v10773_v23 = vld [vmem:[#allocation4 + $0xfd0] sm:$0xf]  ;;  %v10518_v28 = vor.u32 %v13487_v20, %v10517_v40  ;;  %3674 = vmatmul.bf16.vlgmr.msra.gmra.mxu1 %v14368_v39 }
 0x1cf   :  { %v13551_v24 = vld [vmem:[#allocation4 + $0xfec] sm:$0xf0]  ;;  %3699 = vmatpush.bf16.msra.mxu3 %v9526_v25  ;;  %3718 = vmatpush.bf16.msrb.mxu1 %v10262_v27 }
 0x1d0   :  { %v9973_v29 = vld [vmem:[#allocation4 + $0x990] sm:$0xf]  ;;  %v10774_v51 = vor.u32 %v13551_v24, %v10773_v23  ;;  %3687 = vmatmul.bf16.vlgmr.msra.gmra.mxu2 %v14362_v30 }
 0x1d1   :  { %v13351_v32 = vld [vmem:[#allocation4 + $0x9ac] sm:$0xf0]  ;;  %3731 = vmatpush.bf16.msrb.mxu2 %v10518_v28 }
 0x1d2   :  { %v10229_v33 = vld [vmem:[#allocation4 + $0xb90] sm:$0xf]  ;;  %v9974_v46 = vor.u32 %v13351_v32, %v9973_v29  ;;  %3700 = vmatmul.bf16.vlgmr.msra.gmra.mxu3 %v14366_v38 }
 0x1d3   :  { %v13415_v34 = vld [vmem:[#allocation4 + $0xbac] sm:$0xf0]  ;;  %3744 = vmatpush.bf16.msrb.mxu3 %v10774_v51  ;;  %v3480_v51 = vpop.f32.mrf.mxu2 }
 0x1d4   :  { %v10485_v35 = vld [vmem:[#allocation4 + $0xd90] sm:$0xf]  ;;  %v10230_v47 = vor.u32 %v13415_v34, %v10229_v33  ;;  %3706 = vmatpush.bf16.msrb.mxu0 %v9974_v46  ;;  %v3493_v46 = vpop.f32.mrf.mxu3 }
 0x1d5   :  { %v13479_v41 = vld [vmem:[#allocation4 + $0xdac] sm:$0xf0] }
 0x1d6   :  { %v10741_v42 = vld [vmem:[#allocation4 + $0xf90] sm:$0xf]  ;;  %v10486_v48 = vor.u32 %v13479_v41, %v10485_v35  ;;  %3719 = vmatpush.bf16.msrb.mxu1 %v10230_v47 }
 0x1d7   :  { %v13543_v45 = vld [vmem:[#allocation4 + $0xfac] sm:$0xf0] }
 0x1d8   :  { %v9941_v50 = vld [vmem:[#allocation4 + $0x950] sm:$0xf]  ;;  %v10742_v55 = vor.u32 %v13543_v45, %v10741_v42  ;;  %3732 = vmatpush.bf16.msrb.mxu2 %v10486_v48 }
 0x1d9   :  { %v13343_v53 = vld [vmem:[#allocation4 + $0x96c] sm:$0xf0] }
 0x1da   :  { %v10197_v54 = vld [vmem:[#allocation4 + $0xb50] sm:$0xf]  ;;  %v9942_v61 = vor.u32 %v13343_v53, %v9941_v50  ;;  %3745 = vmatpush.bf16.msrb.mxu3 %v10742_v55 }
 0x1db   :  { %v13407_v56 = vld [vmem:[#allocation4 + $0xb6c] sm:$0xf0] }
 0x1dc   :  { %v10453_v57 = vld [vmem:[#allocation4 + $0xd50] sm:$0xf]  ;;  %v10198_v63 = vor.u32 %v13407_v56, %v10197_v54  ;;  %3707 = vmatpush.bf16.msrb.mxu0 %v9942_v61  ;;  %v3456_v54 = vpop.f32.mrf.mxu0 }
 0x1dd   :  { %v13471_v58 = vld [vmem:[#allocation4 + $0xd6c] sm:$0xf0] }
 0x1de   :  { %v10709_v59 = vld [vmem:[#allocation4 + $0xf50] sm:$0xf]  ;;  %v10454_v0 = vor.u32 %v13471_v58, %v10453_v57  ;;  %3720 = vmatpush.bf16.msrb.mxu1 %v10198_v63 }
 0x1df   :  { %v13535_v60 = vld [vmem:[#allocation4 + $0xf6c] sm:$0xf0] }
 0x1e0   :  { %v9909_v62 = vld [vmem:[#allocation4 + $0x910] sm:$0xf]  ;;  %v10710_v5 = vor.u32 %v13535_v60, %v10709_v59  ;;  %3733 = vmatpush.bf16.msrb.mxu2 %v10454_v0  ;;  %v3469_v60 = vpop.f32.mrf.mxu1 }
 0x1e1   :  { %v13335_v1 = vld [vmem:[#allocation4 + $0x92c] sm:$0xf0]  ;;  %v9175_v60 = vld [vmem:[#allocation4 + $0x370] sm:$0xf0] }
 0x1e2   :  { %v10165_v2 = vld [vmem:[#allocation4 + $0xb10] sm:$0xf]  ;;  %v9910_v11 = vor.u32 %v13335_v1, %v9909_v62  ;;  %3746 = vmatpush.bf16.msrb.mxu3 %v10710_v5 }
 0x1e3   :  { %v14428_v3 = vld [vmem:[#allocation2] sm:$0xff] }
 0x1e4   :  { %v663_v4 = vperm.slane %v14428_v3, 2  ;;  %v13399_v6 = vld [vmem:[#allocation4 + $0xb2c] sm:$0xf0]  ;;  %3708 = vmatpush.bf16.msrb.mxu0 %v9910_v11 }
 0x1e5   :  { %v10421_v7 = vld [vmem:[#allocation4 + $0xd10] sm:$0xf]  ;;  %v10166_v13 = vor.u32 %v13399_v6, %v10165_v2 }
 0x1e6   :  { %v13463_v8 = vld [vmem:[#allocation4 + $0xd2c] sm:$0xf0]  ;;  %v3455_v18 = vadd.f32 %v3454_v12, %v663_v4  ;;  %v3482_v12 = vpop.f32.mrf.mxu2 }
 0x1e7   :  { %v10677_v9 = vld [vmem:[#allocation4 + $0xf10] sm:$0xf]  ;;  %v10422_v14 = vor.u32 %v13463_v8, %v10421_v7  ;;  %3721 = vmatpush.bf16.msrb.mxu1 %v10166_v13  ;;  %v13267_v12 = vld [vmem:[#allocation4 + $0x714] sm:$0xf] }
 0x1e8   :  { %v13527_v10 = vld [vmem:[#allocation4 + $0xf2c] sm:$0xf0]  ;;  %v3468_v25 = vadd.f32 %v3467_v19, %v3455_v18  ;;  %v13099_v18 = vld [vmem:[#allocation4 + $0x1d4] sm:$0xf] }
 0x1e9   :  { %v9877_v15 = vld [vmem:[#allocation4 + $0x8d0] sm:$0xf]  ;;  %v10678_v40 = vor.u32 %v13527_v10, %v10677_v9  ;;  %3734 = vmatpush.bf16.msrb.mxu2 %v10422_v14  ;;  %v8983_v19 = vld [vmem:[#allocation4 + $0x1f0] sm:$0xf0] }
 0x1ea   :  { %v13327_v16 = vld [vmem:[#allocation4 + $0x8ec] sm:$0xf0]  ;;  %v3481_v45 = vadd.f32 %v3480_v51, %v3468_v25  ;;  %v13091_v51 = vld [vmem:[#allocation4 + $0x194] sm:$0xf] }
 0x1eb   :  { %v10133_v17 = vld [vmem:[#allocation4 + $0xad0] sm:$0xf]  ;;  %v9878_v26 = vor.u32 %v13327_v16, %v9877_v15  ;;  %3747 = vmatpush.bf16.msrb.mxu3 %v10678_v40  ;;  %v13163_v40 = vld [vmem:[#allocation4 + $0x3d4] sm:$0xf] }
 0x1ec   :  { %v13391_v20 = vld [vmem:[#allocation4 + $0xaec] sm:$0xf0]  ;;  %v14431_v53 = vadd.f32 %v3493_v46, %v3481_v45  ;;  %v13219_v45 = vld [vmem:[#allocation4 + $0x594] sm:$0xf] }
 0x1ed   :  { %v10389_v21 = vld [vmem:[#allocation4 + $0xcd0] sm:$0xf]  ;;  %v10134_v27 = vor.u32 %v13391_v20, %v10133_v17  ;;  %3709 = vmatpush.bf16.msrb.mxu0 %v9878_v26  ;;  %v3495_v17 = vpop.f32.mrf.mxu3  ;;  %v13291_v26 = vld [vmem:[#allocation4 + $0x7d4] sm:$0xf] }
 0x1ee   :  { %v13455_v22 = vld [vmem:[#allocation4 + $0xcec] sm:$0xf0]  ;;  %v9463_v46 = vld [vmem:[#allocation4 + $0x5b0] sm:$0xf0] }
 0x1ef   :  { %v10645_v23 = vld [vmem:[#allocation4 + $0xed0] sm:$0xf]  ;;  %v10390_v28 = vor.u32 %v13455_v22, %v10389_v21  ;;  %3722 = vmatpush.bf16.msrb.mxu1 %v10134_v27  ;;  %v9239_v21 = vld [vmem:[#allocation4 + $0x3f0] sm:$0xf0] }
 0x1f0   :  { %v13519_v24 = vld [vmem:[#allocation4 + $0xeec] sm:$0xf0]  ;;  %v13227_v22 = vld [vmem:[#allocation4 + $0x5d4] sm:$0xf] }
 0x1f1   :  { %v9845_v29 = vld [vmem:[#allocation4 + $0x890] sm:$0xf]  ;;  %v10646_v34 = vor.u32 %v13519_v24, %v10645_v23  ;;  %3735 = vmatpush.bf16.msrb.mxu2 %v10390_v28  ;;  %v9495_v23 = vld [vmem:[#allocation4 + $0x5f0] sm:$0xf0] }
 0x1f2   :  { %v13319_v32 = vld [vmem:[#allocation4 + $0x8ac] sm:$0xf0]  ;;  %v9751_v27 = vld [vmem:[#allocation4 + $0x7f0] sm:$0xf0] }
 0x1f3   :  { %v10101_v33 = vld [vmem:[#allocation4 + $0xa90] sm:$0xf]  ;;  %v9846_v50 = vor.u32 %v13319_v32, %v9845_v29  ;;  %3748 = vmatpush.bf16.msrb.mxu3 %v10646_v34  ;;  %v8986_v29 = vor.u32 %v13099_v18, %v8983_v19  ;;  %v9242_v32 = vor.u32 %v13163_v40, %v9239_v21  ;;  %v8951_v34 = vld [vmem:[#allocation4 + $0x1b0] sm:$0xf0]  ;;  %v3519_v21 = vpop.f32.mrf.mxu1 }
 0x1f4   :  { %v13383_v35 = vld [vmem:[#allocation4 + $0xaac] sm:$0xf0]  ;;  %v13067_v18 = vld [vmem:[#allocation4 + $0xd4] sm:$0xf] }
 0x1f5   :  { %v10357_v41 = vld [vmem:[#allocation4 + $0xc90] sm:$0xf]  ;;  %v10102_v55 = vor.u32 %v13383_v35, %v10101_v33  ;;  %3710 = vmatpush.bf16.msrb.mxu0 %v9846_v50  ;;  %v9498_v33 = vor.u32 %v13227_v22, %v9495_v23  ;;  %v13155_v35 = vld [vmem:[#allocation4 + $0x394] sm:$0xf]  ;;  %v8954_v50 = vor.u32 %v13091_v51, %v8951_v34 }
 0x1f6   :  { %v13447_v42 = vld [vmem:[#allocation4 + $0xcac] sm:$0xf0]  ;;  %v8855_v19 = vld [vmem:[#allocation4 + $0xf0] sm:$0xf0] }
 0x1f7   :  { %v10613_v47 = vld [vmem:[#allocation4 + $0xe90] sm:$0xf]  ;;  %v10358_v56 = vor.u32 %v13447_v42, %v10357_v41  ;;  %3723 = vmatpush.bf16.msrb.mxu1 %v10102_v55  ;;  %v9754_v41 = vor.u32 %v13291_v26, %v9751_v27  ;;  %v9207_v42 = vld [vmem:[#allocation4 + $0x3b0] sm:$0xf0]  ;;  %v9466_v55 = vor.u32 %v13219_v45, %v9463_v46 }
 0x1f8   :  { %v13511_v48 = vld [vmem:[#allocation4 + $0xeac] sm:$0xf0]  ;;  %v9210_v54 = vor.u32 %v13155_v35, %v9207_v42  ;;  %v13131_v40 = vld [vmem:[#allocation4 + $0x2d4] sm:$0xf] }
 0x1f9   :  { %v9813_v57 = vld [vmem:[#allocation4 + $0x850] sm:$0xf]  ;;  %v10614_v61 = vor.u32 %v13511_v48, %v10613_v47  ;;  %3736 = vmatpush.bf16.msrb.mxu2 %v10358_v56  ;;  %v13283_v47 = vld [vmem:[#allocation4 + $0x794] sm:$0xf] }
 0x1fa   :  { %v13311_v58 = vld [vmem:[#allocation4 + $0x86c] sm:$0xf0]  ;;  %v9719_v48 = vld [vmem:[#allocation4 + $0x7b0] sm:$0xf0] }
 0x1fb   :  { %v10069_v59 = vld [vmem:[#allocation4 + $0xa50] sm:$0xf]  ;;  %v9814_v4 = vor.u32 %v13311_v58, %v9813_v57  ;;  %3749 = vmatpush.bf16.msrb.mxu3 %v10614_v61  ;;  %v13083_v56 = vld [vmem:[#allocation4 + $0x154] sm:$0xf] }
 0x1fc   :  { %v13375_v62 = vld [vmem:[#allocation4 + $0xa6c] sm:$0xf0]  ;;  %v8919_v57 = vld [vmem:[#allocation4 + $0x170] sm:$0xf0] }
 0x1fd   :  { %v10325_v63 = vld [vmem:[#allocation4 + $0xc50] sm:$0xf]  ;;  %v10070_v7 = vor.u32 %v13375_v62, %v10069_v59  ;;  %3711 = vmatpush.bf16.msrb.mxu0 %v9814_v4  ;;  %v13147_v58 = vld [vmem:[#allocation4 + $0x354] sm:$0xf]  ;;  %v9722_v59 = vor.u32 %v13283_v47, %v9719_v48  ;;  %v3545_v48 = vpop.f32.mrf.mxu3 }
 0x1fe   :  { %v13439_v0 = vld [vmem:[#allocation4 + $0xc6c] sm:$0xf0]  ;;  %v13211_v61 = vld [vmem:[#allocation4 + $0x554] sm:$0xf] }
 0x1ff   :  { %v10581_v1 = vld [vmem:[#allocation4 + $0xe50] sm:$0xf]  ;;  %v10326_v8 = vor.u32 %v13439_v0, %v10325_v63  ;;  %3724 = vmatpush.bf16.msrb.mxu1 %v10070_v7  ;;  %v9431_v62 = vld [vmem:[#allocation4 + $0x570] sm:$0xf0] }
 0x200   :  { %v13503_v2 = vld [vmem:[#allocation4 + $0xe6c] sm:$0xf0]  ;;  %v13275_v63 = vld [vmem:[#allocation4 + $0x754] sm:$0xf]  ;;  %v9434_v4 = vor.u32 %v13211_v61, %v9431_v62 }
 0x201   :  { %v9781_v5 = vld [vmem:[#allocation4 + $0x810] sm:$0xf]  ;;  %v10582_v13 = vor.u32 %v13503_v2, %v10581_v1  ;;  %3737 = vmatpush.bf16.msrb.mxu2 %v10326_v8  ;;  %v9687_v0 = vld [vmem:[#allocation4 + $0x770] sm:$0xf0]  ;;  %v8922_v1 = vor.u32 %v13083_v56, %v8919_v57  ;;  %v9178_v2 = vor.u32 %v13147_v58, %v9175_v60 }
 0x202   :  { %v13303_v6 = vld [vmem:[#allocation4 + $0x82c] sm:$0xf0]  ;;  %v13139_v7 = vld [vmem:[#allocation4 + $0x314] sm:$0xf]  ;;  %v9690_v8 = vor.u32 %v13275_v63, %v9687_v0  ;;  %v3521_v63 = vpop.f32.mrf.mxu1 }
 0x203   :  { %v10037_v9 = vld [vmem:[#allocation4 + $0xa10] sm:$0xf]  ;;  %v9782_v20 = vor.u32 %v13303_v6, %v9781_v5  ;;  %3750 = vmatpush.bf16.msrb.mxu3 %v10582_v13  ;;  %v13075_v5 = vld [vmem:[#allocation4 + $0x114] sm:$0xf] }
 0x204   :  { %v13367_v10 = vld [vmem:[#allocation4 + $0xa2c] sm:$0xf0]  ;;  %v8887_v6 = vld [vmem:[#allocation4 + $0x130] sm:$0xf0] }
 0x205   :  { %v10293_v11 = vld [vmem:[#allocation4 + $0xc10] sm:$0xf]  ;;  %v10038_v24 = vor.u32 %v13367_v10, %v10037_v9  ;;  %3712 = vmatpush.bf16.msrb.mxu0 %v9782_v20  ;;  %v9143_v9 = vld [vmem:[#allocation4 + $0x330] sm:$0xf0] }
 0x206   :  { %v13431_v14 = vld [vmem:[#allocation4 + $0xc2c] sm:$0xf0]  ;;  %v13203_v10 = vld [vmem:[#allocation4 + $0x514] sm:$0xf] }
 0x207   :  { %v10549_v15 = vld [vmem:[#allocation4 + $0xe10] sm:$0xf]  ;;  %v10294_v25 = vor.u32 %v13431_v14, %v10293_v11  ;;  %3725 = vmatpush.bf16.msrb.mxu1 %v10038_v24  ;;  %v9399_v11 = vld [vmem:[#allocation4 + $0x530] sm:$0xf0]  ;;  %v8890_v14 = vor.u32 %v13075_v5, %v8887_v6 }
 0x208   :  { %v13495_v16 = vld [vmem:[#allocation4 + $0xe2c] sm:$0xf0]  ;;  %3713 = vmatmul.bf16.vlgmr.msrb.gmra.mxu0 %v14379_v37  ;;  %v9655_v13 = vld [vmem:[#allocation4 + $0x730] sm:$0xf0]  ;;  %v9402_v17 = vor.u32 %v13203_v10, %v9399_v11 }
 0x209   :  { %v10550_v28 = vor.u32 %v13495_v16, %v10549_v15  ;;  %3738 = vmatpush.bf16.msrb.mxu2 %v10294_v25  ;;  %3757 = vmatpush.bf16.msra.mxu0 %v8986_v29  ;;  %v3506_v15 = vpop.f32.mrf.mxu0  ;;  %v9146_v16 = vor.u32 %v13139_v7, %v9143_v9  ;;  %v9658_v22 = vor.u32 %v13267_v12, %v9655_v13  ;;  %v9111_v23 = vld [vmem:[#allocation4 + $0x2f0] sm:$0xf0] }
 0x20a   :  { %3726 = vmatmul.bf16.vlgmr.msrb.gmra.mxu1 %v14383_v44  ;;  %v3507_v20 = vadd.f32 %v3506_v15, %v14431_v53  ;;  %v13195_v24 = vld [vmem:[#allocation4 + $0x4d4] sm:$0xf]  ;;  %v8858_v29 = vor.u32 %v13067_v18, %v8855_v19 }
 0x20b   :  { %3751 = vmatpush.bf16.msrb.mxu3 %v10550_v28  ;;  %3770 = vmatpush.bf16.msra.mxu1 %v9242_v32  ;;  %v9367_v25 = vld [vmem:[#allocation4 + $0x4f0] sm:$0xf0]  ;;  %v9114_v32 = vor.u32 %v13131_v40, %v9111_v23  ;;  %v3547_v40 = vpop.f32.mrf.mxu3 }
 0x20c   :  { %3739 = vmatmul.bf16.vlgmr.msrb.gmra.mxu2 %v14377_v36  ;;  %v13259_v26 = vld [vmem:[#allocation4 + $0x6d4] sm:$0xf]  ;;  %v3520_v28 = vadd.f32 %v3519_v21, %v3507_v20 }
 0x20d   :  { %3783 = vmatpush.bf16.msra.mxu2 %v9498_v33  ;;  %3758 = vmatpush.bf16.msra.mxu0 %v8954_v50  ;;  %v9623_v27 = vld [vmem:[#allocation4 + $0x6f0] sm:$0xf0]  ;;  %v9370_v33 = vor.u32 %v13195_v24, %v9367_v25 }
 0x20e   :  { %3752 = vmatmul.bf16.vlgmr.msrb.gmra.mxu3 %v14381_v43  ;;  %v13059_v51 = vld [vmem:[#allocation4 + $0x94] sm:$0xf]  ;;  %v9626_v53 = vor.u32 %v13259_v26, %v9623_v27 }
 0x20f   :  { %3796 = vmatpush.bf16.msra.mxu3 %v9754_v41  ;;  %3771 = vmatpush.bf16.msra.mxu1 %v9210_v54  ;;  %v8823_v34 = vld [vmem:[#allocation4 + $0xb0] sm:$0xf0]  ;;  %v3532_v41 = vpop.f32.mrf.mxu2 }
 0x210   :  { %v13123_v35 = vld [vmem:[#allocation4 + $0x294] sm:$0xf]  ;;  %v3533_v47 = vadd.f32 %v3532_v41, %v3520_v28 }
 0x211   :  { %3784 = vmatpush.bf16.msra.mxu2 %v9466_v55  ;;  %3759 = vmatpush.bf16.msra.mxu0 %v8922_v1  ;;  %v9079_v42 = vld [vmem:[#allocation4 + $0x2b0] sm:$0xf0]  ;;  %v8826_v55 = vor.u32 %v13059_v51, %v8823_v34  ;;  %v3508_v57 = vpop.f32.mrf.mxu0 }
 0x212   :  { %v13187_v45 = vld [vmem:[#allocation4 + $0x494] sm:$0xf]  ;;  %v14438_v56 = vadd.f32 %v3545_v48, %v3533_v47  ;;  %v9082_v58 = vor.u32 %v13123_v35, %v9079_v42 }
 0x213   :  { %3797 = vmatpush.bf16.msra.mxu3 %v9722_v59  ;;  %3772 = vmatpush.bf16.msra.mxu1 %v9178_v2  ;;  %v9335_v46 = vld [vmem:[#allocation4 + $0x4b0] sm:$0xf0] }
 0x214   :  { %v13251_v50 = vld [vmem:[#allocation4 + $0x694] sm:$0xf]  ;;  %v9338_v59 = vor.u32 %v13187_v45, %v9335_v46  ;;  %vm4071_vm2 = vcmp.ge.f32.partialorder %v14438_v56, 0.0 }
 0x215   :  { %3785 = vmatpush.bf16.msra.mxu2 %v9434_v4  ;;  %3760 = vmatpush.bf16.msra.mxu0 %v8890_v14  ;;  %v9591_v54 = vld [vmem:[#allocation4 + $0x6b0] sm:$0xf0] }
 0x216   :  { %v13051_v60 = vld [vmem:[#allocation4 + $0x54] sm:$0xf]  ;;  %v9594_v0 = vor.u32 %v13251_v50, %v9591_v54 }
 0x217   :  { %3798 = vmatpush.bf16.msra.mxu3 %v9690_v8  ;;  %3773 = vmatpush.bf16.msra.mxu1 %v9146_v16  ;;  %v8791_v61 = vld [vmem:[#allocation4 + $0x70] sm:$0xf0]  ;;  %v3534_v15 = vpop.f32.mrf.mxu2 }
 0x218   :  { %v13115_v62 = vld [vmem:[#allocation4 + $0x254] sm:$0xf]  ;;  %v8794_v7 = vor.u32 %v13051_v60, %v8791_v61 }
 0x219   :  { %3786 = vmatpush.bf16.msra.mxu2 %v9402_v17  ;;  %3761 = vmatpush.bf16.msra.mxu0 %v8858_v29  ;;  %v9047_v1 = vld [vmem:[#allocation4 + $0x270] sm:$0xf0] }
 0x21a   :  { %v13179_v2 = vld [vmem:[#allocation4 + $0x454] sm:$0xf]  ;;  %v9050_v10 = vor.u32 %v13115_v62, %v9047_v1 }
 0x21b   :  { %3799 = vmatpush.bf16.msra.mxu3 %v9658_v22  ;;  %3774 = vmatpush.bf16.msra.mxu1 %v9114_v32  ;;  %v9303_v4 = vld [vmem:[#allocation4 + $0x470] sm:$0xf0] }
 0x21c   :  { %v13243_v5 = vld [vmem:[#allocation4 + $0x654] sm:$0xf]  ;;  %v9306_v11 = vor.u32 %v13179_v2, %v9303_v4 }
 0x21d   :  { %3787 = vmatpush.bf16.msra.mxu2 %v9370_v33  ;;  %v9559_v6 = vld [vmem:[#allocation4 + $0x670] sm:$0xf0]  ;;  %3762 = vmatpush.bf16.msra.mxu0 %v8826_v55 }
 0x21e   :  { %v13043_v8 = vld [vmem:[#allocation4 + $0x14] sm:$0xf]  ;;  %v9562_v16 = vor.u32 %v13243_v5, %v9559_v6 }
 0x21f   :  { %3800 = vmatpush.bf16.msra.mxu3 %v9626_v53  ;;  %v8759_v9 = vld [vmem:[#allocation4 + $0x30] sm:$0xf0]  ;;  %3775 = vmatpush.bf16.msra.mxu1 %v9082_v58 }
 0x220   :  { %v13107_v12 = vld [vmem:[#allocation4 + $0x214] sm:$0xf]  ;;  %v8762_v23 = vor.u32 %v13043_v8, %v8759_v9 }
 0x221   :  { %3788 = vmatpush.bf16.msra.mxu2 %v9338_v59  ;;  %v9015_v13 = vld [vmem:[#allocation4 + $0x230] sm:$0xf0]  ;;  %3763 = vmatpush.bf16.msra.mxu0 %v8794_v7 }
 0x222   :  { %v13171_v14 = vld [vmem:[#allocation4 + $0x414] sm:$0xf]  ;;  %v9018_v27 = vor.u32 %v13107_v12, %v9015_v13 }
 0x223   :  { %3801 = vmatpush.bf16.msra.mxu3 %v9594_v0  ;;  %v9271_v17 = vld [vmem:[#allocation4 + $0x430] sm:$0xf0]  ;;  %3776 = vmatpush.bf16.msra.mxu1 %v9050_v10 }
 0x224   :  { %v13235_v18 = vld [vmem:[#allocation4 + $0x614] sm:$0xf]  ;;  %v9274_v28 = vor.u32 %v13171_v14, %v9271_v17 }
 0x225   :  { %v9527_v19 = vld [vmem:[#allocation4 + $0x630] sm:$0xf0]  ;;  %3789 = vmatpush.bf16.msra.mxu2 %v9306_v11  ;;  %3764 = vmatpush.bf16.msra.mxu0 %v8762_v23  ;;  %v664_v11 = vperm.slane %v14428_v3, 3 }
 0x226   :  { %v13355_v20 = vld [vmem:[#allocation4 + $0x9d4] sm:$0xf]  ;;  %v9530_v33 = vor.u32 %v13235_v18, %v9527_v19  ;;  %v3558_v19 = vpop.f32.mrf.mxu0 }
 0x227   :  { %v10007_v21 = vld [vmem:[#allocation4 + $0x9f0] sm:$0xf0]  ;;  %3802 = vmatpush.bf16.msra.mxu3 %v9562_v16  ;;  %3777 = vmatpush.bf16.msra.mxu1 %v9018_v27 }
 0x228   :  { %v13419_v22 = vld [vmem:[#allocation4 + $0xbd4] sm:$0xf]  ;;  %v10010_v51 = vor.u32 %v13355_v20, %v10007_v21  ;;  %3765 = vmatmul.bf16.vlgmr.msra.gmra.mxu0 %v14364_v31 }
 0x229   :  { %v10263_v24 = vld [vmem:[#allocation4 + $0xbf0] sm:$0xf0]  ;;  %3790 = vmatpush.bf16.msra.mxu2 %v9274_v28 }
 0x22a   :  { %v13483_v25 = vld [vmem:[#allocation4 + $0xdd4] sm:$0xf]  ;;  %v10266_v34 = vor.u32 %v13419_v22, %v10263_v24  ;;  %3809 = vmatpush.bf16.msrb.mxu0 %v10010_v51  ;;  %3778 = vmatmul.bf16.vlgmr.msra.gmra.mxu1 %v14368_v39  ;;  %v3559_v24 = vadd.f32 %v3558_v19, %v664_v11 }
 0x22b   :  { %v10519_v26 = vld [vmem:[#allocation4 + $0xdf0] sm:$0xf0]  ;;  %3803 = vmatpush.bf16.msra.mxu3 %v9530_v33 }
 0x22c   :  { %v13547_v29 = vld [vmem:[#allocation4 + $0xfd4] sm:$0xf]  ;;  %v10522_v35 = vor.u32 %v13483_v25, %v10519_v26  ;;  %3822 = vmatpush.bf16.msrb.mxu1 %v10266_v34  ;;  %3791 = vmatmul.bf16.vlgmr.msra.gmra.mxu2 %v14362_v30  ;;  %v3571_v25 = vpop.f32.mrf.mxu1 }
 0x22d   :  { %v10775_v32 = vld [vmem:[#allocation4 + $0xff0] sm:$0xf0]  ;;  %v3572_v33 = vadd.f32 %v3571_v25, %v3559_v24  ;;  %v8989_v24 = vld [vmem:[#allocation4 + $0x1d8] sm:$0xf] }
 0x22e   :  { %v13347_v41 = vld [vmem:[#allocation4 + $0x994] sm:$0xf]  ;;  %v10778_v45 = vor.u32 %v13547_v29, %v10775_v32  ;;  %3835 = vmatpush.bf16.msrb.mxu2 %v10522_v35  ;;  %3804 = vmatmul.bf16.vlgmr.msra.gmra.mxu3 %v14366_v38  ;;  %v13104_v25 = vld [vmem:[#allocation4 + $0x1f4] sm:$0xf0] }
 0x22f   :  { %v9975_v53 = vld [vmem:[#allocation4 + $0x9b0] sm:$0xf0] }
 0x230   :  { %v13411_v42 = vld [vmem:[#allocation4 + $0xb94] sm:$0xf]  ;;  %v9978_v55 = vor.u32 %v13347_v41, %v9975_v53  ;;  %3848 = vmatpush.bf16.msrb.mxu3 %v10778_v45  ;;  %v3584_v45 = vpop.f32.mrf.mxu2 }
 0x231   :  { %v10231_v46 = vld [vmem:[#allocation4 + $0xbb0] sm:$0xf0] }
 0x232   :  { %v13475_v47 = vld [vmem:[#allocation4 + $0xd94] sm:$0xf]  ;;  %v10234_v57 = vor.u32 %v13411_v42, %v10231_v46  ;;  %3810 = vmatpush.bf16.msrb.mxu0 %v9978_v55  ;;  %v3597_v55 = vpop.f32.mrf.mxu3 }
 0x233   :  { %v10487_v48 = vld [vmem:[#allocation4 + $0xdb0] sm:$0xf0] }
 0x234   :  { %v13539_v50 = vld [vmem:[#allocation4 + $0xf94] sm:$0xf]  ;;  %v10490_v58 = vor.u32 %v13475_v47, %v10487_v48  ;;  %3823 = vmatpush.bf16.msrb.mxu1 %v10234_v57 }
 0x235   :  { %v10743_v54 = vld [vmem:[#allocation4 + $0xfb0] sm:$0xf0] }
 0x236   :  { %v13339_v59 = vld [vmem:[#allocation4 + $0x954] sm:$0xf]  ;;  %v10746_v62 = vor.u32 %v13539_v50, %v10743_v54  ;;  %3836 = vmatpush.bf16.msrb.mxu2 %v10490_v58  ;;  %v3585_v54 = vadd.f32 %v3584_v45, %v3572_v33  ;;  %v8957_v45 = vld [vmem:[#allocation4 + $0x198] sm:$0xf] }
 0x237   :  { %v9943_v60 = vld [vmem:[#allocation4 + $0x970] sm:$0xf0] }
 0x238   :  { %v13403_v61 = vld [vmem:[#allocation4 + $0xb54] sm:$0xf]  ;;  %v9946_v5 = vor.u32 %v13339_v59, %v9943_v60  ;;  %3849 = vmatpush.bf16.msrb.mxu3 %v10746_v62  ;;  %v14445_v60 = vadd.f32 %v3597_v55, %v3585_v54  ;;  %v3586_v19 = vpop.f32.mrf.mxu2  ;;  %v9469_v54 = vld [vmem:[#allocation4 + $0x598] sm:$0xf] }
 0x239   :  { %v10199_v63 = vld [vmem:[#allocation4 + $0xb70] sm:$0xf0]  ;;  %v13224_v55 = vld [vmem:[#allocation4 + $0x5b4] sm:$0xf0] }
 0x23a   :  { %v13467_v0 = vld [vmem:[#allocation4 + $0xd54] sm:$0xf]  ;;  %v10202_v7 = vor.u32 %v13403_v61, %v10199_v63  ;;  %3811 = vmatpush.bf16.msrb.mxu0 %v9946_v5  ;;  %v3560_v61 = vpop.f32.mrf.mxu0  ;;  %v9661_v19 = vld [vmem:[#allocation4 + $0x718] sm:$0xf] }
 0x23b   :  { %v10455_v1 = vld [vmem:[#allocation4 + $0xd70] sm:$0xf0] }
 0x23c   :  { %v13531_v2 = vld [vmem:[#allocation4 + $0xf54] sm:$0xf]  ;;  %v10458_v8 = vor.u32 %v13467_v0, %v10455_v1  ;;  %3824 = vmatpush.bf16.msrb.mxu1 %v10202_v7 }
 0x23d   :  { %v10711_v4 = vld [vmem:[#allocation4 + $0xf70] sm:$0xf0] }
 0x23e   :  { %v13331_v6 = vld [vmem:[#allocation4 + $0x914] sm:$0xf]  ;;  %v10714_v12 = vor.u32 %v13531_v2, %v10711_v4  ;;  %3837 = vmatpush.bf16.msrb.mxu2 %v10458_v8  ;;  %v3573_v4 = vpop.f32.mrf.mxu1 }
 0x23f   :  { %v9911_v9 = vld [vmem:[#allocation4 + $0x930] sm:$0xf0]  ;;  %v13152_v4 = vld [vmem:[#allocation4 + $0x374] sm:$0xf0] }
 0x240   :  { %v13395_v10 = vld [vmem:[#allocation4 + $0xb14] sm:$0xf]  ;;  %v9914_v18 = vor.u32 %v13331_v6, %v9911_v9  ;;  %3850 = vmatpush.bf16.msrb.mxu3 %v10714_v12 }
 0x241   :  { %v10167_v13 = vld [vmem:[#allocation4 + $0xb30] sm:$0xf0] }
 0x242   :  { %v13459_v14 = vld [vmem:[#allocation4 + $0xd14] sm:$0xf]  ;;  %v10170_v40 = vor.u32 %v13395_v10, %v10167_v13  ;;  %3812 = vmatpush.bf16.msrb.mxu0 %v9914_v18 }
 0x243   :  { %v10423_v15 = vld [vmem:[#allocation4 + $0xd30] sm:$0xf0] }
 0x244   :  { %v13523_v16 = vld [vmem:[#allocation4 + $0xf14] sm:$0xf]  ;;  %v10426_v20 = vor.u32 %v13459_v14, %v10423_v15  ;;  %3825 = vmatpush.bf16.msrb.mxu1 %v10170_v40 }
 0x245   :  { %v10679_v17 = vld [vmem:[#allocation4 + $0xf30] sm:$0xf0] }
 0x246   :  { %v13323_v21 = vld [vmem:[#allocation4 + $0x8d4] sm:$0xf]  ;;  %v10682_v3 = vor.u32 %v13523_v16, %v10679_v17  ;;  %3838 = vmatpush.bf16.msrb.mxu2 %v10426_v20 }
 0x247   :  { %v9879_v22 = vld [vmem:[#allocation4 + $0x8f0] sm:$0xf0] }
 0x248   :  { %v13387_v23 = vld [vmem:[#allocation4 + $0xad4] sm:$0xf]  ;;  %v9882_v51 = vor.u32 %v13323_v21, %v9879_v22  ;;  %3851 = vmatpush.bf16.msrb.mxu3 %v10682_v3  ;;  %v9245_v3 = vld [vmem:[#allocation4 + $0x3d8] sm:$0xf] }
 0x249   :  { %v10135_v26 = vld [vmem:[#allocation4 + $0xaf0] sm:$0xf0] }
 0x24a   :  { %v13451_v27 = vld [vmem:[#allocation4 + $0xcd4] sm:$0xf]  ;;  %v10138_v34 = vor.u32 %v13387_v23, %v10135_v26  ;;  %3813 = vmatpush.bf16.msrb.mxu0 %v9882_v51  ;;  %v3599_v23 = vpop.f32.mrf.mxu3  ;;  %v9757_v51 = vld [vmem:[#allocation4 + $0x7d8] sm:$0xf] }
 0x24b   :  { %v10391_v28 = vld [vmem:[#allocation4 + $0xcf0] sm:$0xf0] }
 0x24c   :  { %v13515_v29 = vld [vmem:[#allocation4 + $0xed4] sm:$0xf]  ;;  %v10394_v35 = vor.u32 %v13451_v27, %v10391_v28  ;;  %3826 = vmatpush.bf16.msrb.mxu1 %v10138_v34  ;;  %v13168_v27 = vld [vmem:[#allocation4 + $0x3f4] sm:$0xf0] }
 0x24d   :  { %v10647_v32 = vld [vmem:[#allocation4 + $0xef0] sm:$0xf0]  ;;  %v9501_v28 = vld [vmem:[#allocation4 + $0x5d8] sm:$0xf] }
 0x24e   :  { %v13315_v41 = vld [vmem:[#allocation4 + $0x894] sm:$0xf]  ;;  %v10650_v46 = vor.u32 %v13515_v29, %v10647_v32  ;;  %3839 = vmatpush.bf16.msrb.mxu2 %v10394_v35  ;;  %v13232_v29 = vld [vmem:[#allocation4 + $0x5f4] sm:$0xf0] }
 0x24f   :  { %v9847_v53 = vld [vmem:[#allocation4 + $0x8b0] sm:$0xf0]  ;;  %v13296_v34 = vld [vmem:[#allocation4 + $0x7f4] sm:$0xf0] }
 0x250   :  { %v13379_v42 = vld [vmem:[#allocation4 + $0xa94] sm:$0xf]  ;;  %v9850_v59 = vor.u32 %v13315_v41, %v9847_v53  ;;  %3852 = vmatpush.bf16.msrb.mxu3 %v10650_v46  ;;  %v8990_v41 = vor.u32 %v13104_v25, %v8989_v24  ;;  %v9246_v53 = vor.u32 %v13168_v27, %v9245_v3  ;;  %v13096_v46 = vld [vmem:[#allocation4 + $0x1b4] sm:$0xf0]  ;;  %v3623_v27 = vpop.f32.mrf.mxu1 }
 0x251   :  { %v10103_v47 = vld [vmem:[#allocation4 + $0xab0] sm:$0xf0]  ;;  %v8861_v24 = vld [vmem:[#allocation4 + $0xd8] sm:$0xf] }
 0x252   :  { %v13443_v48 = vld [vmem:[#allocation4 + $0xc94] sm:$0xf]  ;;  %v10106_v62 = vor.u32 %v13379_v42, %v10103_v47  ;;  %3814 = vmatpush.bf16.msrb.mxu0 %v9850_v59  ;;  %v9502_v42 = vor.u32 %v13232_v29, %v9501_v28  ;;  %v9213_v47 = vld [vmem:[#allocation4 + $0x398] sm:$0xf]  ;;  %v8958_v59 = vor.u32 %v13096_v46, %v8957_v45 }
 0x253   :  { %v10359_v50 = vld [vmem:[#allocation4 + $0xcb0] sm:$0xf0]  ;;  %v13072_v25 = vld [vmem:[#allocation4 + $0xf4] sm:$0xf0] }
 0x254   :  { %v13507_v57 = vld [vmem:[#allocation4 + $0xe94] sm:$0xf]  ;;  %v10362_v63 = vor.u32 %v13443_v48, %v10359_v50  ;;  %3827 = vmatpush.bf16.msrb.mxu1 %v10106_v62  ;;  %v9758_v48 = vor.u32 %v13296_v34, %v9757_v51  ;;  %v13160_v50 = vld [vmem:[#allocation4 + $0x3b4] sm:$0xf0]  ;;  %v9470_v62 = vor.u32 %v13224_v55, %v9469_v54 }
 0x255   :  { %v10615_v58 = vld [vmem:[#allocation4 + $0xeb0] sm:$0xf0]  ;;  %v9214_v61 = vor.u32 %v13160_v50, %v9213_v47  ;;  %v9117_v3 = vld [vmem:[#allocation4 + $0x2d8] sm:$0xf] }
 0x256   :  { %v13307_v0 = vld [vmem:[#allocation4 + $0x854] sm:$0xf]  ;;  %v10618_v5 = vor.u32 %v13507_v57, %v10615_v58  ;;  %3840 = vmatpush.bf16.msrb.mxu2 %v10362_v63  ;;  %v9725_v57 = vld [vmem:[#allocation4 + $0x798] sm:$0xf] }
 0x257   :  { %v9815_v1 = vld [vmem:[#allocation4 + $0x870] sm:$0xf0]  ;;  %v13288_v58 = vld [vmem:[#allocation4 + $0x7b4] sm:$0xf0] }
 0x258   :  { %v13371_v2 = vld [vmem:[#allocation4 + $0xa54] sm:$0xf]  ;;  %v9818_v11 = vor.u32 %v13307_v0, %v9815_v1  ;;  %3853 = vmatpush.bf16.msrb.mxu3 %v10618_v5  ;;  %v8925_v63 = vld [vmem:[#allocation4 + $0x158] sm:$0xf] }
 0x259   :  { %v10071_v6 = vld [vmem:[#allocation4 + $0xa70] sm:$0xf0]  ;;  %v13088_v0 = vld [vmem:[#allocation4 + $0x174] sm:$0xf0] }
 0x25a   :  { %v13435_v7 = vld [vmem:[#allocation4 + $0xc54] sm:$0xf]  ;;  %v10074_v14 = vor.u32 %v13371_v2, %v10071_v6  ;;  %3815 = vmatpush.bf16.msrb.mxu0 %v9818_v11  ;;  %v9181_v1 = vld [vmem:[#allocation4 + $0x358] sm:$0xf]  ;;  %v9726_v2 = vor.u32 %v13288_v58, %v9725_v57  ;;  %v3649_v58 = vpop.f32.mrf.mxu3 }
 0x25b   :  { %v10327_v8 = vld [vmem:[#allocation4 + $0xc70] sm:$0xf0]  ;;  %v9437_v5 = vld [vmem:[#allocation4 + $0x558] sm:$0xf] }
 0x25c   :  { %v13499_v9 = vld [vmem:[#allocation4 + $0xe54] sm:$0xf]  ;;  %v10330_v15 = vor.u32 %v13435_v7, %v10327_v8  ;;  %3828 = vmatpush.bf16.msrb.mxu1 %v10074_v14  ;;  %v13216_v6 = vld [vmem:[#allocation4 + $0x574] sm:$0xf0] }
 0x25d   :  { %v10583_v10 = vld [vmem:[#allocation4 + $0xe70] sm:$0xf0]  ;;  %v9693_v7 = vld [vmem:[#allocation4 + $0x758] sm:$0xf]  ;;  %v9438_v11 = vor.u32 %v13216_v6, %v9437_v5 }
 0x25e   :  { %v13299_v12 = vld [vmem:[#allocation4 + $0x814] sm:$0xf]  ;;  %v10586_v40 = vor.u32 %v13499_v9, %v10583_v10  ;;  %3841 = vmatpush.bf16.msrb.mxu2 %v10330_v15  ;;  %v13280_v8 = vld [vmem:[#allocation4 + $0x774] sm:$0xf0]  ;;  %v8926_v9 = vor.u32 %v13088_v0, %v8925_v63  ;;  %v9182_v10 = vor.u32 %v13152_v4, %v9181_v1 }
 0x25f   :  { %v9783_v13 = vld [vmem:[#allocation4 + $0x830] sm:$0xf0]  ;;  %v9149_v14 = vld [vmem:[#allocation4 + $0x318] sm:$0xf]  ;;  %v9694_v15 = vor.u32 %v13280_v8, %v9693_v7  ;;  %v3625_v7 = vpop.f32.mrf.mxu1 }
 0x260   :  { %v13363_v16 = vld [vmem:[#allocation4 + $0xa14] sm:$0xf]  ;;  %v9786_v26 = vor.u32 %v13299_v12, %v9783_v13  ;;  %3854 = vmatpush.bf16.msrb.mxu3 %v10586_v40  ;;  %v8893_v12 = vld [vmem:[#allocation4 + $0x118] sm:$0xf] }
 0x261   :  { %v10039_v17 = vld [vmem:[#allocation4 + $0xa30] sm:$0xf0]  ;;  %v13080_v13 = vld [vmem:[#allocation4 + $0x134] sm:$0xf0] }
 0x262   :  { %v13427_v18 = vld [vmem:[#allocation4 + $0xc14] sm:$0xf]  ;;  %v10042_v32 = vor.u32 %v13363_v16, %v10039_v17  ;;  %3816 = vmatpush.bf16.msrb.mxu0 %v9786_v26  ;;  %v13144_v16 = vld [vmem:[#allocation4 + $0x334] sm:$0xf0] }
 0x263   :  { %v10295_v20 = vld [vmem:[#allocation4 + $0xc30] sm:$0xf0]  ;;  %v9405_v17 = vld [vmem:[#allocation4 + $0x518] sm:$0xf] }
 0x264   :  { %v13491_v21 = vld [vmem:[#allocation4 + $0xe14] sm:$0xf]  ;;  %v10298_v33 = vor.u32 %v13427_v18, %v10295_v20  ;;  %3829 = vmatpush.bf16.msrb.mxu1 %v10042_v32  ;;  %v13208_v18 = vld [vmem:[#allocation4 + $0x534] sm:$0xf0]  ;;  %v8894_v20 = vor.u32 %v13080_v13, %v8893_v12 }
 0x265   :  { %v10551_v22 = vld [vmem:[#allocation4 + $0xe30] sm:$0xf0]  ;;  %3817 = vmatmul.bf16.vlgmr.msrb.gmra.mxu0 %v14379_v37  ;;  %v13272_v40 = vld [vmem:[#allocation4 + $0x734] sm:$0xf0]  ;;  %v9406_v23 = vor.u32 %v13208_v18, %v9405_v17 }
 0x266   :  { %v10554_v35 = vor.u32 %v13491_v21, %v10551_v22  ;;  %3842 = vmatpush.bf16.msrb.mxu2 %v10298_v33  ;;  %3861 = vmatpush.bf16.msra.mxu0 %v8990_v41  ;;  %v3610_v21 = vpop.f32.mrf.mxu0  ;;  %v9150_v22 = vor.u32 %v13144_v16, %v9149_v14  ;;  %v9662_v28 = vor.u32 %v13272_v40, %v9661_v19  ;;  %v13136_v29 = vld [vmem:[#allocation4 + $0x2f4] sm:$0xf0] }
 0x267   :  { %3830 = vmatmul.bf16.vlgmr.msrb.gmra.mxu1 %v14383_v44  ;;  %v3611_v26 = vadd.f32 %v3610_v21, %v14445_v60  ;;  %v9373_v32 = vld [vmem:[#allocation4 + $0x4d8] sm:$0xf]  ;;  %v8862_v41 = vor.u32 %v13072_v25, %v8861_v24 }
 0x268   :  { %3855 = vmatpush.bf16.msrb.mxu3 %v10554_v35  ;;  %3874 = vmatpush.bf16.msra.mxu1 %v9246_v53  ;;  %v13200_v33 = vld [vmem:[#allocation4 + $0x4f4] sm:$0xf0]  ;;  %v9118_v53 = vor.u32 %v13136_v29, %v9117_v3  ;;  %v3651_v3 = vpop.f32.mrf.mxu3 }
 0x269   :  { %3843 = vmatmul.bf16.vlgmr.msrb.gmra.mxu2 %v14377_v36  ;;  %v9629_v51 = vld [vmem:[#allocation4 + $0x6d8] sm:$0xf]  ;;  %v3624_v35 = vadd.f32 %v3623_v27, %v3611_v26 }
 0x26a   :  { %3887 = vmatpush.bf16.msra.mxu2 %v9502_v42  ;;  %3862 = vmatpush.bf16.msra.mxu0 %v8958_v59  ;;  %v13264_v34 = vld [vmem:[#allocation4 + $0x6f4] sm:$0xf0]  ;;  %v9374_v42 = vor.u32 %v13200_v33, %v9373_v32 }
 0x26b   :  { %3856 = vmatmul.bf16.vlgmr.msrb.gmra.mxu3 %v14381_v43  ;;  %v8829_v45 = vld [vmem:[#allocation4 + $0x98] sm:$0xf]  ;;  %v9630_v60 = vor.u32 %v13264_v34, %v9629_v51 }
 0x26c   :  { %3900 = vmatpush.bf16.msra.mxu3 %v9758_v48  ;;  %3875 = vmatpush.bf16.msra.mxu1 %v9214_v61  ;;  %v13064_v46 = vld [vmem:[#allocation4 + $0xb4] sm:$0xf0]  ;;  %v3636_v48 = vpop.f32.mrf.mxu2 }
 0x26d   :  { %v9085_v47 = vld [vmem:[#allocation4 + $0x298] sm:$0xf]  ;;  %v3637_v57 = vadd.f32 %v3636_v48, %v3624_v35 }
 0x26e   :  { %3888 = vmatpush.bf16.msra.mxu2 %v9470_v62  ;;  %3863 = vmatpush.bf16.msra.mxu0 %v8926_v9  ;;  %v13128_v50 = vld [vmem:[#allocation4 + $0x2b4] sm:$0xf0]  ;;  %v8830_v62 = vor.u32 %v13064_v46, %v8829_v45  ;;  %v3612_v0 = vpop.f32.mrf.mxu0 }
 0x26f   :  { %v9341_v54 = vld [vmem:[#allocation4 + $0x498] sm:$0xf]  ;;  %v14452_v63 = vadd.f32 %v3649_v58, %v3637_v57  ;;  %v9086_v1 = vor.u32 %v13128_v50, %v9085_v47 }
 0x270   :  { %3901 = vmatpush.bf16.msra.mxu3 %v9726_v2  ;;  %3876 = vmatpush.bf16.msra.mxu1 %v9182_v10  ;;  %v13192_v55 = vld [vmem:[#allocation4 + $0x4b4] sm:$0xf0] }
 0x271   :  { %v9597_v59 = vld [vmem:[#allocation4 + $0x698] sm:$0xf]  ;;  %v9342_v2 = vor.u32 %v13192_v55, %v9341_v54  ;;  %vm4072_vm3 = vcmp.ge.f32.partialorder %v14452_v63, 0.0 }
 0x272   :  { %3889 = vmatpush.bf16.msra.mxu2 %v9438_v11  ;;  %3864 = vmatpush.bf16.msra.mxu0 %v8894_v20  ;;  %v13256_v61 = vld [vmem:[#allocation4 + $0x6b4] sm:$0xf0] }
 0x273   :  { %v8797_v4 = vld [vmem:[#allocation4 + $0x58] sm:$0xf]  ;;  %v9598_v8 = vor.u32 %v13256_v61, %v9597_v59 }
 0x274   :  { %3902 = vmatpush.bf16.msra.mxu3 %v9694_v15  ;;  %3877 = vmatpush.bf16.msra.mxu1 %v9150_v22  ;;  %v13056_v5 = vld [vmem:[#allocation4 + $0x74] sm:$0xf0]  ;;  %v3638_v21 = vpop.f32.mrf.mxu2 }
 0x275   :  { %v9053_v6 = vld [vmem:[#allocation4 + $0x258] sm:$0xf]  ;;  %v8798_v14 = vor.u32 %v13056_v5, %v8797_v4 }
 0x276   :  { %3890 = vmatpush.bf16.msra.mxu2 %v9406_v23  ;;  %3865 = vmatpush.bf16.msra.mxu0 %v8862_v41  ;;  %v13120_v9 = vld [vmem:[#allocation4 + $0x274] sm:$0xf0]  ;;  %v3662_v3 = vpop.f32.mrf.mxu0 }
 0x277   :  { %v9309_v10 = vld [vmem:[#allocation4 + $0x458] sm:$0xf]  ;;  %v9054_v17 = vor.u32 %v13120_v9, %v9053_v6 }
 0x278   :  { %3903 = vmatpush.bf16.msra.mxu3 %v9662_v28  ;;  %3878 = vmatpush.bf16.msra.mxu1 %v9118_v53  ;;  %v13184_v11 = vld [vmem:[#allocation4 + $0x474] sm:$0xf0] }
 0x279   :  { %v9565_v12 = vld [vmem:[#allocation4 + $0x658] sm:$0xf]  ;;  %v9310_v18 = vor.u32 %v13184_v11, %v9309_v10 }
 0x27a   :  { %3891 = vmatpush.bf16.msra.mxu2 %v9374_v42  ;;  %v13248_v13 = vld [vmem:[#allocation4 + $0x674] sm:$0xf0]  ;;  %3866 = vmatpush.bf16.msra.mxu0 %v8830_v62 }
 0x27b   :  { %v8765_v15 = vld [vmem:[#allocation4 + $0x18] sm:$0xf]  ;;  %v9566_v22 = vor.u32 %v13248_v13, %v9565_v12 }
 0x27c   :  { %3904 = vmatpush.bf16.msra.mxu3 %v9630_v60  ;;  %v13048_v16 = vld [vmem:[#allocation4 + $0x34] sm:$0xf0]  ;;  %3879 = vmatpush.bf16.msra.mxu1 %v9086_v1 }
 0x27d   :  { %v9021_v19 = vld [vmem:[#allocation4 + $0x218] sm:$0xf]  ;;  %v8766_v29 = vor.u32 %v13048_v16, %v8765_v15 }
 0x27e   :  { %3892 = vmatpush.bf16.msra.mxu2 %v9342_v2  ;;  %v13112_v40 = vld [vmem:[#allocation4 + $0x234] sm:$0xf0]  ;;  %3867 = vmatpush.bf16.msra.mxu0 %v8798_v14 }
 0x27f   :  { %v9277_v20 = vld [vmem:[#allocation4 + $0x418] sm:$0xf]  ;;  %v9022_v34 = vor.u32 %v13112_v40, %v9021_v19 }
 0x280   :  { %3905 = vmatpush.bf16.msra.mxu3 %v9598_v8  ;;  %v13176_v23 = vld [vmem:[#allocation4 + $0x434] sm:$0xf0]  ;;  %3880 = vmatpush.bf16.msra.mxu1 %v9054_v17 }
 0x281   :  { %v9533_v24 = vld [vmem:[#allocation4 + $0x618] sm:$0xf]  ;;  %v9278_v35 = vor.u32 %v13176_v23, %v9277_v20 }
 0x282   :  { %v13240_v25 = vld [vmem:[#allocation4 + $0x634] sm:$0xf0]  ;;  %3893 = vmatpush.bf16.msra.mxu2 %v9310_v18  ;;  %3868 = vmatpush.bf16.msra.mxu0 %v8766_v29  ;;  %v14458_v18 = vld [vmem:[#allocation2] sm:$0xff] }
 0x283   :  { %v10013_v26 = vld [vmem:[#allocation4 + $0x9d8] sm:$0xf]  ;;  %v9534_v42 = vor.u32 %v13240_v25, %v9533_v24  ;;  %v665_v19 = vperm.slane %v14458_v18, 4 }
 0x284   :  { %v13360_v27 = vld [vmem:[#allocation4 + $0x9f4] sm:$0xf0]  ;;  %3906 = vmatpush.bf16.msra.mxu3 %v9566_v22  ;;  %3881 = vmatpush.bf16.msra.mxu1 %v9022_v34 }
 0x285   :  { %v10269_v28 = vld [vmem:[#allocation4 + $0xbd8] sm:$0xf]  ;;  %v10014_v45 = vor.u32 %v13360_v27, %v10013_v26  ;;  %3869 = vmatmul.bf16.vlgmr.msra.gmra.mxu0 %v14364_v31 }
 0x286   :  { %v13424_v32 = vld [vmem:[#allocation4 + $0xbf4] sm:$0xf0]  ;;  %3894 = vmatpush.bf16.msra.mxu2 %v9278_v35 }
 0x287   :  { %v10525_v33 = vld [vmem:[#allocation4 + $0xdd8] sm:$0xf]  ;;  %v10270_v46 = vor.u32 %v13424_v32, %v10269_v28  ;;  %3913 = vmatpush.bf16.msrb.mxu0 %v10014_v45  ;;  %3882 = vmatmul.bf16.vlgmr.msra.gmra.mxu1 %v14368_v39 }
 0x288   :  { %v13488_v51 = vld [vmem:[#allocation4 + $0xdf4] sm:$0xf0]  ;;  %3907 = vmatpush.bf16.msra.mxu3 %v9534_v42 }
 0x289   :  { %v10781_v41 = vld [vmem:[#allocation4 + $0xfd8] sm:$0xf]  ;;  %v10526_v47 = vor.u32 %v13488_v51, %v10525_v33  ;;  %3926 = vmatpush.bf16.msrb.mxu1 %v10270_v46  ;;  %3895 = vmatmul.bf16.vlgmr.msra.gmra.mxu2 %v14362_v30  ;;  %v3663_v33 = vadd.f32 %v3662_v3, %v665_v19  ;;  %v3675_v51 = vpop.f32.mrf.mxu1 }
 0x28a   :  { %v13552_v53 = vld [vmem:[#allocation4 + $0xff4] sm:$0xf0] }
 0x28b   :  { %v9981_v48 = vld [vmem:[#allocation4 + $0x998] sm:$0xf]  ;;  %v10782_v54 = vor.u32 %v13552_v53, %v10781_v41  ;;  %3939 = vmatpush.bf16.msrb.mxu2 %v10526_v47  ;;  %3908 = vmatmul.bf16.vlgmr.msra.gmra.mxu3 %v14366_v38  ;;  %v3676_v46 = vadd.f32 %v3675_v51, %v3663_v33 }
 0x28c   :  { %v13352_v60 = vld [vmem:[#allocation4 + $0x9b4] sm:$0xf0] }
 0x28d   :  { %v10237_v50 = vld [vmem:[#allocation4 + $0xb98] sm:$0xf]  ;;  %v9982_v62 = vor.u32 %v13352_v60, %v9981_v48  ;;  %3952 = vmatpush.bf16.msrb.mxu3 %v10782_v54 }
 0x28e   :  { %v13416_v55 = vld [vmem:[#allocation4 + $0xbb4] sm:$0xf0] }
 0x28f   :  { %v10493_v57 = vld [vmem:[#allocation4 + $0xd98] sm:$0xf]  ;;  %v10238_v0 = vor.u32 %v13416_v55, %v10237_v50  ;;  %3914 = vmatpush.bf16.msrb.mxu0 %v9982_v62 }
 0x290   :  { %v13480_v58 = vld [vmem:[#allocation4 + $0xdb4] sm:$0xf0] }
 0x291   :  { %v10749_v59 = vld [vmem:[#allocation4 + $0xf98] sm:$0xf]  ;;  %v10494_v1 = vor.u32 %v13480_v58, %v10493_v57  ;;  %3927 = vmatpush.bf16.msrb.mxu1 %v10238_v0  ;;  %v3688_v57 = vpop.f32.mrf.mxu2 }
 0x292   :  { %v13544_v61 = vld [vmem:[#allocation4 + $0xfb4] sm:$0xf0]  ;;  %v3689_v0 = vadd.f32 %v3688_v57, %v3676_v46  ;;  %v9503_v46 = vld [vmem:[#allocation4 + $0x5f8] sm:$0xf0] }
 0x293   :  { %v9949_v2 = vld [vmem:[#allocation4 + $0x958] sm:$0xf]  ;;  %v10750_v6 = vor.u32 %v13544_v61, %v10749_v59  ;;  %3940 = vmatpush.bf16.msrb.mxu2 %v10494_v1  ;;  %v3701_v1 = vpop.f32.mrf.mxu3 }
 0x294   :  { %v13344_v4 = vld [vmem:[#allocation4 + $0x974] sm:$0xf0] }
 0x295   :  { %v10205_v5 = vld [vmem:[#allocation4 + $0xb58] sm:$0xf]  ;;  %v9950_v12 = vor.u32 %v13344_v4, %v9949_v2  ;;  %3953 = vmatpush.bf16.msrb.mxu3 %v10750_v6  ;;  %v14461_v6 = vadd.f32 %v3701_v1, %v3689_v0  ;;  %v9215_v1 = vld [vmem:[#allocation4 + $0x3b8] sm:$0xf0] }
 0x296   :  { %v13408_v7 = vld [vmem:[#allocation4 + $0xb74] sm:$0xf0] }
 0x297   :  { %v10461_v8 = vld [vmem:[#allocation4 + $0xd58] sm:$0xf]  ;;  %v10206_v14 = vor.u32 %v13408_v7, %v10205_v5  ;;  %3915 = vmatpush.bf16.msrb.mxu0 %v9950_v12  ;;  %v3664_v7 = vpop.f32.mrf.mxu0 }
 0x298   :  { %v13472_v9 = vld [vmem:[#allocation4 + $0xd74] sm:$0xf0]  ;;  %v9727_v7 = vld [vmem:[#allocation4 + $0x7b8] sm:$0xf0] }
 0x299   :  { %v10717_v10 = vld [vmem:[#allocation4 + $0xf58] sm:$0xf]  ;;  %v10462_v15 = vor.u32 %v13472_v9, %v10461_v8  ;;  %3928 = vmatpush.bf16.msrb.mxu1 %v10206_v14 }
 0x29a   :  { %v13536_v11 = vld [vmem:[#allocation4 + $0xf74] sm:$0xf0] }
 0x29b   :  { %v9917_v13 = vld [vmem:[#allocation4 + $0x918] sm:$0xf]  ;;  %v10718_v40 = vor.u32 %v13536_v11, %v10717_v10  ;;  %3941 = vmatpush.bf16.msrb.mxu2 %v10462_v15  ;;  %v3703_v51 = vpop.f32.mrf.mxu3 }
 0x29c   :  { %v13336_v16 = vld [vmem:[#allocation4 + $0x934] sm:$0xf0] }
 0x29d   :  { %v10173_v17 = vld [vmem:[#allocation4 + $0xb18] sm:$0xf]  ;;  %v9918_v25 = vor.u32 %v13336_v16, %v9917_v13  ;;  %3954 = vmatpush.bf16.msrb.mxu3 %v10718_v40  ;;  %v3677_v13 = vpop.f32.mrf.mxu1 }
 0x29e   :  { %v13400_v20 = vld [vmem:[#allocation4 + $0xb34] sm:$0xf0]  ;;  %v13148_v13 = vld [vmem:[#allocation4 + $0x35c] sm:$0xf] }
 0x29f   :  { %v10429_v21 = vld [vmem:[#allocation4 + $0xd18] sm:$0xf]  ;;  %v10174_v26 = vor.u32 %v13400_v20, %v10173_v17  ;;  %3916 = vmatpush.bf16.msrb.mxu0 %v9918_v25  ;;  %v3714_v51 = vpop.f32.mrf.mxu0 }
 0x2a0   :  { %v13464_v22 = vld [vmem:[#allocation4 + $0xd34] sm:$0xf0] }
 0x2a1   :  { %v10685_v23 = vld [vmem:[#allocation4 + $0xf18] sm:$0xf]  ;;  %v10430_v27 = vor.u32 %v13464_v22, %v10429_v21  ;;  %3929 = vmatpush.bf16.msrb.mxu1 %v10174_v26 }
 0x2a2   :  { %v13528_v24 = vld [vmem:[#allocation4 + $0xf34] sm:$0xf0] }
 0x2a3   :  { %v9885_v28 = vld [vmem:[#allocation4 + $0x8d8] sm:$0xf]  ;;  %v10686_v34 = vor.u32 %v13528_v24, %v10685_v23  ;;  %3942 = vmatpush.bf16.msrb.mxu2 %v10430_v27  ;;  %v3690_v27 = vpop.f32.mrf.mxu2 }
 0x2a4   :  { %v13328_v29 = vld [vmem:[#allocation4 + $0x8f4] sm:$0xf0]  ;;  %v13204_v27 = vld [vmem:[#allocation4 + $0x51c] sm:$0xf] }
 0x2a5   :  { %v10141_v32 = vld [vmem:[#allocation4 + $0xad8] sm:$0xf]  ;;  %v9886_v47 = vor.u32 %v13328_v29, %v9885_v28  ;;  %3955 = vmatpush.bf16.msrb.mxu3 %v10686_v34  ;;  %v13100_v34 = vld [vmem:[#allocation4 + $0x1dc] sm:$0xf] }
 0x2a6   :  { %v13392_v35 = vld [vmem:[#allocation4 + $0xaf4] sm:$0xf0] }
 0x2a7   :  { %v10397_v41 = vld [vmem:[#allocation4 + $0xcd8] sm:$0xf]  ;;  %v10142_v48 = vor.u32 %v13392_v35, %v10141_v32  ;;  %3917 = vmatpush.bf16.msrb.mxu0 %v9886_v47  ;;  %v8991_v35 = vld [vmem:[#allocation4 + $0x1f8] sm:$0xf0] }
 0x2a8   :  { %v13456_v53 = vld [vmem:[#allocation4 + $0xcf4] sm:$0xf0] }
 0x2a9   :  { %v10653_v42 = vld [vmem:[#allocation4 + $0xed8] sm:$0xf]  ;;  %v10398_v60 = vor.u32 %v13456_v53, %v10397_v41  ;;  %3930 = vmatpush.bf16.msrb.mxu1 %v10142_v48  ;;  %v13164_v41 = vld [vmem:[#allocation4 + $0x3dc] sm:$0xf] }
 0x2aa   :  { %v13520_v45 = vld [vmem:[#allocation4 + $0xef4] sm:$0xf0] }
 0x2ab   :  { %v9853_v50 = vld [vmem:[#allocation4 + $0x898] sm:$0xf]  ;;  %v10654_v58 = vor.u32 %v13520_v45, %v10653_v42  ;;  %3943 = vmatpush.bf16.msrb.mxu2 %v10398_v60  ;;  %v9247_v42 = vld [vmem:[#allocation4 + $0x3f8] sm:$0xf0] }
 0x2ac   :  { %v13320_v54 = vld [vmem:[#allocation4 + $0x8b4] sm:$0xf0]  ;;  %v13228_v45 = vld [vmem:[#allocation4 + $0x5dc] sm:$0xf]  ;;  %v9250_v57 = vor.u32 %v13164_v41, %v9247_v42 }
 0x2ad   :  { %v10109_v55 = vld [vmem:[#allocation4 + $0xa98] sm:$0xf]  ;;  %v9854_v5 = vor.u32 %v13320_v54, %v9853_v50  ;;  %3956 = vmatpush.bf16.msrb.mxu3 %v10654_v58  ;;  %v13292_v60 = vld [vmem:[#allocation4 + $0x7dc] sm:$0xf]  ;;  %v9506_v58 = vor.u32 %v13228_v45, %v9503_v46  ;;  %v3715_v45 = vadd.f32 %v3714_v51, %v14461_v6  ;;  %v3727_v46 = vpop.f32.mrf.mxu1 }
 0x2ae   :  { %v13384_v59 = vld [vmem:[#allocation4 + $0xab4] sm:$0xf0]  ;;  %v9759_v50 = vld [vmem:[#allocation4 + $0x7f8] sm:$0xf0] }
 0x2af   :  { %v10365_v61 = vld [vmem:[#allocation4 + $0xc98] sm:$0xf]  ;;  %v10110_v8 = vor.u32 %v13384_v59, %v10109_v55  ;;  %3918 = vmatpush.bf16.msrb.mxu0 %v9854_v5  ;;  %v8994_v55 = vor.u32 %v13100_v34, %v8991_v35  ;;  %v13092_v59 = vld [vmem:[#allocation4 + $0x19c] sm:$0xf]  ;;  %v9762_v0 = vor.u32 %v13292_v60, %v9759_v50 }
 0x2b0   :  { %v13448_v62 = vld [vmem:[#allocation4 + $0xcb4] sm:$0xf0]  ;;  %v13284_v5 = vld [vmem:[#allocation4 + $0x79c] sm:$0xf] }
 0x2b1   :  { %v10621_v2 = vld [vmem:[#allocation4 + $0xe98] sm:$0xf]  ;;  %v10366_v9 = vor.u32 %v13448_v62, %v10365_v61  ;;  %3931 = vmatpush.bf16.msrb.mxu1 %v10110_v8  ;;  %v8959_v61 = vld [vmem:[#allocation4 + $0x1b8] sm:$0xf0] }
 0x2b2   :  { %v13512_v4 = vld [vmem:[#allocation4 + $0xeb4] sm:$0xf0]  ;;  %v13156_v62 = vld [vmem:[#allocation4 + $0x39c] sm:$0xf]  ;;  %v8962_v8 = vor.u32 %v13092_v59, %v8959_v61 }
 0x2b3   :  { %v9821_v10 = vld [vmem:[#allocation4 + $0x858] sm:$0xf]  ;;  %v10622_v14 = vor.u32 %v13512_v4, %v10621_v2  ;;  %3944 = vmatpush.bf16.msrb.mxu2 %v10366_v9  ;;  %v13220_v2 = vld [vmem:[#allocation4 + $0x59c] sm:$0xf]  ;;  %v9218_v9 = vor.u32 %v13156_v62, %v9215_v1 }
 0x2b4   :  { %v13312_v11 = vld [vmem:[#allocation4 + $0x874] sm:$0xf0]  ;;  %v9471_v4 = vld [vmem:[#allocation4 + $0x5b8] sm:$0xf0] }
 0x2b5   :  { %v10077_v12 = vld [vmem:[#allocation4 + $0xa58] sm:$0xf]  ;;  %v9822_v20 = vor.u32 %v13312_v11, %v9821_v10  ;;  %3957 = vmatpush.bf16.msrb.mxu3 %v10622_v14  ;;  %v9474_v10 = vor.u32 %v13220_v2, %v9471_v4  ;;  %v13084_v11 = vld [vmem:[#allocation4 + $0x15c] sm:$0xf]  ;;  %v9730_v14 = vor.u32 %v13284_v5, %v9727_v7  ;;  %v3740_v2 = vpop.f32.mrf.mxu2 }
 0x2b6   :  { %v13376_v15 = vld [vmem:[#allocation4 + $0xa74] sm:$0xf0]  ;;  %v13068_v41 = vld [vmem:[#allocation4 + $0xdc] sm:$0xf] }
 0x2b7   :  { %v10333_v16 = vld [vmem:[#allocation4 + $0xc58] sm:$0xf]  ;;  %v10078_v23 = vor.u32 %v13376_v15, %v10077_v12  ;;  %3919 = vmatpush.bf16.msrb.mxu0 %v9822_v20  ;;  %v8927_v12 = vld [vmem:[#allocation4 + $0x178] sm:$0xf0] }
 0x2b8   :  { %v13440_v17 = vld [vmem:[#allocation4 + $0xc74] sm:$0xf0]  ;;  %v9183_v15 = vld [vmem:[#allocation4 + $0x378] sm:$0xf0]  ;;  %v8930_v20 = vor.u32 %v13084_v11, %v8927_v12 }
 0x2b9   :  { %v10589_v19 = vld [vmem:[#allocation4 + $0xe58] sm:$0xf]  ;;  %v10334_v24 = vor.u32 %v13440_v17, %v10333_v16  ;;  %3932 = vmatpush.bf16.msrb.mxu1 %v10078_v23  ;;  %v13212_v16 = vld [vmem:[#allocation4 + $0x55c] sm:$0xf] }
 0x2ba   :  { %v13504_v40 = vld [vmem:[#allocation4 + $0xe74] sm:$0xf0]  ;;  %v9439_v17 = vld [vmem:[#allocation4 + $0x578] sm:$0xf0] }
 0x2bb   :  { %v9789_v21 = vld [vmem:[#allocation4 + $0x818] sm:$0xf]  ;;  %v10590_v28 = vor.u32 %v13504_v40, %v10589_v19  ;;  %3945 = vmatpush.bf16.msrb.mxu2 %v10334_v24  ;;  %v13276_v19 = vld [vmem:[#allocation4 + $0x75c] sm:$0xf] }
 0x2bc   :  { %v13304_v22 = vld [vmem:[#allocation4 + $0x834] sm:$0xf0]  ;;  %v9695_v40 = vld [vmem:[#allocation4 + $0x778] sm:$0xf0] }
 0x2bd   :  { %v10045_v25 = vld [vmem:[#allocation4 + $0xa18] sm:$0xf]  ;;  %v9790_v53 = vor.u32 %v13304_v22, %v9789_v21  ;;  %3958 = vmatpush.bf16.msrb.mxu3 %v10590_v28  ;;  %v9186_v21 = vor.u32 %v13148_v13, %v9183_v15  ;;  %v9442_v22 = vor.u32 %v13212_v16, %v9439_v17  ;;  %v13076_v23 = vld [vmem:[#allocation4 + $0x11c] sm:$0xf] }
 0x2be   :  { %v13368_v3 = vld [vmem:[#allocation4 + $0xa34] sm:$0xf0]  ;;  %v8895_v24 = vld [vmem:[#allocation4 + $0x138] sm:$0xf0] }
 0x2bf   :  { %v10301_v26 = vld [vmem:[#allocation4 + $0xc18] sm:$0xf]  ;;  %v10046_v47 = vor.u32 %v13368_v3, %v10045_v25  ;;  %3920 = vmatpush.bf16.msrb.mxu0 %v9790_v53  ;;  %v13140_v25 = vld [vmem:[#allocation4 + $0x31c] sm:$0xf]  ;;  %v9698_v3 = vor.u32 %v13276_v19, %v9695_v40 }
 0x2c0   :  { %v13432_v29 = vld [vmem:[#allocation4 + $0xc34] sm:$0xf0]  ;;  %v9407_v28 = vld [vmem:[#allocation4 + $0x538] sm:$0xf0] }
 0x2c1   :  { %v10557_v32 = vld [vmem:[#allocation4 + $0xe18] sm:$0xf]  ;;  %v10302_v48 = vor.u32 %v13432_v29, %v10301_v26  ;;  %3933 = vmatpush.bf16.msrb.mxu1 %v10046_v47  ;;  %v9151_v26 = vld [vmem:[#allocation4 + $0x338] sm:$0xf0]  ;;  %v9410_v35 = vor.u32 %v13204_v27, %v9407_v28 }
 0x2c2   :  { %v13496_v33 = vld [vmem:[#allocation4 + $0xe34] sm:$0xf0]  ;;  %3921 = vmatmul.bf16.vlgmr.msrb.gmra.mxu0 %v14379_v37  ;;  %v13268_v29 = vld [vmem:[#allocation4 + $0x71c] sm:$0xf]  ;;  %v9154_v34 = vor.u32 %v13140_v25, %v9151_v26 }
 0x2c3   :  { %v10558_v54 = vor.u32 %v13496_v33, %v10557_v32  ;;  %3946 = vmatpush.bf16.msrb.mxu2 %v10302_v48  ;;  %3965 = vmatpush.bf16.msra.mxu0 %v8994_v55  ;;  %v9663_v32 = vld [vmem:[#allocation4 + $0x738] sm:$0xf0]  ;;  %v8898_v33 = vor.u32 %v13076_v23, %v8895_v24 }
 0x2c4   :  { %3934 = vmatmul.bf16.vlgmr.msrb.gmra.mxu1 %v14383_v44  ;;  %v8863_v53 = vld [vmem:[#allocation4 + $0xf8] sm:$0xf0]  ;;  %v9666_v47 = vor.u32 %v13268_v29, %v9663_v32 }
 0x2c5   :  { %3959 = vmatpush.bf16.msrb.mxu3 %v10558_v54  ;;  %3978 = vmatpush.bf16.msra.mxu1 %v9250_v57  ;;  %v13132_v42 = vld [vmem:[#allocation4 + $0x2dc] sm:$0xf]  ;;  %v3728_v57 = vadd.f32 %v3727_v46, %v3715_v45 }
 0x2c6   :  { %3947 = vmatmul.bf16.vlgmr.msrb.gmra.mxu2 %v14377_v36  ;;  %v9119_v48 = vld [vmem:[#allocation4 + $0x2f8] sm:$0xf0] }
 0x2c7   :  { %3991 = vmatpush.bf16.msra.mxu2 %v9506_v58  ;;  %3966 = vmatpush.bf16.msra.mxu0 %v8962_v8  ;;  %v13196_v60 = vld [vmem:[#allocation4 + $0x4dc] sm:$0xf]  ;;  %v8866_v58 = vor.u32 %v13068_v41, %v8863_v53  ;;  %v9122_v59 = vor.u32 %v13132_v42, %v9119_v48  ;;  %v3741_v8 = vadd.f32 %v3740_v2, %v3728_v57 }
 0x2c8   :  { %3960 = vmatmul.bf16.vlgmr.msrb.gmra.mxu3 %v14381_v43  ;;  %v9375_v50 = vld [vmem:[#allocation4 + $0x4f8] sm:$0xf0] }
 0x2c9   :  { %4004 = vmatpush.bf16.msra.mxu3 %v9762_v0  ;;  %3979 = vmatpush.bf16.msra.mxu1 %v9218_v9  ;;  %v13260_v54 = vld [vmem:[#allocation4 + $0x6dc] sm:$0xf]  ;;  %v9378_v61 = vor.u32 %v13196_v60, %v9375_v50  ;;  %v3753_v9 = vpop.f32.mrf.mxu3 }
 0x2ca   :  { %v9631_v55 = vld [vmem:[#allocation4 + $0x6f8] sm:$0xf0]  ;;  %v14468_v13 = vadd.f32 %v3753_v9, %v3741_v8 }
 0x2cb   :  { %3992 = vmatpush.bf16.msra.mxu2 %v9474_v10  ;;  %3967 = vmatpush.bf16.msra.mxu0 %v8930_v20  ;;  %v13060_v62 = vld [vmem:[#allocation4 + $0x9c] sm:$0xf]  ;;  %v9634_v6 = vor.u32 %v13260_v54, %v9631_v55  ;;  %v3729_v20 = vpop.f32.mrf.mxu1 }
 0x2cc   :  { %v8831_v0 = vld [vmem:[#allocation4 + $0xb8] sm:$0xf0]  ;;  %vm4073_vm4 = vcmp.ge.f32.partialorder %v14468_v13, 0.0 }
 0x2cd   :  { %4005 = vmatpush.bf16.msra.mxu3 %v9730_v14  ;;  %3980 = vmatpush.bf16.msra.mxu1 %v9186_v21  ;;  %v13124_v1 = vld [vmem:[#allocation4 + $0x29c] sm:$0xf]  ;;  %v8834_v12 = vor.u32 %v13060_v62, %v8831_v0  ;;  %v3716_v14 = vpop.f32.mrf.mxu0 }
 0x2ce   :  { %v9087_v4 = vld [vmem:[#allocation4 + $0x2b8] sm:$0xf0] }
 0x2cf   :  { %3993 = vmatpush.bf16.msra.mxu2 %v9442_v22  ;;  %3968 = vmatpush.bf16.msra.mxu0 %v8898_v33  ;;  %v13188_v5 = vld [vmem:[#allocation4 + $0x49c] sm:$0xf]  ;;  %v9090_v15 = vor.u32 %v13124_v1, %v9087_v4 }
 0x2d0   :  { %v9343_v7 = vld [vmem:[#allocation4 + $0x4b8] sm:$0xf0] }
 0x2d1   :  { %4006 = vmatpush.bf16.msra.mxu3 %v9698_v3  ;;  %3981 = vmatpush.bf16.msra.mxu1 %v9154_v34  ;;  %v13252_v10 = vld [vmem:[#allocation4 + $0x69c] sm:$0xf]  ;;  %v9346_v16 = vor.u32 %v13188_v5, %v9343_v7  ;;  %v3755_v46 = vpop.f32.mrf.mxu3 }
 0x2d2   :  { %v9599_v11 = vld [vmem:[#allocation4 + $0x6b8] sm:$0xf0] }
 0x2d3   :  { %3994 = vmatpush.bf16.msra.mxu2 %v9410_v35  ;;  %3969 = vmatpush.bf16.msra.mxu0 %v8866_v58  ;;  %v13052_v17 = vld [vmem:[#allocation4 + $0x5c] sm:$0xf]  ;;  %v9602_v21 = vor.u32 %v13252_v10, %v9599_v11  ;;  %v3742_v35 = vpop.f32.mrf.mxu2 }
 0x2d4   :  { %v8799_v19 = vld [vmem:[#allocation4 + $0x78] sm:$0xf0] }
 0x2d5   :  { %4007 = vmatpush.bf16.msra.mxu3 %v9666_v47  ;;  %3982 = vmatpush.bf16.msra.mxu1 %v9122_v59  ;;  %v13116_v40 = vld [vmem:[#allocation4 + $0x25c] sm:$0xf]  ;;  %v8802_v26 = vor.u32 %v13052_v17, %v8799_v19 }
 0x2d6   :  { %v9055_v22 = vld [vmem:[#allocation4 + $0x278] sm:$0xf0] }
 0x2d7   :  { %3995 = vmatpush.bf16.msra.mxu2 %v9378_v61  ;;  %v13180_v23 = vld [vmem:[#allocation4 + $0x45c] sm:$0xf]  ;;  %3970 = vmatpush.bf16.msra.mxu0 %v8834_v12  ;;  %v9058_v29 = vor.u32 %v13116_v40, %v9055_v22 }
 0x2d8   :  { %v9311_v24 = vld [vmem:[#allocation4 + $0x478] sm:$0xf0] }
 0x2d9   :  { %4008 = vmatpush.bf16.msra.mxu3 %v9634_v6  ;;  %v13244_v25 = vld [vmem:[#allocation4 + $0x65c] sm:$0xf]  ;;  %3983 = vmatpush.bf16.msra.mxu1 %v9090_v15  ;;  %v9314_v32 = vor.u32 %v13180_v23, %v9311_v24 }
 0x2da   :  { %v9567_v3 = vld [vmem:[#allocation4 + $0x678] sm:$0xf0] }
 0x2db   :  { %v13044_v27 = vld [vmem:[#allocation4 + $0x1c] sm:$0xf]  ;;  %3996 = vmatpush.bf16.msra.mxu2 %v9346_v16  ;;  %v9570_v41 = vor.u32 %v13244_v25, %v9567_v3  ;;  %3971 = vmatpush.bf16.msra.mxu0 %v8802_v26 }
 0x2dc   :  { %v8767_v28 = vld [vmem:[#allocation4 + $0x38] sm:$0xf0] }
 0x2dd   :  { %v13108_v33 = vld [vmem:[#allocation4 + $0x21c] sm:$0xf]  ;;  %4009 = vmatpush.bf16.msra.mxu3 %v9602_v21  ;;  %v8770_v50 = vor.u32 %v13044_v27, %v8767_v28  ;;  %3984 = vmatpush.bf16.msra.mxu1 %v9058_v29 }
 0x2de   :  { %v9023_v51 = vld [vmem:[#allocation4 + $0x238] sm:$0xf0] }
 0x2df   :  { %v13172_v34 = vld [vmem:[#allocation4 + $0x41c] sm:$0xf]  ;;  %3997 = vmatpush.bf16.msra.mxu2 %v9314_v32  ;;  %v9026_v58 = vor.u32 %v13108_v33, %v9023_v51  ;;  %3972 = vmatpush.bf16.msra.mxu0 %v8770_v50 }
 0x2e0   :  { %v9279_v53 = vld [vmem:[#allocation4 + $0x438] sm:$0xf0] }
 0x2e1   :  { %v13236_v42 = vld [vmem:[#allocation4 + $0x61c] sm:$0xf]  ;;  %v9282_v59 = vor.u32 %v13172_v34, %v9279_v53  ;;  %4010 = vmatpush.bf16.msra.mxu3 %v9570_v41  ;;  %3985 = vmatpush.bf16.msra.mxu1 %v9026_v58  ;;  %v14474_v53 = vpop.f32.mrf.mxu0 }
 0x2e2   :  { %v9535_v45 = vld [vmem:[#allocation4 + $0x638] sm:$0xf0]  ;;  %3973 = vmatmul.bf16.vlgmr.msra.gmra.mxu0 %v14364_v31 }
 0x2e3   :  { %v13356_v47 = vld [vmem:[#allocation4 + $0x9dc] sm:$0xf]  ;;  %v9538_v0 = vor.u32 %v13236_v42, %v9535_v45  ;;  %3998 = vmatpush.bf16.msra.mxu2 %v9282_v59 }
 0x2e4   :  { %v10015_v48 = vld [vmem:[#allocation4 + $0x9f8] sm:$0xf0]  ;;  %3986 = vmatmul.bf16.vlgmr.msra.gmra.mxu1 %v14368_v39 }
 0x2e5   :  { %v13420_v60 = vld [vmem:[#allocation4 + $0xbdc] sm:$0xf]  ;;  %v10018_v1 = vor.u32 %v13356_v47, %v10015_v48  ;;  %4011 = vmatpush.bf16.msra.mxu3 %v9538_v0  ;;  %v14476_v48 = vpop.f32.mrf.mxu1 }
 0x2e6   :  { %v10271_v54 = vld [vmem:[#allocation4 + $0xbf8] sm:$0xf0]  ;;  %3999 = vmatmul.bf16.vlgmr.msra.gmra.mxu2 %v14362_v30 }
 0x2e7   :  { %v13484_v55 = vld [vmem:[#allocation4 + $0xddc] sm:$0xf]  ;;  %v10274_v2 = vor.u32 %v13420_v60, %v10271_v54  ;;  %4017 = vmatpush.bf16.msrb.mxu0 %v10018_v1 }
 0x2e8   :  { %v10527_v57 = vld [vmem:[#allocation4 + $0xdf8] sm:$0xf0]  ;;  %4012 = vmatmul.bf16.vlgmr.msra.gmra.mxu3 %v14366_v38 }
 0x2e9   :  { %v13548_v61 = vld [vmem:[#allocation4 + $0xfdc] sm:$0xf]  ;;  %v10530_v6 = vor.u32 %v13484_v55, %v10527_v57  ;;  %4030 = vmatpush.bf16.msrb.mxu1 %v10274_v2 }
 0x2ea   :  { %v10783_v62 = vld [vmem:[#allocation4 + $0xff8] sm:$0xf0] }
 0x2eb   :  { %v13348_v4 = vld [vmem:[#allocation4 + $0x99c] sm:$0xf]  ;;  %v10786_v8 = vor.u32 %v13548_v61, %v10783_v62  ;;  %4043 = vmatpush.bf16.msrb.mxu2 %v10530_v6  ;;  %v14478_v6 = vpop.f32.mrf.mxu2 }
 0x2ec   :  { %v9983_v5 = vld [vmem:[#allocation4 + $0x9b8] sm:$0xf0] }
 0x2ed   :  { %v13412_v7 = vld [vmem:[#allocation4 + $0xb9c] sm:$0xf]  ;;  %v9986_v15 = vor.u32 %v13348_v4, %v9983_v5  ;;  %4056 = vmatpush.bf16.msrb.mxu3 %v10786_v8 }
 0x2ee   :  { %v10239_v9 = vld [vmem:[#allocation4 + $0xbb8] sm:$0xf0] }
 0x2ef   :  { %v13476_v10 = vld [vmem:[#allocation4 + $0xd9c] sm:$0xf]  ;;  %v10242_v16 = vor.u32 %v13412_v7, %v10239_v9  ;;  %4018 = vmatpush.bf16.msrb.mxu0 %v9986_v15  ;;  %v14480_v9 = vpop.f32.mrf.mxu3 }
 0x2f0   :  { %v10495_v11 = vld [vmem:[#allocation4 + $0xdb8] sm:$0xf0] }
 0x2f1   :  { %v13540_v12 = vld [vmem:[#allocation4 + $0xf9c] sm:$0xf]  ;;  %v10498_v17 = vor.u32 %v13476_v10, %v10495_v11  ;;  %4031 = vmatpush.bf16.msrb.mxu1 %v10242_v16 }
 0x2f2   :  { %v10751_v14 = vld [vmem:[#allocation4 + $0xfb8] sm:$0xf0] }
 0x2f3   :  { %v13340_v19 = vld [vmem:[#allocation4 + $0x95c] sm:$0xf]  ;;  %v10754_v21 = vor.u32 %v13540_v12, %v10751_v14  ;;  %4044 = vmatpush.bf16.msrb.mxu2 %v10498_v17  ;;  %v3768_v14 = vpop.f32.mrf.mxu0 }
 0x2f4   :  { %v9951_v40 = vld [vmem:[#allocation4 + $0x978] sm:$0xf0]  ;;  %v13614_v14 = vld [vmem:[#allocation6 + $0x1e4] sm:$0xf0] }
 0x2f5   :  { %v13404_v20 = vld [vmem:[#allocation4 + $0xb5c] sm:$0xf]  ;;  %v9954_v26 = vor.u32 %v13340_v19, %v9951_v40  ;;  %4057 = vmatpush.bf16.msrb.mxu3 %v10754_v21 }
 0x2f6   :  { %v10207_v22 = vld [vmem:[#allocation4 + $0xb78] sm:$0xf0] }
 0x2f7   :  { %v13468_v23 = vld [vmem:[#allocation4 + $0xd5c] sm:$0xf]  ;;  %v10210_v27 = vor.u32 %v13404_v20, %v10207_v22  ;;  %4019 = vmatpush.bf16.msrb.mxu0 %v9954_v26  ;;  %v3781_v20 = vpop.f32.mrf.mxu1 }
 0x2f8   :  { %v10463_v24 = vld [vmem:[#allocation4 + $0xd78] sm:$0xf0]  ;;  %v10893_v20 = vld [vmem:[#allocation6 + $0xd0] sm:$0xf] }
 0x2f9   :  { %v13532_v25 = vld [vmem:[#allocation4 + $0xf5c] sm:$0xf]  ;;  %v10466_v28 = vor.u32 %v13468_v23, %v10463_v24  ;;  %4032 = vmatpush.bf16.msrb.mxu1 %v10210_v27 }
 0x2fa   :  { %v10719_v3 = vld [vmem:[#allocation4 + $0xf78] sm:$0xf0] }
 0x2fb   :  { %v13332_v29 = vld [vmem:[#allocation4 + $0x91c] sm:$0xf]  ;;  %v10722_v33 = vor.u32 %v13532_v25, %v10719_v3  ;;  %4045 = vmatpush.bf16.msrb.mxu2 %v10466_v28 }
 0x2fc   :  { %v9919_v32 = vld [vmem:[#allocation4 + $0x938] sm:$0xf0] }
 0x2fd   :  { %v13396_v30 = vld [vmem:[#allocation4 + $0xb1c] sm:$0xf]  ;;  %v9922_v38 = vor.u32 %v13332_v29, %v9919_v32  ;;  %4058 = vmatpush.bf16.msrb.mxu3 %v10722_v33 }
 0x2fe   :  { %v10175_v51 = vld [vmem:[#allocation4 + $0xb38] sm:$0xf0] }
 0x2ff   :  { %v13460_v34 = vld [vmem:[#allocation4 + $0xd1c] sm:$0xf]  ;;  %v10178_v39 = vor.u32 %v13396_v30, %v10175_v51  ;;  %4020 = vmatpush.bf16.msrb.mxu0 %v9922_v38 }
 0x300   :  { %v10431_v35 = vld [vmem:[#allocation4 + $0xd38] sm:$0xf0] }
 0x301   :  { %v13524_v41 = vld [vmem:[#allocation4 + $0xf1c] sm:$0xf]  ;;  %v10434_v42 = vor.u32 %v13460_v34, %v10431_v35  ;;  %4033 = vmatpush.bf16.msrb.mxu1 %v10178_v39  ;;  %v3794_v34 = vpop.f32.mrf.mxu2  ;;  %v3807_v39 = vpop.f32.mrf.mxu3 }
 0x302   :  { %v10687_v31 = vld [vmem:[#allocation4 + $0xf38] sm:$0xf0]  ;;  %v11013_v34 = vld [vmem:[#allocation6 + $0x1c0] sm:$0xf]  ;;  %v13560_v39 = vld [vmem:[#allocation6 + $0x34] sm:$0xf0] }
 0x303   :  { %v13324_v45 = vld [vmem:[#allocation4 + $0x8dc] sm:$0xf]  ;;  %v10690_v60 = vor.u32 %v13524_v41, %v10687_v31  ;;  %4046 = vmatpush.bf16.msrb.mxu2 %v10434_v42  ;;  %v10845_v42 = vld [vmem:[#allocation6 + $0x70] sm:$0xf] }
 0x304   :  { %v9887_v46 = vld [vmem:[#allocation4 + $0x8f8] sm:$0xf0] }
 0x305   :  { %v13388_v47 = vld [vmem:[#allocation4 + $0xadc] sm:$0xf]  ;;  %v9890_v59 = vor.u32 %v13324_v45, %v9887_v46  ;;  %4059 = vmatpush.bf16.msrb.mxu3 %v10690_v60  ;;  %v13568_v45 = vld [vmem:[#allocation6 + $0x74] sm:$0xf0]  ;;  %v10909_v46 = vld [vmem:[#allocation6 + $0xf0] sm:$0xf] }
 0x306   :  { %v10143_v50 = vld [vmem:[#allocation4 + $0xaf8] sm:$0xf0]  ;;  %v13584_v60 = vld [vmem:[#allocation6 + $0xf4] sm:$0xf0] }
 0x307   :  { %v13452_v54 = vld [vmem:[#allocation4 + $0xcdc] sm:$0xf]  ;;  %v10146_v61 = vor.u32 %v13388_v47, %v10143_v50  ;;  %4021 = vmatpush.bf16.msrb.mxu0 %v9890_v59  ;;  %v10973_v50 = vld [vmem:[#allocation6 + $0x170] sm:$0xf]  ;;  %v13616_v59 = vld [vmem:[#allocation6 + $0x1f4] sm:$0xf0] }
 0x308   :  { %v10399_v55 = vld [vmem:[#allocation4 + $0xcf8] sm:$0xf0] }
 0x309   :  { %v13516_v57 = vld [vmem:[#allocation4 + $0xedc] sm:$0xf]  ;;  %v10402_v62 = vor.u32 %v13452_v54, %v10399_v55  ;;  %4034 = vmatpush.bf16.msrb.mxu1 %v10146_v61  ;;  %v13600_v54 = vld [vmem:[#allocation6 + $0x174] sm:$0xf0] }
 0x30a   :  { %v10655_v58 = vld [vmem:[#allocation4 + $0xef8] sm:$0xf0] }
 0x30b   :  { %v13316_v0 = vld [vmem:[#allocation4 + $0x89c] sm:$0xf]  ;;  %v10658_v4 = vor.u32 %v13516_v57, %v10655_v58  ;;  %4047 = vmatpush.bf16.msrb.mxu2 %v10402_v62  ;;  %v11037_v58 = vld [vmem:[#allocation6 + $0x1f0] sm:$0xf]  ;;  %v10846_v62 = vor.u32 %v13568_v45, %v10845_v42  ;;  %v14488_v45 = vpop.f32.mrf.mxu1 }
 0x30c   :  { %v9855_v1 = vld [vmem:[#allocation4 + $0x8b8] sm:$0xf0]  ;;  %v10877_v42 = vld [vmem:[#allocation6 + $0xb0] sm:$0xf] }
 0x30d   :  { %v13380_v2 = vld [vmem:[#allocation4 + $0xa9c] sm:$0xf]  ;;  %v9858_v12 = vor.u32 %v13316_v0, %v9855_v1  ;;  %4060 = vmatpush.bf16.msrb.mxu3 %v10658_v4  ;;  %v10910_v0 = vor.u32 %v13584_v60, %v10909_v46  ;;  %v10974_v1 = vor.u32 %v13600_v54, %v10973_v50  ;;  %v13566_v4 = vld [vmem:[#allocation6 + $0x64] sm:$0xf0]  ;;  %v10941_v60 = vld [vmem:[#allocation6 + $0x130] sm:$0xf] }
 0x30e   :  { %v10111_v5 = vld [vmem:[#allocation4 + $0xab8] sm:$0xf0]  ;;  %v13592_v50 = vld [vmem:[#allocation6 + $0x134] sm:$0xf0]  ;;  %v11005_v54 = vld [vmem:[#allocation6 + $0x1b0] sm:$0xf] }
 0x30f   :  { %v13444_v7 = vld [vmem:[#allocation4 + $0xc9c] sm:$0xf]  ;;  %v10114_v15 = vor.u32 %v13380_v2, %v10111_v5  ;;  %4022 = vmatpush.bf16.msrb.mxu0 %v9858_v12  ;;  %v10837_v2 = vld [vmem:[#allocation6 + $0x60] sm:$0xf] }
 0x310   :  { %v10367_v8 = vld [vmem:[#allocation4 + $0xcb8] sm:$0xf0]  ;;  %v10901_v5 = vld [vmem:[#allocation6 + $0xe0] sm:$0xf] }
 0x311   :  { %v13508_v10 = vld [vmem:[#allocation4 + $0xe9c] sm:$0xf]  ;;  %v10370_v16 = vor.u32 %v13444_v7, %v10367_v8  ;;  %4035 = vmatpush.bf16.msrb.mxu1 %v10114_v15  ;;  %v11038_v7 = vor.u32 %v13616_v59, %v11037_v58  ;;  %v13582_v8 = vld [vmem:[#allocation6 + $0xe4] sm:$0xf0]  ;;  %v11029_v12 = vld [vmem:[#allocation6 + $0x1e0] sm:$0xf]  ;;  %v10838_v15 = vor.u32 %v13566_v4, %v10837_v2  ;;  %v14491_v2 = vpop.f32.mrf.mxu2 }
 0x312   :  { %v10623_v11 = vld [vmem:[#allocation4 + $0xeb8] sm:$0xf0] }
 0x313   :  { %v13308_v17 = vld [vmem:[#allocation4 + $0x85c] sm:$0xf]  ;;  %v10626_v21 = vor.u32 %v13508_v10, %v10623_v11  ;;  %4048 = vmatpush.bf16.msrb.mxu2 %v10370_v16  ;;  %v10965_v10 = vld [vmem:[#allocation6 + $0x160] sm:$0xf]  ;;  %v13598_v11 = vld [vmem:[#allocation6 + $0x164] sm:$0xf0]  ;;  %v10902_v16 = vor.u32 %v13582_v8, %v10901_v5 }
 0x314   :  { %v9823_v19 = vld [vmem:[#allocation4 + $0x878] sm:$0xf0]  ;;  %v13574_v5 = vld [vmem:[#allocation6 + $0xa4] sm:$0xf0] }
 0x315   :  { %v13372_v40 = vld [vmem:[#allocation4 + $0xa5c] sm:$0xf]  ;;  %v9826_v26 = vor.u32 %v13308_v17, %v9823_v19  ;;  %4061 = vmatpush.bf16.msrb.mxu3 %v10626_v21  ;;  %v10966_v17 = vor.u32 %v13598_v11, %v10965_v10  ;;  %v10829_v19 = vld [vmem:[#allocation6 + $0x50] sm:$0xf]  ;;  %v11030_v21 = vor.u32 %v13614_v14, %v11029_v12  ;;  %v13590_v8 = vld [vmem:[#allocation6 + $0x124] sm:$0xf0]  ;;  %v14493_v10 = vpop.f32.mrf.mxu3 }
 0x316   :  { %v10079_v22 = vld [vmem:[#allocation4 + $0xa78] sm:$0xf0]  ;;  %v10997_v11 = vld [vmem:[#allocation6 + $0x1a0] sm:$0xf]  ;;  %v13606_v12 = vld [vmem:[#allocation6 + $0x1a4] sm:$0xf0] }
 0x317   :  { %v13436_v23 = vld [vmem:[#allocation4 + $0xc5c] sm:$0xf]  ;;  %v10082_v29 = vor.u32 %v13372_v40, %v10079_v22  ;;  %4023 = vmatpush.bf16.msrb.mxu0 %v9826_v26  ;;  %v13564_v40 = vld [vmem:[#allocation6 + $0x54] sm:$0xf0]  ;;  %v4078_v14 = vmul.f32 0.2, %v14422_v49 }
 0x318   :  { %v10335_v24 = vld [vmem:[#allocation4 + $0xc78] sm:$0xf0]  ;;  %v13580_v22 = vld [vmem:[#allocation6 + $0xd4] sm:$0xf0]  ;;  %v10830_v26 = vor.u32 %v13564_v40, %v10829_v19 }
 0x319   :  { %v13500_v25 = vld [vmem:[#allocation4 + $0xe5c] sm:$0xf]  ;;  %v10338_v32 = vor.u32 %v13436_v23, %v10335_v24  ;;  %4036 = vmatpush.bf16.msrb.mxu1 %v10082_v29  ;;  %v10957_v23 = vld [vmem:[#allocation6 + $0x150] sm:$0xf]  ;;  %v13596_v24 = vld [vmem:[#allocation6 + $0x154] sm:$0xf0] }
 0x31a   :  { %v10591_v3 = vld [vmem:[#allocation4 + $0xe78] sm:$0xf0]  ;;  %v10821_v29 = vld [vmem:[#allocation6 + $0x40] sm:$0xf] }
 0x31b   :  { %v13300_v27 = vld [vmem:[#allocation4 + $0x81c] sm:$0xf]  ;;  %v10594_v35 = vor.u32 %v13500_v25, %v10591_v3  ;;  %4049 = vmatpush.bf16.msrb.mxu2 %v10338_v32  ;;  %v11021_v25 = vld [vmem:[#allocation6 + $0x1d0] sm:$0xf]  ;;  %v13612_v3 = vld [vmem:[#allocation6 + $0x1d4] sm:$0xf0] }
 0x31c   :  { %v9791_v28 = vld [vmem:[#allocation4 + $0x838] sm:$0xf0]  ;;  %v10885_v32 = vld [vmem:[#allocation6 + $0xc0] sm:$0xf] }
 0x31d   :  { %v13364_v30 = vld [vmem:[#allocation4 + $0xa1c] sm:$0xf]  ;;  %v9794_v47 = vor.u32 %v13300_v27, %v9791_v28  ;;  %4062 = vmatpush.bf16.msrb.mxu3 %v10594_v35  ;;  %v10894_v27 = vor.u32 %v13580_v22, %v10893_v20  ;;  %v10958_v28 = vor.u32 %v13596_v24, %v10957_v23  ;;  %v10797_v20 = vld [vmem:[#allocation6 + $0x10] sm:$0xf]  ;;  %v3833_v23 = vpop.f32.mrf.mxu1  ;;  %v10998_v24 = vor.u32 %v13606_v12, %v10997_v11  ;;  %v13630_v11 = vld [vmem:[#allocation6 + $0x264] sm:$0xf0] }
 0x31e   :  { %v10047_v33 = vld [vmem:[#allocation4 + $0xa38] sm:$0xf0]  ;;  %v10861_v22 = vld [vmem:[#allocation6 + $0x90] sm:$0xf]  ;;  %v11157_v12 = vld [vmem:[#allocation6 + $0x2e0] sm:$0xf] }
 0x31f   :  { %v13428_v51 = vld [vmem:[#allocation4 + $0xc1c] sm:$0xf]  ;;  %v10050_v55 = vor.u32 %v13364_v30, %v10047_v33  ;;  %4024 = vmatpush.bf16.msrb.mxu0 %v9794_v47  ;;  %v11022_v30 = vor.u32 %v13612_v3, %v11021_v25  ;;  %v13578_v33 = vld [vmem:[#allocation6 + $0xc4] sm:$0xf0]  ;;  %v13576_v47 = vld [vmem:[#allocation6 + $0xb4] sm:$0xf0] }
 0x320   :  { %v10303_v41 = vld [vmem:[#allocation4 + $0xc38] sm:$0xf0]  ;;  %v10878_v59 = vor.u32 %v13576_v47, %v10877_v42  ;;  %v13572_v25 = vld [vmem:[#allocation6 + $0x94] sm:$0xf0]  ;;  %v10925_v3 = vld [vmem:[#allocation6 + $0x110] sm:$0xf] }
 0x321   :  { %v13492_v31 = vld [vmem:[#allocation4 + $0xe1c] sm:$0xf]  ;;  %v10306_v57 = vor.u32 %v13428_v51, %v10303_v41  ;;  %4037 = vmatpush.bf16.msrb.mxu1 %v10050_v55  ;;  %v10949_v51 = vld [vmem:[#allocation6 + $0x140] sm:$0xf]  ;;  %v14486_v41 = vpop.f32.mrf.mxu0  ;;  %v13608_v55 = vld [vmem:[#allocation6 + $0x1b4] sm:$0xf0] }
 0x322   :  { %v10559_v38 = vld [vmem:[#allocation4 + $0xe38] sm:$0xf0]  ;;  %4025 = vmatmul.bf16.vlgmr.msrb.gmra.mxu0 %v14379_v37  ;;  %v13562_v37 = vld [vmem:[#allocation6 + $0x44] sm:$0xf0]  ;;  %v11006_v4 = vor.u32 %v13608_v55, %v11005_v54  ;;  %v11101_v47 = vld [vmem:[#allocation6 + $0x270] sm:$0xf] }
 0x323   :  { %v10562_v61 = vor.u32 %v13492_v31, %v10559_v38  ;;  %4050 = vmatpush.bf16.msrb.mxu2 %v10306_v57  ;;  %4869 = vmatpush.bf16.msra.mxu0 %v10846_v62  ;;  %v10822_v35 = vor.u32 %v13562_v37, %v10821_v29  ;;  %v10813_v38 = vld [vmem:[#allocation6 + $0x30] sm:$0xf]  ;;  %v666_v57 = vperm.slane %v14458_v18, 5  ;;  %v10805_v62 = vld [vmem:[#allocation6 + $0x20] sm:$0xf] }
 0x324   :  { %4038 = vmatmul.bf16.vlgmr.msrb.gmra.mxu1 %v14383_v44  ;;  %v13594_v44 = vld [vmem:[#allocation6 + $0x144] sm:$0xf0]  ;;  %v10814_v58 = vor.u32 %v13560_v39, %v10813_v38  ;;  %v4077_v18 = vmul.f32 0.2, %v14408_v52  ;;  %v13604_v29 = vld [vmem:[#allocation6 + $0x194] sm:$0xf0] }
 0x325   :  { %4063 = vmatpush.bf16.msrb.mxu3 %v10562_v61  ;;  %4882 = vmatpush.bf16.msra.mxu1 %v10910_v0  ;;  %v10950_v31 = vor.u32 %v13594_v44, %v10949_v51  ;;  %v10942_v61 = vor.u32 %v13592_v50, %v10941_v60  ;;  %v13558_v0 = vld [vmem:[#allocation6 + $0x24] sm:$0xf0]  ;;  %v4080_v37 = vmul.f32 0.2, %v14452_v63  ;;  %v10862_v51 = vor.u32 %v13572_v25, %v10861_v22  ;;  %v10981_v39 = vld [vmem:[#allocation6 + $0x180] sm:$0xf] }
 0x326   :  { %4051 = vmatmul.bf16.vlgmr.msrb.gmra.mxu2 %v14377_v36  ;;  %v13610_v36 = vld [vmem:[#allocation6 + $0x1c4] sm:$0xf0]  ;;  %v13632_v60 = vld [vmem:[#allocation6 + $0x274] sm:$0xf0]  ;;  %v11165_v50 = vld [vmem:[#allocation6 + $0x2f0] sm:$0xf] }
 0x327   :  { %4895 = vmatpush.bf16.msra.mxu2 %v10974_v1  ;;  %4870 = vmatpush.bf16.msra.mxu0 %v10838_v15  ;;  %v11014_v46 = vor.u32 %v13610_v36, %v11013_v34  ;;  %v10869_v1 = vld [vmem:[#allocation6 + $0xa0] sm:$0xf]  ;;  %v10806_v15 = vor.u32 %v13558_v0, %v10805_v62  ;;  %v13570_v36 = vld [vmem:[#allocation6 + $0x84] sm:$0xf0]  ;;  %v11229_v55 = vld [vmem:[#allocation6 + $0x370] sm:$0xf]  ;;  %v4085_v62 = vsel %vm4069_vm0, %v14408_v52, %v4077_v18 }
 0x328   :  { %4064 = vmatmul.bf16.vlgmr.msrb.gmra.mxu3 %v14381_v43  ;;  %v10886_v43 = vor.u32 %v13578_v33, %v10885_v32  ;;  %v10870_v19 = vor.u32 %v13574_v5, %v10869_v1  ;;  %v10789_v32 = vld [vmem:[#allocation6] sm:$0xf]  ;;  %v13586_v38 = vld [vmem:[#allocation6 + $0x104] sm:$0xf0]  ;;  %v11102_v1 = vor.u32 %v13632_v60, %v11101_v47  ;;  %v4088_v52 = vsel %vm4072_vm3, %v14452_v63, %v4080_v37  ;;  %v13628_v22 = vld [vmem:[#allocation6 + $0x254] sm:$0xf0] }
 0x329   :  { %4908 = vmatpush.bf16.msra.mxu3 %v11038_v7  ;;  %4883 = vmatpush.bf16.msra.mxu1 %v10902_v16  ;;  %v10933_v7 = vld [vmem:[#allocation6 + $0x120] sm:$0xf]  ;;  %v3820_v16 = vpop.f32.mrf.mxu0  ;;  %v13602_v42 = vld [vmem:[#allocation6 + $0x184] sm:$0xf0]  ;;  %v11149_v23 = vld [vmem:[#allocation6 + $0x2d0] sm:$0xf] }
 0x32a   :  { %v10934_v40 = vor.u32 %v13590_v8, %v10933_v7  ;;  %v10853_v34 = vld [vmem:[#allocation6 + $0x80] sm:$0xf]  ;;  %v10982_v0 = vor.u32 %v13602_v42, %v10981_v39  ;;  %v13646_v18 = vld [vmem:[#allocation6 + $0x2e4] sm:$0xf0]  ;;  %v13660_v25 = vld [vmem:[#allocation6 + $0x354] sm:$0xf0] }
 0x32b   :  { %4896 = vmatpush.bf16.msra.mxu2 %v10966_v17  ;;  %4871 = vmatpush.bf16.msra.mxu0 %v10830_v26  ;;  %v3767_v17 = vadd.f32 %v14474_v53, %v666_v57  ;;  %v13588_v26 = vld [vmem:[#allocation6 + $0x114] sm:$0xf0]  ;;  %v11093_v8 = vld [vmem:[#allocation6 + $0x260] sm:$0xf]  ;;  %v13662_v16 = vld [vmem:[#allocation6 + $0x364] sm:$0xf0]  ;;  %v11158_v63 = vor.u32 %v13646_v18, %v11157_v12 }
 0x32c   :  { %v10926_v44 = vor.u32 %v13588_v26, %v10925_v3  ;;  %v13664_v57 = vld [vmem:[#allocation6 + $0x374] sm:$0xf0]  ;;  %v13626_v37 = vld [vmem:[#allocation6 + $0x244] sm:$0xf0]  ;;  %v11197_v42 = vld [vmem:[#allocation6 + $0x330] sm:$0xf] }
 0x32d   :  { %4909 = vmatpush.bf16.msra.mxu3 %v11030_v21  ;;  %4884 = vmatpush.bf16.msra.mxu1 %v10894_v27  ;;  %v13556_v21 = vld [vmem:[#allocation6 + $0x14] sm:$0xf0]  ;;  %v4079_v27 = vmul.f32 0.2, %v14438_v56  ;;  %v3780_v33 = vadd.f32 %v14476_v48, %v3767_v17  ;;  %v11230_v7 = vor.u32 %v13664_v57, %v11229_v55  ;;  %v14518_v17 = vpack.c.bf16 %v4085_v62, %v4085_v62  ;;  %v11125_v55 = vld [vmem:[#allocation6 + $0x2a0] sm:$0xf] }
 0x32e   :  { %v10798_v53 = vor.u32 %v13556_v21, %v10797_v20  ;;  %v13648_v48 = vld [vmem:[#allocation6 + $0x2f4] sm:$0xf0]  ;;  %v11085_v21 = vld [vmem:[#allocation6 + $0x250] sm:$0xf]  ;;  %vm5118_vm0 = vcmask 1041408  }
 0x32f   :  { %4897 = vmatpush.bf16.msra.mxu2 %v10958_v28  ;;  %4872 = vmatpush.bf16.msra.mxu0 %v10822_v35  ;;  %v10989_v28 = vld [vmem:[#allocation6 + $0x190] sm:$0xf]  ;;  %v10917_v35 = vld [vmem:[#allocation6 + $0x100] sm:$0xf]  ;;  %v4087_v5 = vsel %vm4071_vm2, %v14438_v56, %v4079_v27  ;;  %v11086_v26 = vor.u32 %v13628_v22, %v11085_v21  ;;  %v13640_v39 = vld [vmem:[#allocation6 + $0x2b4] sm:$0xf0] }
 0x330   :  { %v13636_v12 = vld [vmem:[#allocation6 + $0x294] sm:$0xf0]  ;;  %v11109_v21 = vld [vmem:[#allocation6 + $0x280] sm:$0xf] }
 0x331   :  { %4910 = vmatpush.bf16.msra.mxu3 %v11022_v30  ;;  %4885 = vmatpush.bf16.msra.mxu1 %v10886_v43  ;;  %v13554_v30 = vld [vmem:[#allocation6 + $0x4] sm:$0xf0]  ;;  %v3846_v43 = vpop.f32.mrf.mxu2  ;;  %v13652_v18 = vld [vmem:[#allocation6 + $0x314] sm:$0xf0] }
 0x332   :  { %v10790_v54 = vor.u32 %v13554_v30, %v10789_v32  ;;  %v13642_v32 = vld [vmem:[#allocation6 + $0x2c4] sm:$0xf0]  ;;  %v11205_v30 = vld [vmem:[#allocation6 + $0x340] sm:$0xf]  ;;  %v13624_v43 = vld [vmem:[#allocation6 + $0x234] sm:$0xf0] }
 0x333   :  { %4898 = vmatpush.bf16.msra.mxu2 %v10950_v31  ;;  %4873 = vmatpush.bf16.msra.mxu0 %v10814_v58  ;;  %v10990_v31 = vor.u32 %v13604_v29, %v10989_v28  ;;  %v3793_v58 = vadd.f32 %v14478_v6, %v3780_v33  ;;  %v11166_v6 = vor.u32 %v13648_v48, %v11165_v50  ;;  %v11077_v29 = vld [vmem:[#allocation6 + $0x240] sm:$0xf]  ;;  %v13658_v33 = vld [vmem:[#allocation6 + $0x344] sm:$0xf0] }
 0x334   :  { %v13622_v48 = vld [vmem:[#allocation6 + $0x224] sm:$0xf0] }
 0x335   :  { %4911 = vmatpush.bf16.msra.mxu3 %v11014_v46  ;;  %4886 = vmatpush.bf16.msra.mxu1 %v10878_v59  ;;  %v3859_v46 = vpop.f32.mrf.mxu3  ;;  %v10854_v59 = vor.u32 %v13570_v36, %v10853_v34  ;;  %v11206_v36 = vor.u32 %v13658_v33, %v11205_v30  ;;  %v13680_v30 = vld [vmem:[#allocation6 + $0x3f4] sm:$0xf0] }
 0x336   :  { %v13656_v46 = vld [vmem:[#allocation6 + $0x334] sm:$0xf0] }
 0x337   :  { %4899 = vmatpush.bf16.msra.mxu2 %v10942_v61  ;;  %4874 = vmatpush.bf16.msra.mxu0 %v10806_v15  ;;  %v10918_v61 = vor.u32 %v13586_v38, %v10917_v35  ;;  %v11221_v15 = vld [vmem:[#allocation6 + $0x360] sm:$0xf]  ;;  %v11069_v35 = vld [vmem:[#allocation6 + $0x230] sm:$0xf]  ;;  %v14535_v38 = vpop.f32.mrf.mxu1  ;;  %v11198_v50 = vor.u32 %v13656_v46, %v11197_v42  ;;  %v10839_v42 = vld [vmem:[#allocation6 + $0x68] sm:$0xf0] }
 0x338   :  { %v11222_v20 = vor.u32 %v13662_v16, %v11221_v15  ;;  %v4081_v15 = vmul.f32 0.2, %v14468_v13 }
 0x339   :  { %4912 = vmatpush.bf16.msra.mxu3 %v11006_v4  ;;  %4887 = vmatpush.bf16.msra.mxu1 %v10870_v19  ;;  %v4086_v4 = vsel %vm4070_vm1, %v14422_v49, %v4078_v14  ;;  %v3806_v49 = vadd.f32 %v14480_v9, %v3793_v58  ;;  %v14523_v14 = vpack.c.bf16 %v4087_v5, %v4087_v5  ;;  %v13644_v9 = vld [vmem:[#allocation6 + $0x2d4] sm:$0xf0]  ;;  %v14538_v57 = vpop.f32.mrf.mxu2  ;;  %v13638_v58 = vld [vmem:[#allocation6 + $0x2a4] sm:$0xf0] }
 0x33a   :  { %v14521_v56 = vpack.c.bf16 %v4086_v4, %v4086_v4  ;;  %v11094_v19 = vor.u32 %v13630_v11, %v11093_v8  ;;  %v11150_v27 = vor.u32 %v13644_v9, %v11149_v23  ;;  %v11126_v4 = vor.u32 %v13638_v58, %v11125_v55  ;;  %v11117_v8 = vld [vmem:[#allocation6 + $0x290] sm:$0xf]  ;;  %v13634_v9 = vld [vmem:[#allocation6 + $0x284] sm:$0xf0]  ;;  %v10967_v55 = vld [vmem:[#allocation6 + $0x168] sm:$0xf0] }
 0x33b   :  { %4900 = vmatpush.bf16.msra.mxu2 %v10934_v40  ;;  %4875 = vmatpush.bf16.msra.mxu0 %v10798_v53  ;;  %v14525_v40 = vpack.c.bf16 %v4088_v52, %v4088_v52  ;;  %v3819_v3 = vadd.f32 %v14486_v41, %v3806_v49  ;;  %v11141_v53 = vld [vmem:[#allocation6 + $0x2c0] sm:$0xf]  ;;  %v11078_v41 = vor.u32 %v13626_v37, %v11077_v29  ;;  %v11181_v52 = vld [vmem:[#allocation6 + $0x310] sm:$0xf]  ;;  %v13678_v58 = vld [vmem:[#allocation6 + $0x3e4] sm:$0xf0] }
 0x33c   :  { %v11142_v34 = vor.u32 %v13642_v32, %v11141_v53  ;;  %v11118_v22 = vor.u32 %v13636_v12, %v11117_v8  ;;  %v11182_v23 = vor.u32 %v13652_v18, %v11181_v52  ;;  %v10911_v53 = vld [vmem:[#allocation6 + $0xf8] sm:$0xf0]  ;;  %v11293_v32 = vld [vmem:[#allocation6 + $0x3f0] sm:$0xf]  ;;  %v13595_v12 = vld [vmem:[#allocation6 + $0x154] sm:$0xf] }
 0x33d   :  { %4913 = vmatpush.bf16.msra.mxu3 %v10998_v24  ;;  %4888 = vmatpush.bf16.msra.mxu1 %v10862_v51  ;;  %v11213_v24 = vld [vmem:[#allocation6 + $0x350] sm:$0xf]  ;;  %v3832_v51 = vadd.f32 %v14488_v45, %v3819_v3  ;;  %v11070_v45 = vor.u32 %v13624_v43, %v11069_v35  ;;  %v14540_v62 = vpop.f32.mrf.mxu3  ;;  %v4089_v43 = vsel %vm4073_vm4, %v14468_v13, %v4081_v15  ;;  %v10959_v52 = vld [vmem:[#allocation6 + $0x158] sm:$0xf0] }
 0x33e   :  { %v11214_v28 = vor.u32 %v13660_v25, %v11213_v24  ;;  %v11173_v24 = vld [vmem:[#allocation6 + $0x300] sm:$0xf]  ;;  %v13650_v25 = vld [vmem:[#allocation6 + $0x304] sm:$0xf0]  ;;  %v11277_v8 = vld [vmem:[#allocation6 + $0x3d0] sm:$0xf] }
 0x33f   :  { %4901 = vmatpush.bf16.msra.mxu2 %v10926_v44  ;;  %4876 = vmatpush.bf16.msra.mxu0 %v10790_v54  ;;  %v14533_v44 = vpop.f32.mrf.mxu0  ;;  %v3845_v47 = vadd.f32 %v14491_v2, %v3832_v51  ;;  %v11061_v54 = vld [vmem:[#allocation6 + $0x220] sm:$0xf]  ;;  %v3885_v11 = vpop.f32.mrf.mxu1  ;;  %v13599_v51 = vld [vmem:[#allocation6 + $0x174] sm:$0xf]  ;;  %v11174_v35 = vor.u32 %v13650_v25, %v11173_v24  ;;  %v10951_v24 = vld [vmem:[#allocation6 + $0x148] sm:$0xf0] }
 0x340   :  { %v11062_v2 = vor.u32 %v13622_v48, %v11061_v54  ;;  %v11285_v54 = vld [vmem:[#allocation6 + $0x3e0] sm:$0xf]  ;;  %v13597_v48 = vld [vmem:[#allocation6 + $0x164] sm:$0xf]  ;;  %v13676_v11 = vld [vmem:[#allocation6 + $0x3d4] sm:$0xf0] }
 0x341   :  { %4914 = vmatpush.bf16.msra.mxu3 %v10990_v31  ;;  %4889 = vmatpush.bf16.msra.mxu1 %v10854_v59  ;;  %v11133_v31 = vld [vmem:[#allocation6 + $0x2b0] sm:$0xf]  ;;  %v11189_v59 = vld [vmem:[#allocation6 + $0x320] sm:$0xf]  ;;  %v3898_v3 = vpop.f32.mrf.mxu2  ;;  %v11286_v13 = vor.u32 %v13678_v58, %v11285_v54  ;;  %v11278_v18 = vor.u32 %v13676_v11, %v11277_v8  ;;  %v10935_v58 = vld [vmem:[#allocation6 + $0x128] sm:$0xf0] }
 0x342   :  { %4877 = vmatmul.bf16.vlgmr.msra.gmra.mxu0 %v14518_v17  ;;  %v11134_v60 = vor.u32 %v13640_v39, %v11133_v31  ;;  %v13587_v11 = vld [vmem:[#allocation6 + $0x114] sm:$0xf] }
 0x343   :  { %4902 = vmatpush.bf16.msra.mxu2 %v10918_v61  ;;  %4921 = vmatpush.bf16.msrb.mxu0 %v11102_v1  ;;  %v13654_v61 = vld [vmem:[#allocation6 + $0x324] sm:$0xf0] }
 0x344   :  { %4890 = vmatmul.bf16.vlgmr.msra.gmra.mxu1 %v14521_v56  ;;  %v11190_v5 = vor.u32 %v13654_v61, %v11189_v59  ;;  %v14554_v59 = vpack.c.bf16 %v4089_v43, %v4089_v43 }
 0x345   :  { %4915 = vmatpush.bf16.msra.mxu3 %v10982_v0  ;;  %4934 = vmatpush.bf16.msrb.mxu1 %v11166_v6  ;;  %v3858_v0 = vadd.f32 %v14493_v10, %v3845_v47  ;;  %v11053_v6 = vld [vmem:[#allocation6 + $0x210] sm:$0xf]  ;;  %v3911_v29 = vpop.f32.mrf.mxu3 }
 0x346   :  { %4903 = vmatmul.bf16.vlgmr.msra.gmra.mxu2 %v14523_v14  ;;  %v14545_v10 = vld [vmem:[#allocation2] sm:$0xff]  ;;  %v10815_v29 = vld [vmem:[#allocation6 + $0x38] sm:$0xf0] }
 0x347   :  { %4947 = vmatpush.bf16.msrb.mxu2 %v11230_v7  ;;  %4922 = vmatpush.bf16.msrb.mxu0 %v11094_v19  ;;  %v3872_v1 = vpop.f32.mrf.mxu0  ;;  %v13620_v7 = vld [vmem:[#allocation6 + $0x214] sm:$0xf0]  ;;  %v4082_v16 = vmul.f32 0.2, %v3858_v0  ;;  %v667_v49 = vperm.slane %v14545_v10, 6  ;;  %vm4074_vm5 = vcmp.ge.f32.partialorder %v3858_v0, 0.0 }
 0x348   :  { %4916 = vmatmul.bf16.vlgmr.msra.gmra.mxu3 %v14525_v40  ;;  %v11054_v19 = vor.u32 %v13620_v7, %v11053_v6  ;;  %v10831_v1 = vld [vmem:[#allocation6 + $0x58] sm:$0xf0]  ;;  %v10970_v6 = vor.u32 %v13597_v48, %v10967_v55  ;;  %v13589_v55 = vld [vmem:[#allocation6 + $0x124] sm:$0xf] }
 0x349   :  { %4935 = vmatpush.bf16.msrb.mxu1 %v11158_v63  ;;  %v11045_v63 = vld [vmem:[#allocation6 + $0x200] sm:$0xf]  ;;  %v3871_v37 = vadd.f32 %v14533_v44, %v667_v49  ;;  %v13565_v44 = vld [vmem:[#allocation6 + $0x64] sm:$0xf]  ;;  %v4090_v46 = vsel %vm4074_vm5, %v3858_v0, %v4082_v16  ;;  %v10895_v7 = vld [vmem:[#allocation6 + $0xd8] sm:$0xf0]  ;;  %v10938_v8 = vor.u32 %v13589_v55, %v10935_v58 }
 0x34a   :  { %v14556_v61 = vpack.c.bf16 %v4090_v46, %v4090_v46  ;;  %v10842_v0 = vor.u32 %v13565_v44, %v10839_v42  ;;  %v13561_v49 = vld [vmem:[#allocation6 + $0x44] sm:$0xf]  ;;  %v10807_v44 = vld [vmem:[#allocation6 + $0x28] sm:$0xf0] }
 0x34b   :  { %4948 = vmatpush.bf16.msrb.mxu2 %v11222_v20  ;;  %4923 = vmatpush.bf16.msrb.mxu0 %v11086_v26  ;;  %v13618_v20 = vld [vmem:[#allocation6 + $0x204] sm:$0xf0]  ;;  %v13567_v26 = vld [vmem:[#allocation6 + $0x74] sm:$0xf]  ;;  %v3884_v47 = vadd.f32 %v14535_v38, %v3871_v37  ;;  %v13573_v42 = vld [vmem:[#allocation6 + $0xa4] sm:$0xf] }
 0x34c   :  { %v11046_v33 = vor.u32 %v13618_v20, %v11045_v63  ;;  %v13563_v38 = vld [vmem:[#allocation6 + $0x54] sm:$0xf]  ;;  %v13577_v63 = vld [vmem:[#allocation6 + $0xc4] sm:$0xf]  ;;  %v10962_v20 = vor.u32 %v13595_v12, %v10959_v52  ;;  %v11245_v52 = vld [vmem:[#allocation6 + $0x390] sm:$0xf] }
 0x34d   :  { %4936 = vmatpush.bf16.msrb.mxu1 %v11150_v27  ;;  %v10847_v27 = vld [vmem:[#allocation6 + $0x78] sm:$0xf0]  ;;  %v10834_v15 = vor.u32 %v13563_v38, %v10831_v1  ;;  %v13575_v37 = vld [vmem:[#allocation6 + $0xb4] sm:$0xf]  ;;  %v3961_v48 = vpop.f32.mrf.mxu3  ;;  %v11031_v55 = vld [vmem:[#allocation6 + $0x1e8] sm:$0xf0] }
 0x34e   :  { %v10850_v31 = vor.u32 %v13567_v26, %v10847_v27 }
 0x34f   :  { %4949 = vmatpush.bf16.msrb.mxu2 %v11214_v28  ;;  %4924 = vmatpush.bf16.msrb.mxu0 %v11078_v41  ;;  %v13583_v28 = vld [vmem:[#allocation6 + $0xf4] sm:$0xf]  ;;  %v10975_v41 = vld [vmem:[#allocation6 + $0x178] sm:$0xf0]  ;;  %v3922_v27 = vpop.f32.mrf.mxu0 }
 0x350   :  { %v10914_v39 = vor.u32 %v13583_v28, %v10911_v53  ;;  %v13559_v28 = vld [vmem:[#allocation6 + $0x34] sm:$0xf] }
 0x351   :  { %4937 = vmatpush.bf16.msrb.mxu1 %v11142_v34  ;;  %v11294_v34 = vor.u32 %v13680_v30, %v11293_v32  ;;  %v3935_v32 = vpop.f32.mrf.mxu1  ;;  %v10879_v30 = vld [vmem:[#allocation6 + $0xb8] sm:$0xf0]  ;;  %v10818_v43 = vor.u32 %v13559_v28, %v10815_v29  ;;  %v11237_v29 = vld [vmem:[#allocation6 + $0x380] sm:$0xf] }
 0x353   :  { %4950 = vmatpush.bf16.msrb.mxu2 %v11206_v36  ;;  %4925 = vmatpush.bf16.msrb.mxu0 %v11070_v45  ;;  %v11110_v36 = vor.u32 %v13634_v9, %v11109_v21  ;;  %v10978_v45 = vor.u32 %v13599_v51, %v10975_v41  ;;  %v10887_v21 = vld [vmem:[#allocation6 + $0xc8] sm:$0xf0]  ;;  %v13593_v9 = vld [vmem:[#allocation6 + $0x144] sm:$0xf]  ;;  %v13672_v51 = vld [vmem:[#allocation6 + $0x3b4] sm:$0xf0] }
 0x354   :  { %4960 = vmatpush.bf16.msrb.mxu3 %v11294_v34  ;;  %v10890_v26 = vor.u32 %v13577_v63, %v10887_v21  ;;  %v10954_v53 = vor.u32 %v13593_v9, %v10951_v24  ;;  %v13591_v41 = vld [vmem:[#allocation6 + $0x134] sm:$0xf]  ;;  %v10943_v34 = vld [vmem:[#allocation6 + $0x138] sm:$0xf0]  ;;  %v10791_v63 = vld [vmem:[#allocation6 + $0x8] sm:$0xf0] }
 0x355   :  { %4938 = vmatpush.bf16.msrb.mxu1 %v11134_v60  ;;  %v13581_v60 = vld [vmem:[#allocation6 + $0xe4] sm:$0xf]  ;;  %v10946_v46 = vor.u32 %v13591_v41, %v10943_v34  ;;  %v10919_v24 = vld [vmem:[#allocation6 + $0x108] sm:$0xf0]  ;;  %v13663_v41 = vld [vmem:[#allocation6 + $0x374] sm:$0xf] }
 0x356   :  { %v13585_v9 = vld [vmem:[#allocation6 + $0x104] sm:$0xf]  ;;  %v11231_v34 = vld [vmem:[#allocation6 + $0x378] sm:$0xf0] }
 0x357   :  { %4951 = vmatpush.bf16.msrb.mxu2 %v11198_v50  ;;  %4926 = vmatpush.bf16.msrb.mxu0 %v11062_v2  ;;  %v10903_v50 = vld [vmem:[#allocation6 + $0xe8] sm:$0xf0] }
 0x358   :  { %v10906_v2 = vor.u32 %v13581_v60, %v10903_v50  ;;  %4961 = vmatpush.bf16.msrb.mxu3 %v11286_v13  ;;  %v11253_v60 = vld [vmem:[#allocation6 + $0x3a0] sm:$0xf]  ;;  %v13670_v50 = vld [vmem:[#allocation6 + $0x3a4] sm:$0xf0] }
 0x359   :  { %4939 = vmatpush.bf16.msrb.mxu1 %v11126_v4  ;;  %v13579_v4 = vld [vmem:[#allocation6 + $0xd4] sm:$0xf]  ;;  %v11254_v13 = vor.u32 %v13670_v50, %v11253_v60  ;;  %v3937_v12 = vpop.f32.mrf.mxu1  ;;  %v11159_v60 = vld [vmem:[#allocation6 + $0x2e8] sm:$0xf0]  ;;  %v13661_v50 = vld [vmem:[#allocation6 + $0x364] sm:$0xf] }
 0x35a   :  { %v10898_v16 = vor.u32 %v13579_v4, %v10895_v7  ;;  %v10799_v4 = vld [vmem:[#allocation6 + $0x18] sm:$0xf0]  ;;  %v3924_v7 = vpop.f32.mrf.mxu0 }
 0x35b   :  { %4952 = vmatpush.bf16.msrb.mxu2 %v11190_v5  ;;  %4927 = vmatpush.bf16.msrb.mxu0 %v11054_v19  ;;  %v3897_v5 = vadd.f32 %v14538_v57, %v3884_v47  ;;  %v10823_v19 = vld [vmem:[#allocation6 + $0x48] sm:$0xf0]  ;;  %v3948_v47 = vpop.f32.mrf.mxu2  ;;  %v11215_v7 = vld [vmem:[#allocation6 + $0x358] sm:$0xf0] }
 0x35c   :  { %4962 = vmatpush.bf16.msrb.mxu3 %v11278_v18  ;;  %v10826_v3 = vor.u32 %v13561_v49, %v10823_v19  ;;  %v13668_v18 = vld [vmem:[#allocation6 + $0x394] sm:$0xf0]  ;;  %v13553_v19 = vld [vmem:[#allocation6 + $0x4] sm:$0xf] }
 0x35d   :  { %4940 = vmatpush.bf16.msrb.mxu1 %v11118_v22  ;;  %v3910_v57 = vadd.f32 %v14540_v62, %v3897_v5  ;;  %v11269_v22 = vld [vmem:[#allocation6 + $0x3c0] sm:$0xf]  ;;  %v13571_v5 = vld [vmem:[#allocation6 + $0x94] sm:$0xf]  ;;  %v11246_v49 = vor.u32 %v13668_v18, %v11245_v52  ;;  %v13625_v18 = vld [vmem:[#allocation6 + $0x244] sm:$0xf] }
 0x35f   :  { %4953 = vmatpush.bf16.msrb.mxu2 %v11182_v23  ;;  %4928 = vmatpush.bf16.msrb.mxu0 %v11046_v33  ;;  %v13674_v23 = vld [vmem:[#allocation6 + $0x3c4] sm:$0xf0]  ;;  %v3923_v62 = vadd.f32 %v3922_v27, %v3910_v57  ;;  %v11261_v33 = vld [vmem:[#allocation6 + $0x3b0] sm:$0xf]  ;;  %v13569_v57 = vld [vmem:[#allocation6 + $0x84] sm:$0xf] }
 0x360   :  { %v11270_v25 = vor.u32 %v13674_v23, %v11269_v22  ;;  %v11103_v27 = vld [vmem:[#allocation6 + $0x278] sm:$0xf0] }
 0x361   :  { %4941 = vmatpush.bf16.msrb.mxu1 %v11110_v36  ;;  %v11262_v36 = vor.u32 %v13672_v51, %v11261_v33  ;;  %v11039_v33 = vld [vmem:[#allocation6 + $0x1f8] sm:$0xf0] }
 0x362   :  { %4929 = vmatmul.bf16.vlgmr.msrb.gmra.mxu0 %v14554_v59  ;;  %4963 = vmatpush.bf16.msrb.mxu3 %v11270_v25  ;;  %v13631_v25 = vld [vmem:[#allocation6 + $0x274] sm:$0xf]  ;;  %v11167_v51 = vld [vmem:[#allocation6 + $0x2f8] sm:$0xf0] }
 0x363   :  { %4954 = vmatpush.bf16.msrb.mxu2 %v11174_v35  ;;  %4973 = vmatpush.bf16.msra.mxu0 %v10850_v31  ;;  %v3936_v35 = vadd.f32 %v3935_v32, %v3923_v62  ;;  %v10882_v31 = vor.u32 %v13575_v37, %v10879_v30  ;;  %v3950_v28 = vpop.f32.mrf.mxu2  ;;  %v13666_v37 = vld [vmem:[#allocation6 + $0x384] sm:$0xf0]  ;;  %v3963_v62 = vpop.f32.mrf.mxu3  ;;  %v13615_v30 = vld [vmem:[#allocation6 + $0x1f4] sm:$0xf] }
 0x364   :  { %4942 = vmatmul.bf16.vlgmr.msrb.gmra.mxu1 %v14556_v61  ;;  %v11238_v32 = vor.u32 %v13666_v37, %v11237_v29  ;;  %v13639_v28 = vld [vmem:[#allocation6 + $0x2b4] sm:$0xf]  ;;  %v11135_v29 = vld [vmem:[#allocation6 + $0x2b8] sm:$0xf0] }
 0x365   :  { %4986 = vmatpush.bf16.msra.mxu1 %v10914_v39  ;;  %v13557_v39 = vld [vmem:[#allocation6 + $0x24] sm:$0xf]  ;;  %v3949_v54 = vadd.f32 %v3948_v47, %v3936_v35  ;;  %v10794_v35 = vor.u32 %v13553_v19, %v10791_v63  ;;  %v11234_v47 = vor.u32 %v13663_v41, %v11231_v34  ;;  %v11143_v63 = vld [vmem:[#allocation6 + $0x2c8] sm:$0xf0]  ;;  %v13655_v37 = vld [vmem:[#allocation6 + $0x334] sm:$0xf] }
 0x366   :  { %4964 = vmatpush.bf16.msrb.mxu3 %v11262_v36  ;;  %v10810_v38 = vor.u32 %v13557_v39, %v10807_v44  ;;  %v11042_v36 = vor.u32 %v13615_v30, %v11039_v33  ;;  %v11106_v39 = vor.u32 %v13631_v25, %v11103_v27  ;;  %v13629_v44 = vld [vmem:[#allocation6 + $0x264] sm:$0xf]  ;;  %v11071_v25 = vld [vmem:[#allocation6 + $0x238] sm:$0xf0]  ;;  %v13607_v30 = vld [vmem:[#allocation6 + $0x1b4] sm:$0xf] }
 0x367   :  { %4999 = vmatpush.bf16.msra.mxu2 %v10978_v45  ;;  %4974 = vmatpush.bf16.msra.mxu0 %v10842_v0  ;;  %v10871_v45 = vld [vmem:[#allocation6 + $0xa8] sm:$0xf0]  ;;  %v13555_v0 = vld [vmem:[#allocation6 + $0x14] sm:$0xf]  ;;  %v13641_v19 = vld [vmem:[#allocation6 + $0x2c4] sm:$0xf] }
 0x368   :  { %v10874_v1 = vor.u32 %v13573_v42, %v10871_v45  ;;  %v10802_v22 = vor.u32 %v13555_v0, %v10799_v4  ;;  %v11095_v42 = vld [vmem:[#allocation6 + $0x268] sm:$0xf0]  ;;  %v13645_v45 = vld [vmem:[#allocation6 + $0x2e4] sm:$0xf]  ;;  %v13627_v0 = vld [vmem:[#allocation6 + $0x254] sm:$0xf] }
 0x369   :  { %4987 = vmatpush.bf16.msra.mxu1 %v10906_v2  ;;  %v3962_v2 = vadd.f32 %v3961_v48, %v3949_v54  ;;  %v11223_v54 = vld [vmem:[#allocation6 + $0x368] sm:$0xf0]  ;;  %v13613_v48 = vld [vmem:[#allocation6 + $0x1e4] sm:$0xf]  ;;  %v13643_v4 = vld [vmem:[#allocation6 + $0x2d4] sm:$0xf] }
 0x36a   :  { %4965 = vmatpush.bf16.msrb.mxu3 %v11254_v13  ;;  %v11034_v58 = vor.u32 %v13613_v48, %v11031_v55  ;;  %v11098_v13 = vor.u32 %v13629_v44, %v11095_v42  ;;  %v11199_v62 = vld [vmem:[#allocation6 + $0x338] sm:$0xf0]  ;;  %v13621_v34 = vld [vmem:[#allocation6 + $0x224] sm:$0xf]  ;;  %v11191_v42 = vld [vmem:[#allocation6 + $0x328] sm:$0xf0] }
 0x36b   :  { %5000 = vmatpush.bf16.msra.mxu2 %v10970_v6  ;;  %4975 = vmatpush.bf16.msra.mxu0 %v10834_v15  ;;  %v10863_v6 = vld [vmem:[#allocation6 + $0x98] sm:$0xf0]  ;;  %vm4075_vm6 = vcmp.ge.f32.partialorder %v3962_v2, 0.0  ;;  %v4083_v15 = vmul.f32 0.2, %v3962_v2 }
 0x36c   :  { %v10866_v23 = vor.u32 %v13571_v5, %v10863_v6  ;;  %v11151_v5 = vld [vmem:[#allocation6 + $0x2d8] sm:$0xf0]  ;;  %v13659_v6 = vld [vmem:[#allocation6 + $0x354] sm:$0xf]  ;;  %v13653_v44 = vld [vmem:[#allocation6 + $0x324] sm:$0xf] }
 0x36d   :  { %4988 = vmatpush.bf16.msra.mxu1 %v10898_v16  ;;  %v10927_v16 = vld [vmem:[#allocation6 + $0x118] sm:$0xf0]  ;;  %v4091_v21 = vsel %vm4075_vm6, %v3962_v2, %v4083_v15  ;;  %v11079_v15 = vld [vmem:[#allocation6 + $0x248] sm:$0xf0]  ;;  %v13619_v48 = vld [vmem:[#allocation6 + $0x214] sm:$0xf] }
 0x36e   :  { %4966 = vmatpush.bf16.msrb.mxu3 %v11246_v49  ;;  %v11087_v2 = vld [vmem:[#allocation6 + $0x258] sm:$0xf0]  ;;  %v11218_v49 = vor.u32 %v13659_v6, %v11215_v7  ;;  %v13603_v6 = vld [vmem:[#allocation6 + $0x194] sm:$0xf] }
 0x36f   :  { %5001 = vmatpush.bf16.msra.mxu2 %v10962_v20  ;;  %4976 = vmatpush.bf16.msra.mxu0 %v10826_v3  ;;  %v10855_v20 = vld [vmem:[#allocation6 + $0x88] sm:$0xf0]  ;;  %v14562_v3 = vpack.c.bf16 %v4091_v21, %v4091_v21  ;;  %v11090_v52 = vor.u32 %v13627_v0, %v11087_v2  ;;  %v13609_v21 = vld [vmem:[#allocation6 + $0x1c4] sm:$0xf]  ;;  %v11007_v33 = vld [vmem:[#allocation6 + $0x1b8] sm:$0xf0] }
 0x370   :  { %v11055_v55 = vld [vmem:[#allocation6 + $0x218] sm:$0xf0]  ;;  %v13635_v0 = vld [vmem:[#allocation6 + $0x294] sm:$0xf] }
 0x371   :  { %4989 = vmatpush.bf16.msra.mxu1 %v10890_v26  ;;  %v10930_v26 = vor.u32 %v13587_v11, %v10927_v16  ;;  %4955 = vmatmul.bf16.vlgmr.msrb.gmra.mxu2 %v14562_v3  ;;  %v11023_v11 = vld [vmem:[#allocation6 + $0x1d8] sm:$0xf0]  ;;  %v11154_v16 = vor.u32 %v13643_v4, %v11151_v5 }
 0x372   :  { %4967 = vmatpush.bf16.msrb.mxu3 %v11238_v32  ;;  %v14570_v32 = vpop.f32.mrf.mxu1  ;;  %v11119_v2 = vld [vmem:[#allocation6 + $0x298] sm:$0xf0] }
 0x373   :  { %5002 = vmatpush.bf16.msra.mxu2 %v10954_v53  ;;  %4977 = vmatpush.bf16.msra.mxu0 %v10818_v43  ;;  %v13647_v53 = vld [vmem:[#allocation6 + $0x2f4] sm:$0xf]  ;;  %v10858_v43 = vor.u32 %v13569_v57, %v10855_v20  ;;  %v13657_v57 = vld [vmem:[#allocation6 + $0x344] sm:$0xf]  ;;  %v11207_v20 = vld [vmem:[#allocation6 + $0x348] sm:$0xf0] }
 0x374   :  { %v11210_v27 = vor.u32 %v13657_v57, %v11207_v20  ;;  %v11183_v4 = vld [vmem:[#allocation6 + $0x318] sm:$0xf0]  ;;  %v11175_v57 = vld [vmem:[#allocation6 + $0x308] sm:$0xf0]  ;;  %v11415_v20 = vld [vmem:[#allocation7 + $0xe0] sm:$0xf] }
 0x375   :  { %4990 = vmatpush.bf16.msra.mxu1 %v10882_v31  ;;  %v10922_v31 = vor.u32 %v13585_v9, %v10919_v24  ;;  %v11082_v9 = vor.u32 %v13625_v18, %v11079_v15  ;;  %v13623_v24 = vld [vmem:[#allocation6 + $0x234] sm:$0xf]  ;;  %v10991_v7 = vld [vmem:[#allocation6 + $0x198] sm:$0xf0]  ;;  %v11047_v18 = vld [vmem:[#allocation6 + $0x208] sm:$0xf0] }
 0x376   :  { %5012 = vmatpush.bf16.msra.mxu3 %v11042_v36  ;;  %v11074_v41 = vor.u32 %v13623_v24, %v11071_v25  ;;  %v11063_v36 = vld [vmem:[#allocation6 + $0x228] sm:$0xf0]  ;;  %v13633_v15 = vld [vmem:[#allocation6 + $0x284] sm:$0xf]  ;;  %v13743_v24 = vld [vmem:[#allocation7 + $0x1ec] sm:$0xf0] }
 0x377   :  { %5003 = vmatpush.bf16.msra.mxu2 %v10946_v46  ;;  %4978 = vmatpush.bf16.msra.mxu0 %v10810_v38  ;;  %v11170_v46 = vor.u32 %v13647_v53, %v11167_v51  ;;  %v11162_v38 = vor.u32 %v13645_v45, %v11159_v60  ;;  %v14567_v53 = vpop.f32.mrf.mxu0  ;;  %v11010_v51 = vor.u32 %v13607_v30, %v11007_v33  ;;  %v10999_v45 = vld [vmem:[#allocation6 + $0x1a8] sm:$0xf0]  ;;  %v14574_v60 = vpop.f32.mrf.mxu3 }
 0x379   :  { %4991 = vmatpush.bf16.msra.mxu1 %v10874_v1  ;;  %v11226_v1 = vor.u32 %v13661_v50, %v11223_v54  ;;  %v11066_v54 = vor.u32 %v13621_v34, %v11063_v36  ;;  %v13707_v36 = vld [vmem:[#allocation7 + $0xcc] sm:$0xf0] }
 0x37a   :  { %5013 = vmatpush.bf16.msra.mxu3 %v11034_v58  ;;  %v3989_v5 = vpop.f32.mrf.mxu1 }
 0x37b   :  { %5004 = vmatpush.bf16.msra.mxu2 %v10938_v8  ;;  %4979 = vmatpush.bf16.msra.mxu0 %v10802_v22  ;;  %v13611_v8 = vld [vmem:[#allocation6 + $0x1d4] sm:$0xf]  ;;  %v11015_v22 = vld [vmem:[#allocation6 + $0x1c8] sm:$0xf0]  ;;  %v13731_v5 = vld [vmem:[#allocation7 + $0x18c] sm:$0xf0] }
 0x37c   :  { %v11026_v12 = vor.u32 %v13611_v8, %v11023_v11  ;;  %v668_v8 = vperm.slane %v14545_v10, 7  ;;  %v10994_v11 = vor.u32 %v13603_v6, %v10991_v7  ;;  %v11543_v10 = vld [vmem:[#allocation7 + $0x1e0] sm:$0xf]  ;;  %v13763_v7 = vld [vmem:[#allocation7 + $0x28c] sm:$0xf0] }
 0x37d   :  { %4992 = vmatpush.bf16.msra.mxu1 %v10866_v23  ;;  %v11018_v23 = vor.u32 %v13609_v21, %v11015_v22  ;;  %v13601_v22 = vld [vmem:[#allocation6 + $0x184] sm:$0xf]  ;;  %v11623_v6 = vld [vmem:[#allocation7 + $0x280] sm:$0xf] }
 0x37e   :  { %5014 = vmatpush.bf16.msra.mxu3 %v11026_v12  ;;  %v11058_v12 = vor.u32 %v13619_v48, %v11055_v55  ;;  %v3975_v30 = vadd.f32 %v14567_v53, %v668_v8  ;;  %v11383_v53 = vld [vmem:[#allocation7 + $0xa0] sm:$0xf]  ;;  %v13735_v48 = vld [vmem:[#allocation7 + $0x1ac] sm:$0xf0] }
 0x37f   :  { %5005 = vmatpush.bf16.msra.mxu2 %v10930_v26  ;;  %4980 = vmatpush.bf16.msra.mxu0 %v10794_v35  ;;  %v11146_v26 = vor.u32 %v13641_v19, %v11143_v63  ;;  %v11138_v35 = vor.u32 %v13639_v28, %v11135_v29  ;;  %v11111_v19 = vld [vmem:[#allocation6 + $0x288] sm:$0xf0]  ;;  %v13649_v63 = vld [vmem:[#allocation6 + $0x304] sm:$0xf]  ;;  %v4015_v25 = vpop.f32.mrf.mxu3  ;;  %v11671_v28 = vld [vmem:[#allocation7 + $0x2e0] sm:$0xf] }
 0x380   :  { %v13775_v29 = vld [vmem:[#allocation7 + $0x2ec] sm:$0xf0]  ;;  %v11639_v55 = vld [vmem:[#allocation7 + $0x2a0] sm:$0xf] }
 0x381   :  { %4993 = vmatpush.bf16.msra.mxu1 %v10858_v43  ;;  %v11202_v43 = vor.u32 %v13655_v37, %v11199_v62  ;;  %v11114_v37 = vor.u32 %v13633_v15, %v11111_v19  ;;  %v11178_v62 = vor.u32 %v13649_v63, %v11175_v57  ;;  %v11672_v34 = vor.u32 %v13775_v29, %v11671_v28  ;;  %v13727_v19 = vld [vmem:[#allocation7 + $0x16c] sm:$0xf0]  ;;  %v11607_v57 = vld [vmem:[#allocation7 + $0x260] sm:$0xf] }
 0x382   :  { %4981 = vmatmul.bf16.vlgmr.msra.gmra.mxu0 %v14518_v17  ;;  %5015 = vmatpush.bf16.msra.mxu3 %v11018_v23  ;;  %v10983_v23 = vld [vmem:[#allocation6 + $0x188] sm:$0xf0]  ;;  %v11624_v15 = vor.u32 %v13763_v7, %v11623_v6 }
 0x383   :  { %5006 = vmatpush.bf16.msra.mxu2 %v10922_v31  ;;  %5025 = vmatpush.bf16.msrb.mxu0 %v11106_v39  ;;  %v13637_v31 = vld [vmem:[#allocation6 + $0x2a4] sm:$0xf]  ;;  %v11127_v39 = vld [vmem:[#allocation6 + $0x2a8] sm:$0xf0] }
 0x384   :  { %4994 = vmatmul.bf16.vlgmr.msra.gmra.mxu1 %v14521_v56  ;;  %v11130_v58 = vor.u32 %v13637_v31, %v11127_v39  ;;  %v11655_v31 = vld [vmem:[#allocation7 + $0x2c0] sm:$0xf]  ;;  %v13771_v39 = vld [vmem:[#allocation7 + $0x2cc] sm:$0xf0] }
 0x385   :  { %5038 = vmatpush.bf16.msrb.mxu1 %v11170_v46  ;;  %v14572_v46 = vpop.f32.mrf.mxu2 }
 0x386   :  { %5007 = vmatmul.bf16.vlgmr.msra.gmra.mxu2 %v14523_v14  ;;  %5016 = vmatpush.bf16.msra.mxu3 %v11010_v51  ;;  %v11544_v51 = vor.u32 %v13743_v24, %v11543_v10  ;;  %v11463_v10 = vld [vmem:[#allocation7 + $0x140] sm:$0xf]  ;;  %v13723_v24 = vld [vmem:[#allocation7 + $0x14c] sm:$0xf0] }
 0x387   :  { %5051 = vmatpush.bf16.msrb.mxu2 %v11234_v47  ;;  %5026 = vmatpush.bf16.msrb.mxu0 %v11098_v13  ;;  %v13605_v47 = vld [vmem:[#allocation6 + $0x1a4] sm:$0xf]  ;;  %v11194_v13 = vor.u32 %v13653_v44, %v11191_v42  ;;  %v3988_v44 = vadd.f32 %v14570_v32, %v3975_v30 }
 0x388   :  { %v11002_v50 = vor.u32 %v13605_v47, %v10999_v45  ;;  %v11656_v45 = vor.u32 %v13771_v39, %v11655_v31  ;;  %v11575_v39 = vld [vmem:[#allocation7 + $0x220] sm:$0xf] }
 0x389   :  { %5039 = vmatpush.bf16.msrb.mxu1 %v11162_v38  ;;  %v13651_v38 = vld [vmem:[#allocation6 + $0x314] sm:$0xf]  ;;  %v4001_v32 = vadd.f32 %v14572_v46, %v3988_v44  ;;  %v11351_v46 = vld [vmem:[#allocation7 + $0x60] sm:$0xf]  ;;  %v13751_v44 = vld [vmem:[#allocation7 + $0x22c] sm:$0xf0] }
 0x38a   :  { %5017 = vmatpush.bf16.msra.mxu3 %v11002_v50  ;;  %v13703_v50 = vld [vmem:[#allocation7 + $0xac] sm:$0xf0] }
 0x38b   :  { %5052 = vmatpush.bf16.msrb.mxu2 %v11226_v1  ;;  %5027 = vmatpush.bf16.msrb.mxu0 %v11090_v52  ;;  %v3976_v1 = vpop.f32.mrf.mxu0  ;;  %v13617_v52 = vld [vmem:[#allocation6 + $0x204] sm:$0xf]  ;;  %v4014_v8 = vadd.f32 %v14574_v60, %v4001_v32  ;;  %v11335_v60 = vld [vmem:[#allocation7 + $0x40] sm:$0xf]  ;;  %v13715_v32 = vld [vmem:[#allocation7 + $0x10c] sm:$0xf0] }
 0x38c   :  { %v13699_v1 = vld [vmem:[#allocation7 + $0x8c] sm:$0xf0] }
 0x38d   :  { %5040 = vmatpush.bf16.msrb.mxu1 %v11154_v16  ;;  %v11122_v16 = vor.u32 %v13635_v0, %v11119_v2  ;;  %v4002_v21 = vpop.f32.mrf.mxu2  ;;  %v11367_v2 = vld [vmem:[#allocation7 + $0x80] sm:$0xf] }
 0x38e   :  { %5018 = vmatpush.bf16.msra.mxu3 %v10994_v11 }
 0x38f   :  { %5053 = vmatpush.bf16.msrb.mxu2 %v11218_v49  ;;  %5028 = vmatpush.bf16.msrb.mxu0 %v11082_v9  ;;  %v11186_v49 = vor.u32 %v13651_v38, %v11183_v4  ;;  %v13711_v9 = vld [vmem:[#allocation7 + $0xec] sm:$0xf0]  ;;  %v11495_v4 = vld [vmem:[#allocation7 + $0x180] sm:$0xf] }
 0x390   :  { %v11416_v33 = vor.u32 %v13711_v9, %v11415_v20  ;;  %v13759_v20 = vld [vmem:[#allocation7 + $0x26c] sm:$0xf0] }
 0x391   :  { %5041 = vmatpush.bf16.msrb.mxu1 %v11146_v26  ;;  %v10986_v26 = vor.u32 %v13601_v22, %v10983_v23  ;;  %v11608_v23 = vor.u32 %v13759_v20, %v11607_v57  ;;  %v13691_v9 = vld [vmem:[#allocation7 + $0x4c] sm:$0xf0]  ;;  %v11911_v20 = vld [vmem:[#allocation7 + $0x4c0] sm:$0xf] }
 0x392   :  { %v11336_v30 = vor.u32 %v13691_v9, %v11335_v60  ;;  %v12167_v9 = vld [vmem:[#allocation7 + $0x6c0] sm:$0xf] }
 0x393   :  { %5054 = vmatpush.bf16.msrb.mxu2 %v11210_v27  ;;  %5029 = vmatpush.bf16.msrb.mxu0 %v11074_v41  ;;  %v11050_v27 = vor.u32 %v13617_v52, %v11047_v18  ;;  %v11399_v41 = vld [vmem:[#allocation7 + $0xc0] sm:$0xf]  ;;  %v11496_v52 = vor.u32 %v13731_v5, %v11495_v4  ;;  %v13839_v4 = vld [vmem:[#allocation7 + $0x4ec] sm:$0xf0] }
 0x394   :  { %5019 = vmatpush.bf16.msra.mxu3 %v10986_v26  ;;  %v11400_v42 = vor.u32 %v13707_v36, %v11399_v41  ;;  %v11591_v26 = vld [vmem:[#allocation7 + $0x240] sm:$0xf]  ;;  %v13687_v36 = vld [vmem:[#allocation7 + $0x2c] sm:$0xf0] }
 0x395   :  { %5042 = vmatpush.bf16.msrb.mxu1 %v11138_v35  ;;  %v11527_v35 = vld [vmem:[#allocation7 + $0x1c0] sm:$0xf] }
 0x396   :  { %v12055_v5 = vld [vmem:[#allocation7 + $0x5e0] sm:$0xf] }
 0x397   :  { %5055 = vmatpush.bf16.msrb.mxu2 %v11202_v43  ;;  %5030 = vmatpush.bf16.msrb.mxu0 %v11066_v54  ;;  %v13739_v43 = vld [vmem:[#allocation7 + $0x1cc] sm:$0xf0]  ;;  %v11511_v54 = vld [vmem:[#allocation7 + $0x1a0] sm:$0xf] }
 0x398   :  { %v11528_v47 = vor.u32 %v13739_v43, %v11527_v35  ;;  %v11512_v0 = vor.u32 %v13735_v48, %v11511_v54  ;;  %v11447_v35 = vld [vmem:[#allocation7 + $0x120] sm:$0xf]  ;;  %v13719_v43 = vld [vmem:[#allocation7 + $0x12c] sm:$0xf0] }
 0x399   :  { %5043 = vmatpush.bf16.msrb.mxu1 %v11130_v58  ;;  %v13767_v58 = vld [vmem:[#allocation7 + $0x2ac] sm:$0xf0]  ;;  %v11448_v48 = vor.u32 %v13719_v43, %v11447_v35 }
 0x39a   :  { %v11640_v38 = vor.u32 %v13767_v58, %v11639_v55  ;;  %v11431_v55 = vld [vmem:[#allocation7 + $0x100] sm:$0xf]  ;;  %v11576_v58 = vor.u32 %v13751_v44, %v11575_v39  ;;  %v13827_v44 = vld [vmem:[#allocation7 + $0x48c] sm:$0xf0] }
 0x39b   :  { %5056 = vmatpush.bf16.msrb.mxu2 %v11194_v13  ;;  %5031 = vmatpush.bf16.msrb.mxu0 %v11058_v12  ;;  %v11384_v13 = vor.u32 %v13703_v50, %v11383_v53  ;;  %v11368_v12 = vor.u32 %v13699_v1, %v11367_v2  ;;  %v11303_v53 = vld [vmem:[#allocation7] sm:$0xf] }
 0x39c   :  { %v11927_v1 = vld [vmem:[#allocation7 + $0x4e0] sm:$0xf] }
 0x39d   :  { %5044 = vmatpush.bf16.msrb.mxu1 %v11122_v16  ;;  %v13695_v16 = vld [vmem:[#allocation7 + $0x6c] sm:$0xf0]  ;;  %v11879_v39 = vld [vmem:[#allocation7 + $0x480] sm:$0xf] }
 0x39e   :  { %v11352_v21 = vor.u32 %v13695_v16, %v11351_v46  ;;  %v11287_v16 = vld [vmem:[#allocation6 + $0x3e8] sm:$0xf0] }
 0x39f   :  { %5057 = vmatpush.bf16.msrb.mxu2 %v11186_v49  ;;  %5032 = vmatpush.bf16.msrb.mxu0 %v11050_v27  ;;  %v4026_v11 = vpop.f32.mrf.mxu0  ;;  %v11479_v49 = vld [vmem:[#allocation7 + $0x160] sm:$0xf]  ;;  %v13755_v27 = vld [vmem:[#allocation7 + $0x24c] sm:$0xf0] }
 0x3a0   :  { %v4027_v63 = vadd.f32 %v4026_v11, %v4014_v8  ;;  %v11480_v22 = vor.u32 %v13727_v19, %v11479_v49  ;;  %v13871_v8 = vld [vmem:[#allocation7 + $0x5ec] sm:$0xf0]  ;;  %v12183_v11 = vld [vmem:[#allocation7 + $0x6e0] sm:$0xf]  ;;  %v11928_v19 = vor.u32 %v13839_v4, %v11927_v1 }
 0x3a1   :  { %5045 = vmatpush.bf16.msrb.mxu1 %v11114_v37  ;;  %v4039_v18 = vpop.f32.mrf.mxu1  ;;  %v11991_v1 = vld [vmem:[#allocation7 + $0x560] sm:$0xf] }
 0x3a2   :  { %5033 = vmatmul.bf16.vlgmr.msrb.gmra.mxu0 %v14554_v59  ;;  %v4040_v25 = vadd.f32 %v4039_v18, %v4027_v63  ;;  %v11432_v18 = vor.u32 %v13715_v32, %v11431_v55  ;;  %v12056_v63 = vor.u32 %v13871_v8, %v12055_v5  ;;  %v11880_v55 = vor.u32 %v13827_v44, %v11879_v39  ;;  %v12119_v8 = vld [vmem:[#allocation7 + $0x660] sm:$0xf]  ;;  %v13807_v39 = vld [vmem:[#allocation7 + $0x3ec] sm:$0xf0] }
 0x3a3   :  { %5058 = vmatpush.bf16.msrb.mxu2 %v11178_v62  ;;  %6668 = vmatpush.bf16.msra.mxu0 %v11416_v33  ;;  %v11464_v33 = vor.u32 %v13723_v24, %v11463_v10  ;;  %v13899_v10 = vld [vmem:[#allocation7 + $0x6cc] sm:$0xf0]  ;;  %v13675_v24 = vld [vmem:[#allocation6 + $0x3d4] sm:$0xf]  ;;  %v11815_v44 = vld [vmem:[#allocation7 + $0x400] sm:$0xf] }
 0x3a4   :  { %5046 = vmatmul.bf16.vlgmr.msrb.gmra.mxu1 %v14556_v61 }
 0x3a5   :  { %6681 = vmatpush.bf16.msra.mxu1 %v11544_v51  ;;  %v11319_v51 = vld [vmem:[#allocation7 + $0x20] sm:$0xf] }
 0x3a6   :  { %5059 = vmatmul.bf16.vlgmr.msrb.gmra.mxu2 %v14562_v3  ;;  %v11320_v54 = vor.u32 %v13687_v36, %v11319_v51  ;;  %v12151_v51 = vld [vmem:[#allocation7 + $0x6a0] sm:$0xf]  ;;  %v11271_v36 = vld [vmem:[#allocation6 + $0x3c8] sm:$0xf0] }
 0x3a7   :  { %6694 = vmatpush.bf16.msra.mxu2 %v11672_v34  ;;  %6669 = vmatpush.bf16.msra.mxu0 %v11400_v42  ;;  %v4028_v62 = vpop.f32.mrf.mxu0  ;;  %v11592_v34 = vor.u32 %v13755_v27, %v11591_v26  ;;  %v13679_v42 = vld [vmem:[#allocation6 + $0x3f4] sm:$0xf] }
 0x3a8   :  { %v12023_v62 = vld [vmem:[#allocation7 + $0x5a0] sm:$0xf] }
 0x3a9   :  { %6682 = vmatpush.bf16.msra.mxu1 %v11528_v47  ;;  %v4052_v28 = vpop.f32.mrf.mxu2  ;;  %v4041_v41 = vpop.f32.mrf.mxu1  ;;  %v11295_v47 = vld [vmem:[#allocation6 + $0x3f8] sm:$0xf0] }
 0x3aa   :  { %v4053_v29 = vadd.f32 %v4052_v28, %v4040_v25  ;;  %v11279_v25 = vld [vmem:[#allocation6 + $0x3d8] sm:$0xf0]  ;;  %v12168_v28 = vor.u32 %v13899_v10, %v12167_v9  ;;  %v13895_v41 = vld [vmem:[#allocation7 + $0x6ac] sm:$0xf0] }
 0x3ab   :  { %6695 = vmatpush.bf16.msra.mxu2 %v11656_v45  ;;  %6670 = vmatpush.bf16.msra.mxu0 %v11384_v13  ;;  %v4065_v37 = vpop.f32.mrf.mxu3  ;;  %v13683_v45 = vld [vmem:[#allocation7 + $0xc] sm:$0xf0]  ;;  %v11559_v13 = vld [vmem:[#allocation7 + $0x200] sm:$0xf] }
 0x3ac   :  { %v4066_v31 = vadd.f32 %v4065_v37, %v4053_v29  ;;  %v11304_v46 = vor.u32 %v13683_v45, %v11303_v53  ;;  %v11895_v29 = vld [vmem:[#allocation7 + $0x4a0] sm:$0xf]  ;;  %v13831_v37 = vld [vmem:[#allocation7 + $0x4ac] sm:$0xf0] }
 0x3ad   :  { %6683 = vmatpush.bf16.msra.mxu1 %v11512_v0  ;;  %v13747_v0 = vld [vmem:[#allocation7 + $0x20c] sm:$0xf0]  ;;  %v11896_v35 = vor.u32 %v13831_v37, %v11895_v29  ;;  %v12135_v45 = vld [vmem:[#allocation7 + $0x680] sm:$0xf] }
 0x3ae   :  { %vm4076_vm7 = vcmp.ge.f32.partialorder %v4066_v31, 0.0  ;;  %v4084_v50 = vmul.f32 0.2, %v4066_v31  ;;  %v11560_v49 = vor.u32 %v13747_v0, %v11559_v13  ;;  %v13859_v53 = vld [vmem:[#allocation7 + $0x58c] sm:$0xf0] }
 0x3af   :  { %6696 = vmatpush.bf16.msra.mxu2 %v11640_v38  ;;  %6671 = vmatpush.bf16.msra.mxu0 %v11368_v12  ;;  %v11298_v38 = vor.u32 %v13679_v42, %v11295_v47  ;;  %v13903_v12 = vld [vmem:[#allocation7 + $0x6ec] sm:$0xf0]  ;;  %v12007_v42 = vld [vmem:[#allocation7 + $0x580] sm:$0xf] }
 0x3b0   :  { %v4092_v2 = vsel %vm4076_vm7, %v4066_v31, %v4084_v50  ;;  %v12184_v57 = vor.u32 %v13903_v12, %v12183_v11  ;;  %v12152_v31 = vor.u32 %v13895_v41, %v12151_v51  ;;  %v13891_v50 = vld [vmem:[#allocation7 + $0x68c] sm:$0xf0]  ;;  %v12008_v13 = vor.u32 %v13859_v53, %v12007_v42  ;;  %v13669_v12 = vld [vmem:[#allocation6 + $0x3a4] sm:$0xf]  ;;  %v11831_v29 = vld [vmem:[#allocation7 + $0x420] sm:$0xf] }
 0x3b1   :  { %6684 = vmatpush.bf16.msra.mxu1 %v11496_v52  ;;  %v14584_v6 = vpack.c.bf16 %v4092_v2, %v4092_v2  ;;  %v4054_v7 = vpop.f32.mrf.mxu2  ;;  %v12136_v0 = vor.u32 %v13891_v50, %v12135_v45  ;;  %v11863_v2 = vld [vmem:[#allocation7 + $0x460] sm:$0xf]  ;;  %v13887_v11 = vld [vmem:[#allocation7 + $0x66c] sm:$0xf0] }
 0x3b2   :  { %v13855_v7 = vld [vmem:[#allocation7 + $0x56c] sm:$0xf0]  ;;  %v12087_v51 = vld [vmem:[#allocation7 + $0x620] sm:$0xf] }
 0x3b3   :  { %6697 = vmatpush.bf16.msra.mxu2 %v11624_v15  ;;  %6672 = vmatpush.bf16.msra.mxu0 %v11352_v21  ;;  %v4067_v52 = vpop.f32.mrf.mxu3  ;;  %v13677_v15 = vld [vmem:[#allocation6 + $0x3e4] sm:$0xf]  ;;  %v13835_v21 = vld [vmem:[#allocation7 + $0x4cc] sm:$0xf0]  ;;  %v11943_v45 = vld [vmem:[#allocation7 + $0x500] sm:$0xf] }
 0x3b4   :  { %4968 = vmatmul.bf16.vlgmr.msrb.gmra.mxu3 %v14584_v6  ;;  %v11290_v60 = vor.u32 %v13677_v15, %v11287_v16  ;;  %v11912_v26 = vor.u32 %v13835_v21, %v11911_v20  ;;  %v11255_v52 = vld [vmem:[#allocation6 + $0x3a8] sm:$0xf0]  ;;  %v12120_v15 = vor.u32 %v13887_v11, %v12119_v8  ;;  %v11847_v16 = vld [vmem:[#allocation7 + $0x440] sm:$0xf]  ;;  %v13883_v21 = vld [vmem:[#allocation7 + $0x64c] sm:$0xf0] }
 0x3b5   :  { %6685 = vmatpush.bf16.msra.mxu1 %v11480_v22  ;;  %5064 = vmatpush.bf16.msrb.mxu3 %v11298_v38  ;;  %v12039_v22 = vld [vmem:[#allocation7 + $0x5c0] sm:$0xf]  ;;  %v13823_v38 = vld [vmem:[#allocation7 + $0x46c] sm:$0xf0] }
 0x3b6   :  { %v12103_v20 = vld [vmem:[#allocation7 + $0x640] sm:$0xf]  ;;  %v13815_v37 = vld [vmem:[#allocation7 + $0x42c] sm:$0xf0] }
 0x3b7   :  { %6698 = vmatpush.bf16.msra.mxu2 %v11608_v23  ;;  %6673 = vmatpush.bf16.msra.mxu0 %v11336_v30  ;;  %v13867_v23 = vld [vmem:[#allocation7 + $0x5cc] sm:$0xf0]  ;;  %v11282_v30 = vor.u32 %v13675_v24, %v11279_v25 }
 0x3b8   :  { %v12040_v27 = vor.u32 %v13867_v23, %v12039_v22  ;;  %v13667_v22 = vld [vmem:[#allocation6 + $0x394] sm:$0xf]  ;;  %v13879_v41 = vld [vmem:[#allocation7 + $0x62c] sm:$0xf0] }
 0x3b9   :  { %6686 = vmatpush.bf16.msra.mxu1 %v11464_v33  ;;  %5065 = vmatpush.bf16.msrb.mxu3 %v11290_v60  ;;  %v13863_v33 = vld [vmem:[#allocation7 + $0x5ac] sm:$0xf0]  ;;  %v11247_v60 = vld [vmem:[#allocation6 + $0x398] sm:$0xf0] }
 0x3ba   :  { %v12024_v43 = vor.u32 %v13863_v33, %v12023_v62  ;;  %v11959_v62 = vld [vmem:[#allocation7 + $0x520] sm:$0xf]  ;;  %v13847_v33 = vld [vmem:[#allocation7 + $0x52c] sm:$0xf0] }
 0x3bb   :  { %6699 = vmatpush.bf16.msra.mxu2 %v11592_v34  ;;  %6674 = vmatpush.bf16.msra.mxu0 %v11320_v54  ;;  %v13673_v34 = vld [vmem:[#allocation6 + $0x3c4] sm:$0xf]  ;;  %v13671_v54 = vld [vmem:[#allocation6 + $0x3b4] sm:$0xf]  ;;  %v11960_v42 = vor.u32 %v13847_v33, %v11959_v62  ;;  %v13811_v53 = vld [vmem:[#allocation7 + $0x40c] sm:$0xf0] }
 0x3bc   :  { %v11274_v47 = vor.u32 %v13673_v34, %v11271_v36  ;;  %v13665_v36 = vld [vmem:[#allocation6 + $0x384] sm:$0xf]  ;;  %v13843_v50 = vld [vmem:[#allocation7 + $0x50c] sm:$0xf0]  ;;  %v11751_v62 = vld [vmem:[#allocation7 + $0x380] sm:$0xf] }
 0x3bd   :  { %6687 = vmatpush.bf16.msra.mxu1 %v11448_v48  ;;  %5066 = vmatpush.bf16.msrb.mxu3 %v11282_v30  ;;  %v11263_v48 = vld [vmem:[#allocation6 + $0x3b8] sm:$0xf0]  ;;  %v11250_v30 = vor.u32 %v13667_v22, %v11247_v60  ;;  %v11944_v8 = vor.u32 %v13843_v50, %v11943_v45  ;;  %v11767_v22 = vld [vmem:[#allocation7 + $0x3a0] sm:$0xf]  ;;  %v13799_v60 = vld [vmem:[#allocation7 + $0x3ac] sm:$0xf0] }
 0x3be   :  { %v11266_v5 = vor.u32 %v13671_v54, %v11263_v48  ;;  %v12071_v48 = vld [vmem:[#allocation7 + $0x600] sm:$0xf] }
 0x3bf   :  { %6700 = vmatpush.bf16.msra.mxu2 %v11576_v58  ;;  %6675 = vmatpush.bf16.msra.mxu0 %v11304_v46  ;;  %v4878_v58 = vpop.f32.mrf.mxu0  ;;  %v11864_v46 = vor.u32 %v13823_v38, %v11863_v2  ;;  %v11545_v2 = vld [vmem:[#allocation7 + $0x1f0] sm:$0xf0] }
 0x3c1   :  { %6688 = vmatpush.bf16.msra.mxu1 %v11432_v18  ;;  %v4891_v32 = vpop.f32.mrf.mxu1  ;;  %5067 = vmatpush.bf16.msrb.mxu3 %v11274_v47  ;;  %v11992_v18 = vor.u32 %v13855_v7, %v11991_v1  ;;  %v12088_v47 = vor.u32 %v13879_v41, %v12087_v51  ;;  %v11673_v7 = vld [vmem:[#allocation7 + $0x2f0] sm:$0xf0]  ;;  %v13697_v41 = vld [vmem:[#allocation7 + $0x84] sm:$0xf] }
 0x3c2   :  { %6676 = vmatmul.bf16.vlgmr.msra.gmra.mxu0 %v14518_v17  ;;  %v4892_v4 = vadd.f32 %v4891_v32, %v4878_v58  ;;  %v13709_v58 = vld [vmem:[#allocation7 + $0xe4] sm:$0xf] }
 0x3c3   :  { %6701 = vmatpush.bf16.msra.mxu2 %v11560_v49  ;;  %6720 = vmatpush.bf16.msrb.mxu0 %v11928_v19  ;;  %v13819_v49 = vld [vmem:[#allocation7 + $0x44c] sm:$0xf0]  ;;  %v11975_v19 = vld [vmem:[#allocation7 + $0x540] sm:$0xf] }
 0x3c4   :  { %6689 = vmatmul.bf16.vlgmr.msra.gmra.mxu1 %v14521_v56  ;;  %5020 = vmatmul.bf16.vlgmr.msra.gmra.mxu3 %v14525_v40  ;;  %v11848_v10 = vor.u32 %v13819_v49, %v11847_v16  ;;  %v11401_v49 = vld [vmem:[#allocation7 + $0xd0] sm:$0xf0] }
 0x3c5   :  { %6733 = vmatpush.bf16.msrb.mxu1 %v12056_v63  ;;  %5068 = vmatpush.bf16.msrb.mxu3 %v11266_v5  ;;  %v11258_v63 = vor.u32 %v13669_v12, %v11255_v52  ;;  %v13773_v5 = vld [vmem:[#allocation7 + $0x2e4] sm:$0xf]  ;;  %v11783_v12 = vld [vmem:[#allocation7 + $0x3c0] sm:$0xf]  ;;  %v13803_v52 = vld [vmem:[#allocation7 + $0x3cc] sm:$0xf0] }
 0x3c6   :  { %6702 = vmatmul.bf16.vlgmr.msra.gmra.mxu2 %v14523_v14  ;;  %v11676_v16 = vor.u32 %v13773_v5, %v11673_v7  ;;  %v11719_v7 = vld [vmem:[#allocation7 + $0x340] sm:$0xf] }
 0x3c7   :  { %6746 = vmatpush.bf16.msrb.mxu2 %v12184_v57  ;;  %6721 = vmatpush.bf16.msrb.mxu0 %v11912_v26  ;;  %v13851_v57 = vld [vmem:[#allocation7 + $0x54c] sm:$0xf0]  ;;  %v4880_v25 = vpop.f32.mrf.mxu0 }
 0x3c8   :  { %v11385_v25 = vld [vmem:[#allocation7 + $0xb0] sm:$0xf0] }
 0x3c9   :  { %6734 = vmatpush.bf16.msrb.mxu1 %v12040_v27  ;;  %v4904_v23 = vpop.f32.mrf.mxu2  ;;  %v4893_v26 = vpop.f32.mrf.mxu1  ;;  %v11976_v27 = vor.u32 %v13851_v57, %v11975_v19  ;;  %5069 = vmatpush.bf16.msrb.mxu3 %v11258_v63  ;;  %v13737_v19 = vld [vmem:[#allocation7 + $0x1c4] sm:$0xf]  ;;  %v11529_v63 = vld [vmem:[#allocation7 + $0x1d0] sm:$0xf0]  ;;  %v11784_v57 = vor.u32 %v13803_v52, %v11783_v12 }
 0x3ca   :  { %v4905_v24 = vadd.f32 %v4904_v23, %v4892_v4  ;;  %v11816_v4 = vor.u32 %v13811_v53, %v11815_v44  ;;  %v13733_v26 = vld [vmem:[#allocation7 + $0x1a4] sm:$0xf]  ;;  %v13791_v53 = vld [vmem:[#allocation7 + $0x36c] sm:$0xf0] }
 0x3cb   :  { %6747 = vmatpush.bf16.msrb.mxu2 %v12168_v28  ;;  %6722 = vmatpush.bf16.msrb.mxu0 %v11896_v35  ;;  %v4917_v9 = vpop.f32.mrf.mxu3  ;;  %v12104_v28 = vor.u32 %v13883_v21, %v12103_v20  ;;  %v11239_v35 = vld [vmem:[#allocation6 + $0x388] sm:$0xf0]  ;;  %v13769_v20 = vld [vmem:[#allocation7 + $0x2c4] sm:$0xf]  ;;  %v11657_v21 = vld [vmem:[#allocation7 + $0x2d0] sm:$0xf0] }
 0x3cc   :  { %v14591_v34 = vadd.f32 %v4917_v9, %v4905_v24  ;;  %v11242_v54 = vor.u32 %v13665_v36, %v11239_v35  ;;  %v11532_v9 = vor.u32 %v13737_v19, %v11529_v63  ;;  %v11660_v24 = vor.u32 %v13769_v20, %v11657_v21  ;;  %v11369_v35 = vld [vmem:[#allocation7 + $0x90] sm:$0xf0]  ;;  %v13761_v44 = vld [vmem:[#allocation7 + $0x284] sm:$0xf]  ;;  %v11703_v63 = vld [vmem:[#allocation7 + $0x320] sm:$0xf] }
 0x3cd   :  { %6735 = vmatpush.bf16.msrb.mxu1 %v12024_v43  ;;  %v11832_v43 = vor.u32 %v13815_v37, %v11831_v29  ;;  %5070 = vmatpush.bf16.msrb.mxu3 %v11250_v30  ;;  %v13765_v29 = vld [vmem:[#allocation7 + $0x2a4] sm:$0xf]  ;;  %v11641_v37 = vld [vmem:[#allocation7 + $0x2b0] sm:$0xf0]  ;;  %v13795_v30 = vld [vmem:[#allocation7 + $0x38c] sm:$0xf0]  ;;  %v11372_v50 = vor.u32 %v13697_v41, %v11369_v35 }
 0x3ce   :  { %v11644_v36 = vor.u32 %v13765_v29, %v11641_v37  ;;  %v13689_v52 = vld [vmem:[#allocation7 + $0x44] sm:$0xf]  ;;  %v11593_v19 = vld [vmem:[#allocation7 + $0x250] sm:$0xf0]  ;;  %v11687_v29 = vld [vmem:[#allocation7 + $0x300] sm:$0xf] }
 0x3cf   :  { %6748 = vmatpush.bf16.msrb.mxu2 %v12152_v31  ;;  %6723 = vmatpush.bf16.msrb.mxu0 %v11880_v55  ;;  %v11799_v31 = vld [vmem:[#allocation7 + $0x3e0] sm:$0xf]  ;;  %v13875_v55 = vld [vmem:[#allocation7 + $0x60c] sm:$0xf0]  ;;  %v13681_v41 = vld [vmem:[#allocation7 + $0x4] sm:$0xf] }
 0x3d0   :  { %v11800_v32 = vor.u32 %v13807_v39, %v11799_v31  ;;  %v12072_v11 = vor.u32 %v13875_v55, %v12071_v48  ;;  %v11497_v31 = vld [vmem:[#allocation7 + $0x190] sm:$0xf0]  ;;  %v11752_v39 = vor.u32 %v13795_v30, %v11751_v62  ;;  %v13693_v48 = vld [vmem:[#allocation7 + $0x64] sm:$0xf]  ;;  %v13779_v37 = vld [vmem:[#allocation7 + $0x30c] sm:$0xf0] }
 0x3d1   :  { %6736 = vmatpush.bf16.msrb.mxu1 %v12008_v13  ;;  %v11417_v13 = vld [vmem:[#allocation7 + $0xf0] sm:$0xf0]  ;;  %v4906_v38 = vpop.f32.mrf.mxu2  ;;  %5071 = vmatpush.bf16.msrb.mxu3 %v11242_v54  ;;  %v12311_v62 = vld [vmem:[#allocation7 + $0x7e0] sm:$0xf] }
 0x3d3   :  { %6749 = vmatpush.bf16.msrb.mxu2 %v12136_v0  ;;  %6724 = vmatpush.bf16.msrb.mxu0 %v11864_v46  ;;  %v13741_v0 = vld [vmem:[#allocation7 + $0x1e4] sm:$0xf]  ;;  %v4919_v1 = vpop.f32.mrf.mxu3  ;;  %v11420_v46 = vor.u32 %v13709_v58, %v11417_v13  ;;  %v11353_v13 = vld [vmem:[#allocation7 + $0x70] sm:$0xf0] }
 0x3d4   :  { %5072 = vmatmul.bf16.vlgmr.msrb.gmra.mxu3 %v14584_v6  ;;  %v13757_v1 = vld [vmem:[#allocation7 + $0x264] sm:$0xf] }
 0x3d5   :  { %6737 = vmatpush.bf16.msrb.mxu1 %v11992_v18  ;;  %v11548_v18 = vor.u32 %v13741_v0, %v11545_v2  ;;  %6707 = vmatpush.bf16.msra.mxu3 %v11800_v32  ;;  %v13725_v0 = vld [vmem:[#allocation7 + $0x164] sm:$0xf]  ;;  %v11481_v2 = vld [vmem:[#allocation7 + $0x170] sm:$0xf0] }
 0x3d6   :  { %v11484_v12 = vor.u32 %v13725_v0, %v11481_v2  ;;  %v13931_v0 = vld [vmem:[#allocation7 + $0x7cc] sm:$0xf0] }
 0x3d7   :  { %6750 = vmatpush.bf16.msrb.mxu2 %v12120_v15  ;;  %6725 = vmatpush.bf16.msrb.mxu0 %v11848_v10  ;;  %v13705_v15 = vld [vmem:[#allocation7 + $0xc4] sm:$0xf] }
 0x3d8   :  { %v11404_v23 = vor.u32 %v13705_v15, %v11401_v49  ;;  %v13701_v10 = vld [vmem:[#allocation7 + $0xa4] sm:$0xf]  ;;  %v11465_v15 = vld [vmem:[#allocation7 + $0x150] sm:$0xf0] }
 0x3d9   :  { %6738 = vmatpush.bf16.msrb.mxu1 %v11976_v27  ;;  %v11513_v27 = vld [vmem:[#allocation7 + $0x1b0] sm:$0xf0]  ;;  %6708 = vmatpush.bf16.msra.mxu3 %v11784_v57  ;;  %v11388_v33 = vor.u32 %v13701_v10, %v11385_v25  ;;  %v13753_v49 = vld [vmem:[#allocation7 + $0x244] sm:$0xf]  ;;  %v13783_v57 = vld [vmem:[#allocation7 + $0x32c] sm:$0xf0] }
 0x3da   :  { %v11516_v51 = vor.u32 %v13733_v26, %v11513_v27  ;;  %v11321_v10 = vld [vmem:[#allocation7 + $0x30] sm:$0xf0]  ;;  %v11704_v26 = vor.u32 %v13783_v57, %v11703_v63  ;;  %v13749_v27 = vld [vmem:[#allocation7 + $0x224] sm:$0xf] }
 0x3db   :  { %6751 = vmatpush.bf16.msrb.mxu2 %v12104_v28  ;;  %6726 = vmatpush.bf16.msrb.mxu0 %v11832_v43  ;;  %v11768_v28 = vor.u32 %v13799_v60, %v11767_v22  ;;  %v13729_v43 = vld [vmem:[#allocation7 + $0x184] sm:$0xf]  ;;  %v11449_v25 = vld [vmem:[#allocation7 + $0x130] sm:$0xf0] }
 0x3dc   :  { %v11500_v54 = vor.u32 %v13729_v43, %v11497_v31  ;;  %v13685_v60 = vld [vmem:[#allocation7 + $0x24] sm:$0xf]  ;;  %v11433_v31 = vld [vmem:[#allocation7 + $0x110] sm:$0xf0] }
 0x3dd   :  { %6739 = vmatpush.bf16.msrb.mxu1 %v11960_v42  ;;  %6709 = vmatpush.bf16.msra.mxu3 %v11768_v28  ;;  %v11625_v42 = vld [vmem:[#allocation7 + $0x290] sm:$0xf0]  ;;  %v11324_v30 = vor.u32 %v13685_v60, %v11321_v10  ;;  %v13713_v43 = vld [vmem:[#allocation7 + $0x104] sm:$0xf]  ;;  %v13923_v10 = vld [vmem:[#allocation7 + $0x78c] sm:$0xf0] }
 0x3de   :  { %v11628_v32 = vor.u32 %v13761_v44, %v11625_v42  ;;  %v11577_v28 = vld [vmem:[#allocation7 + $0x230] sm:$0xf0]  ;;  %v11688_v44 = vor.u32 %v13779_v37, %v11687_v29  ;;  %v13893_v60 = vld [vmem:[#allocation7 + $0x6a4] sm:$0xf] }
 0x3df   :  { %6752 = vmatpush.bf16.msrb.mxu2 %v12088_v47  ;;  %6727 = vmatpush.bf16.msrb.mxu0 %v11816_v4  ;;  %v11735_v47 = vld [vmem:[#allocation7 + $0x360] sm:$0xf]  ;;  %v4930_v45 = vpop.f32.mrf.mxu0  ;;  %v11609_v4 = vld [vmem:[#allocation7 + $0x270] sm:$0xf0]  ;;  %v11580_v35 = vor.u32 %v13749_v27, %v11577_v28  ;;  %v13857_v37 = vld [vmem:[#allocation7 + $0x584] sm:$0xf] }
 0x3e0   :  { %v4931_v55 = vadd.f32 %v4930_v45, %v14591_v34  ;;  %v11736_v38 = vor.u32 %v13791_v53, %v11735_v47  ;;  %v11612_v34 = vor.u32 %v13757_v1, %v11609_v4  ;;  %v11561_v42 = vld [vmem:[#allocation7 + $0x210] sm:$0xf0]  ;;  %v13837_v47 = vld [vmem:[#allocation7 + $0x4e4] sm:$0xf] }
 0x3e1   :  { %6740 = vmatpush.bf16.msrb.mxu1 %v11944_v8  ;;  %v4943_v58 = vpop.f32.mrf.mxu1  ;;  %6710 = vmatpush.bf16.msra.mxu3 %v11752_v39  ;;  %v13787_v8 = vld [vmem:[#allocation7 + $0x34c] sm:$0xf0]  ;;  %v13745_v39 = vld [vmem:[#allocation7 + $0x204] sm:$0xf]  ;;  %v11929_v53 = vld [vmem:[#allocation7 + $0x4f0] sm:$0xf0] }
 0x3e2   :  { %6728 = vmatmul.bf16.vlgmr.msrb.gmra.mxu0 %v14554_v59  ;;  %v14598_v5 = vadd.f32 %v4943_v58, %v4931_v55  ;;  %v11436_v58 = vor.u32 %v13713_v43, %v11433_v31  ;;  %v11564_v2 = vor.u32 %v13745_v39, %v11561_v42  ;;  %v13833_v4 = vld [vmem:[#allocation7 + $0x4c4] sm:$0xf]  ;;  %v11897_v63 = vld [vmem:[#allocation7 + $0x4b0] sm:$0xf0] }
 0x3e3   :  { %6753 = vmatpush.bf16.msrb.mxu2 %v12072_v11  ;;  %6772 = vmatpush.bf16.msra.mxu0 %v11420_v46  ;;  %v11356_v11 = vor.u32 %v13693_v48, %v11353_v13  ;;  %v11337_v46 = vld [vmem:[#allocation7 + $0x50] sm:$0xf0]  ;;  %v13901_v48 = vld [vmem:[#allocation7 + $0x6e4] sm:$0xf]  ;;  %v12295_v13 = vld [vmem:[#allocation7 + $0x7c0] sm:$0xf] }
 0x3e4   :  { %6741 = vmatmul.bf16.vlgmr.msrb.gmra.mxu1 %v14556_v61  ;;  %v11340_v21 = vor.u32 %v13689_v52, %v11337_v46  ;;  %v12041_v52 = vld [vmem:[#allocation7 + $0x5d0] sm:$0xf0]  ;;  %v13821_v42 = vld [vmem:[#allocation7 + $0x464] sm:$0xf] }
 0x3e5   :  { %6785 = vmatpush.bf16.msra.mxu1 %v11548_v18  ;;  %v13721_v18 = vld [vmem:[#allocation7 + $0x144] sm:$0xf]  ;;  %6711 = vmatpush.bf16.msra.mxu3 %v11736_v38  ;;  %v11932_v38 = vor.u32 %v13837_v47, %v11929_v53  ;;  %v12169_v46 = vld [vmem:[#allocation7 + $0x6d0] sm:$0xf0] }
 0x3e6   :  { %6754 = vmatmul.bf16.vlgmr.msrb.gmra.mxu2 %v14562_v3  ;;  %v11468_v22 = vor.u32 %v13721_v18, %v11465_v15  ;;  %v12279_v18 = vld [vmem:[#allocation7 + $0x7a0] sm:$0xf]  ;;  %v13927_v15 = vld [vmem:[#allocation7 + $0x7ac] sm:$0xf0]  ;;  %v11881_v27 = vld [vmem:[#allocation7 + $0x490] sm:$0xf0] }
 0x3e7   :  { %6798 = vmatpush.bf16.msra.mxu2 %v11676_v16  ;;  %6773 = vmatpush.bf16.msra.mxu0 %v11404_v23  ;;  %v11720_v16 = vor.u32 %v13787_v8, %v11719_v7  ;;  %v4932_v20 = vpop.f32.mrf.mxu0  ;;  %v11913_v7 = vld [vmem:[#allocation7 + $0x4d0] sm:$0xf0] }
 0x3e8   :  { %v12280_v20 = vor.u32 %v13927_v15, %v12279_v18  ;;  %v11865_v47 = vld [vmem:[#allocation7 + $0x470] sm:$0xf0] }
 0x3e9   :  { %6786 = vmatpush.bf16.msra.mxu1 %v11532_v9  ;;  %v4945_v23 = vpop.f32.mrf.mxu1  ;;  %v11596_v9 = vor.u32 %v13753_v49, %v11593_v19  ;;  %6712 = vmatpush.bf16.msra.mxu3 %v11720_v16  ;;  %v11916_v16 = vor.u32 %v13833_v4, %v11913_v7  ;;  %v13829_v19 = vld [vmem:[#allocation7 + $0x4a4] sm:$0xf] }
 0x3ea   :  { %v12153_v23 = vld [vmem:[#allocation7 + $0x6b0] sm:$0xf0]  ;;  %v13849_v7 = vld [vmem:[#allocation7 + $0x544] sm:$0xf] }
 0x3eb   :  { %6799 = vmatpush.bf16.msra.mxu2 %v11660_v24  ;;  %6774 = vmatpush.bf16.msra.mxu0 %v11388_v33  ;;  %v13717_v24 = vld [vmem:[#allocation7 + $0x124] sm:$0xf]  ;;  %v12156_v28 = vor.u32 %v13893_v60, %v12153_v23  ;;  %v12089_v23 = vld [vmem:[#allocation7 + $0x630] sm:$0xf0] }
 0x3ec   :  { %v11452_v33 = vor.u32 %v13717_v24, %v11449_v25  ;;  %v11900_v24 = vor.u32 %v13829_v19, %v11897_v63  ;;  %v13813_v19 = vld [vmem:[#allocation7 + $0x424] sm:$0xf]  ;;  %v11833_v63 = vld [vmem:[#allocation7 + $0x430] sm:$0xf0] }
 0x3ed   :  { %6787 = vmatpush.bf16.msra.mxu1 %v11516_v51  ;;  %v13935_v51 = vld [vmem:[#allocation7 + $0x7ec] sm:$0xf0]  ;;  %6713 = vmatpush.bf16.msra.mxu3 %v11704_v26  ;;  %v13825_v26 = vld [vmem:[#allocation7 + $0x484] sm:$0xf] }
 0x3ee   :  { %v12312_v45 = vor.u32 %v13935_v51, %v12311_v62  ;;  %v12009_v62 = vld [vmem:[#allocation7 + $0x590] sm:$0xf0]  ;;  %v11884_v39 = vor.u32 %v13825_v26, %v11881_v27  ;;  %v13877_v60 = vld [vmem:[#allocation7 + $0x624] sm:$0xf]  ;;  %v11836_v26 = vor.u32 %v13813_v19, %v11833_v63  ;;  %v11519_v19 = vld [vmem:[#allocation7 + $0x1a8] sm:$0xf] }
 0x3ef   :  { %6800 = vmatpush.bf16.msra.mxu2 %v11644_v36  ;;  %6775 = vmatpush.bf16.msra.mxu0 %v11372_v50  ;;  %v11305_v36 = vld [vmem:[#allocation7 + $0x10] sm:$0xf0]  ;;  %v13869_v50 = vld [vmem:[#allocation7 + $0x5e4] sm:$0xf]  ;;  %v13736_v63 = vld [vmem:[#allocation7 + $0x1b4] sm:$0xf0] }
 0x3f0   :  { %v11308_v55 = vor.u32 %v13681_v41, %v11305_v36  ;;  %v12247_v41 = vld [vmem:[#allocation7 + $0x760] sm:$0xf]  ;;  %v13919_v36 = vld [vmem:[#allocation7 + $0x76c] sm:$0xf0] }
 0x3f1   :  { %6788 = vmatpush.bf16.msra.mxu1 %v11500_v54  ;;  %v12057_v54 = vld [vmem:[#allocation7 + $0x5f0] sm:$0xf0]  ;;  %6714 = vmatpush.bf16.msra.mxu3 %v11688_v44  ;;  %v12012_v44 = vor.u32 %v13857_v37, %v12009_v62  ;;  %v12092_v37 = vor.u32 %v13877_v60, %v12089_v23  ;;  %v11520_v23 = vor.u32 %v13736_v63, %v11519_v19  ;;  %v13720_v19 = vld [vmem:[#allocation7 + $0x134] sm:$0xf0]  ;;  %v11583_v63 = vld [vmem:[#allocation7 + $0x228] sm:$0xf] }
 0x3f2   :  { %v12060_v1 = vor.u32 %v13869_v50, %v12057_v54  ;;  %v12248_v50 = vor.u32 %v13919_v36, %v12247_v41  ;;  %v13853_v54 = vld [vmem:[#allocation7 + $0x564] sm:$0xf]  ;;  %v12073_v36 = vld [vmem:[#allocation7 + $0x610] sm:$0xf0] }
 0x3f3   :  { %6801 = vmatpush.bf16.msra.mxu2 %v11628_v32  ;;  %6776 = vmatpush.bf16.msra.mxu0 %v11356_v11  ;;  %v12185_v32 = vld [vmem:[#allocation7 + $0x6f0] sm:$0xf0]  ;;  %v12296_v11 = vor.u32 %v13931_v0, %v12295_v13  ;;  %v11868_v13 = vor.u32 %v13821_v42, %v11865_v47  ;;  %v11551_v42 = vld [vmem:[#allocation7 + $0x1e8] sm:$0xf]  ;;  %v13744_v47 = vld [vmem:[#allocation7 + $0x1f4] sm:$0xf0] }
 0x3f4   :  { %v12188_v8 = vor.u32 %v13901_v48, %v12185_v32  ;;  %6715 = vmatmul.bf16.vlgmr.msra.gmra.mxu3 %v14525_v40  ;;  %v4956_v51 = vpop.f32.mrf.mxu2  ;;  %v11993_v48 = vld [vmem:[#allocation7 + $0x570] sm:$0xf0]  ;;  %v13915_v32 = vld [vmem:[#allocation7 + $0x74c] sm:$0xf0] }
 0x3f5   :  { %6789 = vmatpush.bf16.msra.mxu1 %v11484_v12  ;;  %6759 = vmatpush.bf16.msrb.mxu3 %v12312_v45  ;;  %v13865_v12 = vld [vmem:[#allocation7 + $0x5c4] sm:$0xf]  ;;  %v11996_v0 = vor.u32 %v13853_v54, %v11993_v48  ;;  %v13776_v48 = vld [vmem:[#allocation7 + $0x2f4] sm:$0xf0] }
 0x3f6   :  { %v12044_v49 = vor.u32 %v13865_v12, %v12041_v52  ;;  %v12105_v12 = vld [vmem:[#allocation7 + $0x650] sm:$0xf0] }
 0x3f7   :  { %6802 = vmatpush.bf16.msra.mxu2 %v11612_v34  ;;  %6777 = vmatpush.bf16.msra.mxu0 %v11340_v21  ;;  %v13897_v34 = vld [vmem:[#allocation7 + $0x6c4] sm:$0xf] }
 0x3f8   :  { %v12172_v57 = vor.u32 %v13897_v34, %v12169_v46  ;;  %v13861_v21 = vld [vmem:[#allocation7 + $0x5a4] sm:$0xf]  ;;  %v12215_v34 = vld [vmem:[#allocation7 + $0x720] sm:$0xf]  ;;  %v13911_v46 = vld [vmem:[#allocation7 + $0x72c] sm:$0xf0] }
 0x3f9   :  { %6790 = vmatpush.bf16.msra.mxu1 %v11468_v22  ;;  %6760 = vmatpush.bf16.msrb.mxu3 %v12296_v11  ;;  %v12025_v22 = vld [vmem:[#allocation7 + $0x5b0] sm:$0xf0]  ;;  %v13881_v11 = vld [vmem:[#allocation7 + $0x644] sm:$0xf] }
 0x3fa   :  { %v12028_v25 = vor.u32 %v13861_v21, %v12025_v22  ;;  %v13845_v21 = vld [vmem:[#allocation7 + $0x524] sm:$0xf]  ;;  %v11961_v22 = vld [vmem:[#allocation7 + $0x530] sm:$0xf0] }
 0x3fb   :  { %6803 = vmatpush.bf16.msra.mxu2 %v11596_v9  ;;  %6778 = vmatpush.bf16.msra.mxu0 %v11324_v30  ;;  %v12263_v9 = vld [vmem:[#allocation7 + $0x780] sm:$0xf]  ;;  %v13889_v30 = vld [vmem:[#allocation7 + $0x684] sm:$0xf]  ;;  %v11964_v27 = vor.u32 %v13845_v21, %v11961_v22  ;;  %v11753_v22 = vld [vmem:[#allocation7 + $0x390] sm:$0xf0] }
 0x3fc   :  { %v12264_v29 = vor.u32 %v13923_v10, %v12263_v9  ;;  %v4958_v52 = vpop.f32.mrf.mxu2  ;;  %v12199_v9 = vld [vmem:[#allocation7 + $0x700] sm:$0xf]  ;;  %v13907_v10 = vld [vmem:[#allocation7 + $0x70c] sm:$0xf0]  ;;  %v13793_v21 = vld [vmem:[#allocation7 + $0x384] sm:$0xf] }
 0x3fd   :  { %6791 = vmatpush.bf16.msra.mxu1 %v11452_v33  ;;  %6761 = vmatpush.bf16.msrb.mxu3 %v12280_v20  ;;  %v12137_v33 = vld [vmem:[#allocation7 + $0x690] sm:$0xf0]  ;;  %v12216_v20 = vor.u32 %v13911_v46, %v12215_v34  ;;  %v12200_v62 = vor.u32 %v13907_v10, %v12199_v9  ;;  %v11375_v9 = vld [vmem:[#allocation7 + $0x88] sm:$0xf]  ;;  %v13700_v10 = vld [vmem:[#allocation7 + $0x94] sm:$0xf0] }
 0x3fe   :  { %v12140_v45 = vor.u32 %v13889_v30, %v12137_v33  ;;  %v13841_v30 = vld [vmem:[#allocation7 + $0x504] sm:$0xf]  ;;  %v11945_v33 = vld [vmem:[#allocation7 + $0x510] sm:$0xf0] }
 0x3ff   :  { %6804 = vmatpush.bf16.msra.mxu2 %v11580_v35  ;;  %6779 = vmatpush.bf16.msra.mxu0 %v11308_v55  ;;  %v14605_v35 = vadd.f32 %v4956_v51, %v14598_v5  ;;  %v4982_v43 = vpop.f32.mrf.mxu0  ;;  %v13885_v55 = vld [vmem:[#allocation7 + $0x664] sm:$0xf]  ;;  %v12231_v5 = vld [vmem:[#allocation7 + $0x740] sm:$0xf]  ;;  %v11948_v54 = vor.u32 %v13841_v30, %v11945_v33 }
 0x400   :  { %v12232_v4 = vor.u32 %v13915_v32, %v12231_v5  ;;  %v13873_v51 = vld [vmem:[#allocation7 + $0x604] sm:$0xf] }
 0x401   :  { %6792 = vmatpush.bf16.msra.mxu1 %v11436_v58  ;;  %v4995_v31 = vpop.f32.mrf.mxu1  ;;  %6762 = vmatpush.bf16.msrb.mxu3 %v12264_v29  ;;  %v12121_v58 = vld [vmem:[#allocation7 + $0x670] sm:$0xf0]  ;;  %v12076_v5 = vor.u32 %v13873_v51, %v12073_v36  ;;  %v11376_v51 = vor.u32 %v13700_v10, %v11375_v9  ;;  %v11359_v36 = vld [vmem:[#allocation7 + $0x68] sm:$0xf] }
 0x402   :  { %6780 = vmatmul.bf16.vlgmr.msra.gmra.mxu0 %v14518_v17  ;;  %v14607_v53 = vadd.f32 %v4995_v31, %v4982_v43  ;;  %v11817_v29 = vld [vmem:[#allocation7 + $0x410] sm:$0xf0]  ;;  %v11423_v31 = vld [vmem:[#allocation7 + $0xe8] sm:$0xf] }
 0x403   :  { %6805 = vmatpush.bf16.msra.mxu2 %v11564_v2  ;;  %6824 = vmatpush.bf16.msrb.mxu0 %v11932_v38  ;;  %v13817_v2 = vld [vmem:[#allocation7 + $0x444] sm:$0xf]  ;;  %v11849_v38 = vld [vmem:[#allocation7 + $0x450] sm:$0xf0]  ;;  %v11311_v10 = vld [vmem:[#allocation7 + $0x8] sm:$0xf] }
 0x404   :  { %6793 = vmatmul.bf16.vlgmr.msra.gmra.mxu1 %v14521_v56 }
 0x405   :  { %6837 = vmatpush.bf16.msrb.mxu1 %v12060_v1  ;;  %6763 = vmatpush.bf16.msrb.mxu3 %v12248_v50  ;;  %v12124_v1 = vor.u32 %v13885_v55, %v12121_v58  ;;  %v13801_v55 = vld [vmem:[#allocation7 + $0x3c4] sm:$0xf]  ;;  %v11785_v58 = vld [vmem:[#allocation7 + $0x3d0] sm:$0xf0] }
 0x406   :  { %6806 = vmatmul.bf16.vlgmr.msra.gmra.mxu2 %v14523_v14 }
 0x407   :  { %6850 = vmatpush.bf16.msrb.mxu2 %v12188_v8  ;;  %6825 = vmatpush.bf16.msrb.mxu0 %v11916_v16  ;;  %v11977_v8 = vld [vmem:[#allocation7 + $0x550] sm:$0xf0]  ;;  %v4984_v18 = vpop.f32.mrf.mxu0  ;;  %v11852_v16 = vor.u32 %v13817_v2, %v11849_v38  ;;  %v13708_v2 = vld [vmem:[#allocation7 + $0xd4] sm:$0xf0]  ;;  %v11788_v38 = vor.u32 %v13801_v55, %v11785_v58 }
 0x408   :  { %v11391_v18 = vld [vmem:[#allocation7 + $0xa8] sm:$0xf] }
 0x409   :  { %6838 = vmatpush.bf16.msrb.mxu1 %v12044_v49  ;;  %v4997_v15 = vpop.f32.mrf.mxu1  ;;  %v11980_v49 = vor.u32 %v13849_v7, %v11977_v8  ;;  %6764 = vmatpush.bf16.msrb.mxu3 %v12232_v4  ;;  %v5008_v43 = vpop.f32.mrf.mxu2  ;;  %v13740_v4 = vld [vmem:[#allocation7 + $0x1d4] sm:$0xf0]  ;;  %v11663_v7 = vld [vmem:[#allocation7 + $0x2c8] sm:$0xf] }
 0x40a   :  { %v13772_v8 = vld [vmem:[#allocation7 + $0x2d4] sm:$0xf0] }
 0x40b   :  { %6851 = vmatpush.bf16.msrb.mxu2 %v12172_v57  ;;  %6826 = vmatpush.bf16.msrb.mxu0 %v11900_v24  ;;  %v12108_v57 = vor.u32 %v13881_v11, %v12105_v12  ;;  %v13805_v24 = vld [vmem:[#allocation7 + $0x3e4] sm:$0xf]  ;;  %v11769_v12 = vld [vmem:[#allocation7 + $0x3b0] sm:$0xf0]  ;;  %v13704_v15 = vld [vmem:[#allocation7 + $0xb4] sm:$0xf0] }
 0x40c   :  { %v13797_v11 = vld [vmem:[#allocation7 + $0x3a4] sm:$0xf]  ;;  %v11392_v60 = vor.u32 %v13704_v15, %v11391_v18  ;;  %v13688_v18 = vld [vmem:[#allocation7 + $0x34] sm:$0xf0] }
 0x40d   :  { %6839 = vmatpush.bf16.msrb.mxu1 %v12028_v25  ;;  %v11801_v25 = vld [vmem:[#allocation7 + $0x3f0] sm:$0xf0]  ;;  %6765 = vmatpush.bf16.msrb.mxu3 %v12216_v20  ;;  %v13768_v20 = vld [vmem:[#allocation7 + $0x2b4] sm:$0xf0] }
 0x40e   :  { %v11804_v41 = vor.u32 %v13805_v24, %v11801_v25  ;;  %v11756_v25 = vor.u32 %v13793_v21, %v11753_v22  ;;  %v11689_v21 = vld [vmem:[#allocation7 + $0x310] sm:$0xf0]  ;;  %v13933_v22 = vld [vmem:[#allocation7 + $0x7e4] sm:$0xf] }
 0x40f   :  { %6852 = vmatpush.bf16.msrb.mxu2 %v12156_v28  ;;  %6827 = vmatpush.bf16.msrb.mxu0 %v11884_v39  ;;  %v13809_v28 = vld [vmem:[#allocation7 + $0x404] sm:$0xf]  ;;  %v13712_v39 = vld [vmem:[#allocation7 + $0xf4] sm:$0xf0] }
 0x410   :  { %v11820_v50 = vor.u32 %v13809_v28, %v11817_v29  ;;  %v11424_v32 = vor.u32 %v13712_v39, %v11423_v31  ;;  %v11631_v28 = vld [vmem:[#allocation7 + $0x288] sm:$0xf]  ;;  %v13764_v29 = vld [vmem:[#allocation7 + $0x294] sm:$0xf0] }
 0x411   :  { %6840 = vmatpush.bf16.msrb.mxu1 %v12012_v44  ;;  %v14610_v44 = vadd.f32 %v5008_v43, %v14607_v53  ;;  %6766 = vmatpush.bf16.msrb.mxu3 %v12200_v62  ;;  %v5010_v46 = vpop.f32.mrf.mxu2  ;;  %v11737_v62 = vld [vmem:[#allocation7 + $0x370] sm:$0xf0]  ;;  %v13696_v43 = vld [vmem:[#allocation7 + $0x74] sm:$0xf0]  ;;  %v11632_v31 = vor.u32 %v13764_v29, %v11631_v28  ;;  %v11567_v29 = vld [vmem:[#allocation7 + $0x208] sm:$0xf] }
 0x412   :  { %v11360_v55 = vor.u32 %v13696_v43, %v11359_v36  ;;  %v11327_v46 = vld [vmem:[#allocation7 + $0x28] sm:$0xf]  ;;  %v13716_v28 = vld [vmem:[#allocation7 + $0x114] sm:$0xf0] }
 0x413   :  { %6853 = vmatpush.bf16.msrb.mxu2 %v12140_v45  ;;  %6828 = vmatpush.bf16.msrb.mxu0 %v11868_v13  ;;  %v11679_v45 = vld [vmem:[#allocation7 + $0x2e8] sm:$0xf]  ;;  %v11552_v13 = vor.u32 %v13744_v47, %v11551_v42  ;;  %v13728_v47 = vld [vmem:[#allocation7 + $0x174] sm:$0xf0] }
 0x414   :  { %v11680_v53 = vor.u32 %v13776_v48, %v11679_v45  ;;  %6767 = vmatmul.bf16.vlgmr.msrb.gmra.mxu3 %v14584_v6  ;;  %v11487_v42 = vld [vmem:[#allocation7 + $0x168] sm:$0xf]  ;;  %v11721_v48 = vld [vmem:[#allocation7 + $0x350] sm:$0xf0]  ;;  %v13840_v36 = vld [vmem:[#allocation7 + $0x4f4] sm:$0xf0] }
 0x415   :  { %6841 = vmatpush.bf16.msrb.mxu1 %v11996_v0  ;;  %6811 = vmatpush.bf16.msra.mxu3 %v11804_v41  ;;  %v11407_v0 = vld [vmem:[#allocation7 + $0xc8] sm:$0xf]  ;;  %v11488_v58 = vor.u32 %v13728_v47, %v11487_v42 }
 0x416   :  { %v11408_v52 = vor.u32 %v13708_v2, %v11407_v0  ;;  %v11615_v45 = vld [vmem:[#allocation7 + $0x268] sm:$0xf] }
 0x417   :  { %6854 = vmatpush.bf16.msrb.mxu2 %v12124_v1  ;;  %6829 = vmatpush.bf16.msrb.mxu0 %v11852_v16  ;;  %v11535_v1 = vld [vmem:[#allocation7 + $0x1c8] sm:$0xf]  ;;  %v11664_v16 = vor.u32 %v13772_v8, %v11663_v7  ;;  %v13781_v7 = vld [vmem:[#allocation7 + $0x324] sm:$0xf]  ;;  %v11705_v8 = vld [vmem:[#allocation7 + $0x330] sm:$0xf0] }
 0x418   :  { %v11536_v34 = vor.u32 %v13740_v4, %v11535_v1  ;;  %v11471_v2 = vld [vmem:[#allocation7 + $0x148] sm:$0xf]  ;;  %v13756_v4 = vld [vmem:[#allocation7 + $0x254] sm:$0xf0] }
 0x419   :  { %6842 = vmatpush.bf16.msrb.mxu1 %v11980_v49  ;;  %6812 = vmatpush.bf16.msra.mxu3 %v11788_v38  ;;  %v11772_v49 = vor.u32 %v13797_v11, %v11769_v12  ;;  %v11599_v38 = vld [vmem:[#allocation7 + $0x248] sm:$0xf] }
 0x41a   :  { %v11600_v15 = vor.u32 %v13756_v4, %v11599_v38  ;;  %v12063_v43 = vld [vmem:[#allocation7 + $0x5e8] sm:$0xf]  ;;  %v13900_v4 = vld [vmem:[#allocation7 + $0x6d4] sm:$0xf0] }
 0x41b   :  { %6855 = vmatpush.bf16.msrb.mxu2 %v12108_v57  ;;  %6830 = vmatpush.bf16.msrb.mxu0 %v11836_v26  ;;  %v11647_v57 = vld [vmem:[#allocation7 + $0x2a8] sm:$0xf] }
 0x41c   :  { %v11648_v24 = vor.u32 %v13768_v20, %v11647_v57  ;;  %v11503_v26 = vld [vmem:[#allocation7 + $0x188] sm:$0xf]  ;;  %v13752_v57 = vld [vmem:[#allocation7 + $0x234] sm:$0xf0]  ;;  %v13777_v20 = vld [vmem:[#allocation7 + $0x304] sm:$0xf] }
 0x41d   :  { %6843 = vmatpush.bf16.msrb.mxu1 %v11964_v27  ;;  %6813 = vmatpush.bf16.msra.mxu3 %v11772_v49  ;;  %v13732_v27 = vld [vmem:[#allocation7 + $0x194] sm:$0xf0]  ;;  %v11455_v49 = vld [vmem:[#allocation7 + $0x128] sm:$0xf] }
 0x41e   :  { %v11504_v41 = vor.u32 %v13732_v27, %v11503_v26  ;;  %v11456_v9 = vor.u32 %v13720_v19, %v11455_v49  ;;  %v11692_v26 = vor.u32 %v13777_v20, %v11689_v21  ;;  %v11439_v27 = vld [vmem:[#allocation7 + $0x108] sm:$0xf]  ;;  %v14623_v19 = vld [vmem:[#allocation2 + $0x8] sm:$0xf] }
 0x41f   :  { %6856 = vmatpush.bf16.msrb.mxu2 %v12092_v37  ;;  %6831 = vmatpush.bf16.msrb.mxu0 %v11820_v50  ;;  %v13789_v37 = vld [vmem:[#allocation7 + $0x364] sm:$0xf]  ;;  %v14616_v30 = vpop.f32.mrf.mxu0  ;;  %v13760_v50 = vld [vmem:[#allocation7 + $0x274] sm:$0xf0]  ;;  %v11440_v47 = vor.u32 %v13716_v28, %v11439_v27  ;;  %v12175_v38 = vld [vmem:[#allocation7 + $0x6c8] sm:$0xf] }
 0x420   :  { %v11740_v39 = vor.u32 %v13789_v37, %v11737_v62  ;;  %v12159_v49 = vld [vmem:[#allocation7 + $0x6a8] sm:$0xf]  ;;  %v12265_v20 = vld [vmem:[#allocation7 + $0x790] sm:$0xf0]  ;;  %v13892_v28 = vld [vmem:[#allocation7 + $0x694] sm:$0xf0] }
 0x421   :  { %6844 = vmatpush.bf16.msrb.mxu1 %v11948_v54  ;;  %v14618_v33 = vpop.f32.mrf.mxu1  ;;  %6814 = vmatpush.bf16.msra.mxu3 %v11756_v25  ;;  %v13785_v54 = vld [vmem:[#allocation7 + $0x344] sm:$0xf]  ;;  %v11584_v25 = vor.u32 %v13752_v57, %v11583_v63  ;;  %v13896_v63 = vld [vmem:[#allocation7 + $0x6b4] sm:$0xf0]  ;;  %v12143_v27 = vld [vmem:[#allocation7 + $0x688] sm:$0xf] }
 0x422   :  { %6832 = vmatmul.bf16.vlgmr.msrb.gmra.mxu0 %v14554_v59  ;;  %v11724_v0 = vor.u32 %v13785_v54, %v11721_v48  ;;  %v12297_v54 = vld [vmem:[#allocation7 + $0x7d0] sm:$0xf0]  ;;  %v13921_v57 = vld [vmem:[#allocation7 + $0x784] sm:$0xf] }
 0x423   :  { %6857 = vmatpush.bf16.msrb.mxu2 %v12076_v5  ;;  %6876 = vmatpush.bf16.msra.mxu0 %v11424_v32  ;;  %v11343_v5 = vld [vmem:[#allocation7 + $0x48] sm:$0xf]  ;;  %v13692_v32 = vld [vmem:[#allocation7 + $0x54] sm:$0xf0] }
 0x424   :  { %6845 = vmatmul.bf16.vlgmr.msrb.gmra.mxu1 %v14556_v61 }
 0x425   :  { %6889 = vmatpush.bf16.msra.mxu1 %v11552_v13  ;;  %6815 = vmatpush.bf16.msra.mxu3 %v11740_v39  ;;  %v11616_v13 = vor.u32 %v13760_v50, %v11615_v45  ;;  %v12191_v39 = vld [vmem:[#allocation7 + $0x6e8] sm:$0xf]  ;;  %v13904_v45 = vld [vmem:[#allocation7 + $0x6f4] sm:$0xf0]  ;;  %v13929_v50 = vld [vmem:[#allocation7 + $0x7c4] sm:$0xf] }
 0x426   :  { %6858 = vmatmul.bf16.vlgmr.msrb.gmra.mxu2 %v14562_v3 }
 0x427   :  { %6902 = vmatpush.bf16.msra.mxu2 %v11680_v53  ;;  %6877 = vmatpush.bf16.msra.mxu0 %v11408_v52  ;;  %v13724_v53 = vld [vmem:[#allocation7 + $0x154] sm:$0xf0]  ;;  %v5036_v11 = vpop.f32.mrf.mxu0  ;;  %v11344_v52 = vor.u32 %v13692_v32, %v11343_v5  ;;  %v11919_v5 = vld [vmem:[#allocation7 + $0x4c8] sm:$0xf] }
 0x428   :  { %v13836_v32 = vld [vmem:[#allocation7 + $0x4d4] sm:$0xf0] }
 0x429   :  { %6890 = vmatpush.bf16.msra.mxu1 %v11536_v34  ;;  %v14620_v1 = vpop.f32.mrf.mxu2  ;;  %v5049_v12 = vpop.f32.mrf.mxu1  ;;  %v11472_v34 = vor.u32 %v13724_v53, %v11471_v2  ;;  %6816 = vmatpush.bf16.msra.mxu3 %v11724_v0  ;;  %v12300_v0 = vor.u32 %v13929_v50, %v12297_v54  ;;  %v12047_v2 = vld [vmem:[#allocation7 + $0x5c8] sm:$0xf]  ;;  %v13868_v53 = vld [vmem:[#allocation7 + $0x5d4] sm:$0xf0]  ;;  %v11920_v11 = vor.u32 %v13836_v32, %v11919_v5  ;;  %v13913_v5 = vld [vmem:[#allocation7 + $0x744] sm:$0xf] }
 0x42a   :  { %v12048_v12 = vor.u32 %v13868_v53, %v12047_v2  ;;  %v11999_v50 = vld [vmem:[#allocation7 + $0x568] sm:$0xf]  ;;  %v13856_v54 = vld [vmem:[#allocation7 + $0x574] sm:$0xf0]  ;;  %v12233_v32 = vld [vmem:[#allocation7 + $0x750] sm:$0xf0] }
 0x42b   :  { %6903 = vmatpush.bf16.msra.mxu2 %v11664_v16  ;;  %6878 = vmatpush.bf16.msra.mxu0 %v11392_v60  ;;  %v11708_v16 = vor.u32 %v13781_v7, %v11705_v8  ;;  %v12313_v60 = vld [vmem:[#allocation7 + $0x7f0] sm:$0xf0]  ;;  %v13925_v7 = vld [vmem:[#allocation7 + $0x7a4] sm:$0xf]  ;;  %v11855_v2 = vld [vmem:[#allocation7 + $0x448] sm:$0xf] }
 0x42c   :  { %v12316_v62 = vor.u32 %v13933_v22, %v12313_v60  ;;  %v12281_v8 = vld [vmem:[#allocation7 + $0x7b0] sm:$0xf0]  ;;  %v5380_v60 = vperm.slane %v14623_v19, 0  ;;  %v13820_v53 = vld [vmem:[#allocation7 + $0x454] sm:$0xf0] }
 0x42d   :  { %6891 = vmatpush.bf16.msra.mxu1 %v11520_v23  ;;  %v11328_v23 = vor.u32 %v13688_v18, %v11327_v46  ;;  %6817 = vmatpush.bf16.msra.mxu3 %v11708_v16  ;;  %v12031_v46 = vld [vmem:[#allocation7 + $0x5a8] sm:$0xf]  ;;  %v12176_v18 = vor.u32 %v13900_v4, %v12175_v38  ;;  %v13864_v16 = vld [vmem:[#allocation7 + $0x5b4] sm:$0xf0]  ;;  %v14288_v4 = vmov 0.0  }
 0x42e   :  { %v12032_v22 = vor.u32 %v13864_v16, %v12031_v46  ;;  %v11983_v38 = vld [vmem:[#allocation7 + $0x548] sm:$0xf]  ;;  %112 = vst [vmem:[%s15299_s10] sm:$0xff] %v14288_v4  ;;  %v13909_v46 = vld [vmem:[#allocation7 + $0x724] sm:$0xf] }
 0x42f   :  { %6904 = vmatpush.bf16.msra.mxu2 %v11648_v24  ;;  %6879 = vmatpush.bf16.msra.mxu0 %v11376_v51  ;;  %v13684_v24 = vld [vmem:[#allocation7 + $0x14] sm:$0xf0]  ;;  %113 = vst [vmem:[%s15299_s10 + $0x8] sm:$0x3] %v14288_v4  ;;  %v11791_v4 = vld [vmem:[#allocation7 + $0x3c8] sm:$0xf] }
 0x430   :  { %v13748_v51 = vld [vmem:[#allocation7 + $0x214] sm:$0xf0]  ;;  %v11312_v42 = vor.u32 %v13684_v24, %v11311_v10  ;;  %v12160_v10 = vor.u32 %v13896_v63, %v12159_v49  ;;  %v12268_v24 = vor.u32 %v13921_v57, %v12265_v20  ;;  %v11856_v57 = vor.u32 %v13820_v53, %v11855_v2 }
 0x431   :  { %6892 = vmatpush.bf16.msra.mxu1 %v11504_v41  ;;  %v5062_v37 = vpop.f32.mrf.mxu2  ;;  %v11935_v41 = vld [vmem:[#allocation7 + $0x4e8] sm:$0xf]  ;;  %6818 = vmatpush.bf16.msra.mxu3 %v11692_v26  ;;  %v11568_v48 = vor.u32 %v13748_v51, %v11567_v29  ;;  %v13860_v26 = vld [vmem:[#allocation7 + $0x594] sm:$0xf0]  ;;  %v13917_v29 = vld [vmem:[#allocation7 + $0x764] sm:$0xf] }
 0x432   :  { %v12249_v37 = vld [vmem:[#allocation7 + $0x770] sm:$0xf0] }
 0x433   :  { %6905 = vmatpush.bf16.msra.mxu2 %v11632_v31  ;;  %6880 = vmatpush.bf16.msra.mxu0 %v11360_v55  ;;  %v13872_v31 = vld [vmem:[#allocation7 + $0x5f4] sm:$0xf0]  ;;  %v11936_v55 = vor.u32 %v13840_v36, %v11935_v41 }
 0x434   :  { %6819 = vmatmul.bf16.vlgmr.msra.gmra.mxu3 %v14525_v40 }
 0x435   :  { %6893 = vmatpush.bf16.msra.mxu1 %v11488_v58  ;;  %6863 = vmatpush.bf16.msrb.mxu3 %v12316_v62  ;;  %v12064_v58 = vor.u32 %v13872_v31, %v12063_v43 }
 0x437   :  { %6906 = vmatpush.bf16.msra.mxu2 %v11616_v13  ;;  %6881 = vmatpush.bf16.msra.mxu0 %v11344_v52  ;;  %v12192_v13 = vor.u32 %v13904_v45, %v12191_v39  ;;  %v11903_v52 = vld [vmem:[#allocation7 + $0x4a8] sm:$0xf]  ;;  %v14629_v51 = vpop.f32.mrf.mxu3  ;;  %v12252_v45 = vor.u32 %v13917_v29, %v12249_v37  ;;  %v13808_v29 = vld [vmem:[#allocation7 + $0x3f4] sm:$0xf0] }
 0x438   :  { %v11871_v39 = vld [vmem:[#allocation7 + $0x468] sm:$0xf] }
 0x439   :  { %6894 = vmatpush.bf16.msra.mxu1 %v11472_v34  ;;  %v13832_v34 = vld [vmem:[#allocation7 + $0x4b4] sm:$0xf0]  ;;  %6864 = vmatpush.bf16.msrb.mxu3 %v12300_v0  ;;  %v12000_v0 = vor.u32 %v13856_v54, %v11999_v50 }
 0x43a   :  { %v11904_v21 = vor.u32 %v13832_v34, %v11903_v52  ;;  %v13884_v34 = vld [vmem:[#allocation7 + $0x654] sm:$0xf0] }
 0x43b   :  { %6907 = vmatpush.bf16.msra.mxu2 %v11600_v15  ;;  %6882 = vmatpush.bf16.msra.mxu0 %v11328_v23  ;;  %v12284_v15 = vor.u32 %v13925_v7, %v12281_v8  ;;  %v11887_v23 = vld [vmem:[#allocation7 + $0x488] sm:$0xf]  ;;  %v12236_v8 = vor.u32 %v13913_v5, %v12233_v32  ;;  %v13742_v32 = vld [vmem:[#allocation7 + $0x1ec] sm:$0xf] }
 0x43d   :  { %6895 = vmatpush.bf16.msra.mxu1 %v11456_v9  ;;  %v13828_v9 = vld [vmem:[#allocation7 + $0x494] sm:$0xf0]  ;;  %6865 = vmatpush.bf16.msrb.mxu3 %v12284_v15 }
 0x43e   :  { %v11888_v43 = vor.u32 %v13828_v9, %v11887_v23  ;;  %v11967_v9 = vld [vmem:[#allocation7 + $0x528] sm:$0xf] }
 0x43f   :  { %6908 = vmatpush.bf16.msra.mxu2 %v11584_v25  ;;  %6883 = vmatpush.bf16.msra.mxu0 %v11312_v42  ;;  %v12015_v25 = vld [vmem:[#allocation7 + $0x588] sm:$0xf]  ;;  %v6677_v62 = vpop.f32.mrf.mxu0  ;;  %v13824_v42 = vld [vmem:[#allocation7 + $0x474] sm:$0xf0]  ;;  %v4971_v49 = vpop.f32.mrf.mxu3 }
 0x440   :  { %v6678_v41 = vadd.f32 %v6677_v62, %v5380_v60  ;;  %v12016_v31 = vor.u32 %v13860_v26, %v12015_v25  ;;  %v13880_v25 = vld [vmem:[#allocation7 + $0x634] sm:$0xf0]  ;;  %v13905_v26 = vld [vmem:[#allocation7 + $0x704] sm:$0xf]  ;;  %v13770_v49 = vld [vmem:[#allocation7 + $0x2cc] sm:$0xf] }
 0x441   :  { %6896 = vmatpush.bf16.msra.mxu1 %v11440_v47  ;;  %v6690_v36 = vpop.f32.mrf.mxu1  ;;  %6866 = vmatpush.bf16.msrb.mxu3 %v12268_v24  ;;  %v12144_v47 = vor.u32 %v13892_v28, %v12143_v27  ;;  %v12095_v24 = vld [vmem:[#allocation7 + $0x628] sm:$0xf]  ;;  %v12201_v27 = vld [vmem:[#allocation7 + $0x710] sm:$0xf0] }
 0x442   :  { %6884 = vmatmul.bf16.vlgmr.msra.gmra.mxu0 %v14518_v17  ;;  %v11807_v28 = vld [vmem:[#allocation7 + $0x3e8] sm:$0xf] }
 0x443   :  { %6909 = vmatpush.bf16.msra.mxu2 %v11568_v48  ;;  %6928 = vmatpush.bf16.msrb.mxu0 %v11936_v55  ;;  %v12127_v48 = vld [vmem:[#allocation7 + $0x668] sm:$0xf]  ;;  %v6691_v55 = vadd.f32 %v6690_v36, %v6678_v41  ;;  %v13812_v36 = vld [vmem:[#allocation7 + $0x414] sm:$0xf0]  ;;  %v11808_v54 = vor.u32 %v13808_v29, %v11807_v28  ;;  %v13766_v28 = vld [vmem:[#allocation7 + $0x2ac] sm:$0xf] }
 0x444   :  { %6897 = vmatmul.bf16.vlgmr.msra.gmra.mxu1 %v14521_v56  ;;  %v11823_v41 = vld [vmem:[#allocation7 + $0x408] sm:$0xf] }
 0x445   :  { %6941 = vmatpush.bf16.msrb.mxu1 %v12064_v58  ;;  %v13888_v58 = vld [vmem:[#allocation7 + $0x674] sm:$0xf0]  ;;  %6867 = vmatpush.bf16.msrb.mxu3 %v12252_v45  ;;  %v4970_v45 = vadd.f32 %v14629_v51, %v14605_v35  ;;  %v11824_v2 = vor.u32 %v13812_v36, %v11823_v41  ;;  %v11759_v29 = vld [vmem:[#allocation7 + $0x388] sm:$0xf] }
 0x446   :  { %6910 = vmatmul.bf16.vlgmr.msra.gmra.mxu2 %v14523_v14  ;;  %v12128_v7 = vor.u32 %v13888_v58, %v12127_v48  ;;  %v13876_v48 = vld [vmem:[#allocation7 + $0x614] sm:$0xf0]  ;;  %v11425_v58 = vld [vmem:[#allocation7 + $0xf8] sm:$0xf0] }
 0x447   :  { %6954 = vmatpush.bf16.msrb.mxu2 %v12192_v13  ;;  %6929 = vmatpush.bf16.msrb.mxu0 %v11920_v11  ;;  %v11872_v13 = vor.u32 %v13824_v42, %v11871_v39  ;;  %v13852_v11 = vld [vmem:[#allocation7 + $0x554] sm:$0xf0]  ;;  %v6679_v16 = vpop.f32.mrf.mxu0  ;;  %v11951_v39 = vld [vmem:[#allocation7 + $0x508] sm:$0xf]  ;;  %v5021_v5 = vpop.f32.mrf.mxu3  ;;  %v11299_v35 = vmul.f32 -1.442695, %v4970_v45 }
 0x448   :  { %v11984_v20 = vor.u32 %v13852_v11, %v11983_v38  ;;  %v13844_v42 = vld [vmem:[#allocation7 + $0x514] sm:$0xf0]  ;;  %v11681_v38 = vld [vmem:[#allocation7 + $0x2f8] sm:$0xf0] }
 0x449   :  { %6942 = vmatpush.bf16.msrb.mxu1 %v12048_v12  ;;  %v12111_v12 = vld [vmem:[#allocation7 + $0x648] sm:$0xf]  ;;  %v6703_v52 = vpop.f32.mrf.mxu2  ;;  %v6692_v63 = vpop.f32.mrf.mxu1  ;;  %6868 = vmatpush.bf16.msrb.mxu3 %v12236_v8  ;;  %v11952_v53 = vor.u32 %v13844_v42, %v11951_v39  ;;  %v11537_v16 = vld [vmem:[#allocation7 + $0x1d8] sm:$0xf0]  ;;  %14127 = vpow2.f32 %v11299_v35 }
 0x44a   :  { %v14637_v15 = vadd.f32 %v6703_v52, %v6691_v55  ;;  %v12112_v60 = vor.u32 %v13884_v34, %v12111_v12  ;;  %v13710_v55 = vld [vmem:[#allocation7 + $0xec] sm:$0xf]  ;;  %v11409_v52 = vld [vmem:[#allocation7 + $0xd8] sm:$0xf0] }
 0x44b   :  { %6955 = vmatpush.bf16.msrb.mxu2 %v12176_v18  ;;  %6930 = vmatpush.bf16.msrb.mxu0 %v11904_v21  ;;  %v12217_v18 = vld [vmem:[#allocation7 + $0x730] sm:$0xf0]  ;;  %v11839_v21 = vld [vmem:[#allocation7 + $0x428] sm:$0xf]  ;;  %v11428_v51 = vor.u32 %v13710_v55, %v11425_v58  ;;  %v13706_v12 = vld [vmem:[#allocation7 + $0xcc] sm:$0xf] }
 0x44c   :  { %v12220_v23 = vor.u32 %v13909_v46, %v12217_v18  ;;  %v13738_v18 = vld [vmem:[#allocation7 + $0x1cc] sm:$0xf]  ;;  %v11665_v63 = vld [vmem:[#allocation7 + $0x2d8] sm:$0xf0]  ;;  %v11743_v55 = vld [vmem:[#allocation7 + $0x368] sm:$0xf] }
 0x44d   :  { %6943 = vmatpush.bf16.msrb.mxu1 %v12032_v22  ;;  %v13816_v22 = vld [vmem:[#allocation7 + $0x434] sm:$0xf0]  ;;  %v11505_v45 = vld [vmem:[#allocation7 + $0x198] sm:$0xf0] }
 0x44e   :  { %v11840_v37 = vor.u32 %v13816_v22, %v11839_v21  ;;  %6869 = vmatpush.bf16.msrb.mxu3 %v12220_v23  ;;  %v5022_v21 = vadd.f32 %v5021_v5, %v14610_v44  ;;  %v11412_v22 = vor.u32 %v13706_v12, %v11409_v52  ;;  %v13702_v23 = vld [vmem:[#allocation7 + $0xac] sm:$0xf]  ;;  %v11649_v44 = vld [vmem:[#allocation7 + $0x2b8] sm:$0xf0]  ;;  %v13792_v58 = vld [vmem:[#allocation7 + $0x374] sm:$0xf0] }
 0x44f   :  { %6956 = vmatpush.bf16.msrb.mxu2 %v12160_v10  ;;  %6931 = vmatpush.bf16.msrb.mxu0 %v11888_v43  ;;  %v13848_v10 = vld [vmem:[#allocation7 + $0x534] sm:$0xf0]  ;;  %v12096_v43 = vor.u32 %v13880_v25, %v12095_v24  ;;  %v5023_v25 = vpop.f32.mrf.mxu3  ;;  %v11652_v39 = vor.u32 %v13766_v28, %v11649_v44  ;;  %v11489_v35 = vld [vmem:[#allocation7 + $0x178] sm:$0xf0]  ;;  %v11727_v12 = vld [vmem:[#allocation7 + $0x348] sm:$0xf] }
 0x450   :  { %v11968_v62 = vor.u32 %v13848_v10, %v11967_v9  ;;  %v11393_v9 = vld [vmem:[#allocation7 + $0xb8] sm:$0xf0]  ;;  %v11668_v10 = vor.u32 %v13770_v49, %v11665_v63  ;;  %v13686_v44 = vld [vmem:[#allocation7 + $0x2c] sm:$0xf] }
 0x451   :  { %6944 = vmatpush.bf16.msrb.mxu1 %v12016_v31  ;;  %v12204_v31 = vor.u32 %v13905_v26, %v12201_v27  ;;  %v6705_v50 = vpop.f32.mrf.mxu2  ;;  %v13734_v26 = vld [vmem:[#allocation7 + $0x1ac] sm:$0xf]  ;;  %v11521_v27 = vld [vmem:[#allocation7 + $0x1b8] sm:$0xf0]  ;;  %v11396_v41 = vor.u32 %v13702_v23, %v11393_v9  ;;  %v11711_v9 = vld [vmem:[#allocation7 + $0x328] sm:$0xf] }
 0x452   :  { %v11524_v36 = vor.u32 %v13734_v26, %v11521_v27  ;;  %v13762_v50 = vld [vmem:[#allocation7 + $0x28c] sm:$0xf]  ;;  %v11345_v49 = vld [vmem:[#allocation7 + $0x58] sm:$0xf0] }
 0x453   :  { %6957 = vmatpush.bf16.msrb.mxu2 %v12144_v47  ;;  %6932 = vmatpush.bf16.msrb.mxu0 %v11872_v13  ;;  %v12079_v47 = vld [vmem:[#allocation7 + $0x608] sm:$0xf]  ;;  %v11553_v13 = vld [vmem:[#allocation7 + $0x1f8] sm:$0xf0] }
 0x454   :  { %6870 = vmatpush.bf16.msrb.mxu3 %v12204_v31  ;;  %v12080_v8 = vor.u32 %v13876_v48, %v12079_v47  ;;  %v11556_v11 = vor.u32 %v13742_v32, %v11553_v13  ;;  %v11377_v31 = vld [vmem:[#allocation7 + $0x98] sm:$0xf0]  ;;  %v13730_v47 = vld [vmem:[#allocation7 + $0x18c] sm:$0xf] }
 0x455   :  { %6945 = vmatpush.bf16.msrb.mxu1 %v12000_v0  ;;  %v13774_v0 = vld [vmem:[#allocation7 + $0x2ec] sm:$0xf]  ;;  %v11633_v48 = vld [vmem:[#allocation7 + $0x298] sm:$0xf0] }
 0x456   :  { %v11684_v34 = vor.u32 %v13774_v0, %v11681_v38  ;;  %v11508_v0 = vor.u32 %v13730_v47, %v11505_v45  ;;  %v13726_v38 = vld [vmem:[#allocation7 + $0x16c] sm:$0xf]  ;;  %v12319_v45 = vld [vmem:[#allocation7 + $0x7e8] sm:$0xf] }
 0x457   :  { %6958 = vmatpush.bf16.msrb.mxu2 %v12128_v7  ;;  %6933 = vmatpush.bf16.msrb.mxu0 %v11856_v57  ;;  %v13804_v7 = vld [vmem:[#allocation7 + $0x3d4] sm:$0xf0]  ;;  %v11775_v57 = vld [vmem:[#allocation7 + $0x3a8] sm:$0xf] }
 0x458   :  { %6915 = vmatpush.bf16.msra.mxu3 %v11808_v54  ;;  %v11792_v46 = vor.u32 %v13804_v7, %v11791_v4  ;;  %v14128_v54 = vpop.eup %14127  ;;  %v11636_v7 = vor.u32 %v13762_v50, %v11633_v48  ;;  %v13936_v50 = vld [vmem:[#allocation7 + $0x7f4] sm:$0xf0] }
 0x459   :  { %6946 = vmatpush.bf16.msrb.mxu1 %v11984_v20  ;;  %v13800_v20 = vld [vmem:[#allocation7 + $0x3b4] sm:$0xf0]  ;;  %6871 = vmatmul.bf16.vlgmr.msrb.gmra.mxu3 %v14584_v6  ;;  %v14652_v4 = vadd.f32 1.0, %v14128_v54 }
 0x45a   :  { %v11776_v24 = vor.u32 %v13800_v20, %v11775_v57 }
 0x45b   :  { %6959 = vmatpush.bf16.msrb.mxu2 %v12112_v60  ;;  %6934 = vmatpush.bf16.msrb.mxu0 %v11840_v37  ;;  %v11540_v60 = vor.u32 %v13738_v18, %v11537_v16  ;;  %v13796_v37 = vld [vmem:[#allocation7 + $0x394] sm:$0xf0]  ;;  %v11492_v18 = vor.u32 %v13726_v38, %v11489_v35  ;;  %v13690_v16 = vld [vmem:[#allocation7 + $0x4c] sm:$0xf]  ;;  %14129 = vrcp.f32 %v14652_v4  ;;  %vm5090_vm9 = vweird.f32 %v14652_v4 }
 0x45c   :  { %6916 = vmatpush.bf16.msra.mxu3 %v11792_v46  ;;  %v11760_v42 = vor.u32 %v13796_v37, %v11759_v29  ;;  %v11348_v27 = vor.u32 %v13690_v16, %v11345_v49  ;;  %v11329_v29 = vld [vmem:[#allocation7 + $0x38] sm:$0xf0]  ;;  %v13746_v38 = vld [vmem:[#allocation7 + $0x20c] sm:$0xf] }
 0x45d   :  { %6947 = vmatpush.bf16.msrb.mxu1 %v11968_v62  ;;  %v5035_v62 = vadd.f32 %v14616_v30, %v5022_v21  ;;  %v13722_v21 = vld [vmem:[#allocation7 + $0x14c] sm:$0xf]  ;;  %v11332_v48 = vor.u32 %v13686_v44, %v11329_v29  ;;  %v12177_v44 = vld [vmem:[#allocation7 + $0x6d8] sm:$0xf0]  ;;  %v12287_v29 = vld [vmem:[#allocation7 + $0x7a8] sm:$0xf] }
 0x45f   :  { %6960 = vmatpush.bf16.msrb.mxu2 %v12096_v43  ;;  %6935 = vmatpush.bf16.msrb.mxu0 %v11824_v2  ;;  %v13698_v43 = vld [vmem:[#allocation7 + $0x8c] sm:$0xf]  ;;  %v14647_v30 = vpop.f32.mrf.mxu0  ;;  %v5048_v5 = vadd.f32 %v14618_v33, %v5035_v62  ;;  %v13788_v33 = vld [vmem:[#allocation7 + $0x354] sm:$0xf0] }
 0x460   :  { %6917 = vmatpush.bf16.msra.mxu3 %v11776_v24  ;;  %v11380_v13 = vor.u32 %v13698_v43, %v11377_v31  ;;  %v13694_v2 = vld [vmem:[#allocation7 + $0x6c] sm:$0xf]  ;;  %v11728_v20 = vor.u32 %v13788_v33, %v11727_v12  ;;  %v11585_v31 = vld [vmem:[#allocation7 + $0x238] sm:$0xf0] }
 0x461   :  { %6948 = vmatpush.bf16.msrb.mxu1 %v11952_v53  ;;  %v14650_v32 = vpop.f32.mrf.mxu1  ;;  %v11361_v53 = vld [vmem:[#allocation7 + $0x78] sm:$0xf0]  ;;  %v5061_v52 = vadd.f32 %v14620_v1, %v5048_v5  ;;  %v13750_v43 = vld [vmem:[#allocation7 + $0x22c] sm:$0xf]  ;;  %v14658_v47 = vpop.eup %14129 }
 0x462   :  { %6936 = vmatmul.bf16.vlgmr.msrb.gmra.mxu0 %v14554_v59  ;;  %v11364_v46 = vor.u32 %v13694_v2, %v11361_v53  ;;  %v11601_v1 = vld [vmem:[#allocation7 + $0x258] sm:$0xf0]  ;;  %v13870_v33 = vld [vmem:[#allocation7 + $0x5ec] sm:$0xf]  ;;  %vm5091_vm8 = vweird.f32 %v14658_v47 }
 0x463   :  { %6961 = vmatpush.bf16.msrb.mxu2 %v12080_v8  ;;  %6980 = vmatpush.bf16.msra.mxu0 %v11428_v51  ;;  %v11744_v8 = vor.u32 %v13792_v58, %v11743_v55  ;;  %v13758_v51 = vld [vmem:[#allocation7 + $0x26c] sm:$0xf]  ;;  %v11313_v5 = vld [vmem:[#allocation7 + $0x18] sm:$0xf0]  ;;  %vm14683_vm10 = vmor %vm5090_vm9, %vm5091_vm8  ;;  %vm7427_vm9 = vcmask 517120  }
 0x464   :  { %6949 = vmatmul.bf16.vlgmr.msrb.gmra.mxu1 %v14556_v61  ;;  %6918 = vmatpush.bf16.msra.mxu3 %v11760_v42  ;;  %v13780_v42 = vld [vmem:[#allocation7 + $0x314] sm:$0xf0]  ;;  %v13682_v58 = vld [vmem:[#allocation7 + $0xc] sm:$0xf]  ;;  %v11441_v53 = vld [vmem:[#allocation7 + $0x118] sm:$0xf0] }
 0x465   :  { %6993 = vmatpush.bf16.msra.mxu1 %v11556_v11  ;;  %v11617_v11 = vld [vmem:[#allocation7 + $0x278] sm:$0xf0]  ;;  %v11316_v49 = vor.u32 %v13682_v58, %v11313_v5  ;;  %v12271_v58 = vld [vmem:[#allocation7 + $0x788] sm:$0xf]  ;;  %v13924_v5 = vld [vmem:[#allocation7 + $0x794] sm:$0xf0] }
 0x466   :  { %6962 = vmatmul.bf16.vlgmr.msrb.gmra.mxu2 %v14562_v3  ;;  %v11620_v57 = vor.u32 %v13758_v51, %v11617_v11  ;;  %v12320_v51 = vor.u32 %v13936_v50, %v12319_v45  ;;  %v13838_v11 = vld [vmem:[#allocation7 + $0x4ec] sm:$0xf]  ;;  %v11937_v12 = vld [vmem:[#allocation7 + $0x4f8] sm:$0xf0] }
 0x467   :  { %7006 = vmatpush.bf16.msra.mxu2 %v11684_v34  ;;  %6981 = vmatpush.bf16.msra.mxu0 %v11412_v22  ;;  %v5073_v34 = vpop.f32.mrf.mxu3  ;;  %v11473_v22 = vld [vmem:[#allocation7 + $0x158] sm:$0xf0]  ;;  %v6731_v25 = vpop.f32.mrf.mxu0  ;;  %v13894_v50 = vld [vmem:[#allocation7 + $0x6ac] sm:$0xf] }
 0x468   :  { %6919 = vmatpush.bf16.msra.mxu3 %v11744_v8  ;;  %v5074_v63 = vadd.f32 %v5073_v34, %v5061_v52  ;;  %v11476_v28 = vor.u32 %v13722_v21, %v11473_v22  ;;  %v5086_v8 = vmul.f32 %v14658_v47, %v14652_v4  ;;  %v12065_v34 = vld [vmem:[#allocation7 + $0x5f8] sm:$0xf0] }
 0x469   :  { %6994 = vmatpush.bf16.msra.mxu1 %v11540_v60  ;;  %v13754_v60 = vld [vmem:[#allocation7 + $0x24c] sm:$0xf]  ;;  %v14656_v23 = vpop.f32.mrf.mxu2  ;;  %v6744_v26 = vpop.f32.mrf.mxu1  ;;  %v12033_v45 = vld [vmem:[#allocation7 + $0x5b8] sm:$0xf0] }
 0x46a   :  { %v11300_v24 = vmul.f32 -1.442695, %v5074_v63  ;;  %v11604_v37 = vor.u32 %v13754_v60, %v11601_v1  ;;  %v5087_v22 = vsub.f32 1.0, %v5086_v8  ;;  %v11940_v60 = vor.u32 %v13838_v11, %v11937_v12  ;;  %v13866_v26 = vld [vmem:[#allocation7 + $0x5cc] sm:$0xf] }
 0x46b   :  { %7007 = vmatpush.bf16.msra.mxu2 %v11668_v10  ;;  %6982 = vmatpush.bf16.msra.mxu0 %v11396_v41  ;;  %v13784_v10 = vld [vmem:[#allocation7 + $0x334] sm:$0xf0]  ;;  %v13718_v41 = vld [vmem:[#allocation7 + $0x12c] sm:$0xf]  ;;  %v12068_v1 = vor.u32 %v13870_v33, %v12065_v34  ;;  %v12017_v8 = vld [vmem:[#allocation7 + $0x598] sm:$0xf0]  ;;  %v12272_v11 = vor.u32 %v13924_v5, %v12271_v58 }
 0x46c   :  { %14131 = vpow2.f32 %v11300_v24  ;;  %6920 = vmatpush.bf16.msra.mxu3 %v11728_v20  ;;  %v11712_v62 = vor.u32 %v13784_v10, %v11711_v9  ;;  %v13932_v20 = vld [vmem:[#allocation7 + $0x7d4] sm:$0xf0]  ;;  %v13834_v9 = vld [vmem:[#allocation7 + $0x4cc] sm:$0xf]  ;;  %v11921_v10 = vld [vmem:[#allocation7 + $0x4d8] sm:$0xf0] }
 0x46d   :  { %6995 = vmatpush.bf16.msra.mxu1 %v11524_v36  ;;  %v11457_v36 = vld [vmem:[#allocation7 + $0x138] sm:$0xf0]  ;;  %v13890_v12 = vld [vmem:[#allocation7 + $0x68c] sm:$0xf] }
 0x46e   :  { %v11460_v55 = vor.u32 %v13718_v41, %v11457_v36  ;;  %v13830_v36 = vld [vmem:[#allocation7 + $0x4ac] sm:$0xf]  ;;  %v12145_v33 = vld [vmem:[#allocation7 + $0x698] sm:$0xf0] }
 0x46f   :  { %7008 = vmatpush.bf16.msra.mxu2 %v11652_v39  ;;  %6983 = vmatpush.bf16.msra.mxu0 %v11380_v13  ;;  %v11695_v39 = vld [vmem:[#allocation7 + $0x308] sm:$0xf]  ;;  %v5075_v54 = vpop.f32.mrf.mxu3  ;;  %v13714_v13 = vld [vmem:[#allocation7 + $0x10c] sm:$0xf] }
 0x470   :  { %6921 = vmatpush.bf16.msra.mxu3 %v11712_v62  ;;  %v11696_v2 = vor.u32 %v13780_v42, %v11695_v39  ;;  %v11444_v63 = vor.u32 %v13714_v13, %v11441_v53  ;;  %v11924_v62 = vor.u32 %v13834_v9, %v11921_v10  ;;  %v13862_v42 = vld [vmem:[#allocation7 + $0x5ac] sm:$0xf]  ;;  %v5094_v13 = vand.u32 2147483647, %v14652_v4  ;;  %v11889_v53 = vld [vmem:[#allocation7 + $0x498] sm:$0xf0] }
 0x471   :  { %6996 = vmatpush.bf16.msra.mxu1 %v11508_v0  ;;  %v11588_v0 = vor.u32 %v13750_v43, %v11585_v31  ;;  %v6757_v35 = vpop.f32.mrf.mxu2  ;;  %v11905_v43 = vld [vmem:[#allocation7 + $0x4b8] sm:$0xf0]  ;;  %v13854_v10 = vld [vmem:[#allocation7 + $0x56c] sm:$0xf] }
 0x472   :  { %v14132_v52 = vpop.eup %14131  ;;  %vm14687_vm11 = vcmp.eq.f32.partialorder %v5094_v13, 8.507059e+37  ;;  %v11873_v9 = vld [vmem:[#allocation7 + $0x478] sm:$0xf0] }
 0x473   :  { %7009 = vmatpush.bf16.msra.mxu2 %v11636_v7  ;;  %6984 = vmatpush.bf16.msra.mxu0 %v11364_v46  ;;  %v11569_v7 = vld [vmem:[#allocation7 + $0x218] sm:$0xf0]  ;;  %v13902_v46 = vld [vmem:[#allocation7 + $0x6ec] sm:$0xf]  ;;  %v14662_v16 = vadd.f32 1.0, %v14132_v52  ;;  %v5096_v52 = vand.u32 2147483648, %v14652_v4 }
 0x474   :  { %6922 = vmatpush.bf16.msra.mxu3 %v11696_v2  ;;  %v11572_v21 = vor.u32 %v13746_v38, %v11569_v7  ;;  %v13826_v2 = vld [vmem:[#allocation7 + $0x48c] sm:$0xf]  ;;  %v11908_v38 = vor.u32 %v13830_v36, %v11905_v43  ;;  %v12239_v43 = vld [vmem:[#allocation7 + $0x748] sm:$0xf] }
 0x475   :  { %6997 = vmatpush.bf16.msra.mxu1 %v11492_v18  ;;  %v12193_v18 = vld [vmem:[#allocation7 + $0x6f8] sm:$0xf0]  ;;  %14133 = vrcp.f32 %v14662_v16  ;;  %v13858_v7 = vld [vmem:[#allocation7 + $0x58c] sm:$0xf]  ;;  %v5111_v34 = vand.u32 2147483648, %v14662_v16  ;;  %vm5105_vm13 = vweird.f32 %v14662_v16 }
 0x476   :  { %v12196_v24 = vor.u32 %v13902_v46, %v12193_v18  ;;  %v12255_v46 = vld [vmem:[#allocation7 + $0x768] sm:$0xf]  ;;  %v13920_v18 = vld [vmem:[#allocation7 + $0x774] sm:$0xf0]  ;;  %v5109_v4 = vand.u32 2147483647, %v14662_v16 }
 0x477   :  { %7010 = vmatpush.bf16.msra.mxu2 %v11620_v57  ;;  %6985 = vmatpush.bf16.msra.mxu0 %v11348_v27  ;;  %v12303_v57 = vld [vmem:[#allocation7 + $0x7c8] sm:$0xf]  ;;  %v12049_v27 = vld [vmem:[#allocation7 + $0x5d8] sm:$0xf0]  ;;  %v6716_v36 = vpop.f32.mrf.mxu3 }
 0x478   :  { %6967 = vmatpush.bf16.msrb.mxu3 %v12320_v51  ;;  %v12304_v25 = vor.u32 %v13932_v20, %v12303_v57  ;;  %v12052_v41 = vor.u32 %v13866_v26, %v12049_v27  ;;  %v12256_v26 = vor.u32 %v13920_v18, %v12255_v46  ;;  %v12001_v27 = vld [vmem:[#allocation7 + $0x578] sm:$0xf0]  ;;  %vm5110_vm15 = vcmp.eq.f32.partialorder %v5109_v4, 8.507059e+37  ;;  %v13846_v46 = vld [vmem:[#allocation7 + $0x52c] sm:$0xf] }
 0x479   :  { %6998 = vmatpush.bf16.msra.mxu1 %v11476_v28  ;;  %v13898_v28 = vld [vmem:[#allocation7 + $0x6cc] sm:$0xf]  ;;  %6923 = vmatmul.bf16.vlgmr.msra.gmra.mxu3 %v14525_v40  ;;  %v11969_v18 = vld [vmem:[#allocation7 + $0x538] sm:$0xf0]  ;;  %v12207_v4 = vld [vmem:[#allocation7 + $0x708] sm:$0xf] }
 0x47a   :  { %v12180_v31 = vor.u32 %v13898_v28, %v12177_v44  ;;  %v13886_v28 = vld [vmem:[#allocation7 + $0x66c] sm:$0xf]  ;;  %v12129_v44 = vld [vmem:[#allocation7 + $0x678] sm:$0xf0] }
 0x47b   :  { %7011 = vmatpush.bf16.msra.mxu2 %v11604_v37  ;;  %6986 = vmatpush.bf16.msra.mxu0 %v11332_v48  ;;  %v13928_v37 = vld [vmem:[#allocation7 + $0x7b4] sm:$0xf0]  ;;  %v14666_v54 = vpop.eup %14133  ;;  %v5088_v48 = vmul.f32 %v14658_v47, %v5087_v22  ;;  %v11892_v22 = vor.u32 %v13826_v2, %v11889_v53  ;;  %v12132_v13 = vor.u32 %v13886_v28, %v12129_v44  ;;  %v13882_v2 = vld [vmem:[#allocation7 + $0x64c] sm:$0xf]  ;;  %v12081_v44 = vld [vmem:[#allocation7 + $0x618] sm:$0xf0] }
 0x47c   :  { %6968 = vmatpush.bf16.msrb.mxu3 %v12304_v25  ;;  %v12288_v39 = vor.u32 %v13928_v37, %v12287_v29  ;;  %vm5106_vm12 = vweird.f32 %v14666_v54  ;;  %v12148_v25 = vor.u32 %v13890_v12, %v12145_v33  ;;  %v5097_v37 = vor.u32 1.1754944e-38, %v5096_v52  ;;  %v13814_v33 = vld [vmem:[#allocation7 + $0x42c] sm:$0xf] }
 0x47d   :  { %6999 = vmatpush.bf16.msra.mxu1 %v11460_v55  ;;  %v12161_v55 = vld [vmem:[#allocation7 + $0x6b8] sm:$0xf0]  ;;  %vm5107_vm14 = vmor %vm5105_vm13, %vm5106_vm12  ;;  %v13874_v28 = vld [vmem:[#allocation7 + $0x60c] sm:$0xf] }
 0x47e   :  { %v12164_v51 = vor.u32 %v13894_v50, %v12161_v55  ;;  %v13818_v50 = vld [vmem:[#allocation7 + $0x44c] sm:$0xf] }
 0x47f   :  { %7012 = vmatpush.bf16.msra.mxu2 %v11588_v0  ;;  %6987 = vmatpush.bf16.msra.mxu0 %v11316_v49  ;;  %v5101_v0 = vmul.f32 %v14666_v54, %v14662_v16  ;;  %v6781_v57 = vpop.f32.mrf.mxu0  ;;  %v13916_v16 = vld [vmem:[#allocation7 + $0x754] sm:$0xf0]  ;;  %v13850_v55 = vld [vmem:[#allocation7 + $0x54c] sm:$0xf] }
 0x480   :  { %6969 = vmatpush.bf16.msrb.mxu3 %v12288_v39  ;;  %v6717_v39 = vadd.f32 %v6716_v36, %v14637_v15  ;;  %v12084_v36 = vor.u32 %v13874_v28, %v12081_v44  ;;  %v12504_v44 = vld [vmem:[#allocation9 + $0x60] sm:$0xf] }
 0x481   :  { %7000 = vmatpush.bf16.msra.mxu1 %v11444_v63  ;;  %v5102_v35 = vsub.f32 1.0, %v5101_v0  ;;  %v6794_v20 = vpop.f32.mrf.mxu1  ;;  %v12240_v0 = vor.u32 %v13916_v16, %v12239_v43  ;;  %v13944_v43 = vld [vmem:[%s15294_s5 + $0x38] sm:$0xff] }
 0x482   :  { %6988 = vmatmul.bf16.vlgmr.msra.gmra.mxu0 %v14518_v17  ;;  %v12036_v17 = vor.u32 %v13862_v42, %v12033_v45  ;;  %v6730_v5 = vadd.f32 %v14647_v30, %v6717_v39  ;;  %v11777_v39 = vld [vmem:[#allocation7 + $0x3b8] sm:$0xf0] }
 0x483   :  { %7013 = vmatpush.bf16.msra.mxu2 %v11572_v21  ;;  %7032 = vmatpush.bf16.msrb.mxu0 %v11940_v60  ;;  %v5103_v63 = vmul.f32 %v14666_v54, %v5102_v35  ;;  %v12020_v60 = vor.u32 %v13858_v7, %v12017_v8 }
 0x484   :  { %7001 = vmatmul.bf16.vlgmr.msra.gmra.mxu1 %v14521_v56  ;;  %v5381_v56 = vperm.slane %v14623_v19, 1  ;;  %6970 = vmatpush.bf16.msrb.mxu3 %v12272_v11  ;;  %v6743_v11 = vadd.f32 %v14650_v32, %v6730_v5  ;;  %v13878_v19 = vld [vmem:[#allocation7 + $0x62c] sm:$0xf]  ;;  %v6718_v32 = vpop.f32.mrf.mxu3 }
 0x485   :  { %7045 = vmatpush.bf16.msrb.mxu1 %v12068_v1  ;;  %v13822_v1 = vld [vmem:[#allocation7 + $0x46c] sm:$0xf] }
 0x486   :  { %7014 = vmatmul.bf16.vlgmr.msra.gmra.mxu2 %v14523_v14  ;;  %v5089_v14 = vadd.f32 %v14658_v47, %v5088_v48  ;;  %v6782_v21 = vadd.f32 %v6781_v57, %v5381_v56  ;;  %v11876_v45 = vor.u32 %v13822_v1, %v11873_v9  ;;  %v11857_v48 = vld [vmem:[#allocation7 + $0x458] sm:$0xf0]  ;;  %v13912_v56 = vld [vmem:[#allocation7 + $0x734] sm:$0xf0]  ;;  %v14714_v49 = vadd.f32 %v14656_v23, %v6743_v11  ;;  %v13810_v1 = vld [vmem:[#allocation7 + $0x40c] sm:$0xf] }
 0x487   :  { %7058 = vmatpush.bf16.msrb.mxu2 %v12196_v24  ;;  %7033 = vmatpush.bf16.msrb.mxu0 %v11924_v62  ;;  %v5104_v24 = vadd.f32 %v14666_v54, %v5103_v63  ;;  %v5112_v62 = vor.u32 1.1754944e-38, %v5111_v34  ;;  %v6783_v35 = vpop.f32.mrf.mxu0  ;;  %v11860_v30 = vor.u32 %v13818_v50, %v11857_v48  ;;  %v12097_v63 = vld [vmem:[#allocation7 + $0x638] sm:$0xf0]  ;;  %v13908_v57 = vld [vmem:[#allocation7 + $0x714] sm:$0xf0] }
 0x488   :  { %v5093_v29 = vsel %vm14683_vm10, %v14658_v47, %v5089_v14  ;;  %v12004_v47 = vor.u32 %v13854_v10, %v12001_v27  ;;  %6971 = vmatpush.bf16.msrb.mxu3 %v12256_v26  ;;  %v11841_v14 = vld [vmem:[#allocation7 + $0x438] sm:$0xf0]  ;;  %v12100_v9 = vor.u32 %v13878_v19, %v12097_v63  ;;  %v12208_v10 = vor.u32 %v13908_v57, %v12207_v4  ;;  %v13794_v50 = vld [vmem:[#allocation7 + $0x38c] sm:$0xf] }
 0x489   :  { %7046 = vmatpush.bf16.msrb.mxu1 %v12052_v41  ;;  %v6795_v41 = vadd.f32 %v6794_v20, %v6782_v21  ;;  %v5098_v15 = vsel %vm14687_vm11, %v5097_v37, %v5093_v29  ;;  %v6807_v53 = vpop.f32.mrf.mxu2  ;;  %v13806_v20 = vld [vmem:[#allocation7 + $0x3ec] sm:$0xf]  ;;  %v11809_v21 = vld [vmem:[#allocation7 + $0x3f8] sm:$0xf0] }
 0x48a   :  { %v11953_v26 = vld [vmem:[#allocation7 + $0x518] sm:$0xf0]  ;;  %v11812_v27 = vor.u32 %v13806_v20, %v11809_v21  ;;  %v13802_v29 = vld [vmem:[#allocation7 + $0x3cc] sm:$0xf] }
 0x48b   :  { %7059 = vmatpush.bf16.msrb.mxu2 %v12180_v31  ;;  %7034 = vmatpush.bf16.msrb.mxu0 %v11908_v38  ;;  %v5108_v31 = vsel %vm5107_vm14, %v14666_v54, %v5104_v24  ;;  %v11985_v54 = vld [vmem:[#allocation7 + $0x558] sm:$0xf0]  ;;  %v14707_v8 = vadd.f32 %v6807_v53, %v6795_v41  ;;  %v13782_v35 = vld [vmem:[#allocation7 + $0x32c] sm:$0xf] }
 0x48c   :  { %v5113_v42 = vsel %vm5110_vm15, %v5112_v62, %v5108_v31  ;;  %v12113_v38 = vld [vmem:[#allocation7 + $0x658] sm:$0xf0]  ;;  %v11988_v12 = vor.u32 %v13850_v55, %v11985_v54  ;;  %6972 = vmatpush.bf16.msrb.mxu3 %v12240_v0  ;;  %v13798_v31 = vld [vmem:[#allocation7 + $0x3ac] sm:$0xf] }
 0x48d   :  { %7047 = vmatpush.bf16.msrb.mxu1 %v12036_v17  ;;  %v5117_v58 = vrot.slane %v5113_v42, 6  ;;  %v12223_v17 = vld [vmem:[#allocation7 + $0x728] sm:$0xf]  ;;  %v12116_v52 = vor.u32 %v13882_v2, %v12113_v38  ;;  %v11825_v24 = vld [vmem:[#allocation7 + $0x418] sm:$0xf0]  ;;  %v13938_v57 = vld [vmem:[%s15294_s5 + $0x8] sm:$0xff] }
 0x48e   :  { %v12224_v34 = vor.u32 %v13912_v56, %v12223_v17  ;;  %v11793_v37 = vld [vmem:[#allocation7 + $0x3d8] sm:$0xf0]  ;;  %v11828_v62 = vor.u32 %v13810_v1, %v11825_v24  ;;  %v13941_v54 = vld [vmem:[%s15294_s5 + $0x20] sm:$0xff]  ;;  %v13946_v24 = vld [vmem:[%s15294_s5 + $0x48] sm:$0xff] }
 0x48f   :  { %7060 = vmatpush.bf16.msrb.mxu2 %v12164_v51  ;;  %7035 = vmatpush.bf16.msrb.mxu0 %v11892_v22  ;;  %v5119_v7 = vsel %vm5118_vm0, %v5098_v15, %v5117_v58  ;;  %v6796_v51 = vpop.f32.mrf.mxu1  ;;  %v11844_v22 = vor.u32 %v13814_v33, %v11841_v14  ;;  %v11796_v16 = vor.u32 %v13802_v29, %v11793_v37  ;;  %v13952_v42 = vld [vmem:[%s15294_s5 + $0x78] sm:$0xff]  ;;  %v13951_v55 = vld [vmem:[%s15294_s5 + $0x70] sm:$0xff]  ;;  %v13942_v58 = vld [vmem:[%s15294_s5 + $0x28] sm:$0xff] }
 0x490   :  { %5121 = vst [vmem:[%s15299_s10] sm:$0xf] %v5119_v7  ;;  %6973 = vmatpush.bf16.msrb.mxu3 %v12224_v34  ;;  %v11761_v48 = vld [vmem:[#allocation7 + $0x398] sm:$0xf0]  ;;  %v13786_v15 = vld [vmem:[#allocation7 + $0x34c] sm:$0xf] }
 0x491   :  { %7048 = vmatpush.bf16.msrb.mxu1 %v12020_v60  ;;  %v11972_v60 = vor.u32 %v13846_v46, %v11969_v18  ;;  %v6809_v23 = vpop.f32.mrf.mxu2  ;;  %v11764_v5 = vor.u32 %v13794_v50, %v11761_v48  ;;  %v11729_v53 = vld [vmem:[#allocation7 + $0x358] sm:$0xf0]  ;;  %v13949_v17 = vld [vmem:[%s15294_s5 + $0x60] sm:$0xff]  ;;  %v13980_v50 = vld [vmem:[#allocation9 + $0x54] sm:$0xf0] }
 0x492   :  { %v13940_v56 = vld [vmem:[%s15294_s5 + $0x18] sm:$0xff]  ;;  %v11732_v7 = vor.u32 %v13786_v15, %v11729_v53  ;;  %v13939_v14 = vld [vmem:[%s15294_s5 + $0x10] sm:$0xff]  ;;  %v13778_v34 = vld [vmem:[#allocation7 + $0x30c] sm:$0xf] }
 0x493   :  { %7061 = vmatpush.bf16.msrb.mxu2 %v12148_v25  ;;  %7036 = vmatpush.bf16.msrb.mxu0 %v11876_v45  ;;  %v13842_v25 = vld [vmem:[#allocation7 + $0x50c] sm:$0xf]  ;;  %v13943_v45 = vld [vmem:[%s15294_s5 + $0x30] sm:$0xff]  ;;  %v13982_v29 = vld [vmem:[#allocation9 + $0x64] sm:$0xf0] }
 0x494   :  { %v11956_v41 = vor.u32 %v13842_v25, %v11953_v26  ;;  %6974 = vmatpush.bf16.msrb.mxu3 %v12208_v10  ;;  %v11713_v51 = vld [vmem:[#allocation7 + $0x338] sm:$0xf0]  ;;  %v13934_v32 = vld [vmem:[#allocation7 + $0x7ec] sm:$0xf]  ;;  %v12576_v26 = vld [vmem:[#allocation9 + $0xf0] sm:$0xf] }
 0x495   :  { %7049 = vmatpush.bf16.msrb.mxu1 %v12004_v47  ;;  %v11780_v47 = vor.u32 %v13798_v31, %v11777_v39  ;;  %v11697_v46 = vld [vmem:[#allocation7 + $0x318] sm:$0xf0]  ;;  %v13930_v1 = vld [vmem:[#allocation7 + $0x7cc] sm:$0xf]  ;;  %v14000_v23 = vld [vmem:[#allocation9 + $0xf4] sm:$0xf0] }
 0x496   :  { %v12321_v63 = vld [vmem:[#allocation7 + $0x7f8] sm:$0xf0]  ;;  %v11700_v20 = vor.u32 %v13778_v34, %v11697_v46  ;;  %v13937_v25 = vld [vmem:[%s15294_s5] sm:$0xff] }
 0x497   :  { %7062 = vmatpush.bf16.msrb.mxu2 %v12132_v13  ;;  %7037 = vmatpush.bf16.msrb.mxu0 %v11860_v30  ;;  %v13790_v13 = vld [vmem:[#allocation7 + $0x36c] sm:$0xf]  ;;  %v6768_v38 = vpop.f32.mrf.mxu3  ;;  %v13948_v30 = vld [vmem:[%s15294_s5 + $0x58] sm:$0xff]  ;;  %v13947_v4 = vld [vmem:[%s15294_s5 + $0x50] sm:$0xff]  ;;  %v12324_v21 = vor.u32 %v13934_v32, %v12321_v63 }
 0x498   :  { %7019 = vmatpush.bf16.msra.mxu3 %v11812_v27  ;;  %v6769_v18 = vadd.f32 %v6768_v38, %v14714_v49  ;;  %v12305_v10 = vld [vmem:[#allocation7 + $0x7d8] sm:$0xf0]  ;;  %v13998_v31 = vld [vmem:[#allocation9 + $0xe4] sm:$0xf0]  ;;  %v13922_v48 = vld [vmem:[#allocation7 + $0x78c] sm:$0xf] }
 0x499   :  { %7050 = vmatpush.bf16.msrb.mxu1 %v11988_v12  ;;  %6975 = vmatmul.bf16.vlgmr.msrb.gmra.mxu3 %v14584_v6  ;;  %v12308_v28 = vor.u32 %v13930_v1, %v12305_v10  ;;  %v13978_v15 = vld [vmem:[#allocation9 + $0x44] sm:$0xf0]  ;;  %v13918_v53 = vld [vmem:[#allocation7 + $0x76c] sm:$0xf]  ;;  %v12257_v38 = vld [vmem:[#allocation7 + $0x778] sm:$0xf0] }
 0x49a   :  { %v7088_v49 = vmul.f32 0.2, %v6769_v18  ;;  %vm7084_vm1 = vcmp.ge.f32.partialorder %v6769_v18, 0.0  ;;  %v13914_v34 = vld [vmem:[#allocation7 + $0x74c] sm:$0xf] }
 0x49b   :  { %7063 = vmatpush.bf16.msrb.mxu2 %v12116_v52  ;;  %7038 = vmatpush.bf16.msrb.mxu0 %v11844_v22  ;;  %v11716_v52 = vor.u32 %v13782_v35, %v11713_v51  ;;  %v12512_v22 = vld [vmem:[#allocation9 + $0x70] sm:$0xf]  ;;  %v12241_v46 = vld [vmem:[#allocation7 + $0x758] sm:$0xf0]  ;;  %v12536_v10 = vld [vmem:[#allocation9 + $0xa0] sm:$0xf] }
 0x49c   :  { %7020 = vmatpush.bf16.msra.mxu3 %v11796_v16  ;;  %v7092_v37 = vsel %vm7084_vm1, %v6769_v18, %v7088_v49  ;;  %v12568_v16 = vld [vmem:[#allocation9 + $0xe0] sm:$0xf]  ;;  %v12544_v63 = vld [vmem:[#allocation9 + $0xb0] sm:$0xf]  ;;  %v12225_v1 = vld [vmem:[#allocation7 + $0x738] sm:$0xf0] }
 0x49d   :  { %7051 = vmatpush.bf16.msrb.mxu1 %v11972_v60  ;;  %v13984_v60 = vld [vmem:[#allocation9 + $0x74] sm:$0xf0]  ;;  %v14776_v39 = vpack.c.bf16 %v7092_v37, %v7092_v37  ;;  %v13906_v37 = vld [vmem:[#allocation7 + $0x70c] sm:$0xf]  ;;  %vm8668_vm1 = vcmask 261120  }
 0x49e   :  { %v12513_v27 = vor.u32 %v13984_v60, %v12512_v22  ;;  %v13974_v22 = vld [vmem:[#allocation9 + $0x24] sm:$0xf0]  ;;  %v13910_v60 = vld [vmem:[#allocation7 + $0x72c] sm:$0xf] }
 0x49f   :  { %7064 = vmatpush.bf16.msrb.mxu2 %v12100_v9  ;;  %7039 = vmatpush.bf16.msrb.mxu0 %v11828_v62  ;;  %v6770_v19 = vpop.f32.mrf.mxu3  ;;  %v13926_v62 = vld [vmem:[#allocation7 + $0x7ac] sm:$0xf] }
 0x4a0   :  { %7021 = vmatpush.bf16.msra.mxu3 %v11780_v47  ;;  %v12496_v47 = vld [vmem:[#allocation9 + $0x50] sm:$0xf] }
 0x4a1   :  { %7052 = vmatpush.bf16.msrb.mxu1 %v11956_v41  ;;  %v14740_v0 = vpop.f32.mrf.mxu1  ;;  %v12289_v41 = vld [vmem:[#allocation7 + $0x7b8] sm:$0xf0] }
 0x4a2   :  { %7040 = vmatmul.bf16.vlgmr.msrb.gmra.mxu0 %v14554_v59  ;;  %v11745_v59 = vld [vmem:[#allocation7 + $0x378] sm:$0xf0] }
 0x4a3   :  { %7065 = vmatpush.bf16.msrb.mxu2 %v12084_v36  ;;  %7356 = vmatpush.bf16.msra.mxu0 %v13944_v43  ;;  %v11748_v2 = vor.u32 %v13790_v13, %v11745_v59  ;;  %v13945_v36 = vld [vmem:[%s15294_s5 + $0x40] sm:$0xff]  ;;  %v12577_v43 = vor.u32 %v14000_v23, %v12576_v26  ;;  %v12497_v13 = vor.u32 %v13980_v50, %v12496_v47  ;;  %v12456_v47 = vld [vmem:[#allocation9] sm:$0xf] }
 0x4a4   :  { %7053 = vmatmul.bf16.vlgmr.msrb.gmra.mxu1 %v14556_v61  ;;  %v13950_v61 = vld [vmem:[%s15294_s5 + $0x68] sm:$0xff]  ;;  %7022 = vmatpush.bf16.msra.mxu3 %v11764_v5  ;;  %v13996_v5 = vld [vmem:[#allocation9 + $0xd4] sm:$0xf0]  ;;  %v13970_v50 = vld [vmem:[#allocation9 + $0x4] sm:$0xf0] }
 0x4a5   :  { %7369 = vmatpush.bf16.msra.mxu1 %v13952_v42  ;;  %v12505_v42 = vor.u32 %v13982_v29, %v12504_v44  ;;  %v12464_v44 = vld [vmem:[#allocation9 + $0x10] sm:$0xf]  ;;  %v13972_v29 = vld [vmem:[#allocation9 + $0x14] sm:$0xf0] }
 0x4a6   :  { %7066 = vmatmul.bf16.vlgmr.msrb.gmra.mxu2 %v14562_v3  ;;  %v14738_v3 = vpop.f32.mrf.mxu0 }
 0x4a7   :  { %7357 = vmatpush.bf16.msra.mxu0 %v13943_v45  ;;  %v12292_v45 = vor.u32 %v13926_v62, %v12289_v41  ;;  %v12209_v62 = vld [vmem:[#allocation7 + $0x718] sm:$0xf0] }
 0x4a8   :  { %7023 = vmatpush.bf16.msra.mxu3 %v11748_v2  ;;  %v12488_v2 = vld [vmem:[#allocation9 + $0x40] sm:$0xf] }
 0x4a9   :  { %7370 = vmatpush.bf16.msra.mxu1 %v13951_v55  ;;  %v14751_v11 = vpop.f32.mrf.mxu2  ;;  %v6848_v33 = vpop.f32.mrf.mxu1  ;;  %v12273_v55 = vld [vmem:[#allocation7 + $0x798] sm:$0xf0] }
 0x4aa   :  { %v12276_v59 = vor.u32 %v13922_v48, %v12273_v55  ;;  %v12480_v33 = vld [vmem:[#allocation9 + $0x30] sm:$0xf]  ;;  %v13960_v41 = vld [vmem:[%s15294_s5 + $0xb8] sm:$0xff]  ;;  %v13959_v48 = vld [vmem:[%s15294_s5 + $0xb0] sm:$0xff] }
 0x4ab   :  { %7358 = vmatpush.bf16.msra.mxu0 %v13942_v58  ;;  %v12569_v58 = vor.u32 %v13998_v31, %v12568_v16  ;;  %v12528_v16 = vld [vmem:[#allocation9 + $0x90] sm:$0xf]  ;;  %v13988_v31 = vld [vmem:[#allocation9 + $0x94] sm:$0xf0]  ;;  %7382 = vmatpush.bf16.msra.mxu2 %v13960_v41  ;;  %v13983_v55 = vld [vmem:[#allocation9 + $0x74] sm:$0xf] }
 0x4ac   :  { %7024 = vmatpush.bf16.msra.mxu3 %v11732_v7  ;;  %v13994_v7 = vld [vmem:[#allocation9 + $0xc4] sm:$0xf0]  ;;  %v12640_v41 = vld [vmem:[#allocation9 + $0x170] sm:$0xf] }
 0x4ad   :  { %7371 = vmatpush.bf16.msra.mxu1 %v13950_v61  ;;  %v14779_v61 = vld [vmem:[#allocation2 + $0x8] sm:$0xf] }
 0x4ae   :  { %v6835_v12 = vpop.f32.mrf.mxu0 }
 0x4af   :  { %7359 = vmatpush.bf16.msra.mxu0 %v13941_v54  ;;  %v5382_v54 = vperm.slane %v14779_v61, 2  ;;  %v12260_v12 = vor.u32 %v13918_v53, %v12257_v38  ;;  %7383 = vmatpush.bf16.msra.mxu2 %v13959_v48  ;;  %v12506_v53 = vld [vmem:[#allocation9 + $0x68] sm:$0xf0]  ;;  %v12562_v48 = vld [vmem:[#allocation9 + $0xd8] sm:$0xf0] }
 0x4b0   :  { %7025 = vmatpush.bf16.msra.mxu3 %v11716_v52  ;;  %v13976_v52 = vld [vmem:[#allocation9 + $0x34] sm:$0xf0] }
 0x4b1   :  { %7372 = vmatpush.bf16.msra.mxu1 %v13949_v17  ;;  %v6861_v9 = vpop.f32.mrf.mxu2 }
 0x4b3   :  { %7360 = vmatpush.bf16.msra.mxu0 %v13940_v56  ;;  %v12552_v56 = vld [vmem:[#allocation9 + $0xc0] sm:$0xf] }
 0x4b4   :  { %7026 = vmatpush.bf16.msra.mxu3 %v11700_v20  ;;  %v12553_v18 = vor.u32 %v13994_v7, %v12552_v56  ;;  %v12244_v20 = vor.u32 %v13914_v34, %v12241_v46 }
 0x4b5   :  { %7373 = vmatpush.bf16.msra.mxu1 %v13948_v30  ;;  %v12489_v30 = vor.u32 %v13978_v15, %v12488_v2  ;;  %v13981_v15 = vld [vmem:[#allocation9 + $0x64] sm:$0xf] }
 0x4b6   :  { %v12509_v7 = vor.u32 %v13981_v15, %v12506_v53  ;;  %v13993_v15 = vld [vmem:[#allocation9 + $0xc4] sm:$0xf]  ;;  %v12554_v53 = vld [vmem:[#allocation9 + $0xc8] sm:$0xf0] }
 0x4b7   :  { %7361 = vmatpush.bf16.msra.mxu0 %v13939_v14  ;;  %7027 = vmatmul.bf16.vlgmr.msra.gmra.mxu3 %v14525_v40  ;;  %v12560_v40 = vld [vmem:[#allocation9 + $0xd0] sm:$0xf]  ;;  %v6820_v32 = vpop.f32.mrf.mxu3 }
 0x4b8   :  { %7071 = vmatpush.bf16.msrb.mxu3 %v12324_v21  ;;  %v12561_v17 = vor.u32 %v13996_v5, %v12560_v40  ;;  %v12472_v21 = vld [vmem:[#allocation9 + $0x20] sm:$0xf]  ;;  %v12529_v40 = vor.u32 %v13988_v31, %v12528_v16  ;;  %v6821_v56 = vadd.f32 %v6820_v32, %v14707_v8  ;;  %v12490_v8 = vld [vmem:[#allocation9 + $0x48] sm:$0xf0]  ;;  %v13955_v32 = vld [vmem:[%s15294_s5 + $0x90] sm:$0xff] }
 0x4b9   :  { %7374 = vmatpush.bf16.msra.mxu1 %v13947_v4  ;;  %v13992_v4 = vld [vmem:[#allocation9 + $0xb4] sm:$0xf0] }
 0x4ba   :  { %v12545_v49 = vor.u32 %v13992_v4, %v12544_v63 }
 0x4bb   :  { %7362 = vmatpush.bf16.msra.mxu0 %v13938_v57  ;;  %v12481_v57 = vor.u32 %v13976_v52, %v12480_v33  ;;  %v13977_v33 = vld [vmem:[#allocation9 + $0x44] sm:$0xf] }
 0x4bc   :  { %7072 = vmatpush.bf16.msrb.mxu3 %v12308_v28  ;;  %v12228_v28 = vor.u32 %v13910_v60, %v12225_v1  ;;  %v12493_v34 = vor.u32 %v13977_v33, %v12490_v8  ;;  %v12578_v60 = vld [vmem:[#allocation9 + $0xf8] sm:$0xf0]  ;;  %v13954_v1 = vld [vmem:[%s15294_s5 + $0x88] sm:$0xff] }
 0x4bd   :  { %7375 = vmatpush.bf16.msra.mxu1 %v13946_v24  ;;  %v13990_v24 = vld [vmem:[#allocation9 + $0xa4] sm:$0xf0]  ;;  %v12538_v33 = vld [vmem:[#allocation9 + $0xa8] sm:$0xf0]  ;;  %v12608_v8 = vld [vmem:[#allocation9 + $0x130] sm:$0xf] }
 0x4bf   :  { %7363 = vmatpush.bf16.msra.mxu0 %v13937_v25  ;;  %v6885_v35 = vpop.f32.mrf.mxu0 }
 0x4c0   :  { %7073 = vmatpush.bf16.msrb.mxu3 %v12292_v45  ;;  %v6886_v14 = vadd.f32 %v6885_v35, %v5382_v54  ;;  %v12212_v45 = vor.u32 %v13906_v37, %v12209_v62  ;;  %v12457_v54 = vor.u32 %v13970_v50, %v12456_v47  ;;  %v13957_v35 = vld [vmem:[%s15294_s5 + $0xa0] sm:$0xff]  ;;  %v13995_v50 = vld [vmem:[#allocation9 + $0xd4] sm:$0xf] }
 0x4c1   :  { %7376 = vmatpush.bf16.msra.mxu1 %v13945_v36  ;;  %v6898_v51 = vpop.f32.mrf.mxu1  ;;  %v12537_v36 = vor.u32 %v13990_v24, %v12536_v10  ;;  %v13953_v62 = vld [vmem:[%s15294_s5 + $0x80] sm:$0xff] }
 0x4c2   :  { %7364 = vmatmul.bf16.vlgmr.msra.gmra.mxu0 %v14776_v39  ;;  %v6899_v19 = vadd.f32 %v6898_v51, %v6886_v14  ;;  %v13979_v51 = vld [vmem:[#allocation9 + $0x54] sm:$0xf]  ;;  %v13956_v14 = vld [vmem:[%s15294_s5 + $0x98] sm:$0xff] }
 0x4c3   :  { %7819 = vmatpush.bf16.msrb.mxu0 %v12513_v27  ;;  %v12473_v27 = vor.u32 %v13974_v22, %v12472_v21  ;;  %v12474_v21 = vld [vmem:[#allocation9 + $0x28] sm:$0xf0]  ;;  %v13999_v22 = vld [vmem:[#allocation9 + $0xf4] sm:$0xf] }
 0x4c4   :  { %7074 = vmatpush.bf16.msrb.mxu3 %v12276_v59  ;;  %v13986_v59 = vld [vmem:[#allocation9 + $0x84] sm:$0xf0] }
 0x4c5   :  { %7832 = vmatpush.bf16.msrb.mxu1 %v12577_v43  ;;  %v6822_v43 = vpop.f32.mrf.mxu3 }
 0x4c7   :  { %7820 = vmatpush.bf16.msrb.mxu0 %v12505_v42  ;;  %v6887_v26 = vpop.f32.mrf.mxu0  ;;  %v12465_v42 = vor.u32 %v13972_v29, %v12464_v44  ;;  %v13997_v44 = vld [vmem:[#allocation9 + $0xe4] sm:$0xf]  ;;  %v12570_v29 = vld [vmem:[#allocation9 + $0xe8] sm:$0xf0] }
 0x4c8   :  { %7075 = vmatpush.bf16.msrb.mxu3 %v12260_v12  ;;  %v12573_v47 = vor.u32 %v13997_v44, %v12570_v29 }
 0x4c9   :  { %7833 = vmatpush.bf16.msrb.mxu1 %v12569_v58  ;;  %v6911_v9 = vpop.f32.mrf.mxu2  ;;  %v6900_v23 = vpop.f32.mrf.mxu1  ;;  %v12514_v58 = vld [vmem:[#allocation9 + $0x78] sm:$0xf0] }
 0x4ca   :  { %v14782_v25 = vadd.f32 %v6911_v9, %v6899_v19  ;;  %v12517_v2 = vor.u32 %v13983_v55, %v12514_v58  ;;  %v13975_v19 = vld [vmem:[#allocation9 + $0x34] sm:$0xf]  ;;  %v12632_v55 = vld [vmem:[#allocation9 + $0x160] sm:$0xf]  ;;  %v14014_v58 = vld [vmem:[#allocation9 + $0x164] sm:$0xf0] }
 0x4cb   :  { %7821 = vmatpush.bf16.msrb.mxu0 %v12497_v13  ;;  %v12520_v13 = vld [vmem:[#allocation9 + $0x80] sm:$0xf] }
 0x4cc   :  { %7076 = vmatpush.bf16.msrb.mxu3 %v12244_v20  ;;  %v12521_v38 = vor.u32 %v13986_v59, %v12520_v13  ;;  %v13973_v20 = vld [vmem:[#allocation9 + $0x24] sm:$0xf]  ;;  %v14012_v13 = vld [vmem:[#allocation9 + $0x154] sm:$0xf0] }
 0x4cd   :  { %7834 = vmatpush.bf16.msrb.mxu1 %v12561_v17  ;;  %v13958_v17 = vld [vmem:[%s15294_s5 + $0xa8] sm:$0xff]  ;;  %v12477_v10 = vor.u32 %v13973_v20, %v12474_v21 }
 0x4ce   :  { %7384 = vmatpush.bf16.msra.mxu2 %v13958_v17  ;;  %v12616_v17 = vld [vmem:[#allocation9 + $0x140] sm:$0xf] }
 0x4cf   :  { %7822 = vmatpush.bf16.msrb.mxu0 %v12489_v30  ;;  %v12498_v30 = vld [vmem:[#allocation9 + $0x58] sm:$0xf0] }
 0x4d0   :  { %7077 = vmatpush.bf16.msrb.mxu3 %v12228_v28  ;;  %v12501_v12 = vor.u32 %v13979_v51, %v12498_v30  ;;  %v12581_v28 = vor.u32 %v13999_v22, %v12578_v60  ;;  %v12546_v51 = vld [vmem:[#allocation9 + $0xb8] sm:$0xf0]  ;;  %v13985_v22 = vld [vmem:[#allocation9 + $0x84] sm:$0xf] }
 0x4d1   :  { %7835 = vmatpush.bf16.msrb.mxu1 %v12553_v18  ;;  %v6913_v5 = vpop.f32.mrf.mxu2 }
 0x4d2   :  { %7385 = vmatpush.bf16.msra.mxu2 %v13957_v35  ;;  %v12624_v5 = vld [vmem:[#allocation9 + $0x150] sm:$0xf]  ;;  %v13991_v35 = vld [vmem:[#allocation9 + $0xb4] sm:$0xf] }
 0x4d3   :  { %7823 = vmatpush.bf16.msrb.mxu0 %v12481_v57 }
 0x4d4   :  { %7078 = vmatpush.bf16.msrb.mxu3 %v12212_v45  ;;  %v12458_v45 = vld [vmem:[#allocation9 + $0x8] sm:$0xf0] }
 0x4d5   :  { %7836 = vmatpush.bf16.msrb.mxu1 %v12545_v49 }
 0x4d6   :  { %7386 = vmatpush.bf16.msra.mxu2 %v13956_v14  ;;  %v14008_v14 = vld [vmem:[#allocation9 + $0x134] sm:$0xf0] }
 0x4d7   :  { %7824 = vmatpush.bf16.msrb.mxu0 %v12473_v27  ;;  %7079 = vmatmul.bf16.vlgmr.msrb.gmra.mxu3 %v14584_v6  ;;  %v6834_v6 = vadd.f32 %v14738_v3, %v6821_v56  ;;  %v12482_v3 = vld [vmem:[#allocation9 + $0x38] sm:$0xf0]  ;;  %v14010_v56 = vld [vmem:[#allocation9 + $0x144] sm:$0xf0] }
 0x4d8   :  { %v12485_v57 = vor.u32 %v13975_v19, %v12482_v3  ;;  %v12466_v27 = vld [vmem:[#allocation9 + $0x18] sm:$0xf0]  ;;  %v12617_v30 = vor.u32 %v14010_v56, %v12616_v17  ;;  %v13987_v3 = vld [vmem:[#allocation9 + $0x94] sm:$0xf]  ;;  %v14032_v56 = vld [vmem:[#allocation9 + $0x1f4] sm:$0xf0] }
 0x4d9   :  { %7837 = vmatpush.bf16.msrb.mxu1 %v12537_v36  ;;  %v6847_v52 = vadd.f32 %v14740_v0, %v6834_v6  ;;  %v14016_v36 = vld [vmem:[#allocation9 + $0x174] sm:$0xf0]  ;;  %v12549_v6 = vor.u32 %v13991_v35, %v12546_v51  ;;  %v14013_v35 = vld [vmem:[#allocation9 + $0x164] sm:$0xf]  ;;  %v12634_v51 = vld [vmem:[#allocation9 + $0x168] sm:$0xf0] }
 0x4da   :  { %7387 = vmatpush.bf16.msra.mxu2 %v13955_v32  ;;  %v12641_v43 = vor.u32 %v14016_v36, %v12640_v41  ;;  %v12530_v32 = vld [vmem:[#allocation9 + $0x98] sm:$0xf0] }
 0x4db   :  { %7825 = vmatpush.bf16.msrb.mxu0 %v12465_v42  ;;  %v6860_v63 = vadd.f32 %v14751_v11, %v6847_v52  ;;  %v13971_v11 = vld [vmem:[#allocation9 + $0x14] sm:$0xf]  ;;  %v13969_v42 = vld [vmem:[#allocation9 + $0x4] sm:$0xf]  ;;  %v12609_v52 = vor.u32 %v14008_v14, %v12608_v8  ;;  %v12533_v21 = vor.u32 %v13987_v3, %v12530_v32  ;;  %v12637_v8 = vor.u32 %v14013_v35, %v12634_v51  ;;  %v12626_v3 = vld [vmem:[#allocation9 + $0x158] sm:$0xf0] }
 0x4dc   :  { %v6872_v4 = vpop.f32.mrf.mxu3  ;;  %v12469_v31 = vor.u32 %v13971_v11, %v12466_v27  ;;  %v14002_v27 = vld [vmem:[#allocation9 + $0x104] sm:$0xf0]  ;;  %v13968_v41 = vld [vmem:[%s15294_s5 + $0xf8] sm:$0xff] }
 0x4dd   :  { %7838 = vmatpush.bf16.msrb.mxu1 %v12529_v40  ;;  %v6873_v0 = vadd.f32 %v6872_v4, %v6860_v63  ;;  %v12633_v40 = vor.u32 %v14014_v58, %v12632_v55  ;;  %v12600_v63 = vld [vmem:[#allocation9 + $0x120] sm:$0xf]  ;;  %v14006_v4 = vld [vmem:[#allocation9 + $0x124] sm:$0xf0]  ;;  %7395 = vmatpush.bf16.msra.mxu3 %v13968_v41  ;;  %v13963_v58 = vld [vmem:[%s15294_s5 + $0xd0] sm:$0xff] }
 0x4de   :  { %7388 = vmatpush.bf16.msra.mxu2 %v13954_v1  ;;  %v14003_v41 = vld [vmem:[#allocation9 + $0x114] sm:$0xf] }
 0x4df   :  { %7826 = vmatpush.bf16.msrb.mxu0 %v12457_v54  ;;  %v14804_v46 = vpop.f32.mrf.mxu0  ;;  %vm7085_vm2 = vcmp.ge.f32.partialorder %v6873_v0, 0.0  ;;  %v7089_v49 = vmul.f32 0.2, %v6873_v0  ;;  %v12461_v54 = vor.u32 %v13969_v42, %v12458_v45  ;;  %v13965_v42 = vld [vmem:[%s15294_s5 + $0xe0] sm:$0xff] }
 0x4e1   :  { %7839 = vmatpush.bf16.msrb.mxu1 %v12521_v38  ;;  %v14806_v18 = vpop.f32.mrf.mxu1  ;;  %v7093_v24 = vsel %vm7085_vm2, %v6873_v0, %v7089_v49  ;;  %v12625_v38 = vor.u32 %v14012_v13, %v12624_v5  ;;  %v12601_v0 = vor.u32 %v14006_v4, %v12600_v63  ;;  %v12522_v49 = vld [vmem:[#allocation9 + $0x88] sm:$0xf0]  ;;  %v14015_v13 = vld [vmem:[#allocation9 + $0x174] sm:$0xf] }
 0x4e2   :  { %7827 = vmatmul.bf16.vlgmr.msrb.gmra.mxu0 %v14776_v39  ;;  %v14817_v37 = vpack.c.bf16 %v7093_v24, %v7093_v24  ;;  %7389 = vmatpush.bf16.msra.mxu2 %v13953_v62  ;;  %v12525_v24 = vor.u32 %v13985_v22, %v12522_v49  ;;  %v12672_v49 = vld [vmem:[#allocation9 + $0x1b0] sm:$0xf] }
 0x4e3   :  { %7871 = vmatpush.bf16.msra.mxu0 %v12517_v2  ;;  %v12565_v2 = vor.u32 %v13995_v50, %v12562_v48 }
 0x4e4   :  { %v6874_v16 = vpop.f32.mrf.mxu3  ;;  %7377 = vmatmul.bf16.vlgmr.msra.gmra.mxu1 %v14817_v37 }
 0x4e5   :  { %7884 = vmatpush.bf16.msra.mxu1 %v12581_v28 }
 0x4e6   :  { %7845 = vmatpush.bf16.msrb.mxu2 %v12641_v43  ;;  %v13967_v43 = vld [vmem:[%s15294_s5 + $0xf0] sm:$0xff] }
 0x4e7   :  { %7872 = vmatpush.bf16.msra.mxu0 %v12509_v7  ;;  %v6939_v26 = vpop.f32.mrf.mxu0  ;;  %v12557_v7 = vor.u32 %v13993_v15, %v12554_v53  ;;  %7396 = vmatpush.bf16.msra.mxu3 %v13967_v43  ;;  %v13961_v53 = vld [vmem:[%s15294_s5 + $0xc0] sm:$0xff] }
 0x4e9   :  { %v14815_v9 = vpop.f32.mrf.mxu2  ;;  %v6952_v23 = vpop.f32.mrf.mxu1  ;;  %7885 = vmatpush.bf16.msra.mxu1 %v12573_v47 }
 0x4ea   :  { %7846 = vmatpush.bf16.msrb.mxu2 %v12633_v40  ;;  %v12584_v23 = vld [vmem:[#allocation9 + $0x100] sm:$0xf] }
 0x4eb   :  { %7873 = vmatpush.bf16.msra.mxu0 %v12501_v12  ;;  %v13989_v12 = vld [vmem:[#allocation9 + $0xa4] sm:$0xf]  ;;  %v12585_v62 = vor.u32 %v14002_v27, %v12584_v23  ;;  %v12664_v23 = vld [vmem:[#allocation9 + $0x1a0] sm:$0xf]  ;;  %v14022_v27 = vld [vmem:[#allocation9 + $0x1a4] sm:$0xf0] }
 0x4ec   :  { %v12541_v19 = vor.u32 %v13989_v12, %v12538_v33  ;;  %v12696_v12 = vld [vmem:[#allocation9 + $0x1e0] sm:$0xf]  ;;  %v14030_v33 = vld [vmem:[#allocation9 + $0x1e4] sm:$0xf0] }
 0x4ed   :  { %7886 = vmatpush.bf16.msra.mxu1 %v12565_v2  ;;  %v12697_v14 = vor.u32 %v14030_v33, %v12696_v12  ;;  %v12698_v12 = vld [vmem:[#allocation9 + $0x1e8] sm:$0xf0]  ;;  %v12690_v33 = vld [vmem:[#allocation9 + $0x1d8] sm:$0xf0] }
 0x4ee   :  { %7847 = vmatpush.bf16.msrb.mxu2 %v12625_v38 }
 0x4ef   :  { %7874 = vmatpush.bf16.msra.mxu0 %v12493_v34  ;;  %v5383_v34 = vperm.slane %v14779_v61, 3  ;;  %v14004_v61 = vld [vmem:[#allocation9 + $0x114] sm:$0xf0] }
 0x4f1   :  { %v6965_v59 = vpop.f32.mrf.mxu2  ;;  %7887 = vmatpush.bf16.msra.mxu1 %v12557_v7 }
 0x4f2   :  { %7848 = vmatpush.bf16.msrb.mxu2 %v12617_v30  ;;  %v12642_v59 = vld [vmem:[#allocation9 + $0x178] sm:$0xf0] }
 0x4f3   :  { %7875 = vmatpush.bf16.msra.mxu0 %v12485_v57  ;;  %v12645_v17 = vor.u32 %v14015_v13, %v12642_v59 }
 0x4f4   :  { %7840 = vmatmul.bf16.vlgmr.msrb.gmra.mxu1 %v14817_v37 }
 0x4f5   :  { %7888 = vmatpush.bf16.msra.mxu1 %v12549_v6 }
 0x4f6   :  { %7849 = vmatpush.bf16.msrb.mxu2 %v12609_v52  ;;  %v12688_v52 = vld [vmem:[#allocation9 + $0x1d0] sm:$0xf] }
 0x4f7   :  { %7876 = vmatpush.bf16.msra.mxu0 %v12477_v10  ;;  %v12592_v10 = vld [vmem:[#allocation9 + $0x110] sm:$0xf] }
 0x4f8   :  { %v12593_v11 = vor.u32 %v14004_v61, %v12592_v10  ;;  %v14024_v10 = vld [vmem:[#allocation9 + $0x1b4] sm:$0xf0] }
 0x4f9   :  { %7889 = vmatpush.bf16.msra.mxu1 %v12541_v19  ;;  %v14011_v19 = vld [vmem:[#allocation9 + $0x154] sm:$0xf] }
 0x4fa   :  { %7850 = vmatpush.bf16.msrb.mxu2 %v12601_v0  ;;  %v12629_v4 = vor.u32 %v14011_v19, %v12626_v3  ;;  %v14009_v0 = vld [vmem:[#allocation9 + $0x144] sm:$0xf]  ;;  %v14023_v3 = vld [vmem:[#allocation9 + $0x1b4] sm:$0xf] }
 0x4fb   :  { %7877 = vmatpush.bf16.msra.mxu0 %v12469_v31  ;;  %v13966_v31 = vld [vmem:[%s15294_s5 + $0xe8] sm:$0xff] }
 0x4fc   :  { %v6924_v1 = vpop.f32.mrf.mxu3  ;;  %7397 = vmatpush.bf16.msra.mxu3 %v13966_v31  ;;  %v14020_v31 = vld [vmem:[#allocation9 + $0x194] sm:$0xf0] }
 0x4fd   :  { %7890 = vmatpush.bf16.msra.mxu1 %v12533_v21  ;;  %v6925_v45 = vadd.f32 %v6924_v1, %v14782_v25  ;;  %v12610_v1 = vld [vmem:[#allocation9 + $0x138] sm:$0xf0] }
 0x4fe   :  { %7851 = vmatpush.bf16.msrb.mxu2 %v12593_v11  ;;  %v12673_v11 = vor.u32 %v14024_v10, %v12672_v49  ;;  %v14017_v10 = vld [vmem:[#allocation9 + $0x184] sm:$0xf] }
 0x4ff   :  { %7878 = vmatpush.bf16.msra.mxu0 %v12461_v54  ;;  %v6938_v47 = vadd.f32 %v14804_v46, %v6925_v45  ;;  %v13962_v46 = vld [vmem:[%s15294_s5 + $0xc8] sm:$0xff] }
 0x500   :  { %7398 = vmatpush.bf16.msra.mxu3 %v13965_v42 }
 0x501   :  { %v7002_v57 = vpop.f32.mrf.mxu1  ;;  %7891 = vmatpush.bf16.msra.mxu1 %v12525_v24  ;;  %v6951_v50 = vadd.f32 %v14806_v18, %v6938_v47  ;;  %v14005_v24 = vld [vmem:[#allocation9 + $0x124] sm:$0xf] }
 0x502   :  { %7879 = vmatmul.bf16.vlgmr.msra.gmra.mxu0 %v14776_v39  ;;  %v6989_v39 = vpop.f32.mrf.mxu0  ;;  %7852 = vmatpush.bf16.msrb.mxu2 %v12585_v62  ;;  %v14001_v47 = vld [vmem:[#allocation9 + $0x104] sm:$0xf] }
 0x503   :  { %v6990_v20 = vadd.f32 %v6989_v39, %v5383_v34  ;;  %v6964_v25 = vadd.f32 %v14815_v9, %v6951_v50  ;;  %v12704_v9 = vld [vmem:[#allocation9 + $0x1f0] sm:$0xf]  ;;  %v14028_v34 = vld [vmem:[#allocation9 + $0x1d4] sm:$0xf0]  ;;  %v12680_v39 = vld [vmem:[#allocation9 + $0x1c0] sm:$0xf] }
 0x504   :  { %v6926_v36 = vpop.f32.mrf.mxu3  ;;  %7892 = vmatmul.bf16.vlgmr.msra.gmra.mxu1 %v14817_v37  ;;  %v13964_v37 = vld [vmem:[%s15294_s5 + $0xd8] sm:$0xff]  ;;  %v12705_v30 = vor.u32 %v14032_v56, %v12704_v9  ;;  %v12689_v63 = vor.u32 %v14028_v34, %v12688_v52 }
 0x505   :  { %v7003_v60 = vadd.f32 %v7002_v57, %v6990_v20  ;;  %7399 = vmatpush.bf16.msra.mxu3 %v13964_v37  ;;  %v14026_v57 = vld [vmem:[#allocation9 + $0x1c4] sm:$0xf0]  ;;  %v12618_v20 = vld [vmem:[#allocation9 + $0x148] sm:$0xf0]  ;;  %v12594_v36 = vld [vmem:[#allocation9 + $0x118] sm:$0xf0] }
 0x506   :  { %v12681_v21 = vor.u32 %v14026_v57, %v12680_v39  ;;  %v12621_v22 = vor.u32 %v14009_v0, %v12618_v20  ;;  %v12597_v42 = vor.u32 %v14003_v41, %v12594_v36  ;;  %v12586_v37 = vld [vmem:[#allocation9 + $0x108] sm:$0xf0]  ;;  %v12648_v50 = vld [vmem:[#allocation9 + $0x180] sm:$0xf]  ;;  %v7493_v57 = vld [vmem:[#allocation2 + $0xc] sm:$0x3] }
 0x507   :  { %v12666_v39 = vld [vmem:[#allocation9 + $0x1a8] sm:$0xf0] }
 0x509   :  { %v7015_v26 = vpop.f32.mrf.mxu2  ;;  %v7004_v29 = vpop.f32.mrf.mxu1  ;;  %7400 = vmatpush.bf16.msra.mxu3 %v13963_v58  ;;  %v14018_v58 = vld [vmem:[#allocation9 + $0x184] sm:$0xf0] }
 0x50a   :  { %v14826_v28 = vadd.f32 %v7015_v26, %v7003_v60  ;;  %v6991_v44 = vpop.f32.mrf.mxu0  ;;  %v14007_v60 = vld [vmem:[#allocation9 + $0x134] sm:$0xf]  ;;  %v12602_v26 = vld [vmem:[#allocation9 + $0x128] sm:$0xf0]  ;;  %v12665_v29 = vor.u32 %v14022_v27, %v12664_v23 }
 0x50b   :  { %v12613_v61 = vor.u32 %v14007_v60, %v12610_v1  ;;  %v12605_v44 = vor.u32 %v14005_v24, %v12602_v26  ;;  %v7495_v60 = vperm.slane %v7493_v57, 0 }
 0x50d   :  { %7401 = vmatpush.bf16.msra.mxu3 %v13962_v46 }
 0x511   :  { %v7017_v16 = vpop.f32.mrf.mxu2  ;;  %7402 = vmatpush.bf16.msra.mxu3 %v13961_v53 }
 0x512   :  { %v12656_v16 = vld [vmem:[#allocation9 + $0x190] sm:$0xf] }
 0x513   :  { %v12657_v45 = vor.u32 %v14020_v31, %v12656_v16  ;;  %v14040_v31 = vld [vmem:[%s15296_s7 + $0x38] sm:$0xff] }
 0x514   :  { %8059 = vmatpush.bf16.msrb.mxu0 %v14040_v31  ;;  %v14044_v31 = vld [vmem:[%s15296_s7 + $0x58] sm:$0xff] }
 0x515   :  { %7858 = vmatpush.bf16.msrb.mxu3 %v12705_v30 }
 0x519   :  { %7859 = vmatpush.bf16.msrb.mxu3 %v12697_v14  ;;  %v12682_v14 = vld [vmem:[#allocation9 + $0x1c8] sm:$0xf0] }
 0x51c   :  { %v6976_v40 = vpop.f32.mrf.mxu3 }
 0x51d   :  { %v6977_v5 = vadd.f32 %v6976_v40, %v6964_v25  ;;  %7860 = vmatpush.bf16.msrb.mxu3 %v12689_v63  ;;  %v12589_v25 = vor.u32 %v14001_v47, %v12586_v37  ;;  %v12649_v40 = vor.u32 %v14018_v58, %v12648_v50  ;;  %v14039_v50 = vld [vmem:[%s15296_s7 + $0x30] sm:$0xff] }
 0x51e   :  { %v12849_v58 = vld [vmem:[%s15297_s8 + $0x90] sm:$0xf]  ;;  %8060 = vmatpush.bf16.msrb.mxu0 %v14039_v50  ;;  %v12857_v50 = vld [vmem:[%s15297_s8 + $0x98] sm:$0xf] }
 0x51f   :  { %v14847_v48 = vpop.f32.mrf.mxu0  ;;  %vm7086_vm3 = vcmp.ge.f32.partialorder %v6977_v5, 0.0  ;;  %v7090_v18 = vmul.f32 0.2, %v6977_v5 }
 0x521   :  { %v14849_v55 = vpop.f32.mrf.mxu1  ;;  %v7094_v38 = vsel %vm7086_vm3, %v6977_v5, %v7090_v18  ;;  %7861 = vmatpush.bf16.msrb.mxu3 %v12681_v21  ;;  %v14019_v21 = vld [vmem:[#allocation9 + $0x194] sm:$0xf]  ;;  %vm8104_vm3 = vcmask 123904  }
 0x522   :  { %v14863_v7 = vpack.c.bf16 %v7094_v38, %v7094_v38  ;;  %v14031_v38 = vld [vmem:[#allocation9 + $0x1f4] sm:$0xf] }
 0x524   :  { %v6978_v6 = vpop.f32.mrf.mxu3  ;;  %7390 = vmatmul.bf16.vlgmr.msra.gmra.mxu2 %v14863_v7 }
 0x525   :  { %7897 = vmatpush.bf16.msra.mxu2 %v12645_v17  ;;  %7862 = vmatpush.bf16.msrb.mxu3 %v12673_v11  ;;  %v12706_v17 = vld [vmem:[#allocation9 + $0x1f8] sm:$0xf0] }
 0x526   :  { %v12709_v51 = vor.u32 %v14031_v38, %v12706_v17  ;;  %v14037_v17 = vld [vmem:[%s15296_s7 + $0x20] sm:$0xff] }
 0x527   :  { %v7043_v2 = vpop.f32.mrf.mxu0 }
 0x529   :  { %v14858_v54 = vpop.f32.mrf.mxu2  ;;  %v7056_v15 = vpop.f32.mrf.mxu1  ;;  %7898 = vmatpush.bf16.msra.mxu2 %v12637_v8  ;;  %7863 = vmatpush.bf16.msrb.mxu3 %v12665_v29  ;;  %v14025_v8 = vld [vmem:[#allocation9 + $0x1c4] sm:$0xf]  ;;  %v7496_v29 = vperm.slane %v7493_v57, 1  ;;  %v14089_v57 = vld [vmem:[%s15297_s8 + $0x140] sm:$0xf0] }
 0x52a   :  { %v12685_v19 = vor.u32 %v14025_v8, %v12682_v14  ;;  %v14092_v14 = vld [vmem:[%s15297_s8 + $0x158] sm:$0xf0] }
 0x52d   :  { %7899 = vmatpush.bf16.msra.mxu2 %v12629_v4  ;;  %7864 = vmatpush.bf16.msrb.mxu3 %v12657_v45  ;;  %v14021_v4 = vld [vmem:[#allocation9 + $0x1a4] sm:$0xf]  ;;  %v14071_v45 = vld [vmem:[%s15297_s8 + $0xb0] sm:$0xf0] }
 0x52e   :  { %v12669_v20 = vor.u32 %v14021_v4, %v12666_v39  ;;  %v14046_v4 = vld [vmem:[%s15296_s7 + $0x68] sm:$0xff] }
 0x531   :  { %v7069_v32 = vpop.f32.mrf.mxu2  ;;  %7900 = vmatpush.bf16.msra.mxu2 %v12621_v22  ;;  %7865 = vmatpush.bf16.msrb.mxu3 %v12649_v40  ;;  %v12658_v22 = vld [vmem:[#allocation9 + $0x198] sm:$0xf0] }
 0x532   :  { %v12674_v32 = vld [vmem:[#allocation9 + $0x1b8] sm:$0xf0]  ;;  %v12661_v49 = vor.u32 %v14019_v21, %v12658_v22  ;;  %v12777_v21 = vld [vmem:[%s15297_s8] sm:$0xf]  ;;  %v14050_v22 = vld [vmem:[%s15297_s8 + $0x8] sm:$0xf0] }
 0x533   :  { %v12677_v63 = vor.u32 %v14023_v3, %v12674_v32  ;;  %v14053_v3 = vld [vmem:[%s15297_s8 + $0x20] sm:$0xf0]  ;;  %v12933_v32 = vld [vmem:[%s15297_s8 + $0x138] sm:$0xf] }
 0x534   :  { %7853 = vmatmul.bf16.vlgmr.msrb.gmra.mxu2 %v14863_v7 }
 0x535   :  { %7901 = vmatpush.bf16.msra.mxu2 %v12613_v61  ;;  %v12650_v61 = vld [vmem:[#allocation9 + $0x188] sm:$0xf0] }
 0x536   :  { %v12653_v23 = vor.u32 %v14017_v10, %v12650_v61  ;;  %v12778_v10 = vor.u32 %v14050_v22, %v12777_v21  ;;  %v14086_v61 = vld [vmem:[%s15297_s8 + $0x128] sm:$0xf0]  ;;  %v14096_v21 = vld [vmem:[%s15297_s8 + $0x178] sm:$0xf0] }
 0x539   :  { %7902 = vmatpush.bf16.msra.mxu2 %v12605_v44 }
 0x53a   :  { %v7028_v43 = vpop.f32.mrf.mxu3 }
 0x53b   :  { %v7029_v13 = vadd.f32 %v7028_v43, %v14826_v28 }
 0x53d   :  { %7903 = vmatpush.bf16.msra.mxu2 %v12597_v42  ;;  %v7042_v59 = vadd.f32 %v14847_v48, %v7029_v13  ;;  %v12861_v42 = vld [vmem:[%s15297_s8 + $0xa8] sm:$0xf] }
 0x53e   :  { %v12862_v47 = vor.u32 %v14071_v45, %v12861_v42  ;;  %v14038_v13 = vld [vmem:[%s15296_s7 + $0x28] sm:$0xff]  ;;  %v14067_v45 = vld [vmem:[%s15297_s8 + $0x94] sm:$0xf] }
 0x53f   :  { %v7365_v62 = vpop.f32.mrf.mxu0  ;;  %v7055_v18 = vadd.f32 %v14849_v55, %v7042_v59  ;;  %v14027_v55 = vld [vmem:[#allocation9 + $0x1d4] sm:$0xf]  ;;  %8061 = vmatpush.bf16.msrb.mxu0 %v14038_v13 }
 0x540   :  { %v14043_v13 = vld [vmem:[%s15296_s7 + $0x50] sm:$0xff] }
 0x541   :  { %7904 = vmatpush.bf16.msra.mxu2 %v12589_v25  ;;  %v7068_v15 = vadd.f32 %v14858_v54, %v7055_v18  ;;  %v12693_v54 = vor.u32 %v14027_v55, %v12690_v33  ;;  %v14068_v25 = vld [vmem:[%s15297_s8 + $0x98] sm:$0xf0]  ;;  %v12825_v18 = vld [vmem:[%s15297_s8 + $0x60] sm:$0xf]  ;;  %v12945_v55 = vld [vmem:[%s15297_s8 + $0x150] sm:$0xf] }
 0x542   :  { %v7030_v5 = vpop.f32.mrf.mxu3  ;;  %v12850_v40 = vor.u32 %v14068_v25, %v12849_v58  ;;  %v14035_v33 = vld [vmem:[%s15296_s7 + $0x10] sm:$0xff]  ;;  %v14069_v58 = vld [vmem:[%s15297_s8 + $0xa0] sm:$0xf0] }
 0x543   :  { %v14065_v5 = vld [vmem:[%s15297_s8 + $0x80] sm:$0xf0]  ;;  %8062 = vmatpush.bf16.msrb.mxu0 %v14037_v17  ;;  %v12858_v25 = vor.u32 %v14069_v58, %v12857_v50  ;;  %v12885_v17 = vld [vmem:[%s15297_s8 + $0xd8] sm:$0xf]  ;;  %v12797_v50 = vld [vmem:[%s15297_s8 + $0x20] sm:$0xf] }
 0x544   :  { %7905 = vmatmul.bf16.vlgmr.msra.gmra.mxu2 %v14863_v7  ;;  %v14029_v7 = vld [vmem:[#allocation9 + $0x1e4] sm:$0xf]  ;;  %v14054_v58 = vld [vmem:[%s15297_s8 + $0x28] sm:$0xf0] }
 0x545   :  { %v12701_v48 = vor.u32 %v14029_v7, %v12698_v12  ;;  %8434 = vmatpush.bf16.msrb.mxu2 %v12862_v47  ;;  %v12851_v47 = vld [vmem:[%s15297_s8 + $0x9c] sm:$0xf0] }
 0x547   :  { %v7367_v46 = vpop.f32.mrf.mxu0 }
 0x548   :  { %v12837_v46 = vld [vmem:[%s15297_s8 + $0x78] sm:$0xf] }
 0x549   :  { %8435 = vmatpush.bf16.msrb.mxu2 %v12850_v40  ;;  %v12838_v59 = vor.u32 %v14065_v5, %v12837_v46  ;;  %v12897_v46 = vld [vmem:[%s15297_s8 + $0xf0] sm:$0xf]  ;;  %v14080_v5 = vld [vmem:[%s15297_s8 + $0xf8] sm:$0xf0] }
 0x54d   :  { %8436 = vmatpush.bf16.msrb.mxu2 %v12838_v59  ;;  %v12898_v59 = vor.u32 %v14080_v5, %v12897_v46  ;;  %v12941_v46 = vld [vmem:[%s15297_s8 + $0x140] sm:$0xf]  ;;  %v14090_v5 = vld [vmem:[%s15297_s8 + $0x148] sm:$0xf0] }
 0x55a   :  { %v7080_v53 = vpop.f32.mrf.mxu3 }
 0x55b   :  { %v7081_v9 = vadd.f32 %v7080_v53, %v7068_v15  ;;  %v14062_v15 = vld [vmem:[%s15297_s8 + $0x68] sm:$0xf0]  ;;  %v12957_v53 = vld [vmem:[%s15297_s8 + $0x168] sm:$0xf] }
 0x55d   :  { %vm7087_vm4 = vcmp.ge.f32.partialorder %v7081_v9, 0.0  ;;  %v7091_v56 = vmul.f32 0.2, %v7081_v9 }
 0x55f   :  { %v7828_v2 = vpop.f32.mrf.mxu0  ;;  %v7095_v35 = vsel %vm7087_vm4, %v7081_v9, %v7091_v56  ;;  %v14095_v9 = vld [vmem:[%s15297_s8 + $0x170] sm:$0xf0]  ;;  %v12826_v56 = vor.u32 %v14062_v15, %v12825_v18  ;;  %v14064_v18 = vld [vmem:[%s15297_s8 + $0x7c] sm:$0xf] }
 0x560   :  { %v7099_v30 = vpack.c.bf16 %v7095_v35, %v7095_v35  ;;  %v7829_v11 = vadd.f32 %v7828_v2, %v7495_v60  ;;  %v14048_v2 = vld [vmem:[%s15296_s7 + $0x78] sm:$0xff]  ;;  %v12958_v38 = vor.u32 %v14095_v9, %v12957_v53  ;;  %v12921_v60 = vld [vmem:[%s15297_s8 + $0x120] sm:$0xf]  ;;  %v14066_v9 = vld [vmem:[%s15297_s8 + $0x88] sm:$0xf0] }
 0x561   :  { %v7378_v52 = vpop.f32.mrf.mxu1  ;;  %8072 = vmatpush.bf16.msrb.mxu1 %v14048_v2  ;;  %8437 = vmatpush.bf16.msrb.mxu2 %v12826_v56  ;;  %v12839_v2 = vld [vmem:[%s15297_s8 + $0x84] sm:$0xf0]  ;;  %v12845_v53 = vld [vmem:[%s15297_s8 + $0x80] sm:$0xf]  ;;  %v14077_v56 = vld [vmem:[%s15297_s8 + $0xe0] sm:$0xf0] }
 0x562   :  { %v7082_v28 = vpop.f32.mrf.mxu3  ;;  %7403 = vmatmul.bf16.vlgmr.msra.gmra.mxu3 %v7099_v30  ;;  %v14872_v34 = vadd.f32 %v7378_v52, %v7365_v62  ;;  %v12946_v52 = vor.u32 %v14092_v14, %v12945_v55  ;;  %v12842_v15 = vor.u32 %v14064_v18, %v12839_v2  ;;  %v14049_v18 = vld [vmem:[%s15297_s8 + $0x4] sm:$0xf]  ;;  %v12779_v2 = vld [vmem:[%s15297_s8 + $0xc] sm:$0xf0] }
 0x563   :  { %7910 = vmatpush.bf16.msra.mxu3 %v12709_v51  ;;  %v12813_v51 = vld [vmem:[%s15297_s8 + $0x48] sm:$0xf]  ;;  %v12801_v28 = vld [vmem:[%s15297_s8 + $0x30] sm:$0xf] }
 0x567   :  { %v7830_v6 = vpop.f32.mrf.mxu0  ;;  %7911 = vmatpush.bf16.msra.mxu3 %v12701_v48  ;;  %v14056_v48 = vld [vmem:[%s15297_s8 + $0x38] sm:$0xf0] }
 0x568   :  { %v14036_v6 = vld [vmem:[%s15296_s7 + $0x18] sm:$0xff]  ;;  %v12802_v8 = vor.u32 %v14056_v48, %v12801_v28  ;;  %v12833_v28 = vld [vmem:[%s15297_s8 + $0x68] sm:$0xf]  ;;  %v14063_v48 = vld [vmem:[%s15297_s8 + $0x70] sm:$0xf0] }
 0x569   :  { %v7380_v0 = vpop.f32.mrf.mxu1  ;;  %8063 = vmatpush.bf16.msrb.mxu0 %v14036_v6  ;;  %v14061_v6 = vld [vmem:[%s15297_s8 + $0x64] sm:$0xf]  ;;  %v12834_v55 = vor.u32 %v14063_v48, %v12833_v28  ;;  %v14082_v28 = vld [vmem:[%s15297_s8 + $0x10c] sm:$0xf]  ;;  %v12911_v48 = vld [vmem:[%s15297_s8 + $0x114] sm:$0xf0] }
 0x56a   :  { %v12934_v0 = vor.u32 %v14089_v57, %v12933_v32  ;;  %v14094_v32 = vld [vmem:[%s15297_s8 + $0x16c] sm:$0xf]  ;;  %v14060_v57 = vld [vmem:[%s15297_s8 + $0x58] sm:$0xf0] }
 0x56b   :  { %7912 = vmatpush.bf16.msra.mxu3 %v12693_v54  ;;  %v14047_v54 = vld [vmem:[%s15296_s7 + $0x70] sm:$0xff] }
 0x56c   :  { %8073 = vmatpush.bf16.msrb.mxu1 %v14047_v54  ;;  %v14074_v54 = vld [vmem:[%s15297_s8 + $0xc8] sm:$0xf0] }
 0x56d   :  { %8064 = vmatpush.bf16.msrb.mxu0 %v14035_v33  ;;  %v12873_v33 = vld [vmem:[%s15297_s8 + $0xc0] sm:$0xf] }
 0x56e   :  { %v12874_v14 = vor.u32 %v14074_v54, %v12873_v33  ;;  %v12914_v33 = vor.u32 %v14082_v28, %v12911_v48  ;;  %v14084_v54 = vld [vmem:[%s15297_s8 + $0x118] sm:$0xf0]  ;;  %v14106_v48 = vld [vmem:[%s15298_s9 + $0x48] sm:$0xff] }
 0x56f   :  { %7913 = vmatpush.bf16.msra.mxu3 %v12685_v19  ;;  %v12789_v19 = vld [vmem:[%s15297_s8 + $0x18] sm:$0xf] }
 0x570   :  { %v12790_v39 = vor.u32 %v14053_v3, %v12789_v19  ;;  %8074 = vmatpush.bf16.msrb.mxu1 %v14046_v4  ;;  %v12815_v19 = vld [vmem:[%s15297_s8 + $0x54] sm:$0xf0]  ;;  %v12821_v4 = vld [vmem:[%s15297_s8 + $0x50] sm:$0xf] }
 0x571   :  { %v7841_v24 = vpop.f32.mrf.mxu1  ;;  %v12822_v22 = vor.u32 %v14060_v57, %v12821_v4  ;;  %v14076_v57 = vld [vmem:[%s15297_s8 + $0xdc] sm:$0xf] }
 0x572   :  { %7866 = vmatmul.bf16.vlgmr.msrb.gmra.mxu3 %v7099_v30  ;;  %v14874_v26 = vadd.f32 %v7841_v24, %v7829_v11  ;;  %v12922_v11 = vor.u32 %v14086_v61, %v12921_v60  ;;  %v14070_v24 = vld [vmem:[%s15297_s8 + $0xac] sm:$0xf] }
 0x573   :  { %7914 = vmatpush.bf16.msra.mxu3 %v12677_v63  ;;  %v14034_v63 = vld [vmem:[%s15296_s7 + $0x8] sm:$0xff] }
 0x574   :  { %8065 = vmatpush.bf16.msrb.mxu0 %v14034_v63  ;;  %v12959_v63 = vld [vmem:[%s15297_s8 + $0x174] sm:$0xf0] }
 0x577   :  { %7915 = vmatpush.bf16.msra.mxu3 %v12669_v20 }
 0x579   :  { %v7843_v44 = vpop.f32.mrf.mxu1 }
 0x57b   :  { %7916 = vmatpush.bf16.msra.mxu3 %v12661_v49  ;;  %v14045_v49 = vld [vmem:[%s15296_s7 + $0x60] sm:$0xff] }
 0x57c   :  { %8075 = vmatpush.bf16.msrb.mxu1 %v14045_v49  ;;  %v12803_v49 = vld [vmem:[%s15297_s8 + $0x3c] sm:$0xf0] }
 0x57f   :  { %v7880_v1 = vpop.f32.mrf.mxu0  ;;  %7917 = vmatpush.bf16.msra.mxu3 %v12653_v23  ;;  %v12863_v23 = vld [vmem:[%s15297_s8 + $0xb4] sm:$0xf0] }
 0x580   :  { %v7881_v62 = vadd.f32 %v7880_v1, %v7496_v29  ;;  %v14033_v1 = vld [vmem:[%s15296_s7] sm:$0xff]  ;;  %v12866_v44 = vor.u32 %v14070_v24, %v12863_v23  ;;  %v14072_v29 = vld [vmem:[%s15297_s8 + $0xb8] sm:$0xf0]  ;;  %8076 = vmatpush.bf16.msrb.mxu1 %v14044_v31  ;;  %v12809_v24 = vld [vmem:[%s15297_s8 + $0x38] sm:$0xf] }
 0x581   :  { %v7893_v41 = vpop.f32.mrf.mxu1  ;;  %8066 = vmatpush.bf16.msrb.mxu0 %v14033_v1  ;;  %v14055_v1 = vld [vmem:[%s15297_s8 + $0x34] sm:$0xf]  ;;  %v14057_v23 = vld [vmem:[%s15297_s8 + $0x40] sm:$0xf0] }
 0x582   :  { %7918 = vmatmul.bf16.vlgmr.msra.gmra.mxu3 %v7099_v30  ;;  %v14876_v36 = vadd.f32 %v7893_v41, %v7881_v62  ;;  %v14059_v30 = vld [vmem:[%s15297_s8 + $0x50] sm:$0xf0]  ;;  %v12909_v41 = vld [vmem:[%s15297_s8 + $0x108] sm:$0xf]  ;;  %v12806_v61 = vor.u32 %v14055_v1, %v12803_v49 }
 0x583   :  { %8447 = vmatpush.bf16.msrb.mxu3 %v12958_v38  ;;  %v12814_v7 = vor.u32 %v14059_v30, %v12813_v51  ;;  %v12846_v38 = vor.u32 %v14066_v9, %v12845_v53  ;;  %v14042_v51 = vld [vmem:[%s15296_s7 + $0x48] sm:$0xff]  ;;  %v12886_v30 = vor.u32 %v14077_v56, %v12885_v17  ;;  %v12782_v53 = vor.u32 %v14049_v18, %v12779_v2  ;;  %v12923_v9 = vld [vmem:[%s15297_s8 + $0x12c] sm:$0xf0]  ;;  %v14051_v17 = vld [vmem:[%s15297_s8 + $0x10] sm:$0xf0] }
 0x584   :  { %8077 = vmatpush.bf16.msrb.mxu1 %v14043_v13 }
 0x585   :  { %8438 = vmatpush.bf16.msrb.mxu2 %v12814_v7  ;;  %8460 = vmatpush.bf16.msra.mxu0 %v12866_v44  ;;  %v12827_v7 = vld [vmem:[%s15297_s8 + $0x6c] sm:$0xf0]  ;;  %v12810_v44 = vor.u32 %v14057_v23, %v12809_v24  ;;  %v12881_v23 = vld [vmem:[%s15297_s8 + $0xc8] sm:$0xf] }
 0x586   :  { %v12875_v24 = vld [vmem:[%s15297_s8 + $0xcc] sm:$0xf0] }
 0x587   :  { %v7882_v27 = vpop.f32.mrf.mxu0  ;;  %8448 = vmatpush.bf16.msrb.mxu3 %v12946_v52  ;;  %v14058_v52 = vld [vmem:[%s15297_s8 + $0x4c] sm:$0xf] }
 0x588   :  { %v12869_v27 = vld [vmem:[%s15297_s8 + $0xb0] sm:$0xf]  ;;  %8078 = vmatpush.bf16.msrb.mxu1 %v14042_v51  ;;  %v12818_v3 = vor.u32 %v14058_v52, %v12815_v19  ;;  %v12905_v19 = vld [vmem:[%s15297_s8 + $0xf8] sm:$0xf] }
 0x589   :  { %v7895_v43 = vpop.f32.mrf.mxu1  ;;  %8439 = vmatpush.bf16.msrb.mxu2 %v12802_v8  ;;  %v12870_v62 = vor.u32 %v14072_v29, %v12869_v27  ;;  %v14041_v8 = vld [vmem:[%s15296_s7 + $0x40] sm:$0xff]  ;;  %v12953_v29 = vld [vmem:[%s15297_s8 + $0x158] sm:$0xf] }
 0x58a   :  { %v14083_v43 = vld [vmem:[%s15297_s8 + $0x110] sm:$0xf0] }
 0x58b   :  { %8449 = vmatpush.bf16.msrb.mxu3 %v12934_v0  ;;  %v12910_v42 = vor.u32 %v14083_v43, %v12909_v41  ;;  %v12965_v0 = vld [vmem:[%s15297_s8 + $0x170] sm:$0xf] }
 0x58c   :  { %8079 = vmatpush.bf16.msrb.mxu1 %v14041_v8  ;;  %v12966_v60 = vor.u32 %v14096_v21, %v12965_v0  ;;  %v14079_v8 = vld [vmem:[%s15297_s8 + $0xf4] sm:$0xf]  ;;  %v12887_v0 = vld [vmem:[%s15297_s8 + $0xe4] sm:$0xf0]  ;;  %v12893_v21 = vld [vmem:[%s15297_s8 + $0xe0] sm:$0xf] }
 0x58d   :  { %8440 = vmatpush.bf16.msrb.mxu2 %v12790_v39  ;;  %v12962_v39 = vor.u32 %v14094_v32, %v12959_v63  ;;  %v12890_v49 = vor.u32 %v14076_v57, %v12887_v0 }
 0x58f   :  { %8450 = vmatpush.bf16.msrb.mxu3 %v12922_v11  ;;  %v12947_v11 = vld [vmem:[%s15297_s8 + $0x15c] sm:$0xf0] }
 0x590   :  { %8473 = vmatpush.bf16.msra.mxu1 %v12962_v39 }
 0x591   :  { %8441 = vmatpush.bf16.msrb.mxu2 %v12778_v10  ;;  %v14091_v10 = vld [vmem:[%s15297_s8 + $0x154] sm:$0xf] }
 0x592   :  { %v12950_v27 = vor.u32 %v14091_v10, %v12947_v11  ;;  %v14073_v11 = vld [vmem:[%s15297_s8 + $0xc4] sm:$0xf] }
 0x593   :  { %8451 = vmatpush.bf16.msrb.mxu3 %v12910_v42  ;;  %v14052_v42 = vld [vmem:[%s15297_s8 + $0x1c] sm:$0xf] }
 0x594   :  { %8474 = vmatpush.bf16.msra.mxu1 %v12950_v27 }
 0x595   :  { %8486 = vmatpush.bf16.msra.mxu2 %v12870_v62  ;;  %v14093_v62 = vld [vmem:[%s15297_s8 + $0x160] sm:$0xf0] }
 0x596   :  { %v12954_v43 = vor.u32 %v14093_v62, %v12953_v29  ;;  %v12878_v62 = vor.u32 %v14073_v11, %v12875_v24 }
 0x597   :  { %8452 = vmatpush.bf16.msrb.mxu3 %v12898_v59  ;;  %v12942_v59 = vor.u32 %v14090_v5, %v12941_v46 }
 0x599   :  { %8487 = vmatpush.bf16.msra.mxu2 %v12858_v25 }
 0x59b   :  { %8453 = vmatpush.bf16.msrb.mxu3 %v12886_v30  ;;  %v12929_v30 = vld [vmem:[%s15297_s8 + $0x128] sm:$0xf] }
 0x59d   :  { %8488 = vmatpush.bf16.msra.mxu2 %v12846_v38  ;;  %v12785_v38 = vld [vmem:[%s15297_s8 + $0x8] sm:$0xf] }
 0x59e   :  { %v12786_v51 = vor.u32 %v14051_v17, %v12785_v38  ;;  %v14100_v38 = vld [vmem:[%s15298_s9 + $0x18] sm:$0xff]  ;;  %v14110_v17 = vld [vmem:[%s15298_s9 + $0x68] sm:$0xff] }
 0x59f   :  { %8454 = vmatpush.bf16.msrb.mxu3 %v12874_v14  ;;  %v12899_v14 = vld [vmem:[%s15297_s8 + $0xfc] sm:$0xf0] }
 0x5a0   :  { %v12902_v4 = vor.u32 %v14079_v8, %v12899_v14  ;;  %v14113_v14 = vld [vmem:[%s15298_s9 + $0x80] sm:$0xff] }
 0x5a1   :  { %8489 = vmatpush.bf16.msra.mxu2 %v12834_v55  ;;  %v12917_v55 = vld [vmem:[%s15297_s8 + $0x110] sm:$0xf] }
 0x5a2   :  { %v12918_v52 = vor.u32 %v14084_v54, %v12917_v55  ;;  %v14105_v55 = vld [vmem:[%s15298_s9 + $0x40] sm:$0xff]  ;;  %v14114_v54 = vld [vmem:[%s15298_s9 + $0x88] sm:$0xff] }
 0x5a3   :  { %8499 = vmatpush.bf16.msra.mxu3 %v12966_v60 }
 0x5a5   :  { %8490 = vmatpush.bf16.msra.mxu2 %v12822_v22  ;;  %v14078_v22 = vld [vmem:[%s15297_s8 + $0xe8] sm:$0xf0] }
 0x5a7   :  { %v14878_v16 = vpop.f32.mrf.mxu2  ;;  %8500 = vmatpush.bf16.msra.mxu3 %v12954_v43 }
 0x5a8   :  { %v7392_v41 = vadd.f32 %v14878_v16, %v14872_v34  ;;  %v12935_v16 = vld [vmem:[%s15297_s8 + $0x144] sm:$0xf0] }
 0x5a9   :  { %8491 = vmatpush.bf16.msra.mxu2 %v12810_v44 }
 0x5ab   :  { %8501 = vmatpush.bf16.msra.mxu3 %v12942_v59 }
 0x5af   :  { %v7393_v37 = vpop.f32.mrf.mxu2 }
 0x5b0   :  { %v12854_v37 = vor.u32 %v14067_v45, %v12851_v47  ;;  %v12791_v45 = vld [vmem:[%s15297_s8 + $0x24] sm:$0xf0]  ;;  %v14088_v47 = vld [vmem:[%s15297_s8 + $0x13c] sm:$0xf] }
 0x5b1   :  { %v12794_v34 = vor.u32 %v14052_v42, %v12791_v45  ;;  %v12938_v25 = vor.u32 %v14088_v47, %v12935_v16  ;;  %v14104_v47 = vld [vmem:[%s15298_s9 + $0x38] sm:$0xff] }
 0x5b2   :  { %8461 = vmatpush.bf16.msra.mxu0 %v12854_v37 }
 0x5b3   :  { %8475 = vmatpush.bf16.msra.mxu1 %v12938_v25 }
 0x5b6   :  { %8462 = vmatpush.bf16.msra.mxu0 %v12842_v15  ;;  %v14085_v15 = vld [vmem:[%s15297_s8 + $0x124] sm:$0xf] }
 0x5b7   :  { %v14925_v35 = vpop.f32.mrf.mxu2  ;;  %v12926_v56 = vor.u32 %v14085_v15, %v12923_v9  ;;  %v14112_v15 = vld [vmem:[%s15298_s9 + $0x78] sm:$0xff]  ;;  %v14111_v9 = vld [vmem:[%s15298_s9 + $0x70] sm:$0xff] }
 0x5b8   :  { %v7855_v60 = vadd.f32 %v14925_v35, %v14874_v26  ;;  %v14075_v26 = vld [vmem:[%s15297_s8 + $0xd0] sm:$0xf0] }
 0x5b9   :  { %8476 = vmatpush.bf16.msra.mxu1 %v12926_v56  ;;  %v14099_v56 = vld [vmem:[%s15298_s9 + $0x10] sm:$0xff] }
 0x5bd   :  { %8477 = vmatpush.bf16.msra.mxu1 %v12914_v33 }
 0x5bf   :  { %v7856_v12 = vpop.f32.mrf.mxu2 }
 0x5c0   :  { %v12830_v12 = vor.u32 %v14061_v6, %v12827_v7  ;;  %v14087_v6 = vld [vmem:[%s15297_s8 + $0x130] sm:$0xf0] }
 0x5c1   :  { %v12930_v7 = vor.u32 %v14087_v6, %v12929_v30  ;;  %8478 = vmatpush.bf16.msra.mxu1 %v12902_v4  ;;  %v14098_v30 = vld [vmem:[%s15298_s9 + $0x8] sm:$0xff]  ;;  %v14108_v6 = vld [vmem:[%s15298_s9 + $0x58] sm:$0xff] }
 0x5c2   :  { %8463 = vmatpush.bf16.msra.mxu0 %v12830_v12 }
 0x5c3   :  { %8502 = vmatpush.bf16.msra.mxu3 %v12930_v7  ;;  %v14097_v7 = vld [vmem:[%s15298_s9] sm:$0xff] }
 0x5c5   :  { %8479 = vmatpush.bf16.msra.mxu1 %v12890_v49 }
 0x5c6   :  { %8464 = vmatpush.bf16.msra.mxu0 %v12818_v3  ;;  %v14081_v3 = vld [vmem:[%s15297_s8 + $0x100] sm:$0xf0] }
 0x5c7   :  { %v14972_v20 = vpop.f32.mrf.mxu2  ;;  %8503 = vmatpush.bf16.msra.mxu3 %v12918_v52  ;;  %v12906_v39 = vor.u32 %v14081_v3, %v12905_v19  ;;  %v8170_v52 = vld [vmem:[#allocation2 + $0xe] sm:$0x7] }
 0x5c9   :  { %8480 = vmatpush.bf16.msra.mxu1 %v12878_v62 }
 0x5ca   :  { %8465 = vmatpush.bf16.msra.mxu0 %v12806_v61  ;;  %v12894_v61 = vor.u32 %v14078_v22, %v12893_v21 }
 0x5cb   :  { %8504 = vmatpush.bf16.msra.mxu3 %v12906_v39 }
 0x5ce   :  { %8466 = vmatpush.bf16.msra.mxu0 %v12794_v34 }
 0x5cf   :  { %v7908_v40 = vpop.f32.mrf.mxu2  ;;  %8505 = vmatpush.bf16.msra.mxu3 %v12894_v61  ;;  %v8173_v61 = vperm.slane %v8170_v52, 1 }
 0x5d0   :  { %v12798_v40 = vor.u32 %v14054_v58, %v12797_v50 }
 0x5d2   :  { %8492 = vmatpush.bf16.msra.mxu2 %v12798_v40  ;;  %8467 = vmatpush.bf16.msra.mxu0 %v12782_v53  ;;  %v7907_v40 = vadd.f32 %v14972_v20, %v14876_v36  ;;  %v14103_v36 = vld [vmem:[%s15298_s9 + $0x30] sm:$0xff]  ;;  %v14102_v20 = vld [vmem:[%s15298_s9 + $0x28] sm:$0xff]  ;;  %v14101_v53 = vld [vmem:[%s15298_s9 + $0x20] sm:$0xff] }
 0x5d6   :  { %8493 = vmatpush.bf16.msra.mxu2 %v12786_v51  ;;  %v14109_v51 = vld [vmem:[%s15298_s9 + $0x60] sm:$0xff] }
 0x5e5   :  { %v7404_v31 = vpop.f32.mrf.mxu3 }
 0x5e6   :  { %v7405_v37 = vadd.f32 %v7404_v31, %v7392_v41  ;;  %v12882_v41 = vor.u32 %v14075_v26, %v12881_v23 }
 0x5e8   :  { %v12453_v13 = vmul.f32 -1.442695, %v7405_v37  ;;  %8506 = vmatpush.bf16.msra.mxu3 %v12882_v41 }
 0x5ea   :  { %14135 = vpow2.f32 %v12453_v13 }
 0x5ed   :  { %v7406_v12 = vpop.f32.mrf.mxu3 }
 0x5ee   :  { %v14107_v12 = vld [vmem:[%s15298_s9 + $0x50] sm:$0xff] }
 0x5f0   :  { %v14136_v32 = vpop.eup %14135 }
 0x5f1   :  { %v7411_v63 = vadd.f32 1.0, %v14136_v32  ;;  %v8172_v32 = vperm.slane %v8170_v52, 0 }
 0x5f3   :  { %14137 = vrcp.f32 %v7411_v63  ;;  %v7423_v42 = vand.u32 2147483648, %v7411_v63  ;;  %v7421_v34 = vand.u32 2147483647, %v7411_v63  ;;  %vm7417_vm7 = vweird.f32 %v7411_v63 }
 0x5f5   :  { %v7867_v1 = vpop.f32.mrf.mxu3  ;;  %v7424_v50 = vor.u32 1.1754944e-38, %v7423_v42  ;;  %vm7422_vm10 = vcmp.eq.f32.partialorder %v7421_v34, 8.507059e+37 }
 0x5f6   :  { %v7868_v10 = vadd.f32 %v7867_v1, %v7855_v60 }
 0x5f8   :  { %vm7923_vm5 = vcmp.ge.f32.partialorder %v7868_v10, 0.0  ;;  %v7925_v35 = vmul.f32 0.2, %v7868_v10 }
 0x5f9   :  { %v14138_v27 = vpop.eup %14137 }
 0x5fa   :  { %v7413_v44 = vmul.f32 %v14138_v27, %v7411_v63  ;;  %v7927_v29 = vsel %vm7923_vm5, %v7868_v10, %v7925_v35  ;;  %vm7418_vm6 = vweird.f32 %v14138_v27 }
 0x5fb   :  { %v7929_v43 = vpack.c.bf16 %v7927_v29, %v7927_v29  ;;  %vm7419_vm8 = vmor %vm7417_vm7, %vm7418_vm6  ;;  %v8174_v29 = vperm.slane %v8170_v52, 2 }
 0x5fc   :  { %v7414_v31 = vsub.f32 1.0, %v7413_v44 }
 0x5fd   :  { %v7869_v45 = vpop.f32.mrf.mxu3  ;;  %8067 = vmatmul.bf16.vlgmr.msrb.gmra.mxu0 %v7929_v43  ;;  %8442 = vmatmul.bf16.vlgmr.msrb.gmra.mxu2 %v7929_v43 }
 0x5fe   :  { %v7415_v37 = vmul.f32 %v14138_v27, %v7414_v31  ;;  %8672 = vmatpush.bf16.msrb.mxu0 %v14104_v47  ;;  %8704 = vmatpush.bf16.msrb.mxu2 %v14114_v54 }
 0x600   :  { %v7416_v16 = vadd.f32 %v14138_v27, %v7415_v37 }
 0x602   :  { %v7420_v58 = vsel %vm7419_vm8, %v14138_v27, %v7416_v16  ;;  %8673 = vmatpush.bf16.msrb.mxu0 %v14103_v36  ;;  %8705 = vmatpush.bf16.msrb.mxu2 %v14113_v14  ;;  %vm8730_vm8 = vcmask 66560  }
 0x603   :  { %v7425_v25 = vsel %vm7422_vm10, %v7424_v50, %v7420_v58 }
 0x604   :  { %7428 = vst.msk [vmem:[%s15299_s10 + $0x4] sm:$0x3] %vm7427_vm9, %v7425_v25 }
 0x605   :  { %v7919_v46 = vpop.f32.mrf.mxu3 }
 0x606   :  { %v7920_v5 = vadd.f32 %v7919_v46, %v7907_v40  ;;  %8674 = vmatpush.bf16.msrb.mxu0 %v14102_v20 }
 0x608   :  { %vm7924_vm11 = vcmp.ge.f32.partialorder %v7920_v5, 0.0  ;;  %v7926_v13 = vmul.f32 0.2, %v7920_v5 }
 0x60a   :  { %v7928_v59 = vsel %vm7924_vm11, %v7920_v5, %v7926_v13  ;;  %8675 = vmatpush.bf16.msrb.mxu0 %v14101_v53 }
 0x60b   :  { %v7930_v18 = vpack.c.bf16 %v7928_v59, %v7928_v59 }
 0x60d   :  { %v7921_v2 = vpop.f32.mrf.mxu3  ;;  %8080 = vmatmul.bf16.vlgmr.msrb.gmra.mxu1 %v7930_v18  ;;  %8455 = vmatmul.bf16.vlgmr.msrb.gmra.mxu3 %v7930_v18 }
 0x60e   :  { %8468 = vmatmul.bf16.vlgmr.msra.gmra.mxu0 %v7929_v43  ;;  %8494 = vmatmul.bf16.vlgmr.msra.gmra.mxu2 %v7929_v43 }
 0x60f   :  { %8685 = vmatpush.bf16.msrb.mxu1 %v14112_v15  ;;  %8676 = vmatpush.bf16.msrb.mxu0 %v14100_v38 }
 0x613   :  { %8686 = vmatpush.bf16.msrb.mxu1 %v14111_v9  ;;  %8677 = vmatpush.bf16.msrb.mxu0 %v14099_v56 }
 0x617   :  { %8687 = vmatpush.bf16.msrb.mxu1 %v14110_v17  ;;  %8678 = vmatpush.bf16.msrb.mxu0 %v14098_v30 }
 0x61b   :  { %8688 = vmatpush.bf16.msrb.mxu1 %v14109_v51  ;;  %8679 = vmatpush.bf16.msrb.mxu0 %v14097_v7 }
 0x61d   :  { %8481 = vmatmul.bf16.vlgmr.msra.gmra.mxu1 %v7930_v18  ;;  %8507 = vmatmul.bf16.vlgmr.msra.gmra.mxu3 %v7930_v18 }
 0x61f   :  { %8689 = vmatpush.bf16.msrb.mxu1 %v14108_v6 }
 0x623   :  { %8690 = vmatpush.bf16.msrb.mxu1 %v14107_v12 }
 0x627   :  { %8691 = vmatpush.bf16.msrb.mxu1 %v14106_v48 }
 0x62b   :  { %8692 = vmatpush.bf16.msrb.mxu1 %v14105_v55 }
 0x67a   :  { %v8068_v28 = vpop.f32.mrf.mxu0 }
 0x680   :  { %v8443_v33 = vpop.f32.mrf.mxu2 }
 0x681   :  { %v8444_v57 = vadd.f32 %v8443_v33, %v8172_v32 }
 0x682   :  { %v8070_v8 = vpop.f32.mrf.mxu0 }
 0x688   :  { %v8445_v19 = vpop.f32.mrf.mxu2 }
 0x68a   :  { %v8081_v3 = vpop.f32.mrf.mxu1 }
 0x68b   :  { %v8082_v63 = vadd.f32 %v8081_v3, %v8068_v28  ;;  %v8469_v4 = vpop.f32.mrf.mxu0 }
 0x68c   :  { %v8470_v35 = vadd.f32 %v8469_v4, %v8173_v61 }
 0x68d   :  { %v12774_v39 = vmul.f32 -1.442695, %v8082_v63 }
 0x68f   :  { %14139 = vpow2.f32 %v12774_v39 }
 0x690   :  { %v8456_v0 = vpop.f32.mrf.mxu3 }
 0x691   :  { %v8457_v21 = vadd.f32 %v8456_v0, %v8444_v57  ;;  %v8495_v22 = vpop.f32.mrf.mxu2 }
 0x692   :  { %v8083_v60 = vpop.f32.mrf.mxu1  ;;  %v8496_v42 = vadd.f32 %v8495_v22, %v8174_v29 }
 0x693   :  { %vm8512_vm12 = vcmp.ge.f32.partialorder %v8457_v21, 0.0  ;;  %v8515_v1 = vmul.f32 0.2, %v8457_v21  ;;  %v8471_v49 = vpop.f32.mrf.mxu0 }
 0x695   :  { %v14140_v10 = vpop.eup %14139  ;;  %v8518_v11 = vsel %vm8512_vm12, %v8457_v21, %v8515_v1 }
 0x696   :  { %v8088_v24 = vadd.f32 1.0, %v14140_v10  ;;  %v8521_v23 = vpack.c.bf16 %v8518_v11, %v8518_v11 }
 0x698   :  { %14141 = vrcp.f32 %v8088_v24  ;;  %v8458_v26 = vpop.f32.mrf.mxu3  ;;  %8680 = vmatmul.bf16.vlgmr.msrb.gmra.mxu0 %v8521_v23  ;;  %v8098_v50 = vand.u32 2147483647, %v8088_v24  ;;  %v8100_v58 = vand.u32 2147483648, %v8088_v24  ;;  %vm8094_vm0 = vweird.f32 %v8088_v24 }
 0x699   :  { %v8497_v27 = vpop.f32.mrf.mxu2 }
 0x69a   :  { %v8482_v44 = vpop.f32.mrf.mxu1  ;;  %v8101_v59 = vor.u32 1.1754944e-38, %v8100_v58  ;;  %vm8099_vm4 = vcmp.eq.f32.partialorder %v8098_v50, 8.507059e+37 }
 0x69b   :  { %v8483_v62 = vadd.f32 %v8482_v44, %v8470_v35 }
 0x69d   :  { %vm8513_vm13 = vcmp.ge.f32.partialorder %v8483_v62, 0.0  ;;  %v8516_v41 = vmul.f32 0.2, %v8483_v62 }
 0x69e   :  { %v14142_v43 = vpop.eup %14141 }
 0x69f   :  { %v8090_v31 = vmul.f32 %v14142_v43, %v8088_v24  ;;  %v8519_v45 = vsel %vm8513_vm13, %v8483_v62, %v8516_v41  ;;  %vm8095_vm14 = vweird.f32 %v14142_v43 }
 0x6a0   :  { %v8522_v47 = vpack.c.bf16 %v8519_v45, %v8519_v45  ;;  %v8508_v37 = vpop.f32.mrf.mxu3  ;;  %vm8096_vm2 = vmor %vm8094_vm0, %vm8095_vm14 }
 0x6a1   :  { %v8091_v34 = vsub.f32 1.0, %v8090_v31  ;;  %v8509_v16 = vadd.f32 %v8508_v37, %v8496_v42 }
 0x6a2   :  { %v8484_v25 = vpop.f32.mrf.mxu1  ;;  %8693 = vmatmul.bf16.vlgmr.msrb.gmra.mxu1 %v8522_v47 }
 0x6a3   :  { %v8092_v40 = vmul.f32 %v14142_v43, %v8091_v34  ;;  %vm8514_vm15 = vcmp.ge.f32.partialorder %v8509_v16, 0.0  ;;  %v8517_v46 = vmul.f32 0.2, %v8509_v16 }
 0x6a5   :  { %v8093_v5 = vadd.f32 %v14142_v43, %v8092_v40  ;;  %v8520_v13 = vsel %vm8514_vm15, %v8509_v16, %v8517_v46 }
 0x6a6   :  { %v8523_v18 = vpack.c.bf16 %v8520_v13, %v8520_v13 }
 0x6a7   :  { %v8097_v2 = vsel %vm8096_vm2, %v14142_v43, %v8093_v5 }
 0x6a8   :  { %v8102_v36 = vsel %vm8099_vm4, %v8101_v59, %v8097_v2  ;;  %v8510_v20 = vpop.f32.mrf.mxu3  ;;  %13039 = vmatmul.msk.bf16.vlgmr.msrb.gmra.mxu2 %vm8668_vm1, %v8523_v18 }
 0x6a9   :  { %8105 = vst.msk [vmem:[%s15299_s10 + $0x6] sm:$0x3] %vm8104_vm3, %v8102_v36 }
 0x715   :  { %v8681_v15 = vpop.f32.mrf.mxu0 }
 0x71d   :  { %v8683_v53 = vpop.f32.mrf.mxu0 }
 0x71f   :  { %v8694_v9 = vpop.f32.mrf.mxu1 }
 0x720   :  { %v8695_v17 = vadd.f32 %v8694_v9, %v8681_v15 }
 0x727   :  { %v8696_v38 = vpop.f32.mrf.mxu1 }
 0x72b   :  { %v8707_v56 = vpop.f32.mrf.mxu2 }
 0x72c   :  { %v8708_v51 = vadd.f32 %v8707_v56, %v8695_v17 }
 0x72e   :  { %v13040_v30 = vmul.f32 -1.442695, %v8708_v51 }
 0x730   :  { %14143 = vpow2.f32 %v13040_v30 }
 0x733   :  { %v8709_v6 = vpop.f32.mrf.mxu2 }
 0x736   :  { %v14144_v7 = vpop.eup %14143 }
 0x737   :  { %v8714_v12 = vadd.f32 1.0, %v14144_v7 }
 0x739   :  { %14145 = vrcp.f32 %v8714_v12  ;;  %v8726_v33 = vand.u32 2147483648, %v8714_v12  ;;  %v8724_v8 = vand.u32 2147483647, %v8714_v12  ;;  %vm8720_vm6 = vweird.f32 %v8714_v12 }
 0x73b   :  { %v8727_v52 = vor.u32 1.1754944e-38, %v8726_v33  ;;  %vm8725_vm9 = vcmp.eq.f32.partialorder %v8724_v8, 8.507059e+37 }
 0x73f   :  { %v14146_v28 = vpop.eup %14145 }
 0x740   :  { %v8716_v48 = vmul.f32 %v14146_v28, %v8714_v12  ;;  %vm8721_vm5 = vweird.f32 %v14146_v28 }
 0x741   :  { %vm8722_vm7 = vmor %vm8720_vm6, %vm8721_vm5 }
 0x742   :  { %v8717_v55 = vsub.f32 1.0, %v8716_v48 }
 0x744   :  { %v8718_v54 = vmul.f32 %v14146_v28, %v8717_v55 }
 0x746   :  { %v8719_v14 = vadd.f32 %v14146_v28, %v8718_v54 }
 0x748   :  { %v8723_v19 = vsel %vm8722_vm7, %v14146_v28, %v8719_v14 }
 0x749   :  { %v8728_v3 = vsel %vm8725_vm9, %v8727_v52, %v8723_v19 }
 0x74a   :  { %8731 = vst.msk [vmem:[%s15299_s10 + $0x8] sm:$0x3] %vm8730_vm8, %v8728_v3 }
 0x74b   :  { %8736 = vsyncpa [#allocation3], 1 }
 0x74c   :  { %8737 = vsyncpa [#allocation5], 1 }
 0x74d   :  { %8738 = vsyncpa [#allocation8], 1 }

</bundles_post_ra>
